<compile_context>
chip_gen: v5e
topology: v5e:2x2
jax: 0.10.0
libtpu: 0.0.40
codegen_flags: <defaults>
</compile_context>

<pallas_src>
import functools

import jax
import jax.numpy as jnp
from jax.experimental import pallas as pl
from jax.experimental.pallas import tpu as pltpu


# ---------------------------------------------------------------------------
# Fused per-stage kernel: q1 -> q2 -> q3 -> attention -> fin
# (one batch element per grid step)
# ---------------------------------------------------------------------------
def _fse_stage_kernel(fac_ref, x_ref, w1_ref, b1_ref, w2_ref, b2_ref,
                      w3_ref, b3_ref, wf_ref, bf_ref, o_ref, pad_ref,
                      *, num_heads):
    # fac_ref: (1, 1) scalar in SMEM
    # x_ref:   (1, H, W, C)        NHWC input tile
    # w1_ref:  (C, 3C), b1_ref: (1, 3C)              1x1 conv (q1)
    # w2_ref / w3_ref: (3, 3, 3C), b*_ref: (1, 3C)   depthwise 3x3 (q2/q3)
    # wf_ref:  (C, C),  bf_ref: (1, C)               1x1 conv (fin)
    # o_ref:   (1, H, W, C)
    # pad_ref: (H+2, W+2, 3C) f32 VMEM scratch with a zero halo.
    H, W, C = x_ref.shape[1], x_ref.shape[2], x_ref.shape[3]
    C3 = w1_ref.shape[1]
    dh = C // num_heads
    fac = fac_ref[0, 0]

    # Zero the halo buffer once per grid step; the interior is fully rewritten
    # below, so the 1-element zero border is shared by both depthwise passes.
    pad_ref[...] = jnp.zeros_like(pad_ref)

    # --- q1: 1x1 conv == a single (H*W, C) @ (C, 3C) MXU matmul, f32 acc ---
    x = x_ref[0].astype(jnp.float32).reshape(H * W, C)
    y = jnp.dot(x, w1_ref[...], preferred_element_type=jnp.float32) + b1_ref[0]
    y = y.reshape(H, W, C3)

    def depthwise3x3(w_tap_ref, b_tap_ref):
        # Reads each shifted 3x3 tap directly from the padded VMEM ref
        # (padding folded in via the zero halo); per-channel multiply-
        # accumulate on the VPU in f32.
        w = w_tap_ref[...]                              # (3, 3, 3C), one load
        acc = jnp.zeros((H, W, C3), jnp.float32)
        for ky in range(3):
            for kx in range(3):
                acc = acc + pad_ref[ky:ky + H, kx:kx + W, :] * w[ky, kx]
        return acc + b_tap_ref[0]

    pad_ref[1:H + 1, 1:W + 1, :] = y
    y = depthwise3x3(w2_ref, b2_ref)                    # q2
    pad_ref[1:H + 1, 1:W + 1, :] = y                    # halo stays zero
    qkv = depthwise3x3(w3_ref, b3_ref)                  # q3: (H, W, 3C) f32

    # --- per-row attention over W (batched over the H rows), per head ------
    heads = []
    for h in range(num_heads):
        lo = h * dh
        q = qkv[:, :, lo:lo + dh]
        k = qkv[:, :, C + lo:C + lo + dh]
        v = qkv[:, :, 2 * C + lo:2 * C + lo + dh]
        # F.normalize(dim=-1): x / max(||x||_2, 1e-12)
        q = q / jnp.maximum(jnp.sqrt(jnp.sum(q * q, -1, keepdims=True)), 1e-12)
        k = k / jnp.maximum(jnp.sqrt(jnp.sum(k * k, -1, keepdims=True)), 1e-12)
        s = jnp.einsum('hqd,hkd->hqk', q, k,
                       preferred_element_type=jnp.float32) * fac
        s = s - jnp.max(s, axis=-1, keepdims=True)
        p = jnp.exp(s)
        p = p * pl.reciprocal(jnp.sum(p, axis=-1, keepdims=True), approx=True)
        heads.append(jnp.einsum('hqk,hkd->hqd', p, v,
                                preferred_element_type=jnp.float32))
    r = heads[0] if num_heads == 1 else jnp.concatenate(heads, axis=-1)

    # --- fin: 1x1 conv fused in (one more MXU matmul) ----------------------
    out = jnp.dot(r.reshape(H * W, C), wf_ref[...],
                  preferred_element_type=jnp.float32) + bf_ref[0]
    o_ref[0] = out.reshape(H, W, C).astype(o_ref.dtype)


# ---------------------------------------------------------------------------
# Wrappers
# ---------------------------------------------------------------------------
def next_attention_impl_z(x_nhwc, p, num_heads):
    """One NextAttentionImplZ block. x_nhwc: (B, H, W, C) -> (B, H, W, C)."""
    B, H, W, C = x_nhwc.shape
    assert C % num_heads == 0
    C3 = 3 * C
    dtype = x_nhwc.dtype

    # TODO(synk): at production H/W, add a spatially-tiled grid (2-row halo DMA
    # for the stacked 3x3 convs) instead of one batch element per grid step;
    # at these sizes a per-batch block fits VMEM trivially.
    return pl.pallas_call(
        functools.partial(_fse_stage_kernel, num_heads=num_heads),
        out_shape=jax.ShapeDtypeStruct((B, H, W, C), dtype),
        grid=(B,),
        in_specs=[
            pl.BlockSpec(memory_space=pltpu.MemorySpace.SMEM),   # fac scalar
            pl.BlockSpec((1, H, W, C), lambda b: (b, 0, 0, 0)),
            pl.BlockSpec((C, C3), lambda b: (0, 0)),
            pl.BlockSpec((1, C3), lambda b: (0, 0)),
            pl.BlockSpec((3, 3, C3), lambda b: (0, 0, 0)),
            pl.BlockSpec((1, C3), lambda b: (0, 0)),
            pl.BlockSpec((3, 3, C3), lambda b: (0, 0, 0)),
            pl.BlockSpec((1, C3), lambda b: (0, 0)),
            pl.BlockSpec((C, C), lambda b: (0, 0)),
            pl.BlockSpec((1, C), lambda b: (0, 0)),
        ],
        out_specs=pl.BlockSpec((1, H, W, C), lambda b: (b, 0, 0, 0)),
        scratch_shapes=[pltpu.VMEM((H + 2, W + 2, C3), jnp.float32)],
        compiler_params=pltpu.CompilerParams(
            dimension_semantics=("parallel",)),
    )(p['fac'], x_nhwc, p['w1'], p['b1'], p['w2'], p['b2'], p['w3'], p['b3'],
      p['wf'], p['bf'])


def next_attention_z(x_nchw, p_row, p_col, num_heads=1):
    """NextAttentionZ.forward: row attention, transpose, column attention."""
    x = jnp.transpose(x_nchw, (0, 2, 3, 1))            # NCHW -> NHWC
    x = next_attention_impl_z(x, p_row, num_heads)
    x = jnp.transpose(x, (0, 2, 1, 3))                 # == .transpose(-2,-1)
    x = next_attention_impl_z(x, p_col, num_heads)
    x = jnp.transpose(x, (0, 2, 1, 3))
    return jnp.transpose(x, (0, 3, 1, 2))              # NHWC -> NCHW


# ---------------------------------------------------------------------------
# Parameters (PyTorch layouts) + conversion to kernel-friendly layouts
# ---------------------------------------------------------------------------
def init_impl_params(key, c, dtype=jnp.float32):
    c3 = 3 * c
    ks = jax.random.split(key, 9)
    return dict(
        w_q1=jax.random.normal(ks[0], (c3, c, 1, 1), dtype) * 0.3,
        b_q1=jax.random.normal(ks[1], (c3,), dtype) * 0.1,
        w_q2=jax.random.normal(ks[2], (c3, 1, 3, 3), dtype) * 0.3,
        b_q2=jax.random.normal(ks[3], (c3,), dtype) * 0.1,
        w_q3=jax.random.normal(ks[4], (c3, 1, 3, 3), dtype) * 0.3,
        b_q3=jax.random.normal(ks[5], (c3,), dtype) * 0.1,
        fac=jax.random.uniform(ks[6], (1,), dtype, 0.5, 1.5),
        w_fin=jax.random.normal(ks[7], (c, c, 1, 1), dtype) * 0.3,
        b_fin=jax.random.normal(ks[8], (c,), dtype) * 0.1,
    )


def to_kernel_params(p):
    return dict(
        w1=jnp.transpose(p['w_q1'][:, :, 0, 0], (1, 0)),        # (C, 3C)
        b1=p['b_q1'][None, :],                                  # (1, 3C)
        w2=jnp.transpose(p['w_q2'][:, 0, :, :], (1, 2, 0)),     # (3, 3, 3C)
        b2=p['b_q2'][None, :],
        w3=jnp.transpose(p['w_q3'][:, 0, :, :], (1, 2, 0)),
        b3=p['b_q3'][None, :],
        fac=p['fac'].reshape(1, 1).astype(jnp.float32),         # (1, 1) SMEM
        wf=jnp.transpose(p['w_fin'][:, :, 0, 0], (1, 0)),       # (C, C)
        bf=p['b_fin'][None, :],
    )


# ---------------------------------------------------------------------------
# Pure-JAX (XLA) reference for correctness checking
# ---------------------------------------------------------------------------
def _ref_impl(x, p, nh):
    B, C, H, W = x.shape
    dn = ("NCHW", "OIHW", "NCHW")
    hp = jax.lax.Precision.HIGHEST
    y = jax.lax.conv_general_dilated(x, p['w_q1'], (1, 1), 'VALID',
                                     dimension_numbers=dn, precision=hp)
    y = y + p['b_q1'][None, :, None, None]
    y = jax.lax.conv_general_dilated(y, p['w_q2'], (1, 1), ((1, 1), (1, 1)),
                                     dimension_numbers=dn,
                                     feature_group_count=3 * C, precision=hp)
    y = y + p['b_q2'][None, :, None, None]
    y = jax.lax.conv_general_dilated(y, p['w_q3'], (1, 1), ((1, 1), (1, 1)),
                                     dimension_numbers=dn,
                                     feature_group_count=3 * C, precision=hp)
    y = y + p['b_q3'][None, :, None, None]

    q, k, v = jnp.split(y, 3, axis=1)
    dh = C // nh

    def resh(t):   # 'n (nh dh) h w -> (n nh h) w dh'
        t = t.reshape(B, nh, dh, H, W)
        t = jnp.transpose(t, (0, 1, 3, 4, 2))
        return t.reshape(B * nh * H, W, dh)

    def l2n(t):
        return t / jnp.maximum(jnp.sqrt(jnp.sum(t * t, -1, keepdims=True)),
                               1e-12)

    q, k, v = resh(q), resh(k), resh(v)
    q, k = l2n(q), l2n(k)
    s = jnp.einsum('bqd,bkd->bqk', q, k, precision=hp) * p['fac'][0]
    s = jax.nn.softmax(s, axis=-1)
    r = jnp.einsum('bqk,bkd->bqd', s, v, precision=hp)
    r = r.reshape(B, nh, H, W, dh)
    r = jnp.transpose(r, (0, 1, 4, 2, 3)).reshape(B, C, H, W)
    r = jax.lax.conv_general_dilated(r, p['w_fin'], (1, 1), 'VALID',
                                     dimension_numbers=dn, precision=hp)
    return r + p['b_fin'][None, :, None, None]


def _ref_next_attention_z(x, p_row, p_col, nh):
    y = _ref_impl(x, p_row, nh)
    y = jnp.swapaxes(y, -2, -1)
    y = _ref_impl(y, p_col, nh)
    return jnp.swapaxes(y, -2, -1)


# ---------------------------------------------------------------------------
if __name__ == "__main__":
    B, C, H, W = 2, 4, 16, 16
    num_heads = 1

    key = jax.random.PRNGKey(0)
    k_x, k_row, k_col = jax.random.split(key, 3)
    x = jax.random.normal(k_x, (B, C, H, W), dtype=jnp.float32)

    p_row = init_impl_params(k_row, C)
    p_col = init_impl_params(k_col, C)

    out = next_attention_z(x, to_kernel_params(p_row), to_kernel_params(p_col),
                           num_heads=num_heads)
    out = jax.block_until_ready(out)

    ref = _ref_next_attention_z(x, p_row, p_col, num_heads)
    assert out.shape == (B, C, H, W)
    max_err = float(jnp.max(jnp.abs(out - ref)))
    assert jnp.allclose(out, ref, atol=2e-3, rtol=2e-3), (
        f"mismatch vs reference, max abs err = {max_err}")
    print("KERNEL_OK")
</pallas_src>

<mosaic_0001>
module attributes {stable_mosaic.version = 11 : i64} {
  func.func @_fse_stage_kernel(%arg0: i32, %arg1: memref<1x1xf32, #tpu.memory_space<smem>>, %arg2: memref<1x16x16x4xf32, #tpu.memory_space<vmem>>, %arg3: memref<4x12xf32, #tpu.memory_space<vmem>>, %arg4: memref<1x12xf32, #tpu.memory_space<vmem>>, %arg5: memref<3x3x12xf32, #tpu.memory_space<vmem>>, %arg6: memref<1x12xf32, #tpu.memory_space<vmem>>, %arg7: memref<3x3x12xf32, #tpu.memory_space<vmem>>, %arg8: memref<1x12xf32, #tpu.memory_space<vmem>>, %arg9: memref<4x4xf32, #tpu.memory_space<vmem>>, %arg10: memref<1x4xf32, #tpu.memory_space<vmem>>, %arg11: memref<1x16x16x4xf32, #tpu.memory_space<vmem>>, %arg12: memref<18x18x12xf32, #tpu.memory_space<vmem>>) attributes {dimension_semantics = [#tpu.dimension_semantics<parallel>], iteration_bounds = array<i64: 2>, scalar_prefetch = 0 : i64, scratch_operands = 1 : i64, tpu.core_type = #tpu.core_type<tc>, window_params = [{transform_indices = @transform_0, window_bounds = array<i64: 1, 1>}, {transform_indices = @transform_1, window_bounds = array<i64: 1, 16, 16, 4>}, {pipeline_mode = #tpu.pipeline_mode<synchronous>, transform_indices = @transform_2, window_bounds = array<i64: 4, 12>}, {pipeline_mode = #tpu.pipeline_mode<synchronous>, transform_indices = @transform_3, window_bounds = array<i64: 1, 12>}, {pipeline_mode = #tpu.pipeline_mode<synchronous>, transform_indices = @transform_4, window_bounds = array<i64: 3, 3, 12>}, {pipeline_mode = #tpu.pipeline_mode<synchronous>, transform_indices = @transform_5, window_bounds = array<i64: 1, 12>}, {pipeline_mode = #tpu.pipeline_mode<synchronous>, transform_indices = @transform_6, window_bounds = array<i64: 3, 3, 12>}, {pipeline_mode = #tpu.pipeline_mode<synchronous>, transform_indices = @transform_7, window_bounds = array<i64: 1, 12>}, {pipeline_mode = #tpu.pipeline_mode<synchronous>, transform_indices = @transform_8, window_bounds = array<i64: 4, 4>}, {pipeline_mode = #tpu.pipeline_mode<synchronous>, transform_indices = @transform_9, window_bounds = array<i64: 1, 4>}, {transform_indices = @transform_10, window_bounds = array<i64: 1, 16, 16, 4>}]} {
    %c0 = arith.constant 0 : index
    %c0_0 = arith.constant 0 : index
    %0 = memref.load %arg1[%c0, %c0_0] : memref<1x1xf32, #tpu.memory_space<smem>>
    %cst = arith.constant 0.000000e+00 : f32
    %1 = vector.broadcast %cst : f32 to vector<18x18x12xf32>
    %c0_1 = arith.constant 0 : index
    %c0_2 = arith.constant 0 : index
    %c0_3 = arith.constant 0 : index
    %2 = vector.load %arg12[%c0_1, %c0_2, %c0_3] : memref<18x18x12xf32, #tpu.memory_space<vmem>>, vector<18x18x12xf32>
    tpu.vector_store %arg12[%c0_1, %c0_2, %c0_3], %1 {strides = array<i32>} : memref<18x18x12xf32, #tpu.memory_space<vmem>>, vector<18x18x12xf32>,
    %c0_4 = arith.constant 0 : index
    %c0_5 = arith.constant 0 : index
    %c0_6 = arith.constant 0 : index
    %c0_7 = arith.constant 0 : index
    %3 = vector.load %arg2[%c0_4, %c0_5, %c0_6, %c0_7] : memref<1x16x16x4xf32, #tpu.memory_space<vmem>>, vector<1x16x16x4xf32>
    %4 = vector.shape_cast %3 : vector<1x16x16x4xf32> to vector<16x16x4xf32>
    %5 = vector.shape_cast %4 : vector<16x16x4xf32> to vector<256x4xf32>
    %c0_8 = arith.constant 0 : index
    %c0_9 = arith.constant 0 : index
    %6 = vector.load %arg3[%c0_8, %c0_9] : memref<4x12xf32, #tpu.memory_space<vmem>>, vector<4x12xf32>
    %cst_10 = arith.constant dense<0.000000e+00> : vector<256x12xf32>
    %7 = tpu.matmul %5, %6, %cst_10 {dimension_numbers = #tpu.dot_dimension_numbers<[1], [0], [0], [1], [0, 0, 1, 1], [], []>} : vector<256x4xf32>, vector<4x12xf32>, vector<256x12xf32> -> vector<256x12xf32>
    %c0_11 = arith.constant 0 : index
    %c0_12 = arith.constant 0 : index
    %8 = vector.load %arg4[%c0_11, %c0_12] : memref<1x12xf32, #tpu.memory_space<vmem>>, vector<1x12xf32>
    %9 = vector.shape_cast %8 : vector<1x12xf32> to vector<12xf32>
    %10 = vector.shape_cast %9 : vector<12xf32> to vector<1x12xf32>
    %11 = vector.broadcast %10 : vector<1x12xf32> to vector<256x12xf32>
    %12 = arith.addf %7, %11 : vector<256x12xf32>
    %13 = vector.shape_cast %12 : vector<256x12xf32> to vector<16x16x12xf32>
    %c1 = arith.constant 1 : index
    %c1_13 = arith.constant 1 : index
    %c0_14 = arith.constant 0 : index
    %14 = vector.load %arg12[%c1, %c1_13, %c0_14] : memref<18x18x12xf32, #tpu.memory_space<vmem>>, vector<16x16x12xf32>
    tpu.vector_store %arg12[%c1, %c1_13, %c0_14], %13 {strides = array<i32>} : memref<18x18x12xf32, #tpu.memory_space<vmem>>, vector<16x16x12xf32>,
    %c0_15 = arith.constant 0 : index
    %c0_16 = arith.constant 0 : index
    %c0_17 = arith.constant 0 : index
    %15 = vector.load %arg5[%c0_15, %c0_16, %c0_17] : memref<3x3x12xf32, #tpu.memory_space<vmem>>, vector<3x3x12xf32>
    %cst_18 = arith.constant 0.000000e+00 : f32
    %16 = vector.broadcast %cst_18 : f32 to vector<16x16x12xf32>
    %c0_19 = arith.constant 0 : index
    %c0_20 = arith.constant 0 : index
    %c0_21 = arith.constant 0 : index
    %17 = vector.load %arg12[%c0_19, %c0_20, %c0_21] : memref<18x18x12xf32, #tpu.memory_space<vmem>>, vector<16x16x12xf32>
    %18 = vector.extract_strided_slice %15 {offsets = [0, 0, 0], sizes = [1, 1, 12], strides = [1, 1, 1]} : vector<3x3x12xf32> to vector<1x1x12xf32>
    %19 = vector.shape_cast %18 : vector<1x1x12xf32> to vector<12xf32>
    %20 = vector.shape_cast %19 : vector<12xf32> to vector<1x1x12xf32>
    %21 = vector.broadcast %20 : vector<1x1x12xf32> to vector<16x16x12xf32>
    %22 = arith.mulf %17, %21 : vector<16x16x12xf32>
    %23 = arith.addf %16, %22 : vector<16x16x12xf32>
    %c0_22 = arith.constant 0 : index
    %c1_23 = arith.constant 1 : index
    %c0_24 = arith.constant 0 : index
    %24 = vector.load %arg12[%c0_22, %c1_23, %c0_24] : memref<18x18x12xf32, #tpu.memory_space<vmem>>, vector<16x16x12xf32>
    %25 = vector.extract_strided_slice %15 {offsets = [0, 1, 0], sizes = [1, 1, 12], strides = [1, 1, 1]} : vector<3x3x12xf32> to vector<1x1x12xf32>
    %26 = vector.shape_cast %25 : vector<1x1x12xf32> to vector<12xf32>
    %27 = vector.shape_cast %26 : vector<12xf32> to vector<1x1x12xf32>
    %28 = vector.broadcast %27 : vector<1x1x12xf32> to vector<16x16x12xf32>
    %29 = arith.mulf %24, %28 : vector<16x16x12xf32>
    %30 = arith.addf %23, %29 : vector<16x16x12xf32>
    %c0_25 = arith.constant 0 : index
    %c2 = arith.constant 2 : index
    %c0_26 = arith.constant 0 : index
    %31 = vector.load %arg12[%c0_25, %c2, %c0_26] : memref<18x18x12xf32, #tpu.memory_space<vmem>>, vector<16x16x12xf32>
    %32 = vector.extract_strided_slice %15 {offsets = [0, 2, 0], sizes = [1, 1, 12], strides = [1, 1, 1]} : vector<3x3x12xf32> to vector<1x1x12xf32>
    %33 = vector.shape_cast %32 : vector<1x1x12xf32> to vector<12xf32>
    %34 = vector.shape_cast %33 : vector<12xf32> to vector<1x1x12xf32>
    %35 = vector.broadcast %34 : vector<1x1x12xf32> to vector<16x16x12xf32>
    %36 = arith.mulf %31, %35 : vector<16x16x12xf32>
    %37 = arith.addf %30, %36 : vector<16x16x12xf32>
    %c1_27 = arith.constant 1 : index
    %c0_28 = arith.constant 0 : index
    %c0_29 = arith.constant 0 : index
    %38 = vector.load %arg12[%c1_27, %c0_28, %c0_29] : memref<18x18x12xf32, #tpu.memory_space<vmem>>, vector<16x16x12xf32>
    %39 = vector.extract_strided_slice %15 {offsets = [1, 0, 0], sizes = [1, 1, 12], strides = [1, 1, 1]} : vector<3x3x12xf32> to vector<1x1x12xf32>
    %40 = vector.shape_cast %39 : vector<1x1x12xf32> to vector<12xf32>
    %41 = vector.shape_cast %40 : vector<12xf32> to vector<1x1x12xf32>
    %42 = vector.broadcast %41 : vector<1x1x12xf32> to vector<16x16x12xf32>
    %43 = arith.mulf %38, %42 : vector<16x16x12xf32>
    %44 = arith.addf %37, %43 : vector<16x16x12xf32>
    %c1_30 = arith.constant 1 : index
    %c1_31 = arith.constant 1 : index
    %c0_32 = arith.constant 0 : index
    %45 = vector.load %arg12[%c1_30, %c1_31, %c0_32] : memref<18x18x12xf32, #tpu.memory_space<vmem>>, vector<16x16x12xf32>
    %46 = vector.extract_strided_slice %15 {offsets = [1, 1, 0], sizes = [1, 1, 12], strides = [1, 1, 1]} : vector<3x3x12xf32> to vector<1x1x12xf32>
    %47 = vector.shape_cast %46 : vector<1x1x12xf32> to vector<12xf32>
    %48 = vector.shape_cast %47 : vector<12xf32> to vector<1x1x12xf32>
    %49 = vector.broadcast %48 : vector<1x1x12xf32> to vector<16x16x12xf32>
    %50 = arith.mulf %45, %49 : vector<16x16x12xf32>
    %51 = arith.addf %44, %50 : vector<16x16x12xf32>
    %c1_33 = arith.constant 1 : index
    %c2_34 = arith.constant 2 : index
    %c0_35 = arith.constant 0 : index
    %52 = vector.load %arg12[%c1_33, %c2_34, %c0_35] : memref<18x18x12xf32, #tpu.memory_space<vmem>>, vector<16x16x12xf32>
    %53 = vector.extract_strided_slice %15 {offsets = [1, 2, 0], sizes = [1, 1, 12], strides = [1, 1, 1]} : vector<3x3x12xf32> to vector<1x1x12xf32>
    %54 = vector.shape_cast %53 : vector<1x1x12xf32> to vector<12xf32>
    %55 = vector.shape_cast %54 : vector<12xf32> to vector<1x1x12xf32>
    %56 = vector.broadcast %55 : vector<1x1x12xf32> to vector<16x16x12xf32>
    %57 = arith.mulf %52, %56 : vector<16x16x12xf32>
    %58 = arith.addf %51, %57 : vector<16x16x12xf32>
    %c2_36 = arith.constant 2 : index
    %c0_37 = arith.constant 0 : index
    %c0_38 = arith.constant 0 : index
    %59 = vector.load %arg12[%c2_36, %c0_37, %c0_38] : memref<18x18x12xf32, #tpu.memory_space<vmem>>, vector<16x16x12xf32>
    %60 = vector.extract_strided_slice %15 {offsets = [2, 0, 0], sizes = [1, 1, 12], strides = [1, 1, 1]} : vector<3x3x12xf32> to vector<1x1x12xf32>
    %61 = vector.shape_cast %60 : vector<1x1x12xf32> to vector<12xf32>
    %62 = vector.shape_cast %61 : vector<12xf32> to vector<1x1x12xf32>
    %63 = vector.broadcast %62 : vector<1x1x12xf32> to vector<16x16x12xf32>
    %64 = arith.mulf %59, %63 : vector<16x16x12xf32>
    %65 = arith.addf %58, %64 : vector<16x16x12xf32>
    %c2_39 = arith.constant 2 : index
    %c1_40 = arith.constant 1 : index
    %c0_41 = arith.constant 0 : index
    %66 = vector.load %arg12[%c2_39, %c1_40, %c0_41] : memref<18x18x12xf32, #tpu.memory_space<vmem>>, vector<16x16x12xf32>
    %67 = vector.extract_strided_slice %15 {offsets = [2, 1, 0], sizes = [1, 1, 12], strides = [1, 1, 1]} : vector<3x3x12xf32> to vector<1x1x12xf32>
    %68 = vector.shape_cast %67 : vector<1x1x12xf32> to vector<12xf32>
    %69 = vector.shape_cast %68 : vector<12xf32> to vector<1x1x12xf32>
    %70 = vector.broadcast %69 : vector<1x1x12xf32> to vector<16x16x12xf32>
    %71 = arith.mulf %66, %70 : vector<16x16x12xf32>
    %72 = arith.addf %65, %71 : vector<16x16x12xf32>
    %c2_42 = arith.constant 2 : index
    %c2_43 = arith.constant 2 : index
    %c0_44 = arith.constant 0 : index
    %73 = vector.load %arg12[%c2_42, %c2_43, %c0_44] : memref<18x18x12xf32, #tpu.memory_space<vmem>>, vector<16x16x12xf32>
    %74 = vector.extract_strided_slice %15 {offsets = [2, 2, 0], sizes = [1, 1, 12], strides = [1, 1, 1]} : vector<3x3x12xf32> to vector<1x1x12xf32>
    %75 = vector.shape_cast %74 : vector<1x1x12xf32> to vector<12xf32>
    %76 = vector.shape_cast %75 : vector<12xf32> to vector<1x1x12xf32>
    %77 = vector.broadcast %76 : vector<1x1x12xf32> to vector<16x16x12xf32>
    %78 = arith.mulf %73, %77 : vector<16x16x12xf32>
    %79 = arith.addf %72, %78 : vector<16x16x12xf32>
    %c0_45 = arith.constant 0 : index
    %c0_46 = arith.constant 0 : index
    %80 = vector.load %arg6[%c0_45, %c0_46] : memref<1x12xf32, #tpu.memory_space<vmem>>, vector<1x12xf32>
    %81 = vector.shape_cast %80 : vector<1x12xf32> to vector<12xf32>
    %82 = vector.shape_cast %81 : vector<12xf32> to vector<1x1x12xf32>
    %83 = vector.broadcast %82 : vector<1x1x12xf32> to vector<16x16x12xf32>
    %84 = arith.addf %79, %83 : vector<16x16x12xf32>
    %c1_47 = arith.constant 1 : index
    %c1_48 = arith.constant 1 : index
    %c0_49 = arith.constant 0 : index
    %85 = vector.load %arg12[%c1_47, %c1_48, %c0_49] : memref<18x18x12xf32, #tpu.memory_space<vmem>>, vector<16x16x12xf32>
    tpu.vector_store %arg12[%c1_47, %c1_48, %c0_49], %84 {strides = array<i32>} : memref<18x18x12xf32, #tpu.memory_space<vmem>>, vector<16x16x12xf32>,
    %c0_50 = arith.constant 0 : index
    %c0_51 = arith.constant 0 : index
    %c0_52 = arith.constant 0 : index
    %86 = vector.load %arg7[%c0_50, %c0_51, %c0_52] : memref<3x3x12xf32, #tpu.memory_space<vmem>>, vector<3x3x12xf32>
    %cst_53 = arith.constant 0.000000e+00 : f32
    %87 = vector.broadcast %cst_53 : f32 to vector<16x16x12xf32>
    %c0_54 = arith.constant 0 : index
    %c0_55 = arith.constant 0 : index
    %c0_56 = arith.constant 0 : index
    %88 = vector.load %arg12[%c0_54, %c0_55, %c0_56] : memref<18x18x12xf32, #tpu.memory_space<vmem>>, vector<16x16x12xf32>
    %89 = vector.extract_strided_slice %86 {offsets = [0, 0, 0], sizes = [1, 1, 12], strides = [1, 1, 1]} : vector<3x3x12xf32> to vector<1x1x12xf32>
    %90 = vector.shape_cast %89 : vector<1x1x12xf32> to vector<12xf32>
    %91 = vector.shape_cast %90 : vector<12xf32> to vector<1x1x12xf32>
    %92 = vector.broadcast %91 : vector<1x1x12xf32> to vector<16x16x12xf32>
    %93 = arith.mulf %88, %92 : vector<16x16x12xf32>
    %94 = arith.addf %87, %93 : vector<16x16x12xf32>
    %c0_57 = arith.constant 0 : index
    %c1_58 = arith.constant 1 : index
    %c0_59 = arith.constant 0 : index
    %95 = vector.load %arg12[%c0_57, %c1_58, %c0_59] : memref<18x18x12xf32, #tpu.memory_space<vmem>>, vector<16x16x12xf32>
    %96 = vector.extract_strided_slice %86 {offsets = [0, 1, 0], sizes = [1, 1, 12], strides = [1, 1, 1]} : vector<3x3x12xf32> to vector<1x1x12xf32>
    %97 = vector.shape_cast %96 : vector<1x1x12xf32> to vector<12xf32>
    %98 = vector.shape_cast %97 : vector<12xf32> to vector<1x1x12xf32>
    %99 = vector.broadcast %98 : vector<1x1x12xf32> to vector<16x16x12xf32>
    %100 = arith.mulf %95, %99 : vector<16x16x12xf32>
    %101 = arith.addf %94, %100 : vector<16x16x12xf32>
    %c0_60 = arith.constant 0 : index
    %c2_61 = arith.constant 2 : index
    %c0_62 = arith.constant 0 : index
    %102 = vector.load %arg12[%c0_60, %c2_61, %c0_62] : memref<18x18x12xf32, #tpu.memory_space<vmem>>, vector<16x16x12xf32>
    %103 = vector.extract_strided_slice %86 {offsets = [0, 2, 0], sizes = [1, 1, 12], strides = [1, 1, 1]} : vector<3x3x12xf32> to vector<1x1x12xf32>
    %104 = vector.shape_cast %103 : vector<1x1x12xf32> to vector<12xf32>
    %105 = vector.shape_cast %104 : vector<12xf32> to vector<1x1x12xf32>
    %106 = vector.broadcast %105 : vector<1x1x12xf32> to vector<16x16x12xf32>
    %107 = arith.mulf %102, %106 : vector<16x16x12xf32>
    %108 = arith.addf %101, %107 : vector<16x16x12xf32>
    %c1_63 = arith.constant 1 : index
    %c0_64 = arith.constant 0 : index
    %c0_65 = arith.constant 0 : index
    %109 = vector.load %arg12[%c1_63, %c0_64, %c0_65] : memref<18x18x12xf32, #tpu.memory_space<vmem>>, vector<16x16x12xf32>
    %110 = vector.extract_strided_slice %86 {offsets = [1, 0, 0], sizes = [1, 1, 12], strides = [1, 1, 1]} : vector<3x3x12xf32> to vector<1x1x12xf32>
    %111 = vector.shape_cast %110 : vector<1x1x12xf32> to vector<12xf32>
    %112 = vector.shape_cast %111 : vector<12xf32> to vector<1x1x12xf32>
    %113 = vector.broadcast %112 : vector<1x1x12xf32> to vector<16x16x12xf32>
    %114 = arith.mulf %109, %113 : vector<16x16x12xf32>
    %115 = arith.addf %108, %114 : vector<16x16x12xf32>
    %c1_66 = arith.constant 1 : index
    %c1_67 = arith.constant 1 : index
    %c0_68 = arith.constant 0 : index
    %116 = vector.load %arg12[%c1_66, %c1_67, %c0_68] : memref<18x18x12xf32, #tpu.memory_space<vmem>>, vector<16x16x12xf32>
    %117 = vector.extract_strided_slice %86 {offsets = [1, 1, 0], sizes = [1, 1, 12], strides = [1, 1, 1]} : vector<3x3x12xf32> to vector<1x1x12xf32>
    %118 = vector.shape_cast %117 : vector<1x1x12xf32> to vector<12xf32>
    %119 = vector.shape_cast %118 : vector<12xf32> to vector<1x1x12xf32>
    %120 = vector.broadcast %119 : vector<1x1x12xf32> to vector<16x16x12xf32>
    %121 = arith.mulf %116, %120 : vector<16x16x12xf32>
    %122 = arith.addf %115, %121 : vector<16x16x12xf32>
    %c1_69 = arith.constant 1 : index
    %c2_70 = arith.constant 2 : index
    %c0_71 = arith.constant 0 : index
    %123 = vector.load %arg12[%c1_69, %c2_70, %c0_71] : memref<18x18x12xf32, #tpu.memory_space<vmem>>, vector<16x16x12xf32>
    %124 = vector.extract_strided_slice %86 {offsets = [1, 2, 0], sizes = [1, 1, 12], strides = [1, 1, 1]} : vector<3x3x12xf32> to vector<1x1x12xf32>
    %125 = vector.shape_cast %124 : vector<1x1x12xf32> to vector<12xf32>
    %126 = vector.shape_cast %125 : vector<12xf32> to vector<1x1x12xf32>
    %127 = vector.broadcast %126 : vector<1x1x12xf32> to vector<16x16x12xf32>
    %128 = arith.mulf %123, %127 : vector<16x16x12xf32>
    %129 = arith.addf %122, %128 : vector<16x16x12xf32>
    %c2_72 = arith.constant 2 : index
    %c0_73 = arith.constant 0 : index
    %c0_74 = arith.constant 0 : index
    %130 = vector.load %arg12[%c2_72, %c0_73, %c0_74] : memref<18x18x12xf32, #tpu.memory_space<vmem>>, vector<16x16x12xf32>
    %131 = vector.extract_strided_slice %86 {offsets = [2, 0, 0], sizes = [1, 1, 12], strides = [1, 1, 1]} : vector<3x3x12xf32> to vector<1x1x12xf32>
    %132 = vector.shape_cast %131 : vector<1x1x12xf32> to vector<12xf32>
    %133 = vector.shape_cast %132 : vector<12xf32> to vector<1x1x12xf32>
    %134 = vector.broadcast %133 : vector<1x1x12xf32> to vector<16x16x12xf32>
    %135 = arith.mulf %130, %134 : vector<16x16x12xf32>
    %136 = arith.addf %129, %135 : vector<16x16x12xf32>
    %c2_75 = arith.constant 2 : index
    %c1_76 = arith.constant 1 : index
    %c0_77 = arith.constant 0 : index
    %137 = vector.load %arg12[%c2_75, %c1_76, %c0_77] : memref<18x18x12xf32, #tpu.memory_space<vmem>>, vector<16x16x12xf32>
    %138 = vector.extract_strided_slice %86 {offsets = [2, 1, 0], sizes = [1, 1, 12], strides = [1, 1, 1]} : vector<3x3x12xf32> to vector<1x1x12xf32>
    %139 = vector.shape_cast %138 : vector<1x1x12xf32> to vector<12xf32>
    %140 = vector.shape_cast %139 : vector<12xf32> to vector<1x1x12xf32>
    %141 = vector.broadcast %140 : vector<1x1x12xf32> to vector<16x16x12xf32>
    %142 = arith.mulf %137, %141 : vector<16x16x12xf32>
    %143 = arith.addf %136, %142 : vector<16x16x12xf32>
    %c2_78 = arith.constant 2 : index
    %c2_79 = arith.constant 2 : index
    %c0_80 = arith.constant 0 : index
    %144 = vector.load %arg12[%c2_78, %c2_79, %c0_80] : memref<18x18x12xf32, #tpu.memory_space<vmem>>, vector<16x16x12xf32>
    %145 = vector.extract_strided_slice %86 {offsets = [2, 2, 0], sizes = [1, 1, 12], strides = [1, 1, 1]} : vector<3x3x12xf32> to vector<1x1x12xf32>
    %146 = vector.shape_cast %145 : vector<1x1x12xf32> to vector<12xf32>
    %147 = vector.shape_cast %146 : vector<12xf32> to vector<1x1x12xf32>
    %148 = vector.broadcast %147 : vector<1x1x12xf32> to vector<16x16x12xf32>
    %149 = arith.mulf %144, %148 : vector<16x16x12xf32>
    %150 = arith.addf %143, %149 : vector<16x16x12xf32>
    %c0_81 = arith.constant 0 : index
    %c0_82 = arith.constant 0 : index
    %151 = vector.load %arg8[%c0_81, %c0_82] : memref<1x12xf32, #tpu.memory_space<vmem>>, vector<1x12xf32>
    %152 = vector.shape_cast %151 : vector<1x12xf32> to vector<12xf32>
    %153 = vector.shape_cast %152 : vector<12xf32> to vector<1x1x12xf32>
    %154 = vector.broadcast %153 : vector<1x1x12xf32> to vector<16x16x12xf32>
    %155 = arith.addf %150, %154 : vector<16x16x12xf32>
    %156 = vector.extract_strided_slice %155 {offsets = [0, 0, 0], sizes = [16, 16, 4], strides = [1, 1, 1]} : vector<16x16x12xf32> to vector<16x16x4xf32>
    %157 = vector.extract_strided_slice %155 {offsets = [0, 0, 4], sizes = [16, 16, 4], strides = [1, 1, 1]} : vector<16x16x12xf32> to vector<16x16x4xf32>
    %158 = vector.extract_strided_slice %155 {offsets = [0, 0, 8], sizes = [16, 16, 4], strides = [1, 1, 1]} : vector<16x16x12xf32> to vector<16x16x4xf32>
    %159 = arith.mulf %156, %156 : vector<16x16x4xf32>
    %cst_83 = arith.constant dense<0.000000e+00> : vector<16x16xf32>
    %160 = vector.multi_reduction <add>, %159, %cst_83 [2] : vector<16x16x4xf32> to vector<16x16xf32>
    %161 = vector.shape_cast %160 : vector<16x16xf32> to vector<16x16x1xf32>
    %162 = math.sqrt %161 : vector<16x16x1xf32>
    %cst_84 = arith.constant 9.99999996E-13 : f32
    %163 = vector.broadcast %cst_84 : f32 to vector<16x16x1xf32>
    %164 = arith.maximumf %162, %163 : vector<16x16x1xf32>
    %165 = vector.broadcast %164 : vector<16x16x1xf32> to vector<16x16x4xf32>
    %166 = arith.divf %156, %165 : vector<16x16x4xf32>
    %167 = arith.mulf %157, %157 : vector<16x16x4xf32>
    %cst_85 = arith.constant dense<0.000000e+00> : vector<16x16xf32>
    %168 = vector.multi_reduction <add>, %167, %cst_85 [2] : vector<16x16x4xf32> to vector<16x16xf32>
    %169 = vector.shape_cast %168 : vector<16x16xf32> to vector<16x16x1xf32>
    %170 = math.sqrt %169 : vector<16x16x1xf32>
    %cst_86 = arith.constant 9.99999996E-13 : f32
    %171 = vector.broadcast %cst_86 : f32 to vector<16x16x1xf32>
    %172 = arith.maximumf %170, %171 : vector<16x16x1xf32>
    %173 = vector.broadcast %172 : vector<16x16x1xf32> to vector<16x16x4xf32>
    %174 = arith.divf %157, %173 : vector<16x16x4xf32>
    "tpu.trace_start"() <{level = 10 : i32, message = "hqd,hkd->hqk"}> : () -> ()
    %cst_87 = arith.constant dense<0.000000e+00> : vector<16x16x16xf32>
    %175 = tpu.matmul %166, %174, %cst_87 {dimension_numbers = #tpu.dot_dimension_numbers<[2], [2], [1], [1], [0, 0, 0, 1, 1, 1], [0], [0]>} : vector<16x16x4xf32>, vector<16x16x4xf32>, vector<16x16x16xf32> -> vector<16x16x16xf32>
    "tpu.trace_stop"() : () -> ()
    %176 = vector.broadcast %0 : f32 to vector<16x16x16xf32>
    %177 = arith.mulf %175, %176 : vector<16x16x16xf32>
    %cst_88 = arith.constant dense<0xFF800000> : vector<16x16xf32>
    %178 = vector.multi_reduction <maximumf>, %177, %cst_88 [2] : vector<16x16x16xf32> to vector<16x16xf32>
    %179 = vector.shape_cast %178 : vector<16x16xf32> to vector<16x16x1xf32>
    %180 = vector.broadcast %179 : vector<16x16x1xf32> to vector<16x16x16xf32>
    %181 = arith.subf %177, %180 : vector<16x16x16xf32>
    %182 = math.exp %181 : vector<16x16x16xf32>
    %cst_89 = arith.constant dense<0.000000e+00> : vector<16x16xf32>
    %183 = vector.multi_reduction <add>, %182, %cst_89 [2] : vector<16x16x16xf32> to vector<16x16xf32>
    %184 = vector.shape_cast %183 : vector<16x16xf32> to vector<16x16x1xf32>
    %185 = tpu.reciprocal %184 {approx = true} : vector<16x16x1xf32> -> vector<16x16x1xf32>
    %186 = vector.broadcast %185 : vector<16x16x1xf32> to vector<16x16x16xf32>
    %187 = arith.mulf %182, %186 : vector<16x16x16xf32>
    "tpu.trace_start"() <{level = 10 : i32, message = "hqk,hkd->hqd"}> : () -> ()
    %cst_90 = arith.constant dense<0.000000e+00> : vector<16x16x4xf32>
    %188 = tpu.matmul %187, %158, %cst_90 {dimension_numbers = #tpu.dot_dimension_numbers<[2], [1], [1], [2], [0, 0, 0, 1, 1, 2], [0], [0]>} : vector<16x16x16xf32>, vector<16x16x4xf32>, vector<16x16x4xf32> -> vector<16x16x4xf32>
    "tpu.trace_stop"() : () -> ()
    %189 = vector.shape_cast %188 : vector<16x16x4xf32> to vector<256x4xf32>
    %c0_91 = arith.constant 0 : index
    %c0_92 = arith.constant 0 : index
    %190 = vector.load %arg9[%c0_91, %c0_92] : memref<4x4xf32, #tpu.memory_space<vmem>>, vector<4x4xf32>
    %cst_93 = arith.constant dense<0.000000e+00> : vector<256x4xf32>
    %191 = tpu.matmul %189, %190, %cst_93 {dimension_numbers = #tpu.dot_dimension_numbers<[1], [0], [0], [1], [0, 0, 1, 1], [], []>} : vector<256x4xf32>, vector<4x4xf32>, vector<256x4xf32> -> vector<256x4xf32>
    %c0_94 = arith.constant 0 : index
    %c0_95 = arith.constant 0 : index
    %192 = vector.load %arg10[%c0_94, %c0_95] : memref<1x4xf32, #tpu.memory_space<vmem>>, vector<1x4xf32>
    %193 = vector.shape_cast %192 : vector<1x4xf32> to vector<4xf32>
    %194 = vector.shape_cast %193 : vector<4xf32> to vector<1x4xf32>
    %195 = vector.broadcast %194 : vector<1x4xf32> to vector<256x4xf32>
    %196 = arith.addf %191, %195 : vector<256x4xf32>
    %197 = vector.shape_cast %196 : vector<256x4xf32> to vector<16x16x4xf32>
    %c0_96 = arith.constant 0 : index
    %c0_97 = arith.constant 0 : index
    %c0_98 = arith.constant 0 : index
    %c0_99 = arith.constant 0 : index
    %198 = vector.load %arg11[%c0_96, %c0_97, %c0_98, %c0_99] : memref<1x16x16x4xf32, #tpu.memory_space<vmem>>, vector<1x16x16x4xf32>
    %199 = vector.shape_cast %198 : vector<1x16x16x4xf32> to vector<16x16x4xf32>
    %200 = vector.shape_cast %197 : vector<16x16x4xf32> to vector<1x16x16x4xf32>
    tpu.vector_store %arg11[%c0_96, %c0_97, %c0_98, %c0_99], %200 {strides = array<i32>} : memref<1x16x16x4xf32, #tpu.memory_space<vmem>>, vector<1x16x16x4xf32>,
    return
  }
  func.func @transform_0(%arg0: i32) -> (i32, i32) {
    %c0_i32 = arith.constant 0 : i32
    %c0_i32_0 = arith.constant 0 : i32
    %c0_i32_1 = arith.constant 0 : i32
    return %c0_i32, %c0_i32_0 : i32, i32
  }
  func.func @transform_1(%arg0: i32) -> (i32, i32, i32, i32) {
    %c0_i32 = arith.constant 0 : i32
    %c0_i32_0 = arith.constant 0 : i32
    %c0_i32_1 = arith.constant 0 : i32
    %c0_i32_2 = arith.constant 0 : i32
    return %arg0, %c0_i32, %c0_i32_0, %c0_i32_1 : i32, i32, i32, i32
  }
  func.func @transform_2(%arg0: i32) -> (i32, i32) {
    %c0_i32 = arith.constant 0 : i32
    %c0_i32_0 = arith.constant 0 : i32
    %c0_i32_1 = arith.constant 0 : i32
    return %c0_i32, %c0_i32_0 : i32, i32
  }
  func.func @transform_3(%arg0: i32) -> (i32, i32) {
    %c0_i32 = arith.constant 0 : i32
    %c0_i32_0 = arith.constant 0 : i32
    %c0_i32_1 = arith.constant 0 : i32
    return %c0_i32, %c0_i32_0 : i32, i32
  }
  func.func @transform_4(%arg0: i32) -> (i32, i32, i32) {
    %c0_i32 = arith.constant 0 : i32
    %c0_i32_0 = arith.constant 0 : i32
    %c0_i32_1 = arith.constant 0 : i32
    %c0_i32_2 = arith.constant 0 : i32
    return %c0_i32, %c0_i32_0, %c0_i32_1 : i32, i32, i32
  }
  func.func @transform_5(%arg0: i32) -> (i32, i32) {
    %c0_i32 = arith.constant 0 : i32
    %c0_i32_0 = arith.constant 0 : i32
    %c0_i32_1 = arith.constant 0 : i32
    return %c0_i32, %c0_i32_0 : i32, i32
  }
  func.func @transform_6(%arg0: i32) -> (i32, i32, i32) {
    %c0_i32 = arith.constant 0 : i32
    %c0_i32_0 = arith.constant 0 : i32
    %c0_i32_1 = arith.constant 0 : i32
    %c0_i32_2 = arith.constant 0 : i32
    return %c0_i32, %c0_i32_0, %c0_i32_1 : i32, i32, i32
  }
  func.func @transform_7(%arg0: i32) -> (i32, i32) {
    %c0_i32 = arith.constant 0 : i32
    %c0_i32_0 = arith.constant 0 : i32
    %c0_i32_1 = arith.constant 0 : i32
    return %c0_i32, %c0_i32_0 : i32, i32
  }
  func.func @transform_8(%arg0: i32) -> (i32, i32) {
    %c0_i32 = arith.constant 0 : i32
    %c0_i32_0 = arith.constant 0 : i32
    %c0_i32_1 = arith.constant 0 : i32
    return %c0_i32, %c0_i32_0 : i32, i32
  }
  func.func @transform_9(%arg0: i32) -> (i32, i32) {
    %c0_i32 = arith.constant 0 : i32
    %c0_i32_0 = arith.constant 0 : i32
    %c0_i32_1 = arith.constant 0 : i32
    return %c0_i32, %c0_i32_0 : i32, i32
  }
  func.func @transform_10(%arg0: i32) -> (i32, i32, i32, i32) {
    %c0_i32 = arith.constant 0 : i32
    %c0_i32_0 = arith.constant 0 : i32
    %c0_i32_1 = arith.constant 0 : i32
    %c0_i32_2 = arith.constant 0 : i32
    return %arg0, %c0_i32, %c0_i32_0, %c0_i32_1 : i32, i32, i32, i32
  }
}

</mosaic_0001>

<bundles_post_ra>
// kernel: tpu_custom_call.1
= control target key start
LH: loop header
LB: loop body
LE: loop exit
PB: predicated region body
PF: predicated region fallthrough
CT: control target
= control target key end

     0   :  { %s7341_s15 = smov 0   ;;  %s12035_s0 = inlined_call_operand.<no memory space> [shape: f32[1,1], index: 0, kind: input, shape index: {}]   ;;  %s12036_s1 = inlined_call_operand.vmem [shape: f32[2,16,16,4], index: 1, kind: input, shape index: {}]   ;;  %s12037_s2 = inlined_call_operand.vmem [shape: f32[4,12], index: 2, kind: input, shape index: {}]   ;;  %s12038_s3 = inlined_call_operand.vmem [shape: f32[1,12], index: 3, kind: input, shape index: {}]   ;;  %s12039_s4 = inlined_call_operand.vmem [shape: f32[3,3,12], index: 4, kind: input, shape index: {}]   ;;  %s12040_s5 = inlined_call_operand.vmem [shape: f32[1,12], index: 5, kind: input, shape index: {}]   ;;  %s12041_s6 = inlined_call_operand.vmem [shape: f32[3,3,12], index: 6, kind: input, shape index: {}]   ;;  %s12042_s7 = inlined_call_operand.vmem [shape: f32[1,12], index: 7, kind: input, shape index: {}]   ;;  %s12043_s8 = inlined_call_operand.vmem [shape: f32[4,4], index: 8, kind: input, shape index: {}]   ;;  %s12044_s9 = inlined_call_operand.vmem [shape: f32[1,4], index: 9, kind: input, shape index: {}]   ;;  %s12045_s10 = inlined_call_operand.vmem [shape: f32[2,16,16,4], index: 10, kind: output, shape index: {}]  }
   0x1   :  { %15 = sst [smem:[#allocation3]] %s12035_s0 }
   0x2 LB: > { %s6609_s16 = sadd.s32 4294967295, %s7278_s15   ;;  %p6613_p0 = scmp.ge.s32.totalorder %s7278_s15, 1  ;;  %s7278_s15 = sphi %s7341_s15, %s21_s15  }
   0x3   : > { %p313_p1 = scmp.lt.s32.totalorder %s7278_s15, 3 }
   0x5   : > { %p314_p2 = pnand %p6613_p0, %p313_p1 }
   0x7   : > { %317 = sbr.rel (%p314_p2) target bundleno = 2253 (0x8cd), region = 60 }
   0xc   : > { %v450_v0 = vld [vmem:[%s12037_s2] sm:$0xf]  ;;  %vm552_vm0 = vcmask 1043456   ;;  %p351_p3 = scmp.lt.s32.totalorder %s6609_s16, 1  ;;  %vm455_vm1 = vcmask 31744   ;;  %vm362_vm2 = vcmask 97280  }
   0xd   : > { %6618 = vmatpush.msk.msra.mxu0 %vm552_vm0, %v450_v0  ;;  %v7280_v13 = vmov 0.0   ;;  %v7464_v18 = vld [vmem:[%s12038_s3] ss:$0 sm:$0xff]  ;;  %vm365_vm3 = vcmask 91136   ;;  %v703_v35 = vld [vmem:[%s12039_s4 + $0x4] sm:$0x7] }
   0xe   : > { %s12454_s16 = smov (!%p351_p3, %s6609_s16), 1  ;;  %363 = vst.msk [vmem:[#allocation2] sm:$0xff] %vm362_vm2, %v7280_v13  ;;  %v702_v22 = vld [vmem:[%s12039_s4] sm:$0x7]  ;;  %v7545_v43 = vperm.slane %v703_v35, 0  ;;  %v7562_v53 = vperm.slane %v703_v35, 1 }
   0xf   : > { %s6782_s0 = sshll.u32 %s12454_s16, 8  ;;  %364 = vst.msk [vmem:[#allocation2 + $0x8] sm:$0xff] %vm362_vm2, %v7280_v13  ;;  %v7499_v26 = vperm.slane %v702_v22, 0  ;;  %v7501_v27 = vperm.slane %v702_v22, 1  ;;  %v7519_v32 = vperm.slane %v702_v22, 2  ;;  %v7564_v54 = vperm.slane %v703_v35, 2 }
  0x10   : > { %s7361_s21 = scalar_lea.vmem %s12036_s1, %s6782_s0  ;;  %367 = vst.msk [vmem:[#allocation2 + $0x18] sm:$0xff] %vm362_vm2, %v7280_v13  ;;  %v704_v52 = vld [vmem:[%s12039_s4 + $0x8] sm:$0x7]  ;;  %s7281_s23 = smov 124  }
  0x11   : > { %v418_v1 = vld [vmem:[%s7361_s21] sm:$0xff]  ;;  %v419_v2 = vld [vmem:[%s7361_s21 + $0x8] sm:$0xff]  ;;  %v420_v3 = vld [vmem:[%s7361_s21 + $0x10] sm:$0xff]  ;;  %368 = vst.msk [vmem:[#allocation2 + $0x20] sm:$0xff] %vm362_vm2, %v7280_v13  ;;  %v7568_v62 = vperm.slane %v704_v52, 0  ;;  %s361_s19 = sld [smem:[#allocation3]]  ;;  %s11929_s28 = scalar_lea.vmem %s12045_s10, %s6782_s0 }
  0x12   : > { %6619 = vmatmul.msk.f32.vlgmr.msra.gmra.mxu0 %vm455_vm1, %v418_v1  ;;  %v421_v4 = vld [vmem:[%s7361_s21 + $0x18] sm:$0xff]  ;;  %v422_v5 = vld [vmem:[%s7361_s21 + $0x20] sm:$0xff]  ;;  %v423_v6 = vld [vmem:[%s7361_s21 + $0x28] sm:$0xff]  ;;  %370 = vst.msk [vmem:[#allocation2 + $0x30] sm:$0xff] %vm362_vm2, %v7280_v13  ;;  %s7282_s20 = smov 120  }
  0x13   : > { %v424_v7 = vld [vmem:[%s7361_s21 + $0x30] sm:$0xff]  ;;  %v425_v8 = vld [vmem:[%s7361_s21 + $0x38] sm:$0xff]  ;;  %v426_v9 = vld [vmem:[%s7361_s21 + $0x40] sm:$0xff]  ;;  %371 = vst.msk [vmem:[#allocation2 + $0x38] sm:$0xff] %vm362_vm2, %v7280_v13 }
  0x14   : > { %v427_v10 = vld [vmem:[%s7361_s21 + $0x48] sm:$0xff]  ;;  %v428_v11 = vld [vmem:[%s7361_s21 + $0x50] sm:$0xff]  ;;  %v429_v12 = vld [vmem:[%s7361_s21 + $0x58] sm:$0xff]  ;;  %373 = vst.msk [vmem:[#allocation2 + $0x48] sm:$0xff] %vm362_vm2, %v7280_v13 }
  0x15   : > { %v430_v14 = vld [vmem:[%s7361_s21 + $0x60] sm:$0xff]  ;;  %374 = vst.msk [vmem:[#allocation2 + $0x50] sm:$0xff] %vm362_vm2, %v7280_v13  ;;  %v431_v15 = vld [vmem:[%s7361_s21 + $0x68] sm:$0xff]  ;;  %v432_v16 = vld [vmem:[%s7361_s21 + $0x70] sm:$0xff] }
  0x16   : > { %376 = vst.msk [vmem:[#allocation2 + $0x60] sm:$0xff] %vm362_vm2, %v7280_v13  ;;  %v433_v17 = vld [vmem:[%s7361_s21 + $0x78] sm:$0xff]  ;;  %v434_v20 = vld [vmem:[%s7361_s21 + $0x80] sm:$0xff]  ;;  %v435_v25 = vld [vmem:[%s7361_s21 + $0x88] sm:$0xff] }
  0x17   : > { %377 = vst.msk [vmem:[#allocation2 + $0x68] sm:$0xff] %vm362_vm2, %v7280_v13  ;;  %v7505_v28 = vld [vmem:[#allocation2] sm:$0xff]  ;;  %v7521_v33 = vld [vmem:[#allocation2 + $0x8] sm:$0xff]  ;;  %v436_v45 = vld [vmem:[%s7361_s21 + $0x90] sm:$0xff] }
  0x18   : > { %379 = vst.msk [vmem:[#allocation2 + $0x78] sm:$0xff] %vm362_vm2, %v7280_v13  ;;  %v7507_v29 = vld [vmem:[#allocation2 + $0x1] sm:$0xff]  ;;  %v738_v30 = vmul.f32 %v7499_v26, %v7505_v28  ;;  %v739_v38 = vmul.f32 %v7499_v26, %v7521_v33  ;;  %v437_v63 = vld [vmem:[%s7361_s21 + $0x98] sm:$0xff] }
  0x19   : > { %380 = vst.msk [vmem:[#allocation2 + $0x80] sm:$0xff] %vm362_vm2, %v7280_v13  ;;  %v835_v31 = vmul.f32 %v7501_v27, %v7507_v29  ;;  %v7530_v36 = vld [vmem:[#allocation2 + $0x2] sm:$0xff] }
  0x1a   : > { %6620 = vmatmul.msk.f32.gmra.mxu0 %vm455_vm1, %v419_v2  ;;  %382 = vst.msk [vmem:[#allocation2 + $0x90] sm:$0xff] %vm362_vm2, %v7280_v13  ;;  %v932_v42 = vmul.f32 %v7519_v32, %v7530_v36 }
  0x1b   : > { %383 = vst.msk [vmem:[#allocation2 + $0x98] sm:$0xff] %vm362_vm2, %v7280_v13  ;;  %v867_v41 = vadd.f32 %v835_v31, %v738_v30  ;;  %v438_v30 = vld [vmem:[%s7361_s21 + $0xa0] sm:$0xff] }
  0x1c   : > { %385 = vst.msk [vmem:[#allocation2 + $0xa8] sm:$0xff] %vm362_vm2, %v7280_v13 }
  0x1d   : > { %386 = vst.msk [vmem:[#allocation2 + $0xb0] sm:$0xff] %vm362_vm2, %v7280_v13  ;;  %v964_v49 = vadd.f32 %v932_v42, %v867_v41 }
  0x1e   : > { %388 = vst.msk [vmem:[#allocation2 + $0xc0] sm:$0xff] %vm362_vm2, %v7280_v13 }
  0x1f   : > { %389 = vst.msk [vmem:[#allocation2 + $0xc8] sm:$0xff] %vm362_vm2, %v7280_v13 }
  0x20   : > { %391 = vst.msk [vmem:[#allocation2 + $0xd8] sm:$0xff] %vm362_vm2, %v7280_v13 }
  0x21   : > { %392 = vst.msk [vmem:[#allocation2 + $0xe0] sm:$0xff] %vm362_vm2, %v7280_v13 }
  0x22   : > { %6621 = vmatmul.msk.f32.gmra.mxu0 %vm455_vm1, %v420_v3  ;;  %394 = vst.msk [vmem:[#allocation2 + $0xf0] sm:$0xff] %vm362_vm2, %v7280_v13 }
  0x23   : > { %395 = vst.msk [vmem:[#allocation2 + $0xf8] sm:$0xff] %vm362_vm2, %v7280_v13 }
  0x24   : > { %397 = vst.msk [vmem:[#allocation2 + $0x108] sm:$0xff] %vm362_vm2, %v7280_v13 }
  0x25   : > { %398 = vst.msk [vmem:[#allocation2 + $0x110] sm:$0xff] %vm362_vm2, %v7280_v13 }
  0x26   : > { %400 = vst.msk [vmem:[#allocation2 + $0x120] sm:$0xff] %vm362_vm2, %v7280_v13 }
  0x27   : > { %401 = vst.msk [vmem:[#allocation2 + $0x128] sm:$0xff] %vm362_vm2, %v7280_v13 }
  0x28   : > { %403 = vst.msk [vmem:[#allocation2 + $0x138] sm:$0xff] %vm362_vm2, %v7280_v13 }
  0x29   : > { %404 = vst.msk [vmem:[#allocation2 + $0x140] sm:$0xff] %vm362_vm2, %v7280_v13 }
  0x2a   : > { %6622 = vmatmul.msk.f32.gmra.mxu0 %vm455_vm1, %v421_v4  ;;  %406 = vst.msk [vmem:[#allocation2 + $0x150] sm:$0xff] %vm362_vm2, %v7280_v13 }
  0x2b   : > { %407 = vst.msk [vmem:[#allocation2 + $0x158] sm:$0xff] %vm362_vm2, %v7280_v13 }
  0x2c   : > { %409 = vst.msk [vmem:[#allocation2 + $0x168] sm:$0xff] %vm362_vm2, %v7280_v13 }
  0x2d   : > { %410 = vst.msk [vmem:[#allocation2 + $0x170] sm:$0xff] %vm362_vm2, %v7280_v13 }
  0x2e   : > { %412 = vst.msk [vmem:[#allocation2 + $0x180] sm:$0xff] %vm362_vm2, %v7280_v13 }
  0x2f   : > { %413 = vst.msk [vmem:[#allocation2 + $0x188] sm:$0xff] %vm362_vm2, %v7280_v13 }
  0x30   : > { %415 = vst.msk [vmem:[#allocation2 + $0x198] sm:$0xff] %vm362_vm2, %v7280_v13 }
  0x31   : > { %416 = vst.msk [vmem:[#allocation2 + $0x1a0] sm:$0xff] %vm362_vm2, %v7280_v13 }
  0x32   : > { %6623 = vmatmul.msk.f32.gmra.mxu0 %vm455_vm1, %v422_v5  ;;  %366 = vst.msk [vmem:[#allocation2 + $0x10] sm:$0x3] %vm365_vm3, %v7280_v13  ;;  %v1647_v5 = vld [vmem:[%s12041_s6] sm:$0x7] }
  0x33   : > { %369 = vst.msk [vmem:[#allocation2 + $0x28] sm:$0x3] %vm365_vm3, %v7280_v13 }
  0x34   : > { %372 = vst.msk [vmem:[#allocation2 + $0x40] sm:$0x3] %vm365_vm3, %v7280_v13 }
  0x35   : > { %375 = vst.msk [vmem:[#allocation2 + $0x58] sm:$0x3] %vm365_vm3, %v7280_v13 }
  0x36   : > { %378 = vst.msk [vmem:[#allocation2 + $0x70] sm:$0x3] %vm365_vm3, %v7280_v13 }
  0x37   : > { %381 = vst.msk [vmem:[#allocation2 + $0x88] sm:$0x3] %vm365_vm3, %v7280_v13 }
  0x38   : > { %384 = vst.msk [vmem:[#allocation2 + $0xa0] sm:$0x3] %vm365_vm3, %v7280_v13 }
  0x39   : > { %387 = vst.msk [vmem:[#allocation2 + $0xb8] sm:$0x3] %vm365_vm3, %v7280_v13  ;;  %v7523_v34 = vld [vmem:[#allocation2 + $0x9] sm:$0xff] }
  0x3a   : > { %6624 = vmatmul.msk.f32.gmra.mxu0 %vm455_vm1, %v423_v6  ;;  %390 = vst.msk [vmem:[#allocation2 + $0xd0] sm:$0x3] %vm365_vm3, %v7280_v13  ;;  %v836_v39 = vmul.f32 %v7501_v27, %v7523_v34  ;;  %v7547_v44 = vld [vmem:[#allocation2 + $0xa] sm:$0xff] }
  0x3b   : > { %393 = vst.msk [vmem:[#allocation2 + $0xe8] sm:$0x3] %vm365_vm3, %v7280_v13  ;;  %v933_v48 = vmul.f32 %v7519_v32, %v7547_v44 }
  0x3c   : > { %396 = vst.msk [vmem:[#allocation2 + $0x100] sm:$0x3] %vm365_vm3, %v7280_v13  ;;  %v868_v47 = vadd.f32 %v836_v39, %v739_v38 }
  0x3d   : > { %399 = vst.msk [vmem:[#allocation2 + $0x118] sm:$0x3] %vm365_vm3, %v7280_v13 }
  0x3e   : > { %402 = vst.msk [vmem:[#allocation2 + $0x130] sm:$0x3] %vm365_vm3, %v7280_v13  ;;  %v965_v58 = vadd.f32 %v933_v48, %v868_v47 }
  0x3f   : > { %405 = vst.msk [vmem:[#allocation2 + $0x148] sm:$0x3] %vm365_vm3, %v7280_v13 }
  0x40   : > { %408 = vst.msk [vmem:[#allocation2 + $0x160] sm:$0x3] %vm365_vm3, %v7280_v13 }
  0x41   : > { %411 = vst.msk [vmem:[#allocation2 + $0x178] sm:$0x3] %vm365_vm3, %v7280_v13 }
  0x42   : > { %6625 = vmatmul.msk.f32.gmra.mxu0 %vm455_vm1, %v424_v7  ;;  %414 = vst.msk [vmem:[#allocation2 + $0x190] sm:$0x3] %vm365_vm3, %v7280_v13 }
  0x43   : > { %417 = vst.msk [vmem:[#allocation2 + $0x1a8] sm:$0x3] %vm365_vm3, %v7280_v13 }
  0x4a   : > { %6626 = vmatmul.msk.f32.gmra.mxu0 %vm455_vm1, %v425_v8 }
  0x52   : > { %6627 = vmatmul.msk.f32.gmra.mxu0 %vm455_vm1, %v426_v9  ;;  %v7580_v9 = vperm.slane %v704_v52, 1 }
  0x5a   : > { %6628 = vmatmul.msk.f32.gmra.mxu0 %vm455_vm1, %v427_v10 }
  0x62   : > { %6629 = vmatmul.msk.f32.gmra.mxu0 %vm455_vm1, %v428_v11 }
  0x6a   : > { %6630 = vmatmul.msk.f32.gmra.mxu0 %vm455_vm1, %v429_v12 }
  0x72   : > { %6631 = vmatmul.msk.f32.gmra.mxu0 %vm455_vm1, %v430_v14 }
  0x7a   : > { %6632 = vmatmul.msk.f32.gmra.mxu0 %vm455_vm1, %v431_v15  ;;  %v7584_v15 = vperm.slane %v1647_v5, 0 }
  0x7c   : > { %12183 = vst [vmem:[#allocation4_spill] sm:$0xff] %v7584_v15  ;;  %v1683_v41 = vmul.f32 %v7584_v15, %v7505_v28  ;;  %v7611_v28 = vperm.slane %v1647_v5, 2 }
  0x82   : > { %6633 = vmatmul.msk.f32.gmra.mxu0 %vm455_vm1, %v432_v16 }
  0x8a   : > { %6634 = vmatmul.msk.f32.gmra.mxu0 %vm455_vm1, %v433_v17 }
  0x8f   : > { %v573_v19 = vpop.f32.mrf.mxu0 }
  0x90   : > { %v574_v21 = vadd.f32 %v7464_v18, %v573_v19 }
  0x92   : > { %670 = vst.msk [vmem:[#allocation2 + $0x19] sm:$0xff] %vm362_vm2, %v574_v21  ;;  %6635 = vmatmul.msk.f32.gmra.mxu0 %vm455_vm1, %v434_v20  ;;  %v7587_v20 = vperm.slane %v1647_v5, 1 }
  0x94   : > { %v1780_v47 = vmul.f32 %v7587_v20, %v7507_v29 }
  0x97   : > { %v576_v23 = vpop.f32.mrf.mxu0 }
  0x98   : > { %v577_v24 = vadd.f32 %v7464_v18, %v576_v23 }
  0x99   : > { %v707_v46 = vld [vmem:[#allocation2 + $0x18] sm:$0xff] }
  0x9a   : > { %671 = vst.msk [vmem:[#allocation2 + $0x21] sm:$0xff] %vm362_vm2, %v577_v24  ;;  %6636 = vmatmul.msk.f32.gmra.mxu0 %vm455_vm1, %v435_v25  ;;  %v1029_v50 = vmul.f32 %v7545_v43, %v707_v46  ;;  %v804_v56 = vld [vmem:[#allocation2 + $0x19] sm:$0xff]  ;;  %v740_v10 = vmul.f32 %v7499_v26, %v707_v46  ;;  %v7591_v25 = vperm.slane %v704_v52, 2 }
  0x9b   : > { %v1126_v1 = vmul.f32 %v7562_v53, %v804_v56  ;;  %v837_v11 = vmul.f32 %v7501_v27, %v804_v56  ;;  %v7609_v52 = vld [vmem:[%s12040_s5] ss:$0 sm:$0xff] }
  0x9c   : > { %v1061_v61 = vadd.f32 %v1029_v50, %v964_v49 }
  0x9d   : > { %v869_v38 = vadd.f32 %v837_v11, %v740_v10  ;;  %v1781_v10 = vmul.f32 %v7587_v20, %v7523_v34 }
  0x9e   : > { %v1158_v6 = vadd.f32 %v1126_v1, %v1061_v61 }
  0x9f   : > { %v579_v37 = vpop.f32.mrf.mxu0 }
  0xa0   : > { %v580_v40 = vadd.f32 %v7464_v18, %v579_v37 }
  0xa1   : > { %v708_v51 = vld [vmem:[#allocation2 + $0x20] sm:$0xff] }
  0xa2   : > { %672 = vst.msk [vmem:[#allocation2 + $0x31] sm:$0xff] %vm362_vm2, %v580_v40  ;;  %6637 = vmatmul.msk.f32.gmra.mxu0 %vm455_vm1, %v436_v45  ;;  %v901_v57 = vld [vmem:[#allocation2 + $0x1a] sm:$0xff]  ;;  %v1030_v59 = vmul.f32 %v7545_v43, %v708_v51  ;;  %v902_v12 = vld [vmem:[#allocation2 + $0x22] sm:$0xff]  ;;  %v741_v21 = vmul.f32 %v7499_v26, %v708_v51 }
  0xa3   : > { %v805_v2 = vld [vmem:[#allocation2 + $0x21] sm:$0xff]  ;;  %v1223_v3 = vmul.f32 %v7564_v54, %v901_v57  ;;  %v934_v31 = vmul.f32 %v7519_v32, %v901_v57  ;;  %v1224_v35 = vmul.f32 %v7564_v54, %v902_v12 }
  0xa4   : > { %v1062_v4 = vadd.f32 %v1030_v59, %v965_v58  ;;  %v1127_v8 = vmul.f32 %v7562_v53, %v805_v2  ;;  %v838_v22 = vmul.f32 %v7501_v27, %v805_v2 }
  0xa5   : > { %v1255_v13 = vadd.f32 %v1223_v3, %v1158_v6  ;;  %v966_v56 = vadd.f32 %v934_v31, %v869_v38 }
  0xa6   : > { %v1159_v16 = vadd.f32 %v1127_v8, %v1062_v4  ;;  %v870_v48 = vadd.f32 %v838_v22, %v741_v21  ;;  %v439_v8 = vld [vmem:[%s7361_s21 + $0xa8] sm:$0xff] }
  0xa7   : > { %v582_v55 = vpop.f32.mrf.mxu0 }
  0xa8   : > { %v583_v60 = vadd.f32 %v7464_v18, %v582_v55  ;;  %v1256_v42 = vadd.f32 %v1224_v35, %v1159_v16  ;;  %v935_v55 = vmul.f32 %v7519_v32, %v902_v12  ;;  %v1812_v35 = vadd.f32 %v1780_v47, %v1683_v41 }
  0xa9   : > { %v709_v0 = vld [vmem:[#allocation2 + $0x30] sm:$0xff]  ;;  %v1878_v41 = vmul.f32 %v7611_v28, %v7547_v44 }
  0xaa   : > { %673 = vst.msk [vmem:[#allocation2 + $0x39] sm:$0xff] %vm362_vm2, %v583_v60  ;;  %6638 = vmatmul.msk.f32.gmra.mxu0 %vm455_vm1, %v437_v63  ;;  %v1321_v7 = vmul.f32 %v7568_v62, %v709_v0  ;;  %v806_v17 = vld [vmem:[#allocation2 + $0x31] sm:$0xff]  ;;  %v1031_v45 = vmul.f32 %v7545_v43, %v709_v0  ;;  %v742_v29 = vmul.f32 %v7499_v26, %v709_v0 }
  0xab   : > { %v1418_v39 = vmul.f32 %v7580_v9, %v806_v17  ;;  %v839_v59 = vmul.f32 %v7501_v27, %v806_v17  ;;  %v967_v5 = vadd.f32 %v935_v55, %v870_v48  ;;  %v1684_v0 = vmul.f32 %v7584_v15, %v7521_v33 }
  0xac   : > { %v1353_v23 = vadd.f32 %v1321_v7, %v1255_v13  ;;  %v1063_v1 = vadd.f32 %v1031_v45, %v966_v56  ;;  %v1128_v11 = vmul.f32 %v7562_v53, %v806_v17 }
  0xad   : > { %v871_v16 = vadd.f32 %v839_v59, %v742_v29 }
  0xae   : > { %v1450_v49 = vadd.f32 %v1418_v39, %v1353_v23  ;;  %v1160_v33 = vadd.f32 %v1128_v11, %v1063_v1  ;;  %v1648_v39 = vld [vmem:[%s12041_s6 + $0x4] sm:$0x7] }
  0xaf   : > { %v585_v14 = vpop.f32.mrf.mxu0  ;;  %v7652_v59 = vperm.slane %v1648_v39, 0  ;;  %v7657_v1 = vperm.slane %v1648_v39, 1 }
  0xb0   : > { %v586_v19 = vadd.f32 %v7464_v18, %v585_v14 }
  0xb1   : > { %v710_v24 = vld [vmem:[#allocation2 + $0x38] sm:$0xff]  ;;  %12184 = vst [vmem:[#allocation5_spill] sm:$0xff] %v7652_v59 }
  0xb2   : > { %v903_v37 = vld [vmem:[#allocation2 + $0x32] sm:$0xff]  ;;  %674 = vst.msk [vmem:[#allocation2 + $0x49] sm:$0xff] %vm362_vm2, %v586_v19  ;;  %v1322_v46 = vmul.f32 %v7568_v62, %v710_v24  ;;  %6639 = vmatmul.msk.f32.gmra.mxu0 %vm455_vm1, %v438_v30  ;;  %v904_v50 = vld [vmem:[#allocation2 + $0x3a] sm:$0xff]  ;;  %v1032_v60 = vmul.f32 %v7545_v43, %v710_v24  ;;  %v743_v19 = vmul.f32 %v7499_v26, %v710_v24 }
  0xb3   : > { %v807_v40 = vld [vmem:[#allocation2 + $0x39] sm:$0xff]  ;;  %v1515_v51 = vmul.f32 %v7591_v25, %v903_v37  ;;  %v1516_v3 = vmul.f32 %v7591_v25, %v904_v50  ;;  %v936_v12 = vmul.f32 %v7519_v32, %v903_v37  ;;  %v1225_v13 = vmul.f32 %v7564_v54, %v903_v37  ;;  %12185 = vst [vmem:[#allocation6_spill] sm:$0xff] %v7657_v1 }
  0xb4   : > { %v1354_v57 = vadd.f32 %v1322_v46, %v1256_v42  ;;  %v1419_v58 = vmul.f32 %v7580_v9, %v807_v40  ;;  %v840_v21 = vmul.f32 %v7501_v27, %v807_v40  ;;  %v1064_v22 = vadd.f32 %v1032_v60, %v967_v5 }
  0xb5   : > { %v1547_v61 = vadd.f32 %v1515_v51, %v1450_v49  ;;  %v1129_v30 = vmul.f32 %v7562_v53, %v807_v40  ;;  %v1877_v24 = vmul.f32 %v7611_v28, %v7530_v36  ;;  %v968_v37 = vadd.f32 %v936_v12, %v871_v16 }
  0xb6   : > { %v1451_v2 = vadd.f32 %v1419_v58, %v1354_v57  ;;  %v1257_v38 = vadd.f32 %v1225_v13, %v1160_v33  ;;  %v1813_v42 = vadd.f32 %v1781_v10, %v1684_v0  ;;  %v872_v45 = vadd.f32 %v840_v21, %v743_v19  ;;  %v440_v58 = vld [vmem:[%s7361_s21 + $0xb0] sm:$0xff] }
  0xb7   : > { %v588_v63 = vpop.f32.mrf.mxu0  ;;  %v1583_v6 = vadd.f32 %v7609_v52, %v1547_v61  ;;  %v1161_v46 = vadd.f32 %v1129_v30, %v1064_v22  ;;  %v937_v55 = vmul.f32 %v7519_v32, %v904_v50  ;;  %v1226_v56 = vmul.f32 %v7564_v54, %v904_v50 }
  0xb8   : > { %v589_v4 = vadd.f32 %v7464_v18, %v588_v63  ;;  %v1548_v14 = vadd.f32 %v1516_v3, %v1451_v2  ;;  %v1909_v29 = vadd.f32 %v1877_v24, %v1812_v35  ;;  %v7659_v2 = vperm.slane %v1648_v39, 2 }
  0xb9   : > { %v711_v7 = vld [vmem:[#allocation2 + $0x48] sm:$0xff]  ;;  %1615 = vst.msk [vmem:[#allocation2 + $0x19] sm:$0xff] %vm362_vm2, %v1583_v6  ;;  %v969_v3 = vadd.f32 %v937_v55, %v872_v45 }
  0xba   : > { %675 = vst.msk [vmem:[#allocation2 + $0x51] sm:$0xff] %vm362_vm2, %v589_v4  ;;  %v1584_v34 = vadd.f32 %v7609_v52, %v1548_v14  ;;  %v1033_v17 = vmul.f32 %v7545_v43, %v711_v7  ;;  %v1323_v23 = vmul.f32 %v7568_v62, %v711_v7  ;;  %6640 = vmatmul.msk.f32.gmra.mxu0 %vm455_vm1, %v439_v8  ;;  %v808_v31 = vld [vmem:[#allocation2 + $0x49] sm:$0xff] }
  0xbb   : > { %v744_v48 = vmul.f32 %v7499_v26, %v711_v7  ;;  %v841_v36 = vmul.f32 %v7501_v27, %v808_v31  ;;  %v1130_v60 = vmul.f32 %v7562_v53, %v808_v31  ;;  %v1420_v61 = vmul.f32 %v7580_v9, %v808_v31  ;;  %12186 = vst [vmem:[#allocation7_spill] sm:$0xff] %v7659_v2 }
  0xbc   : > { %1616 = vst.msk [vmem:[#allocation2 + $0x21] sm:$0xff] %vm362_vm2, %v1584_v34  ;;  %v1065_v47 = vadd.f32 %v1033_v17, %v968_v37  ;;  %v1355_v49 = vadd.f32 %v1323_v23, %v1257_v38  ;;  %v1258_v4 = vadd.f32 %v1226_v56, %v1161_v46  ;;  %v1910_v7 = vadd.f32 %v1878_v41, %v1813_v42  ;;  %v441_v42 = vld [vmem:[%s7361_s21 + $0xb8] sm:$0xff] }
  0xbd   : > { %v873_v8 = vadd.f32 %v841_v36, %v744_v48 }
  0xbe   : > { %v1162_v0 = vadd.f32 %v1130_v60, %v1065_v47  ;;  %v1452_v10 = vadd.f32 %v1420_v61, %v1355_v49 }
  0xbf   : > { %v591_v40 = vpop.f32.mrf.mxu0 }
  0xc0   : > { %v592_v51 = vadd.f32 %v7464_v18, %v591_v40  ;;  %v1941_v6 = vld [vmem:[#allocation2 + $0x18] sm:$0xff] }
  0xc1   : > { %v712_v57 = vld [vmem:[#allocation2 + $0x50] sm:$0xff]  ;;  %v1974_v34 = vmul.f32 %v7652_v59, %v1941_v6  ;;  %v2038_v45 = vld [vmem:[#allocation2 + $0x19] sm:$0xff] }
  0xc2   : > { %v809_v44 = vld [vmem:[#allocation2 + $0x51] sm:$0xff]  ;;  %676 = vst.msk [vmem:[#allocation2 + $0x61] sm:$0xff] %vm362_vm2, %v592_v51  ;;  %v1034_v5 = vmul.f32 %v7545_v43, %v712_v57  ;;  %v1324_v11 = vmul.f32 %v7568_v62, %v712_v57  ;;  %6641 = vmatmul.msk.f32.gmra.mxu0 %vm455_vm1, %v440_v58  ;;  %v745_v12 = vmul.f32 %v7499_v26, %v712_v57 }
  0xc3   : > { %v905_v63 = vld [vmem:[#allocation2 + $0x4a] sm:$0xff]  ;;  %v906_v50 = vld [vmem:[#allocation2 + $0x52] sm:$0xff]  ;;  %v842_v13 = vmul.f32 %v7501_v27, %v809_v44  ;;  %v1942_v19 = vld [vmem:[#allocation2 + $0x20] sm:$0xff]  ;;  %v1421_v33 = vmul.f32 %v7580_v9, %v809_v44  ;;  %v1131_v24 = vmul.f32 %v7562_v53, %v809_v44  ;;  %v2006_v57 = vadd.f32 %v1974_v34, %v1909_v29 }
  0xc4   : > { %v938_v14 = vmul.f32 %v7519_v32, %v905_v63  ;;  %v1517_v16 = vmul.f32 %v7591_v25, %v905_v63  ;;  %v939_v21 = vmul.f32 %v7519_v32, %v906_v50  ;;  %v1356_v22 = vadd.f32 %v1324_v11, %v1258_v4  ;;  %v2135_v47 = vld [vmem:[#allocation2 + $0x1a] sm:$0xff] }
  0xc5   : > { %v1066_v17 = vadd.f32 %v1034_v5, %v969_v3  ;;  %v1227_v23 = vmul.f32 %v7564_v54, %v905_v63  ;;  %v1975_v35 = vmul.f32 %v7652_v59, %v1942_v19  ;;  %v1518_v38 = vmul.f32 %v7591_v25, %v906_v50  ;;  %v2039_v49 = vld [vmem:[#allocation2 + $0x21] sm:$0xff] }
  0xc6   : > { %v1549_v30 = vadd.f32 %v1517_v16, %v1452_v10  ;;  %v1453_v37 = vadd.f32 %v1421_v33, %v1356_v22  ;;  %v874_v46 = vadd.f32 %v842_v13, %v745_v12  ;;  %v970_v48 = vadd.f32 %v938_v14, %v873_v8  ;;  %v1649_v8 = vld [vmem:[%s12041_s6 + $0x8] sm:$0x7] }
  0xc7   : > { %v594_v31 = vpop.f32.mrf.mxu0  ;;  %v1228_v40 = vmul.f32 %v7564_v54, %v906_v50  ;;  %v2007_v58 = vadd.f32 %v1975_v35, %v1910_v7  ;;  %v1163_v60 = vadd.f32 %v1131_v24, %v1066_v17  ;;  %v1259_v61 = vadd.f32 %v1227_v23, %v1162_v0  ;;  %v7694_v0 = vld [vmem:[#allocation2 + $0x22] sm:$0xff] }
  0xc8   : > { %v595_v39 = vadd.f32 %v7464_v18, %v594_v31  ;;  %v1585_v41 = vadd.f32 %v7609_v52, %v1549_v30  ;;  %v1550_v51 = vadd.f32 %v1518_v38, %v1453_v37  ;;  %v2071_v63 = vmul.f32 %v7657_v1, %v2038_v45 }
  0xc9   : > { %v713_v36 = vld [vmem:[#allocation2 + $0x60] sm:$0xff]  ;;  %v2168_v50 = vmul.f32 %v7659_v2, %v2135_v47  ;;  %v2072_v5 = vmul.f32 %v7657_v1, %v2039_v49  ;;  %v1685_v10 = vmul.f32 %v1941_v6, %v7584_v15  ;;  %v1782_v11 = vmul.f32 %v2038_v45, %v7587_v20 }
  0xca   : > { %v810_v55 = vld [vmem:[#allocation2 + $0x61] sm:$0xff]  ;;  %v1035_v56 = vmul.f32 %v7545_v43, %v713_v36  ;;  %677 = vst.msk [vmem:[#allocation2 + $0x69] sm:$0xff] %vm362_vm2, %v595_v39  ;;  %v1325_v44 = vmul.f32 %v7568_v62, %v713_v36  ;;  %v1586_v3 = vadd.f32 %v7609_v52, %v1550_v51  ;;  %v746_v4 = vmul.f32 %v7499_v26, %v713_v36 }
  0xcb   : > { %1617 = vst.msk [vmem:[#allocation2 + $0x31] sm:$0xff] %vm362_vm2, %v1585_v41  ;;  %6642 = vmatmul.msk.f32.gmra.mxu0 %vm455_vm1, %v441_v42  ;;  %v843_v29 = vmul.f32 %v7501_v27, %v810_v55  ;;  %v1132_v7 = vmul.f32 %v7562_v53, %v810_v55  ;;  %v1422_v13 = vmul.f32 %v7580_v9, %v810_v55  ;;  %v7704_v30 = vperm.slane %v1649_v8, 0  ;;  %v442_v42 = vld [vmem:[%s7361_s21 + $0xc0] sm:$0xff] }
  0xcc   : > { %1618 = vst.msk [vmem:[#allocation2 + $0x39] sm:$0xff] %vm362_vm2, %v1586_v3  ;;  %v1067_v12 = vadd.f32 %v1035_v56, %v970_v48  ;;  %v2103_v14 = vadd.f32 %v2071_v63, %v2006_v57  ;;  %v2104_v16 = vadd.f32 %v2072_v5, %v2007_v58  ;;  %v1357_v22 = vadd.f32 %v1325_v44, %v1259_v61 }
  0xcd   : > { %v1879_v34 = vmul.f32 %v2135_v47, %v7611_v28  ;;  %v1686_v17 = vmul.f32 %v1942_v19, %v7584_v15  ;;  %v1783_v23 = vmul.f32 %v2039_v49, %v7587_v20  ;;  %v7706_v31 = vperm.slane %v1649_v8, 1 }
  0xce   : > { %v2169_v35 = vmul.f32 %v7659_v2, %v7694_v0  ;;  %v971_v24 = vadd.f32 %v939_v21, %v874_v46  ;;  %v1260_v37 = vadd.f32 %v1228_v40, %v1163_v60  ;;  %v7711_v45 = vperm.slane %v1649_v8, 2 }
  0xcf   : > { %v597_v33 = vpop.f32.mrf.mxu0  ;;  %v1814_v48 = vadd.f32 %v1782_v11, %v1685_v10  ;;  %v875_v19 = vadd.f32 %v843_v29, %v746_v4  ;;  %v1164_v41 = vadd.f32 %v1132_v7, %v1067_v12  ;;  %v2200_v47 = vadd.f32 %v2168_v50, %v2103_v14 }
  0xd0   : > { %v598_v6 = vadd.f32 %v7464_v18, %v597_v33  ;;  %12187 = vst [vmem:[#allocation8_spill] sm:$0xff] %v7711_v45  ;;  %v2201_v49 = vadd.f32 %v2169_v35, %v2104_v16  ;;  %v1454_v51 = vadd.f32 %v1422_v13, %v1357_v22  ;;  %v7719_v46 = vadd.f32 %v1783_v23, %v1686_v17 }
  0xd1   : > { %v714_v38 = vld [vmem:[#allocation2 + $0x68] sm:$0xff]  ;;  %v7717_v21 = vadd.f32 %v1879_v34, %v1814_v48 }
  0xd2   : > { %v811_v39 = vld [vmem:[#allocation2 + $0x69] sm:$0xff]  ;;  %678 = vst.msk [vmem:[#allocation2 + $0x79] sm:$0xff] %vm362_vm2, %v598_v6  ;;  %v1036_v56 = vmul.f32 %v7545_v43, %v714_v38  ;;  %v747_v40 = vmul.f32 %v7499_v26, %v714_v38  ;;  %v1326_v60 = vmul.f32 %v7568_v62, %v714_v38  ;;  %v7736_v10 = vld [vmem:[#allocation2 + $0x31] sm:$0xff] }
  0xd3   : > { %v907_v36 = vld [vmem:[#allocation2 + $0x62] sm:$0xff]  ;;  %v908_v55 = vld [vmem:[#allocation2 + $0x6a] sm:$0xff]  ;;  %v844_v58 = vmul.f32 %v7501_v27, %v811_v39  ;;  %v1423_v61 = vmul.f32 %v7580_v9, %v811_v39  ;;  %6643 = vmatmul.msk.f32.gmra.mxu0 %vm455_vm1, %v442_v42  ;;  %v1133_v3 = vmul.f32 %v7562_v53, %v811_v39  ;;  %v7730_v50 = vld [vmem:[#allocation2 + $0x38] sm:$0xff] }
  0xd4   : > { %v7715_v57 = vld [vmem:[#allocation2 + $0x30] sm:$0xff]  ;;  %v940_v44 = vmul.f32 %v7519_v32, %v907_v36  ;;  %v941_v63 = vmul.f32 %v7519_v32, %v908_v55  ;;  %v1519_v4 = vmul.f32 %v7591_v25, %v907_v36  ;;  %12188 = vst [vmem:[#allocation9_spill] sm:$0xff] %v7730_v50  ;;  %v1229_v5 = vmul.f32 %v7564_v54, %v907_v36  ;;  %v7743_v33 = vld [vmem:[#allocation2 + $0x39] sm:$0xff]  ;;  %v443_v38 = vld [vmem:[%s7361_s21 + $0xc8] sm:$0xff] }
  0xd5   : > { %v1358_v29 = vadd.f32 %v1326_v60, %v1260_v37  ;;  %v1520_v7 = vmul.f32 %v7591_v25, %v908_v55  ;;  %v2265_v8 = vmul.f32 %v7704_v30, %v7715_v57  ;;  %v7738_v11 = vld [vmem:[#allocation2 + $0x32] sm:$0xff]  ;;  %v1068_v12 = vadd.f32 %v1036_v56, %v971_v24  ;;  %12189 = vst [vmem:[#allocation10_spill] sm:$0xff] %v7743_v33  ;;  %v7752_v48 = vld [vmem:[#allocation2 + $0x3a] sm:$0xff] }
  0xd6   : > { %v1230_v13 = vmul.f32 %v7564_v54, %v908_v55  ;;  %v1551_v14 = vadd.f32 %v1519_v4, %v1454_v51  ;;  %v2266_v22 = vmul.f32 %v7704_v30, %v7730_v50  ;;  %v876_v34 = vadd.f32 %v844_v58, %v747_v40  ;;  %12190 = vst [vmem:[#allocation11_spill] sm:$0xff] %v7752_v48 }
  0xd7   : > { %v600_v16 = vpop.f32.mrf.mxu0  ;;  %v1455_v17 = vadd.f32 %v1423_v61, %v1358_v29  ;;  %v2297_v6 = vadd.f32 %v2265_v8, %v2200_v47  ;;  %v2362_v24 = vmul.f32 %v7706_v31, %v7736_v10  ;;  %v2459_v39 = vmul.f32 %v7711_v45, %v7738_v11 }
  0xd8   : > { %v601_v23 = vadd.f32 %v7464_v18, %v600_v16  ;;  %v1587_v35 = vadd.f32 %v7609_v52, %v1551_v14  ;;  %v2298_v42 = vadd.f32 %v2266_v22, %v2201_v49  ;;  %v972_v51 = vadd.f32 %v940_v44, %v875_v19  ;;  %v7763_v49 = vld [vmem:[%s12042_s7] ss:$0 sm:$0xff] }
  0xd9   : > { %v715_v37 = vld [vmem:[#allocation2 + $0x78] sm:$0xff]  ;;  %v1552_v36 = vadd.f32 %v1520_v7, %v1455_v17  ;;  %v2363_v47 = vmul.f32 %v7706_v31, %v7743_v33  ;;  %v1165_v56 = vadd.f32 %v1133_v3, %v1068_v12  ;;  %v1261_v58 = vadd.f32 %v1229_v5, %v1164_v41 }
  0xda   : > { %v1037_v55 = vmul.f32 %v7545_v43, %v715_v37  ;;  %679 = vst.msk [vmem:[#allocation2 + $0x81] sm:$0xff] %vm362_vm2, %v601_v23  ;;  %v812_v40 = vld [vmem:[#allocation2 + $0x79] sm:$0xff]  ;;  %v1327_v60 = vmul.f32 %v7568_v62, %v715_v37  ;;  %v2394_v61 = vadd.f32 %v2362_v24, %v2297_v6  ;;  %v748_v44 = vmul.f32 %v7499_v26, %v715_v37 }
  0xdb   : > { %1619 = vst.msk [vmem:[#allocation2 + $0x49] sm:$0xff] %vm362_vm2, %v1587_v35  ;;  %v1588_v19 = vadd.f32 %v7609_v52, %v1552_v36  ;;  %6644 = vmatmul.msk.f32.gmra.mxu0 %vm455_vm1, %v443_v38  ;;  %v2395_v4 = vadd.f32 %v2363_v47, %v2298_v42  ;;  %v2460_v3 = vmul.f32 %v7711_v45, %v7752_v48 }
  0xdc   : > { %v845_v41 = vmul.f32 %v7501_v27, %v812_v40  ;;  %v1134_v5 = vmul.f32 %v7562_v53, %v812_v40  ;;  %v2491_v29 = vadd.f32 %v2459_v39, %v2394_v61  ;;  %v1976_v7 = vmul.f32 %v7715_v57, %v7652_v59 }
  0xdd   : > { %1620 = vst.msk [vmem:[#allocation2 + $0x51] sm:$0xff] %vm362_vm2, %v1588_v19  ;;  %v1069_v8 = vadd.f32 %v1037_v55, %v972_v51  ;;  %v1359_v12 = vadd.f32 %v1327_v60, %v1261_v58  ;;  %v1424_v14 = vmul.f32 %v7580_v9, %v812_v40  ;;  %v2492_v16 = vadd.f32 %v2460_v3, %v2395_v4 }
  0xde   : > { %v7777_v22 = vadd.f32 %v7763_v49, %v2491_v29  ;;  %v2008_v23 = vadd.f32 %v1976_v7, %v7717_v21  ;;  %v1880_v6 = vmul.f32 %v7694_v0, %v7611_v28  ;;  %v1977_v35 = vmul.f32 %v7730_v50, %v7652_v59 }
  0xdf   : > { %v603_v17 = vpop.f32.mrf.mxu0  ;;  %v973_v37 = vadd.f32 %v941_v63, %v876_v34  ;;  %v1262_v38 = vadd.f32 %v1230_v13, %v1165_v56  ;;  %v877_v39 = vadd.f32 %v845_v41, %v748_v44  ;;  %v2073_v51 = vmul.f32 %v7736_v10, %v7657_v1 }
  0xe0   : > { %12191 = vst [vmem:[#allocation12_spill] sm:$0xff] %v7777_v22  ;;  %v604_v24 = vadd.f32 %v7464_v18, %v603_v17  ;;  %v2559_v36 = vmul.f32 %v7777_v22, %v7777_v22  ;;  %v1912_v21 = vadd.f32 %v1880_v6, %v7719_v46  ;;  %v1166_v55 = vadd.f32 %v1134_v5, %v1069_v8 }
  0xe1   : > { %v716_v42 = vld [vmem:[#allocation2 + $0x80] sm:$0xff]  ;;  %v1456_v47 = vadd.f32 %v1424_v14, %v1359_v12  ;;  %v7792_v63 = vadd.f32 %v7763_v49, %v2492_v16  ;;  %v2170_v13 = vmul.f32 %v7738_v11, %v7659_v2  ;;  %v2105_v56 = vadd.f32 %v2073_v51, %v2008_v23 }
  0xe2   : > { %v813_v0 = vld [vmem:[#allocation2 + $0x81] sm:$0xff]  ;;  %680 = vst.msk [vmem:[#allocation2 + $0x91] sm:$0xff] %vm362_vm2, %v604_v24  ;;  %3615 = vrot.lane.b32.xlu0 %v2559_v36, %s7281_s23  ;;  %v2009_v58 = vadd.f32 %v1977_v35, %v1912_v21  ;;  %v2074_v46 = vmul.f32 %v7743_v33, %v7657_v1  ;;  %v2171_v60 = vmul.f32 %v7752_v48, %v7659_v2  ;;  %v7811_v8 = vld [vmem:[#allocation2 + $0x49] sm:$0xff]  ;;  %v2591_v17 = vsel %vm455_vm1, %v2559_v36, 0.0 }
  0xe3   : > { %v909_v40 = vld [vmem:[#allocation2 + $0x7a] sm:$0xff]  ;;  %12192 = vst [vmem:[#allocation13_spill] sm:$0xff] %v7792_v63  ;;  %v910_v34 = vld [vmem:[#allocation2 + $0x82] sm:$0xff]  ;;  %v749_v61 = vmul.f32 %v7499_v26, %v716_v42  ;;  %v846_v19 = vmul.f32 %v7501_v27, %v813_v0  ;;  %v1038_v44 = vmul.f32 %v7545_v43, %v716_v42  ;;  %v1328_v4 = vmul.f32 %v7568_v62, %v716_v42 }
  0xe4   : > { %v7805_v3 = vld [vmem:[#allocation2 + $0x48] sm:$0xff]  ;;  %v942_v41 = vmul.f32 %v7519_v32, %v909_v40  ;;  %v1135_v5 = vmul.f32 %v7562_v53, %v813_v0  ;;  %v1425_v29 = vmul.f32 %v7580_v9, %v813_v0  ;;  %v1521_v7 = vmul.f32 %v7591_v25, %v909_v40  ;;  %2592 = vadd.xlane.f32.xlu2 %v2591_v17 }
  0xe5   : > { %v1231_v12 = vmul.f32 %v7564_v54, %v909_v40  ;;  %v1360_v14 = vadd.f32 %v1328_v4, %v1262_v38  ;;  %v1522_v16 = vmul.f32 %v7591_v25, %v910_v34  ;;  %v7816_v23 = vld [vmem:[#allocation2 + $0x4a] sm:$0xff]  ;;  %v7820_v35 = vmul.f32 %v7792_v63, %v7792_v63 }
  0xe6   : > { %v1553_v6 = vadd.f32 %v1521_v7, %v1456_v47  ;;  %v2202_v42 = vadd.f32 %v2170_v13, %v2105_v56  ;;  %v2267_v51 = vmul.f32 %v7704_v30, %v7805_v3  ;;  %v1070_v21 = vadd.f32 %v1038_v44, %v973_v37  ;;  %v7833_v44 = vld [vmem:[#allocation2 + $0x50] sm:$0xff] }
  0xe7   : > { %v606_v24 = vpop.f32.mrf.mxu0  ;;  %v1457_v0 = vadd.f32 %v1425_v29, %v1360_v14  ;;  %v2364_v36 = vmul.f32 %v7706_v31, %v7811_v8  ;;  %v2594_v4 = vsel %vm455_vm1, %v7820_v35, 0.0  ;;  %v2461_v13 = vmul.f32 %v7711_v45, %v7816_v23  ;;  %12193 = vst [vmem:[#allocation14_spill] sm:$0xff] %v7833_v44 }
  0xe8   : > { %v607_v38 = vadd.f32 %v7464_v18, %v606_v24  ;;  %v1589_v40 = vadd.f32 %v7609_v52, %v1553_v6  ;;  %v2299_v7 = vadd.f32 %v2267_v51, %v2202_v42  ;;  %v974_v56 = vadd.f32 %v942_v41, %v877_v39  ;;  %2595 = vadd.xlane.f32.xlu1 %v2594_v4 }
  0xe9   : > { %v717_v47 = vld [vmem:[#allocation2 + $0x90] sm:$0xff]  ;;  %v1554_v17 = vadd.f32 %v1522_v16, %v1457_v0  ;;  %v1687_v29 = vmul.f32 %v7715_v57, %v7584_v15  ;;  %v943_v14 = vmul.f32 %v7519_v32, %v910_v34  ;;  %v1232_v6 = vmul.f32 %v7564_v54, %v910_v34 }
  0xea   : > { %v1039_v37 = vmul.f32 %v7545_v43, %v717_v47  ;;  %1621 = vst.msk [vmem:[#allocation2 + $0x61] sm:$0xff] %vm362_vm2, %v1589_v40  ;;  %v1329_v24 = vmul.f32 %v7568_v62, %v717_v47  ;;  %v2396_v42 = vadd.f32 %v2364_v36, %v2299_v7  ;;  %v878_v51 = vadd.f32 %v846_v19, %v749_v61  ;;  %v814_v16 = vld [vmem:[#allocation2 + $0x91] sm:$0xff] }
  0xeb   : > { %v1263_v39 = vadd.f32 %v1231_v12, %v1166_v55  ;;  %v1590_v41 = vadd.f32 %v7609_v52, %v1554_v17  ;;  %681 = vst.msk [vmem:[#allocation2 + $0x99] sm:$0xff] %vm362_vm2, %v607_v38  ;;  %v2106_v0 = vadd.f32 %v2074_v46, %v2009_v58  ;;  %v1167_v4 = vadd.f32 %v1135_v5, %v1070_v21  ;;  %v7853_v5 = vld [vmem:[#allocation2 + $0x51] sm:$0xff] }
  0xec   : > { %v750_v57 = vmul.f32 %v7499_v26, %v717_v47  ;;  %v2493_v22 = vadd.f32 %v2461_v13, %v2396_v42  ;;  %v2268_v34 = vmul.f32 %v7704_v30, %v7833_v44  ;;  %v847_v40 = vmul.f32 %v7501_v27, %v814_v16  ;;  %v7855_v21 = vld [vmem:[#allocation2 + $0x52] sm:$0xff] }
  0xed   : > { %1622 = vst.msk [vmem:[#allocation2 + $0x69] sm:$0xff] %vm362_vm2, %v1590_v41  ;;  %v1071_v36 = vadd.f32 %v1039_v37, %v974_v56  ;;  %v1136_v55 = vmul.f32 %v7562_v53, %v814_v16  ;;  %v2203_v61 = vadd.f32 %v2171_v60, %v2106_v0  ;;  %v1361_v19 = vadd.f32 %v1329_v24, %v1263_v39 }
  0xee   : > { %v1426_v12 = vmul.f32 %v7580_v9, %v814_v16  ;;  %v7851_v58 = vadd.f32 %v7763_v49, %v2493_v22  ;;  %12195 = vst [vmem:[#allocation16_spill] sm:$0xff] %v7855_v21  ;;  %v1784_v38 = vmul.f32 %v7736_v10, %v7587_v20  ;;  %v975_v13 = vadd.f32 %v943_v14, %v878_v51 }
  0xef   : > { %v609_v46 = vpop.f32.mrf.mxu0  ;;  %v2300_v7 = vadd.f32 %v2268_v34, %v2203_v61  ;;  %v1264_v56 = vadd.f32 %v1232_v6, %v1167_v4  ;;  %v1881_v22 = vmul.f32 %v7738_v11, %v7611_v28  ;;  %v879_v17 = vadd.f32 %v847_v40, %v750_v57 }
  0xf0   : > { %12194 = vst [vmem:[#allocation15_spill] sm:$0xff] %v7851_v58  ;;  %v610_v47 = vadd.f32 %v7464_v18, %v609_v46  ;;  %v7862_v60 = vmul.f32 %v7851_v58, %v7851_v58  ;;  %v1168_v37 = vadd.f32 %v1136_v55, %v1071_v36  ;;  %v2365_v24 = vmul.f32 %v7706_v31, %v7853_v5 }
  0xf1   : > { %v2462_v10 = vmul.f32 %v7711_v45, %v7855_v21  ;;  %v1458_v42 = vadd.f32 %v1426_v12, %v1361_v19  ;;  %v1816_v6 = vadd.f32 %v1784_v38, %v1687_v29  ;;  %v1978_v51 = vmul.f32 %v7805_v3, %v7652_v59  ;;  %v7877_v39 = vld [vmem:[#allocation2 + $0x60] sm:$0xff] }
  0xf2   : > { %12196 = vst [vmem:[#allocation17_spill] sm:$0xff] %v7862_v60  ;;  %v718_v14 = vld [vmem:[#allocation2 + $0x98] sm:$0xff]  ;;  %3619 = vrot.lane.b32.xlu0 %v7862_v60, %s7281_s23  ;;  %v2075_v11 = vmul.f32 %v7811_v8, %v7657_v1  ;;  %v2397_v0 = vadd.f32 %v2365_v24, %v2300_v7  ;;  %v7881_v4 = vmul.f32 %v7816_v23, %v7659_v2 }
  0xf3   : > { %682 = vst.msk [vmem:[#allocation2 + $0xa9] sm:$0xff] %vm362_vm2, %v610_v47  ;;  %v815_v41 = vld [vmem:[#allocation2 + $0x99] sm:$0xff]  ;;  %v1689_v57 = vmul.f32 %v7805_v3, %v7584_v15  ;;  %v1786_v29 = vmul.f32 %v7811_v8, %v7587_v20  ;;  %v1040_v40 = vmul.f32 %v7545_v43, %v718_v14  ;;  %v1913_v36 = vadd.f32 %v1881_v22, %v1816_v6 }
  0xf4   : > { %v911_v16 = vld [vmem:[#allocation2 + $0x92] sm:$0xff]  ;;  %v912_v34 = vld [vmem:[#allocation2 + $0x9a] sm:$0xff]  ;;  %v1883_v55 = vmul.f32 %v7816_v23, %v7611_v28  ;;  %v7892_v61 = vmul.f32 %v7833_v44, %v7584_v15  ;;  %v751_v19 = vmul.f32 %v7499_v26, %v718_v14  ;;  %v848_v12 = vmul.f32 %v7501_v27, %v815_v41 }
  0xf5   : > { %v1330_v3 = vmul.f32 %v7568_v62, %v718_v14  ;;  %v7899_v8 = vmul.f32 %v7704_v30, %v7877_v39  ;;  %v944_v46 = vmul.f32 %v7519_v32, %v911_v16  ;;  %v1137_v38 = vmul.f32 %v7562_v53, %v815_v41 }
  0xf6   : > { %v1427_v23 = vmul.f32 %v7580_v9, %v815_v41  ;;  %v1523_v47 = vmul.f32 %v7591_v25, %v911_v16  ;;  %v1233_v22 = vmul.f32 %v7564_v54, %v911_v16  ;;  %v1524_v6 = vmul.f32 %v7591_v25, %v912_v34 }
  0xf7   : > { %v612_v7 = vpop.f32.mrf.mxu0  ;;  %v1362_v24 = vadd.f32 %v1330_v3, %v1264_v56  ;;  %v2494_v58 = vadd.f32 %v2462_v10, %v2397_v0  ;;  %v1072_v14 = vadd.f32 %v1040_v40, %v975_v13  ;;  %v2010_v48 = vadd.f32 %v1978_v51, %v1913_v36 }
  0xf8   : > { %v1555_v63 = vadd.f32 %v1523_v47, %v1458_v42  ;;  %v613_v44 = vadd.f32 %v7464_v18, %v612_v7  ;;  %v945_v33 = vmul.f32 %v7519_v32, %v912_v34  ;;  %v1818_v15 = vadd.f32 %v1786_v29, %v1689_v57 }
  0xf9   : > { %v1459_v50 = vadd.f32 %v1427_v23, %v1362_v24  ;;  %v1980_v41 = vmul.f32 %v7877_v39, %v7652_v59  ;;  %v976_v21 = vadd.f32 %v944_v46, %v879_v17  ;;  %v880_v13 = vadd.f32 %v848_v12, %v751_v19 }
  0xfa   : > { %v719_v60 = vld [vmem:[#allocation2 + $0xa8] sm:$0xff]  ;;  %v1591_v16 = vadd.f32 %v7609_v52, %v1555_v63  ;;  %683 = vst.msk [vmem:[#allocation2 + $0xb1] sm:$0xff] %vm362_vm2, %v613_v44  ;;  %v1234_v42 = vmul.f32 %v7564_v54, %v912_v34  ;;  %v7917_v40 = vadd.f32 %v7763_v49, %v2494_v58  ;;  %v1169_v57 = vadd.f32 %v1137_v38, %v1072_v14 }
  0xfb   : > { %v1041_v56 = vmul.f32 %v7545_v43, %v719_v60  ;;  %v1331_v10 = vmul.f32 %v7568_v62, %v719_v60  ;;  %v1556_v51 = vadd.f32 %v1524_v6, %v1459_v50  ;;  %v816_v0 = vld [vmem:[#allocation2 + $0xa9] sm:$0xff]  ;;  %v1265_v29 = vadd.f32 %v1233_v22, %v1168_v37  ;;  %v7927_v50 = vld [vmem:[#allocation2 + $0x61] sm:$0xff] }
  0xfc   : > { %12197 = vst [vmem:[#allocation18_spill] sm:$0xff] %v7917_v40  ;;  %v752_v63 = vmul.f32 %v7499_v26, %v719_v60  ;;  %v2107_v17 = vadd.f32 %v2075_v11, %v2010_v48  ;;  %v849_v3 = vmul.f32 %v7501_v27, %v816_v0  ;;  %v7925_v44 = vmul.f32 %v7917_v40, %v7917_v40  ;;  %v7933_v48 = vld [vmem:[#allocation2 + $0x62] sm:$0xff] }
  0xfd   : > { %1623 = vst.msk [vmem:[#allocation2 + $0x79] sm:$0xff] %vm362_vm2, %v1591_v16  ;;  %v1592_v36 = vadd.f32 %v7609_v52, %v1556_v51  ;;  %v1915_v34 = vadd.f32 %v1883_v55, %v1818_v15  ;;  %v1073_v58 = vadd.f32 %v1041_v56, %v976_v21  ;;  %v1138_v19 = vmul.f32 %v7562_v53, %v816_v0 }
  0xfe   : > { %v1363_v37 = vadd.f32 %v1331_v10, %v1265_v29  ;;  %v1428_v12 = vmul.f32 %v7580_v9, %v816_v0  ;;  %3617 = vrot.lane.b32.xlu2 %v7820_v35, %s7281_s23  ;;  %3621 = vrot.lane.b32.xlu0 %v7925_v44, %s7281_s23  ;;  %v1787_v21 = vmul.f32 %v7853_v5, %v7587_v20 }
  0xff   : > { %v615_v60 = vpop.f32.mrf.mxu0  ;;  %1624 = vst.msk [vmem:[#allocation2 + $0x81] sm:$0xff] %vm362_vm2, %v1592_v36  ;;  %v2012_v15 = vadd.f32 %v1980_v41, %v1915_v34  ;;  %v977_v55 = vadd.f32 %v945_v33, %v880_v13  ;;  %v2204_v46 = vadd.f32 %v7881_v4, %v2107_v17  ;;  %v2366_v35 = vmul.f32 %v7706_v31, %v7927_v50 }
 0x100   : > { %v616_v11 = vadd.f32 %v7464_v18, %v615_v60  ;;  %v1266_v38 = vadd.f32 %v1234_v42, %v1169_v57  ;;  %v881_v23 = vadd.f32 %v849_v3, %v752_v63  ;;  %v2463_v7 = vmul.f32 %v7711_v45, %v7933_v48  ;;  %v7974_v60 = vld [vmem:[%s12038_s3] ss:$0 sm:$0xff] }
 0x101   : > { %v720_v47 = vld [vmem:[#allocation2 + $0xb0] sm:$0xff]  ;;  %v2077_v18 = vmul.f32 %v7927_v50, %v7657_v1  ;;  %v1170_v22 = vadd.f32 %v1138_v19, %v1073_v58  ;;  %v2301_v4 = vadd.f32 %v7899_v8, %v2204_v46  ;;  %v2174_v14 = vmul.f32 %v7933_v48, %v7659_v2 }
 0x102   : > { %684 = vst.msk [vmem:[#allocation2 + $0xc1] sm:$0xff] %vm362_vm2, %v616_v11  ;;  %v817_v24 = vld [vmem:[#allocation2 + $0xb1] sm:$0xff]  ;;  %v1042_v33 = vmul.f32 %v7545_v43, %v720_v47  ;;  %v1460_v41 = vadd.f32 %v1428_v12, %v1363_v37  ;;  %v753_v16 = vmul.f32 %v7499_v26, %v720_v47  ;;  %v7955_v13 = vadd.f32 %v1787_v21, %v7892_v61 }
 0x103   : > { %v913_v6 = vld [vmem:[#allocation2 + $0xaa] sm:$0xff]  ;;  %v914_v56 = vld [vmem:[#allocation2 + $0xb2] sm:$0xff]  ;;  %v2109_v10 = vadd.f32 %v2077_v18, %v2012_v15  ;;  %v850_v42 = vmul.f32 %v7501_v27, %v817_v24  ;;  %v1332_v8 = vmul.f32 %v7568_v62, %v720_v47  ;;  %v1139_v29 = vmul.f32 %v7562_v53, %v817_v24 }
 0x104   : > { %v946_v51 = vmul.f32 %v7519_v32, %v913_v6  ;;  %v7960_v0 = vmul.f32 %v7519_v32, %v914_v56  ;;  %v7963_v57 = vld [vmem:[#allocation2 + $0x78] sm:$0xff]  ;;  %v1235_v63 = vmul.f32 %v7564_v54, %v913_v6  ;;  %v1429_v17 = vmul.f32 %v7580_v9, %v817_v24 }
 0x105   : > { %12198 = vst [vmem:[#allocation19_spill] sm:$0xff] %v7963_v57  ;;  %v1525_v61 = vmul.f32 %v7591_v25, %v913_v6  ;;  %v1074_v36 = vadd.f32 %v1042_v33, %v977_v55  ;;  %v1364_v3 = vadd.f32 %v1332_v8, %v1266_v38  ;;  %v1526_v34 = vmul.f32 %v7591_v25, %v914_v56 }
 0x106   : > { %v2398_v58 = vadd.f32 %v2366_v35, %v2301_v4  ;;  %v1236_v37 = vmul.f32 %v7564_v54, %v914_v56  ;;  %v2271_v15 = vmul.f32 %v7704_v30, %v7963_v57  ;;  %v882_v21 = vadd.f32 %v850_v42, %v753_v16  ;;  %v7979_v35 = vld [vmem:[#allocation2 + $0x79] sm:$0xff] }
 0x107   : > { %v618_v19 = vpop.f32.mrf.mxu0  ;;  %v1557_v12 = vadd.f32 %v1525_v61, %v1460_v41  ;;  %v978_v55 = vadd.f32 %v946_v51, %v881_v23  ;;  %v1461_v46 = vadd.f32 %v1429_v17, %v1364_v3  ;;  %12199 = vst [vmem:[#allocation20_spill] sm:$0xff] %v7979_v35  ;;  %v1267_v18 = vadd.f32 %v1235_v63, %v1170_v22  ;;  %v8003_v61 = vld [vmem:[#allocation2 + $0x69] sm:$0xff] }
 0x108   : > { %v619_v11 = vadd.f32 %v7974_v60, %v618_v19  ;;  %v2495_v38 = vadd.f32 %v2463_v7, %v2398_v58  ;;  %v2206_v33 = vadd.f32 %v2174_v14, %v2109_v10  ;;  %v1171_v4 = vadd.f32 %v1139_v29, %v1074_v36  ;;  %v7988_v7 = vld [vmem:[#allocation2 + $0x7a] sm:$0xff]  ;;  %v7995_v10 = vld [vmem:[#allocation2 + $0x68] sm:$0xff] }
 0x109   : > { %v721_v47 = vld [vmem:[#allocation2 + $0xc0] sm:$0xff]  ;;  %v1593_v24 = vadd.f32 %v7609_v52, %v1557_v12  ;;  %v1558_v41 = vadd.f32 %v1526_v34, %v1461_v46  ;;  %12201 = vst [vmem:[#allocation22_spill] sm:$0xff] %v7988_v7  ;;  %v2368_v14 = vmul.f32 %v7706_v31, %v7979_v35  ;;  %v8005_v36 = vld [vmem:[#allocation2 + $0x6a] sm:$0xff]  ;;  %v2465_v19 = vmul.f32 %v7711_v45, %v7988_v7 }
 0x10a   : > { %v1043_v6 = vmul.f32 %v7545_v43, %v721_v47  ;;  %685 = vst.msk [vmem:[#allocation2 + $0xc9] sm:$0xff] %vm362_vm2, %v619_v11  ;;  %v7985_v56 = vadd.f32 %v7763_v49, %v2495_v38  ;;  %v818_v16 = vld [vmem:[#allocation2 + $0xc1] sm:$0xff]  ;;  %v1333_v23 = vmul.f32 %v7568_v62, %v721_v47  ;;  %v754_v22 = vmul.f32 %v7499_v26, %v721_v47  ;;  %v12203_v12 = vld [vmem:[#allocation16_spill] sm:$0xff] }
 0x10b   : > { %1625 = vst.msk [vmem:[#allocation2 + $0x91] sm:$0xff] %vm362_vm2, %v1593_v24  ;;  %v851_v42 = vmul.f32 %v7501_v27, %v818_v16  ;;  %v2303_v51 = vadd.f32 %v2271_v15, %v2206_v33  ;;  %v1594_v8 = vadd.f32 %v7609_v52, %v1558_v41  ;;  %v1140_v17 = vmul.f32 %v7562_v53, %v818_v16  ;;  %v8028_v24 = vld [vmem:[#allocation2 + $0x81] sm:$0xff]  ;;  %v12208_v33 = vld [vmem:[#allocation4_spill] sm:$0xff]  ;;  %v12209_v41 = vld [vmem:[#allocation9_spill] sm:$0xff] }
 0x10c   : > { %12200 = vst [vmem:[#allocation21_spill] sm:$0xff] %v7985_v56  ;;  %v8000_v29 = vmul.f32 %v7985_v56, %v7985_v56  ;;  %v1075_v63 = vadd.f32 %v1043_v6, %v978_v55  ;;  %v1365_v3 = vadd.f32 %v1333_v23, %v1267_v18  ;;  %v1430_v34 = vmul.f32 %v7580_v9, %v818_v16  ;;  %v8017_v55 = vld [vmem:[#allocation2 + $0x80] sm:$0xff]  ;;  %v444_v35 = vld [vmem:[%s7361_s21 + $0xd0] sm:$0xff] }
 0x10d   : > { %v2400_v58 = vadd.f32 %v2368_v14, %v2303_v51  ;;  %1626 = vst.msk [vmem:[#allocation2 + $0x99] sm:$0xff] %vm362_vm2, %v1594_v8  ;;  %v1884_v11 = vmul.f32 %v12203_v12, %v7611_v28  ;;  %v1981_v15 = vmul.f32 %v7652_v59, %v7995_v10  ;;  %v8021_v46 = vsel %vm455_vm1, %v7925_v44, 0.0  ;;  %v8030_v6 = vld [vmem:[#allocation2 + $0x82] sm:$0xff]  ;;  %6645 = vmatmul.msk.f32.gmra.mxu0 %vm455_vm1, %v444_v35 }
 0x10e   : > { %12202 = vst [vmem:[#allocation23_spill] sm:$0xff] %v8000_v29  ;;  %3623 = vrot.lane.b32.xlu1 %v8000_v29, %s7281_s23  ;;  %v2078_v47 = vmul.f32 %v7657_v1, %v8003_v61  ;;  %v2175_v18 = vmul.f32 %v7659_v2, %v8005_v36  ;;  %v1688_v16 = vmul.f32 %v12209_v41, %v12208_v33 }
 0x10f   : > { %v621_v52 = vpop.f32.mrf.mxu0  ;;  %12204 = vst [vmem:[#allocation16_spill] sm:$0xff] %v8017_v55  ;;  %v979_v23 = vadd.f32 %v7960_v0, %v882_v21  ;;  %v1268_v44 = vadd.f32 %v1236_v37, %v1171_v4  ;;  %v883_v51 = vadd.f32 %v851_v42, %v754_v22  ;;  %v1916_v8 = vadd.f32 %v1884_v11, %v7955_v13  ;;  %v12210_v13 = vld [vmem:[#allocation10_spill] sm:$0xff]  ;;  %v12211_v42 = vld [vmem:[#allocation11_spill] sm:$0xff] }
 0x110   : > { %12205 = vst [vmem:[#allocation24_spill] sm:$0xff] %v8021_v46  ;;  %v622_v38 = vadd.f32 %v7974_v60, %v621_v52  ;;  %v1172_v52 = vadd.f32 %v1140_v17, %v1075_v63  ;;  %v1462_v56 = vadd.f32 %v1430_v34, %v1365_v3  ;;  %v2497_v7 = vadd.f32 %v2465_v19, %v2400_v58  ;;  %v12212_v17 = vld [vmem:[#allocation14_spill] sm:$0xff] }
 0x111   : > { %12206 = vst [vmem:[#allocation25_spill] sm:$0xff] %v8028_v24  ;;  %v722_v14 = vld [vmem:[#allocation2 + $0xc8] sm:$0xff]  ;;  %v2272_v46 = vmul.f32 %v7704_v30, %v8017_v55  ;;  %v2013_v41 = vadd.f32 %v1981_v15, %v1916_v8  ;;  %v2369_v0 = vmul.f32 %v7706_v31, %v8028_v24  ;;  %v2466_v37 = vmul.f32 %v7711_v45, %v8030_v6 }
 0x112   : > { %12207 = vst [vmem:[#allocation26_spill] sm:$0xff] %v8030_v6  ;;  %v819_v40 = vld [vmem:[#allocation2 + $0xc9] sm:$0xff]  ;;  %v1785_v21 = vmul.f32 %v12210_v13, %v7587_v20  ;;  %v1044_v4 = vmul.f32 %v7545_v43, %v722_v14  ;;  %v1334_v22 = vmul.f32 %v7568_v62, %v722_v14  ;;  %v1882_v63 = vmul.f32 %v12211_v42, %v7611_v28 }
 0x113   : > { %v915_v29 = vld [vmem:[#allocation2 + $0xc2] sm:$0xff]  ;;  %686 = vst.msk [vmem:[#allocation2 + $0xd9] sm:$0xff] %vm362_vm2, %v622_v38  ;;  %v916_v57 = vld [vmem:[#allocation2 + $0xca] sm:$0xff]  ;;  %v1979_v3 = vmul.f32 %v12212_v17, %v7652_v59  ;;  %v755_v34 = vmul.f32 %v7499_v26, %v722_v14  ;;  %v852_v58 = vmul.f32 %v7501_v27, %v819_v40  ;;  %v1431_v19 = vmul.f32 %v7580_v9, %v819_v40 }
 0x114   : > { %v1527_v35 = vmul.f32 %v7591_v25, %v915_v29  ;;  %v948_v11 = vmul.f32 %v7519_v32, %v915_v29  ;;  %v1366_v15 = vadd.f32 %v1334_v22, %v1268_v44  ;;  %v1528_v38 = vmul.f32 %v7591_v25, %v916_v57  ;;  %v8071_v44 = vld [vmem:[%s12040_s5] ss:$0 sm:$0xff] }
 0x115   : > { %v8060_v8 = vadd.f32 %v7763_v49, %v2497_v7  ;;  %v1141_v13 = vmul.f32 %v7562_v53, %v819_v40  ;;  %v2110_v17 = vadd.f32 %v2078_v47, %v2013_v41  ;;  %v1817_v6 = vadd.f32 %v1785_v21, %v1688_v16 }
 0x116   : > { %v1559_v42 = vadd.f32 %v1527_v35, %v1462_v56  ;;  %v1076_v14 = vadd.f32 %v1044_v4, %v979_v23  ;;  %v1237_v24 = vmul.f32 %v7564_v54, %v915_v29  ;;  %v1463_v55 = vadd.f32 %v1431_v19, %v1366_v15 }
 0x117   : > { %12213 = vst [vmem:[#allocation9_spill] sm:$0xff] %v8060_v8  ;;  %v8066_v59 = vmul.f32 %v8060_v8, %v8060_v8  ;;  %v624_v45 = vpop.f32.mrf.mxu0  ;;  %v2207_v56 = vadd.f32 %v2175_v18, %v2110_v17  ;;  %v1914_v16 = vadd.f32 %v1882_v63, %v1817_v6  ;;  %v980_v23 = vadd.f32 %v948_v11, %v883_v51  ;;  %v445_v17 = vld [vmem:[%s7361_s21 + $0xd8] sm:$0xff] }
 0x118   : > { %v1595_v7 = vadd.f32 %v8071_v44, %v1559_v42  ;;  %v625_v47 = vadd.f32 %v7974_v60, %v624_v45  ;;  %v1560_v29 = vadd.f32 %v1528_v38, %v1463_v55  ;;  %v2076_v21 = vmul.f32 %v7853_v5, %v7657_v1  ;;  %v12214_v42 = vld [vmem:[#allocation17_spill] sm:$0xff]  ;;  %6646 = vmatmul.msk.f32.gmra.mxu0 %vm455_vm1, %v445_v17 }
 0x119   : > { %3627 = vrot.lane.b32.xlu1 %v8066_v59, %s7281_s23  ;;  %v949_v4 = vmul.f32 %v7519_v32, %v916_v57  ;;  %v1238_v22 = vmul.f32 %v7564_v54, %v916_v57  ;;  %v2304_v6 = vadd.f32 %v2272_v46, %v2207_v56  ;;  %v884_v51 = vadd.f32 %v852_v58, %v755_v34 }
 0x11a   : > { %v723_v40 = vld [vmem:[#allocation2 + $0xd8] sm:$0xff]  ;;  %1627 = vst.msk [vmem:[#allocation2 + $0xa9] sm:$0xff] %vm362_vm2, %v1595_v7  ;;  %v1269_v55 = vadd.f32 %v1237_v24, %v1172_v52  ;;  %v1596_v63 = vadd.f32 %v8071_v44, %v1560_v29  ;;  %v2011_v19 = vadd.f32 %v1979_v3, %v1914_v16  ;;  %v1173_v35 = vadd.f32 %v1141_v13, %v1076_v14 }
 0x11b   : > { %v1045_v41 = vmul.f32 %v7545_v43, %v723_v40  ;;  %v820_v18 = vld [vmem:[#allocation2 + $0xd9] sm:$0xff]  ;;  %v1335_v45 = vmul.f32 %v7568_v62, %v723_v40  ;;  %687 = vst.msk [vmem:[#allocation2 + $0xe1] sm:$0xff] %vm362_vm2, %v625_v47  ;;  %v756_v5 = vmul.f32 %v7499_v26, %v723_v40  ;;  %v2401_v57 = vadd.f32 %v2369_v0, %v2304_v6 }
 0x11c   : > { %v853_v11 = vmul.f32 %v7501_v27, %v820_v18  ;;  %1628 = vst.msk [vmem:[#allocation2 + $0xb1] sm:$0xff] %vm362_vm2, %v1596_v63  ;;  %v1142_v38 = vmul.f32 %v7562_v53, %v820_v18  ;;  %v1432_v46 = vmul.f32 %v7580_v9, %v820_v18  ;;  %v2108_v24 = vadd.f32 %v2076_v21, %v2011_v19 }
 0x11d   : > { %v1077_v15 = vadd.f32 %v1045_v41, %v980_v23  ;;  %v1367_v52 = vadd.f32 %v1335_v45, %v1269_v55  ;;  %v2498_v34 = vadd.f32 %v2466_v37, %v2401_v57  ;;  %v1691_v3 = vmul.f32 %v7877_v39, %v12208_v33  ;;  %v12216_v23 = vld [vmem:[#allocation8_spill] sm:$0xff] }
 0x11e   : > { %v1788_v58 = vmul.f32 %v7927_v50, %v7587_v20  ;;  %v981_v13 = vadd.f32 %v949_v4, %v884_v51  ;;  %v2597_v0 = vsel %vm455_vm1, %v12214_v42, 0.0  ;;  %v2173_v14 = vmul.f32 %v12203_v12, %v7659_v2 }
 0x11f   : > { %v2270_v7 = vmul.f32 %v7704_v30, %v7995_v10  ;;  %v1270_v40 = vadd.f32 %v1238_v22, %v1173_v35  ;;  %v8103_v37 = vadd.f32 %v7763_v49, %v2498_v34  ;;  %v627_v56 = vpop.f32.mrf.mxu0  ;;  %v2367_v39 = vmul.f32 %v7706_v31, %v8003_v61  ;;  %v12218_v35 = vld [vmem:[#allocation19_spill] sm:$0xff] }
 0x120   : > { %v1885_v50 = vmul.f32 %v7933_v48, %v7611_v28  ;;  %v885_v47 = vadd.f32 %v853_v11, %v756_v5  ;;  %v628_v16 = vadd.f32 %v7974_v60, %v627_v56  ;;  %v2205_v12 = vadd.f32 %v2173_v14, %v2108_v24  ;;  %v12219_v11 = vld [vmem:[#allocation20_spill] sm:$0xff] }
 0x121   : > { %12215 = vst [vmem:[#allocation10_spill] sm:$0xff] %v8103_v37  ;;  %v2464_v29 = vmul.f32 %v12216_v23, %v8005_v36  ;;  %v1174_v41 = vadd.f32 %v1142_v38, %v1077_v15  ;;  %v1464_v21 = vadd.f32 %v1432_v46, %v1367_v52  ;;  %v8115_v4 = vmul.f32 %v8103_v37, %v8103_v37  ;;  %v12220_v38 = vld [vmem:[#allocation5_spill] sm:$0xff]  ;;  %v12221_v37 = vld [vmem:[#allocation24_spill] sm:$0xff] }
 0x122   : > { %v724_v22 = vld [vmem:[#allocation2 + $0xe0] sm:$0xff]  ;;  %v1820_v18 = vadd.f32 %v1788_v58, %v1691_v3  ;;  %688 = vst.msk [vmem:[#allocation2 + $0xf1] sm:$0xff] %vm362_vm2, %v628_v16  ;;  %v2302_v48 = vadd.f32 %v2270_v7, %v2205_v12  ;;  %v1692_v55 = vmul.f32 %v7995_v10, %v12208_v33  ;;  %v1789_v63 = vmul.f32 %v8003_v61, %v7587_v20 }
 0x123   : > { %12217 = vst [vmem:[#allocation11_spill] sm:$0xff] %v8115_v4  ;;  %v821_v45 = vld [vmem:[#allocation2 + $0xe1] sm:$0xff]  ;;  %v1046_v51 = vmul.f32 %v7545_v43, %v724_v22  ;;  %3629 = vrot.lane.b32.xlu1 %v8115_v4, %s7281_s23  ;;  %v1693_v5 = vmul.f32 %v12218_v35, %v12208_v33  ;;  %v1790_v57 = vmul.f32 %v12219_v11, %v7587_v20 }
 0x124   : > { %v917_v6 = vld [vmem:[#allocation2 + $0xda] sm:$0xff]  ;;  %v918_v19 = vld [vmem:[#allocation2 + $0xe2] sm:$0xff]  ;;  %v1917_v15 = vadd.f32 %v1885_v50, %v1820_v18  ;;  %v1982_v46 = vmul.f32 %v12218_v35, %v12220_v38  ;;  %v757_v24 = vmul.f32 %v7499_v26, %v724_v22  ;;  %v854_v10 = vmul.f32 %v7501_v27, %v821_v45 }
 0x125   : > { %v950_v61 = vmul.f32 %v7519_v32, %v917_v6  ;;  %v1336_v52 = vmul.f32 %v7568_v62, %v724_v22  ;;  %v1143_v34 = vmul.f32 %v7562_v53, %v821_v45  ;;  %v1239_v3 = vmul.f32 %v7564_v54, %v917_v6 }
 0x126   : > { %v1433_v58 = vmul.f32 %v7580_v9, %v821_v45  ;;  %v1529_v42 = vmul.f32 %v7591_v25, %v917_v6  ;;  %v1078_v17 = vadd.f32 %v1046_v51, %v981_v13  ;;  %v1530_v7 = vmul.f32 %v7591_v25, %v918_v19 }
 0x127   : > { %v1368_v14 = vadd.f32 %v1336_v52, %v1270_v40  ;;  %2598 = vadd.xlane.f32.xlu2 %v2597_v0  ;;  %v2399_v56 = vadd.f32 %v2367_v39, %v2302_v48  ;;  %v951_v50 = vmul.f32 %v7519_v32, %v918_v19  ;;  %v630_v12 = vpop.f32.mrf.mxu0  ;;  %v2079_v22 = vmul.f32 %v12219_v11, %v7657_v1 }
 0x128   : > { %v1561_v16 = vadd.f32 %v1529_v42, %v1464_v21  ;;  %v1821_v18 = vadd.f32 %v1789_v63, %v1692_v55  ;;  %2601 = vadd.xlane.f32.xlu0 %v12221_v37  ;;  %v631_v45 = vadd.f32 %v7974_v60, %v630_v12  ;;  %v2014_v13 = vadd.f32 %v1982_v46, %v1917_v15 }
 0x129   : > { %v1465_v35 = vadd.f32 %v1433_v58, %v1368_v14  ;;  %v2496_v6 = vadd.f32 %v2464_v29, %v2399_v56  ;;  %v886_v40 = vadd.f32 %v854_v10, %v757_v24  ;;  %v982_v51 = vadd.f32 %v950_v61, %v885_v47  ;;  %v725_v48 = vld [vmem:[#allocation2 + $0xf0] sm:$0xff]  ;;  %v12223_v47 = vld [vmem:[#allocation22_spill] sm:$0xff] }
 0x12a   : > { %v1240_v0 = vmul.f32 %v7564_v54, %v918_v19  ;;  %v1597_v39 = vadd.f32 %v8071_v44, %v1561_v16  ;;  %v1175_v21 = vadd.f32 %v1143_v34, %v1078_v17  ;;  %v1271_v52 = vadd.f32 %v1239_v3, %v1174_v41  ;;  %689 = vst.msk [vmem:[#allocation2 + $0xf9] sm:$0xff] %vm362_vm2, %v631_v45  ;;  %v822_v37 = vld [vmem:[#allocation2 + $0xf1] sm:$0xff]  ;;  %v12224_v34 = vld [vmem:[#allocation23_spill] sm:$0xff] }
 0x12b   : > { %v1562_v42 = vadd.f32 %v1530_v7, %v1465_v35  ;;  %v1047_v11 = vmul.f32 %v7545_v43, %v725_v48  ;;  %v1337_v29 = vmul.f32 %v7568_v62, %v725_v48  ;;  %v8152_v55 = vadd.f32 %v7763_v49, %v2496_v6  ;;  %v8170_v7 = vld [vmem:[#allocation2 + $0x90] sm:$0xff] }
 0x12c   : > { %1629 = vst.msk [vmem:[#allocation2 + $0xc1] sm:$0xff] %vm362_vm2, %v1597_v39  ;;  %v1887_v63 = vmul.f32 %v12223_v47, %v7611_v28  ;;  %v2176_v19 = vmul.f32 %v12223_v47, %v7659_v2  ;;  %v758_v15 = vmul.f32 %v7499_v26, %v725_v48  ;;  %v855_v46 = vmul.f32 %v7501_v27, %v822_v37  ;;  %v8179_v6 = vld [vmem:[#allocation2 + $0x91] sm:$0xff] }
 0x12d   : > { %12222 = vst [vmem:[#allocation14_spill] sm:$0xff] %v8152_v55  ;;  %v1598_v41 = vadd.f32 %v8071_v44, %v1562_v42  ;;  %v2111_v24 = vadd.f32 %v2079_v22, %v2014_v13  ;;  %v1079_v10 = vadd.f32 %v1047_v11, %v982_v51  ;;  %v1144_v61 = vmul.f32 %v7562_v53, %v822_v37  ;;  %v8181_v13 = vld [vmem:[#allocation2 + $0x92] sm:$0xff]  ;;  %v8183_v51 = vld [vmem:[#allocation2 + $0xa8] sm:$0xff] }
 0x12e   : > { %v2603_v49 = vsel %vm455_vm1, %v12224_v34, 0.0  ;;  %v1822_v3 = vadd.f32 %v1790_v57, %v1693_v5  ;;  %v1369_v58 = vadd.f32 %v1337_v29, %v1271_v52  ;;  %v1434_v17 = vmul.f32 %v7580_v9, %v822_v37  ;;  %12225 = vst [vmem:[#allocation17_spill] sm:$0xff] %v8170_v7  ;;  %v8187_v48 = vld [vmem:[#allocation2 + $0xaa] sm:$0xff]  ;;  %v12231_v42 = vld [vmem:[#allocation25_spill] sm:$0xff]  ;;  %v12232_v37 = vld [vmem:[#allocation26_spill] sm:$0xff] }
 0x12f   : > { %1630 = vst.msk [vmem:[#allocation2 + $0xc9] sm:$0xff] %vm362_vm2, %v1598_v41  ;;  %v8168_v14 = vmul.f32 %v8152_v55, %v8152_v55  ;;  %v1886_v56 = vmul.f32 %v8005_v36, %v7611_v28  ;;  %v983_v16 = vadd.f32 %v951_v50, %v886_v40  ;;  %v1272_v12 = vadd.f32 %v1240_v0, %v1175_v21  ;;  %v633_v22 = vpop.f32.mrf.mxu0  ;;  %v8185_v0 = vld [vmem:[#allocation2 + $0xa9] sm:$0xff] }
 0x130   : > { %v1919_v35 = vadd.f32 %v1887_v63, %v1822_v3  ;;  %v1984_v5 = vmul.f32 %v12220_v38, %v8170_v7  ;;  %v8176_v57 = vadd.f32 %v855_v46, %v758_v15  ;;  %2604 = vadd.xlane.f32.xlu0 %v2603_v49  ;;  %v634_v45 = vadd.f32 %v7974_v60, %v633_v22  ;;  %v12230_v21 = vld [vmem:[#allocation16_spill] sm:$0xff] }
 0x131   : > { %12226 = vst [vmem:[#allocation8_spill] sm:$0xff] %v8179_v6  ;;  %v2208_v39 = vadd.f32 %v2176_v19, %v2111_v24  ;;  %v1918_v36 = vadd.f32 %v1886_v56, %v1821_v18  ;;  %v1176_v50 = vadd.f32 %v1144_v61, %v1079_v10  ;;  %v726_v40 = vld [vmem:[#allocation2 + $0xf8] sm:$0xff]  ;;  %v1983_v52 = vmul.f32 %v12230_v21, %v12220_v38 }
 0x132   : > { %12227 = vst [vmem:[#allocation19_spill] sm:$0xff] %v8183_v51  ;;  %v2080_v11 = vmul.f32 %v12231_v42, %v7657_v1  ;;  %v2177_v29 = vmul.f32 %v12232_v37, %v7659_v2  ;;  %v1466_v47 = vadd.f32 %v1434_v17, %v1369_v58  ;;  %v823_v63 = vld [vmem:[#allocation2 + $0xf9] sm:$0xff]  ;;  %v2606_v18 = vsel %vm455_vm1, %v8168_v14, 0.0 }
 0x133   : > { %12228 = vst [vmem:[#allocation20_spill] sm:$0xff] %v8185_v0  ;;  %v919_v41 = vld [vmem:[#allocation2 + $0xf2] sm:$0xff]  ;;  %v2016_v19 = vadd.f32 %v1984_v5, %v1919_v35  ;;  %v8200_v15 = vmul.f32 %v12230_v21, %v12208_v33  ;;  %v920_v46 = vld [vmem:[#allocation2 + $0xfa] sm:$0xff]  ;;  %v2081_v24 = vmul.f32 %v7657_v1, %v8179_v6  ;;  %v2178_v10 = vmul.f32 %v7659_v2, %v8181_v13 }
 0x134   : > { %12229 = vst [vmem:[#allocation5_spill] sm:$0xff] %v8187_v48  ;;  %v2275_v61 = vmul.f32 %v7704_v30, %v8183_v51  ;;  %v2273_v34 = vmul.f32 %v7704_v30, %v8170_v7  ;;  %v1338_v49 = vmul.f32 %v7568_v62, %v726_v40  ;;  %v2372_v3 = vmul.f32 %v7706_v31, %v8185_v0  ;;  %v8228_v1 = vld [vmem:[#allocation2 + $0x98] sm:$0xff] }
 0x135   : > { %690 = vst.msk [vmem:[#allocation2 + $0x109] sm:$0xff] %vm362_vm2, %v634_v45  ;;  %v2469_v58 = vmul.f32 %v12216_v23, %v8187_v48  ;;  %v2370_v17 = vmul.f32 %v7706_v31, %v8179_v6  ;;  %v759_v56 = vmul.f32 %v7499_v26, %v726_v40  ;;  %v1048_v22 = vmul.f32 %v7545_v43, %v726_v40 }
 0x136   : > { %v1435_v35 = vmul.f32 %v7580_v9, %v823_v63  ;;  %v1531_v5 = vmul.f32 %v7591_v25, %v919_v41  ;;  %v1241_v45 = vmul.f32 %v7564_v54, %v919_v41  ;;  %v1370_v21 = vadd.f32 %v1338_v49, %v1272_v12 }
 0x137   : > { %v1532_v8 = vmul.f32 %v7591_v25, %v920_v46  ;;  %v2113_v55 = vadd.f32 %v2081_v24, %v2016_v19  ;;  %v856_v0 = vmul.f32 %v7501_v27, %v823_v63  ;;  %v636_v51 = vpop.f32.mrf.mxu0  ;;  %v2305_v7 = vadd.f32 %v2273_v34, %v2208_v39 }
 0x138   : > { %v1563_v48 = vadd.f32 %v1531_v5, %v1466_v47  ;;  %v2015_v6 = vadd.f32 %v1983_v52, %v1918_v36  ;;  %v952_v33 = vmul.f32 %v7519_v32, %v919_v41  ;;  %v1467_v2 = vadd.f32 %v1435_v35, %v1370_v21  ;;  %2607 = vadd.xlane.f32.xlu0 %v2606_v18 }
 0x139   : > { %v637_v40 = vadd.f32 %v7974_v60, %v636_v51  ;;  %v2467_v4 = vmul.f32 %v12216_v23, %v8181_v13  ;;  %v2210_v24 = vadd.f32 %v2178_v10, %v2113_v55  ;;  %v2402_v49 = vadd.f32 %v2370_v17, %v2305_v7 }
 0x13a   : > { %v1599_v12 = vadd.f32 %v8071_v44, %v1563_v48  ;;  %v2112_v47 = vadd.f32 %v2080_v11, %v2015_v6  ;;  %v1080_v5 = vadd.f32 %v1048_v22, %v983_v16  ;;  %v1145_v39 = vmul.f32 %v7562_v53, %v823_v63 }
 0x13b   : > { %v1273_v36 = vadd.f32 %v1241_v45, %v1176_v50  ;;  %v1564_v52 = vadd.f32 %v1532_v8, %v1467_v2  ;;  %691 = vst.msk [vmem:[#allocation2 + $0x111] sm:$0xff] %vm362_vm2, %v637_v40  ;;  %v953_v51 = vmul.f32 %v7519_v32, %v920_v46  ;;  %v2307_v34 = vadd.f32 %v2275_v61, %v2210_v24  ;;  %v8264_v45 = vld [vmem:[#allocation2 + $0x9a] sm:$0xff] }
 0x13c   : > { %v727_v19 = vld [vmem:[#allocation2 + $0x108] sm:$0xff]  ;;  %1631 = vst.msk [vmem:[#allocation2 + $0xd9] sm:$0xff] %vm362_vm2, %v1599_v12  ;;  %v2274_v55 = vmul.f32 %v7704_v30, %v8228_v1  ;;  %v984_v7 = vadd.f32 %v952_v33, %v8176_v57  ;;  %v2499_v2 = vadd.f32 %v2467_v4, %v2402_v49  ;;  %v888_v8 = vadd.f32 %v856_v0, %v759_v56  ;;  %v8248_v57 = vld [vmem:[#allocation2 + $0x99] sm:$0xff] }
 0x13d   : > { %v824_v41 = vld [vmem:[#allocation2 + $0x109] sm:$0xff]  ;;  %v1339_v18 = vmul.f32 %v7568_v62, %v727_v19  ;;  %v1600_v16 = vadd.f32 %v8071_v44, %v1564_v52  ;;  %v1049_v6 = vmul.f32 %v7545_v43, %v727_v19  ;;  %v1242_v50 = vmul.f32 %v7564_v54, %v920_v46  ;;  %v8253_v0 = vld [vmem:[%s12042_s7] ss:$0 sm:$0xff] }
 0x13e   : > { %v2404_v48 = vadd.f32 %v2372_v3, %v2307_v34  ;;  %v2209_v11 = vadd.f32 %v2177_v29, %v2112_v47  ;;  %v1177_v63 = vadd.f32 %v1145_v39, %v1080_v5  ;;  %v1436_v61 = vmul.f32 %v7580_v9, %v824_v41 }
 0x13f   : > { %1632 = vst.msk [vmem:[#allocation2 + $0xe1] sm:$0xff] %vm362_vm2, %v1600_v16  ;;  %v1371_v10 = vadd.f32 %v1339_v18, %v1273_v36  ;;  %3625 = vrot.lane.b32.xlu2 %v8168_v14, %s7281_s23  ;;  %v2609_v33 = vsel %vm455_vm1, %v8066_v59, 0.0  ;;  %v8256_v29 = vadd.f32 %v8253_v0, %v2499_v2  ;;  %v639_v46 = vpop.f32.mrf.mxu0  ;;  %v1791_v17 = vmul.f32 %v12231_v42, %v7587_v20 }
 0x140   : > { %v2501_v4 = vadd.f32 %v2469_v58, %v2404_v48  ;;  %v2306_v3 = vadd.f32 %v2274_v55, %v2209_v11  ;;  %v1081_v14 = vadd.f32 %v1049_v6, %v984_v7  ;;  %v1146_v56 = vmul.f32 %v7562_v53, %v824_v41  ;;  %2610 = vadd.xlane.f32.xlu0 %v2609_v33 }
 0x141   : > { %12233 = vst [vmem:[#allocation24_spill] sm:$0xff] %v8256_v29  ;;  %v640_v59 = vadd.f32 %v7974_v60, %v639_v46  ;;  %v985_v58 = vadd.f32 %v953_v51, %v888_v8  ;;  %v2371_v35 = vmul.f32 %v7706_v31, %v8248_v57  ;;  %v1274_v21 = vadd.f32 %v1242_v50, %v1177_v63 }
 0x142   : > { %v728_v22 = vld [vmem:[#allocation2 + $0x110] sm:$0xff]  ;;  %v760_v40 = vmul.f32 %v7499_v26, %v727_v19  ;;  %v857_v12 = vmul.f32 %v7501_v27, %v824_v41  ;;  %v8269_v49 = vadd.f32 %v8253_v0, %v2501_v4  ;;  %v1468_v47 = vadd.f32 %v1436_v61, %v1371_v10 }
 0x143   : > { %v825_v24 = vld [vmem:[#allocation2 + $0x111] sm:$0xff]  ;;  %692 = vst.msk [vmem:[#allocation2 + $0x121] sm:$0xff] %vm362_vm2, %v640_v59  ;;  %v8276_v39 = vmul.f32 %v8256_v29, %v8256_v29  ;;  %v2403_v36 = vadd.f32 %v2371_v35, %v2306_v3  ;;  %v1823_v52 = vadd.f32 %v1791_v17, %v8200_v15  ;;  %v1178_v19 = vadd.f32 %v1146_v56, %v1081_v14 }
 0x144   : > { %v921_v42 = vld [vmem:[#allocation2 + $0x10a] sm:$0xff]  ;;  %12234 = vst [vmem:[#allocation22_spill] sm:$0xff] %v8269_v49  ;;  %v8272_v5 = vld [vmem:[#allocation2 + $0x112] sm:$0xff]  ;;  %v1340_v51 = vmul.f32 %v7568_v62, %v728_v22  ;;  %v2468_v41 = vmul.f32 %v12216_v23, %v8264_v45  ;;  %v1888_v18 = vmul.f32 %v12232_v37, %v7611_v28  ;;  %v1050_v34 = vmul.f32 %v7545_v43, %v728_v22 }
 0x145   : > { %v1437_v55 = vmul.f32 %v7580_v9, %v825_v24  ;;  %v1533_v7 = vmul.f32 %v7591_v25, %v921_v42  ;;  %v1985_v16 = vmul.f32 %v8228_v1, %v12220_v38  ;;  %v1243_v15 = vmul.f32 %v7564_v54, %v921_v42 }
 0x146   : > { %v1372_v6 = vadd.f32 %v1340_v51, %v1274_v21  ;;  %v1534_v2 = vmul.f32 %v7591_v25, %v8272_v5  ;;  %v8294_v8 = vmul.f32 %v8269_v49, %v8269_v49  ;;  %v2615_v50 = vsel %vm455_vm1, %v8276_v39, 0.0 }
 0x147   : > { %v1565_v37 = vadd.f32 %v1533_v7, %v1468_v47  ;;  %v2500_v48 = vadd.f32 %v2468_v41, %v2403_v36  ;;  %v1920_v63 = vadd.f32 %v1888_v18, %v1823_v52  ;;  %v1147_v10 = vmul.f32 %v7562_v53, %v825_v24  ;;  %v12236_v47 = vld [vmem:[#allocation6_spill] sm:$0xff]  ;;  %v8317_v41 = vld [vmem:[#allocation2 + $0xb0] sm:$0xff] }
 0x148   : > { %v642_v11 = vpop.f32.mrf.mxu0  ;;  %v1469_v61 = vadd.f32 %v1437_v55, %v1372_v6  ;;  %3635 = vrot.lane.b32.xlu2 %v8294_v8, %s7281_s23  ;;  %2616 = vadd.xlane.f32.xlu0 %v2615_v50  ;;  %v1082_v4 = vadd.f32 %v1050_v34, %v985_v58  ;;  %v2082_v36 = vmul.f32 %v8248_v57, %v12236_v47  ;;  %v12237_v34 = vld [vmem:[#allocation11_spill] sm:$0xff] }
 0x149   : > { %v643_v33 = vadd.f32 %v7974_v60, %v642_v11  ;;  %v1601_v46 = vadd.f32 %v8071_v44, %v1565_v37  ;;  %v8304_v14 = vadd.f32 %v8253_v0, %v2500_v48  ;;  %v2017_v56 = vadd.f32 %v1985_v16, %v1920_v63  ;;  %v12238_v50 = vld [vmem:[#allocation7_spill] sm:$0xff] }
 0x14a   : > { %v729_v3 = vld [vmem:[#allocation2 + $0x120] sm:$0xff]  ;;  %v1566_v59 = vadd.f32 %v1534_v2, %v1469_v61  ;;  %v1275_v52 = vadd.f32 %v1243_v15, %v1178_v19  ;;  %v2612_v55 = vsel %vm455_vm1, %v12237_v34, 0.0  ;;  %v889_v6 = vadd.f32 %v857_v12, %v760_v40 }
 0x14b   : > { %v826_v17 = vld [vmem:[#allocation2 + $0x121] sm:$0xff]  ;;  %12235 = vst [vmem:[#allocation23_spill] sm:$0xff] %v8304_v14  ;;  %v762_v35 = vmul.f32 %v7499_v26, %v729_v3  ;;  %v1341_v58 = vmul.f32 %v7568_v62, %v729_v3  ;;  %v8315_v51 = vmul.f32 %v8304_v14, %v8304_v14  ;;  %v2114_v16 = vadd.f32 %v2082_v36, %v2017_v56 }
 0x14c   : > { %v859_v21 = vmul.f32 %v7501_v27, %v826_v17  ;;  %693 = vst.msk [vmem:[#allocation2 + $0x129] sm:$0xff] %vm362_vm2, %v643_v33  ;;  %v1602_v18 = vadd.f32 %v8071_v44, %v1566_v59  ;;  %v954_v19 = vmul.f32 %v7519_v32, %v921_v42  ;;  %v1179_v15 = vadd.f32 %v1147_v10, %v1082_v4 }
 0x14d   : > { %1633 = vst.msk [vmem:[#allocation2 + $0xf1] sm:$0xff] %vm362_vm2, %v1601_v46  ;;  %v1244_v2 = vmul.f32 %v7564_v54, %v8272_v5  ;;  %2613 = vadd.xlane.f32.xlu1 %v2612_v55  ;;  %v761_v37 = vmul.f32 %v7499_v26, %v728_v22  ;;  %v2179_v48 = vmul.f32 %v8264_v45, %v12238_v50  ;;  %v2618_v42 = vsel %vm455_vm1, %v8315_v51, 0.0  ;;  %v8335_v22 = vld [vmem:[#allocation2 + $0xb1] sm:$0xff] }
 0x14e   : > { %v891_v7 = vadd.f32 %v859_v21, %v762_v35  ;;  %1634 = vst.msk [vmem:[#allocation2 + $0xf9] sm:$0xff] %vm362_vm2, %v1602_v18  ;;  %v2276_v11 = vmul.f32 %v7704_v30, %v8317_v41  ;;  %v858_v63 = vmul.f32 %v7501_v27, %v825_v24  ;;  %v1373_v40 = vadd.f32 %v1341_v58, %v1275_v52  ;;  %v8344_v55 = vld [vmem:[#allocation2 + $0xb2] sm:$0xff] }
 0x14f   : > { %v1438_v12 = vmul.f32 %v7580_v9, %v826_v17  ;;  %v2211_v61 = vadd.f32 %v2179_v48, %v2114_v16  ;;  %v955_v4 = vmul.f32 %v7519_v32, %v8272_v5  ;;  %v986_v46 = vadd.f32 %v954_v19, %v889_v6 }
 0x150   : > { %v645_v10 = vpop.f32.mrf.mxu0  ;;  %2619 = vadd.xlane.f32.xlu0 %v2618_v42  ;;  %v1276_v56 = vadd.f32 %v1244_v2, %v1179_v15  ;;  %v1051_v24 = vmul.f32 %v7545_v43, %v729_v3  ;;  %v890_v5 = vadd.f32 %v858_v63, %v761_v37  ;;  %v1148_v16 = vmul.f32 %v7562_v53, %v826_v17  ;;  %v446_v42 = vld [vmem:[%s7361_s21 + $0xe0] sm:$0xff] }
 0x151   : > { %v646_v33 = vadd.f32 %v7974_v60, %v645_v10  ;;  %v2308_v34 = vadd.f32 %v2276_v11, %v2211_v61  ;;  %v1470_v3 = vadd.f32 %v1438_v12, %v1373_v40  ;;  %v2373_v48 = vmul.f32 %v7706_v31, %v8335_v22  ;;  %6647 = vmatmul.msk.f32.gmra.mxu0 %vm455_vm1, %v446_v42 }
 0x152   : > { %v1083_v11 = vadd.f32 %v1051_v24, %v986_v46  ;;  %v2470_v17 = vmul.f32 %v12216_v23, %v8344_v55  ;;  %v987_v12 = vadd.f32 %v955_v4, %v890_v5 }
 0x153   : > { %v730_v59 = vld [vmem:[#allocation2 + $0x128] sm:$0xff]  ;;  %694 = vst.msk [vmem:[#allocation2 + $0x139] sm:$0xff] %vm362_vm2, %v646_v33  ;;  %v2405_v40 = vadd.f32 %v2373_v48, %v2308_v34 }
 0x154   : > { %v827_v35 = vld [vmem:[#allocation2 + $0x129] sm:$0xff]  ;;  %v763_v36 = vmul.f32 %v7499_v26, %v730_v59  ;;  %v1342_v2 = vmul.f32 %v7568_v62, %v730_v59  ;;  %v1052_v33 = vmul.f32 %v7545_v43, %v730_v59 }
 0x155   : > { %v923_v21 = vld [vmem:[#allocation2 + $0x122] sm:$0xff]  ;;  %v860_v52 = vmul.f32 %v7501_v27, %v827_v35  ;;  %v924_v58 = vld [vmem:[#allocation2 + $0x12a] sm:$0xff]  ;;  %v1439_v10 = vmul.f32 %v7580_v9, %v827_v35  ;;  %v2502_v14 = vadd.f32 %v2470_v17, %v2405_v40  ;;  %v1149_v42 = vmul.f32 %v7562_v53, %v827_v35 }
 0x156   : > { %v956_v18 = vmul.f32 %v7519_v32, %v923_v21  ;;  %v957_v6 = vmul.f32 %v7519_v32, %v924_v58  ;;  %v1535_v61 = vmul.f32 %v7591_v25, %v923_v21  ;;  %v1536_v63 = vmul.f32 %v7591_v25, %v924_v58 }
 0x157   : > { %v892_v19 = vadd.f32 %v860_v52, %v763_v36  ;;  %v12239_v36 = vld [vmem:[#allocation4_spill] sm:$0xff]  ;;  %v12240_v52 = vld [vmem:[#allocation17_spill] sm:$0xff]  ;;  %v8372_v59 = vadd.f32 %v8253_v0, %v2502_v14  ;;  %v1084_v48 = vadd.f32 %v1052_v33, %v987_v12 }
 0x158   : > { %v8349_v15 = vadd.f32 %v956_v18, %v891_v7  ;;  %v1374_v7 = vadd.f32 %v1342_v2, %v1276_v56  ;;  %v1567_v46 = vadd.f32 %v1535_v61, %v1470_v3  ;;  %v648_v24 = vpop.f32.mrf.mxu0  ;;  %v1695_v18 = vmul.f32 %v12240_v52, %v12239_v36 }
 0x159   : > { %v8360_v37 = vadd.f32 %v957_v6, %v892_v19  ;;  %v649_v49 = vadd.f32 %v7974_v60, %v648_v24  ;;  %v12241_v6 = vld [vmem:[#allocation8_spill] sm:$0xff]  ;;  %v1180_v56 = vadd.f32 %v1148_v16, %v1083_v11  ;;  %v1245_v2 = vmul.f32 %v7564_v54, %v923_v21  ;;  %12242 = vst [vmem:[#allocation16_spill] sm:$0xff] %v8372_v59  ;;  %v447_v60 = vld [vmem:[%s7361_s21 + $0xe8] sm:$0xff] }
 0x15a   : > { %v1471_v29 = vadd.f32 %v1439_v10, %v1374_v7  ;;  %v1792_v19 = vmul.f32 %v12241_v6, %v7587_v20  ;;  %v1603_v4 = vadd.f32 %v8071_v44, %v1567_v46  ;;  %v8374_v5 = vld [vmem:[#allocation2 + $0x138] sm:$0xff]  ;;  %v1889_v3 = vmul.f32 %v8181_v13, %v7611_v28  ;;  %v12243_v16 = vld [vmem:[#allocation19_spill] sm:$0xff]  ;;  %6648 = vmatmul.msk.f32.gmra.mxu0 %vm455_vm1, %v447_v60  ;;  %v12244_v46 = vld [vmem:[#allocation20_spill] sm:$0xff] }
 0x15b   : > { %695 = vst.msk [vmem:[#allocation2 + $0x141] sm:$0xff] %vm362_vm2, %v649_v49  ;;  %v1986_v11 = vmul.f32 %v12243_v16, %v12220_v38  ;;  %v1277_v49 = vadd.f32 %v1245_v2, %v1180_v56  ;;  %v1343_v13 = vmul.f32 %v7568_v62, %v8374_v5  ;;  %v8395_v10 = vld [vmem:[#allocation2 + $0x139] sm:$0xff]  ;;  %v1181_v17 = vadd.f32 %v1149_v42, %v1084_v48 }
 0x15c   : > { %v1568_v34 = vadd.f32 %v1536_v63, %v1471_v29  ;;  %1635 = vst.msk [vmem:[#allocation2 + $0x109] sm:$0xff] %vm362_vm2, %v1603_v4  ;;  %v8385_v29 = vmul.f32 %v8372_v59, %v8372_v59  ;;  %v1824_v14 = vadd.f32 %v1792_v19, %v1695_v18  ;;  %v1246_v7 = vmul.f32 %v7564_v54, %v924_v58  ;;  %v2244_v6 = vld [vmem:[#allocation2 + $0xc0] sm:$0xff]  ;;  %v12245_v2 = vld [vmem:[#allocation5_spill] sm:$0xff] }
 0x15d   : > { %v1375_v40 = vadd.f32 %v1343_v13, %v1277_v49  ;;  %v1440_v12 = vmul.f32 %v7580_v9, %v8395_v10  ;;  %v2083_v24 = vmul.f32 %v12244_v46, %v12236_v47  ;;  %v2180_v4 = vmul.f32 %v12245_v2, %v12238_v50  ;;  %v8425_v49 = vld [vmem:[#allocation2 + $0xc2] sm:$0xff] }
 0x15e   : > { %v1604_v21 = vadd.f32 %v8071_v44, %v1568_v34  ;;  %v2624_v35 = vsel %vm455_vm1, %v8385_v29, 0.0  ;;  %v1921_v61 = vadd.f32 %v1889_v3, %v1824_v14  ;;  %v1278_v52 = vadd.f32 %v1246_v7, %v1181_v17 }
 0x15f   : > { %2625 = vadd.xlane.f32.xlu0 %v2624_v35  ;;  %v1472_v34 = vadd.f32 %v1440_v12, %v1375_v40  ;;  %v2277_v48 = vmul.f32 %v7704_v30, %v2244_v6  ;;  %v1696_v35 = vmul.f32 %v8228_v1, %v12239_v36  ;;  %v1697_v7 = vmul.f32 %v12243_v16, %v12239_v36 }
 0x160   : > { %1636 = vst.msk [vmem:[#allocation2 + $0x111] sm:$0xff] %vm362_vm2, %v1604_v21  ;;  %v2018_v63 = vadd.f32 %v1986_v11, %v1921_v61  ;;  %v8423_v11 = vld [vmem:[#allocation2 + $0xc1] sm:$0xff] }
 0x161   : > { %v2374_v12 = vmul.f32 %v7706_v31, %v8423_v11 }
 0x162   : > { %v8400_v33 = vld [vmem:[#allocation2 + $0x140] sm:$0xff]  ;;  %v2115_v58 = vadd.f32 %v2083_v24, %v2018_v63  ;;  %v1794_v63 = vmul.f32 %v12244_v46, %v7587_v20  ;;  %v2471_v24 = vmul.f32 %v12216_v23, %v8425_v49  ;;  %v1891_v46 = vmul.f32 %v12245_v2, %v7611_v28 }
 0x163   : > { %v8404_v18 = vld [vmem:[#allocation2 + $0x141] sm:$0xff]  ;;  %v1344_v3 = vmul.f32 %v7568_v62, %v8400_v33 }
 0x164   : > { %v8406_v19 = vld [vmem:[#allocation2 + $0x13a] sm:$0xff]  ;;  %v8408_v56 = vld [vmem:[#allocation2 + $0x142] sm:$0xff]  ;;  %v1441_v60 = vmul.f32 %v7580_v9, %v8404_v18  ;;  %v2212_v13 = vadd.f32 %v2180_v4, %v2115_v58  ;;  %v1826_v16 = vadd.f32 %v1794_v63, %v1697_v7  ;;  %v1893_v7 = vmul.f32 %v8425_v49, %v7611_v28 }
 0x165   : > { %v1376_v42 = vadd.f32 %v1344_v3, %v1278_v52  ;;  %v1537_v21 = vmul.f32 %v7591_v25, %v8406_v19  ;;  %v1538_v14 = vmul.f32 %v7591_v25, %v8408_v56  ;;  %v1890_v3 = vmul.f32 %v8264_v45, %v7611_v28 }
 0x166   : > { %3631 = vrot.lane.b32.xlu1 %v8276_v39, %s7281_s23  ;;  %v1793_v39 = vmul.f32 %v8248_v57, %v7587_v20  ;;  %v2309_v40 = vadd.f32 %v2277_v48, %v2212_v13  ;;  %v1699_v45 = vmul.f32 %v2244_v6, %v12239_v36  ;;  %v1988_v13 = vmul.f32 %v2244_v6, %v12220_v38 }
 0x167   : > { %v1473_v61 = vadd.f32 %v1441_v60, %v1376_v42  ;;  %v1569_v17 = vadd.f32 %v1537_v21, %v1472_v34  ;;  %v1987_v60 = vmul.f32 %v8317_v41, %v12220_v38  ;;  %v2621_v42 = vsel %vm455_vm1, %v8294_v8, 0.0  ;;  %v8468_v8 = vld [vmem:[#allocation2 + $0xd9] sm:$0xff] }
 0x168   : > { %v2406_v58 = vadd.f32 %v2374_v12, %v2309_v40  ;;  %v1825_v4 = vadd.f32 %v1793_v39, %v1696_v35  ;;  %v8466_v35 = vld [vmem:[#allocation2 + $0xd8] sm:$0xff]  ;;  %v2245_v40 = vld [vmem:[#allocation2 + $0xc8] sm:$0xff]  ;;  %v1698_v12 = vmul.f32 %v8317_v41, %v12239_v36  ;;  %v1795_v6 = vmul.f32 %v8335_v22, %v7587_v20 }
 0x169   : > { %v1570_v52 = vadd.f32 %v1538_v14, %v1473_v61  ;;  %v1605_v1 = vadd.f32 %v8071_v44, %v1569_v17  ;;  %v2084_v14 = vmul.f32 %v8335_v22, %v12236_v47  ;;  %v8470_v39 = vld [vmem:[#allocation2 + $0xda] sm:$0xff]  ;;  %v1796_v17 = vmul.f32 %v8423_v11, %v7587_v20  ;;  %v2441_v41 = vld [vmem:[#allocation2 + $0xe2] sm:$0xff] }
 0x16a   : > { %v2503_v34 = vadd.f32 %v2471_v24, %v2406_v58  ;;  %v1922_v2 = vadd.f32 %v1890_v3, %v1825_v4  ;;  %v8472_v61 = vld [vmem:[#allocation2 + $0xe0] sm:$0xff]  ;;  %v1701_v58 = vmul.f32 %v8466_v35, %v12239_v36  ;;  %v1667_v4 = vld [vmem:[#allocation2 + $0xc8] sm:$0xff]  ;;  %v1895_v22 = vmul.f32 %v8470_v39, %v7611_v28 }
 0x16b   : > { %v1606_v57 = vadd.f32 %v8071_v44, %v1570_v52  ;;  %1637 = vst.msk [vmem:[#allocation2 + $0x121] sm:$0xff] %vm362_vm2, %v1605_v1  ;;  %v1923_v44 = vadd.f32 %v1891_v46, %v1826_v16  ;;  %v8482_v24 = vld [vmem:[#allocation2 + $0xe1] sm:$0xff]  ;;  %v448_v52 = vld [vmem:[%s7361_s21 + $0xf0] sm:$0xff]  ;;  %v1828_v1 = vadd.f32 %v1796_v17, %v1699_v45  ;;  %v2181_v16 = vmul.f32 %v8344_v55, %v12238_v50 }
 0x16c   : > { %v8452_v48 = vadd.f32 %v8253_v0, %v2503_v34  ;;  %v2019_v21 = vadd.f32 %v1987_v60, %v1922_v2  ;;  %6649 = vmatmul.msk.f32.gmra.mxu0 %vm455_vm1, %v448_v52  ;;  %v1702_v34 = vmul.f32 %v8472_v61, %v12239_v36  ;;  %v1764_v3 = vld [vmem:[#allocation2 + $0xc9] sm:$0xff]  ;;  %v2278_v60 = vmul.f32 %v7704_v30, %v2245_v40 }
 0x16d   : > { %1638 = vst.msk [vmem:[#allocation2 + $0x129] sm:$0xff] %vm362_vm2, %v1606_v57  ;;  %v1798_v57 = vmul.f32 %v8468_v8, %v7587_v20  ;;  %v2020_v46 = vadd.f32 %v1988_v13, %v1923_v44  ;;  %v2085_v44 = vmul.f32 %v8423_v11, %v12236_v47  ;;  %v1700_v13 = vmul.f32 %v12239_v36, %v1667_v4 }
 0x16e   : > { %3633 = vrot.lane.b32.xlu1 %v8315_v51, %s7281_s23  ;;  %12246 = vst [vmem:[#allocation25_spill] sm:$0xff] %v8452_v48  ;;  %v8458_v51 = vmul.f32 %v8452_v48, %v8452_v48  ;;  %v2116_v63 = vadd.f32 %v2084_v14, %v2019_v21  ;;  %v1799_v21 = vmul.f32 %v8482_v24, %v7587_v20 }
 0x16f   : > { %v1830_v2 = vadd.f32 %v1798_v57, %v1701_v58  ;;  %v1827_v14 = vadd.f32 %v1795_v6, %v1698_v12  ;;  %v1896_v59 = vmul.f32 %v2441_v41, %v7611_v28  ;;  %v1797_v48 = vmul.f32 %v7587_v20, %v1764_v3  ;;  %v2439_v3 = vld [vmem:[#allocation2 + $0xca] sm:$0xff] }
 0x170   : > { %v2213_v45 = vadd.f32 %v2181_v16, %v2116_v63  ;;  %v1831_v52 = vadd.f32 %v1799_v21, %v1702_v34  ;;  %v2117_v58 = vadd.f32 %v2085_v44, %v2020_v46  ;;  %v2182_v57 = vmul.f32 %v8425_v49, %v12238_v50 }
 0x171   : > { %2622 = vadd.xlane.f32.xlu2 %v2621_v42  ;;  %v8497_v42 = vadd.f32 %v1893_v7, %v1828_v1  ;;  %v8504_v17 = vadd.f32 %v1895_v22, %v1830_v2  ;;  %v1861_v7 = vld [vmem:[#allocation2 + $0xca] sm:$0xff]  ;;  %v1892_v63 = vmul.f32 %v8344_v55, %v7611_v28  ;;  %v1989_v11 = vmul.f32 %v2245_v40, %v12220_v38 }
 0x172   : > { %v2342_v1 = vld [vmem:[#allocation2 + $0xc9] sm:$0xff]  ;;  %v2310_v12 = vadd.f32 %v2278_v60, %v2213_v45  ;;  %v8513_v6 = vadd.f32 %v1896_v59, %v1831_v52  ;;  %v1829_v4 = vadd.f32 %v1797_v48, %v1700_v13  ;;  %v2279_v16 = vmul.f32 %v7704_v30, %v8466_v35 }
 0x173   : > { %3639 = vrot.lane.b32.xlu0 %v8458_v51, %s7281_s23  ;;  %v1924_v22 = vadd.f32 %v1892_v63, %v1827_v14  ;;  %v1894_v34 = vmul.f32 %v7611_v28, %v1861_v7  ;;  %v1991_v46 = vmul.f32 %v8472_v61, %v12220_v38  ;;  %v2375_v49 = vmul.f32 %v7706_v31, %v2342_v1 }
 0x174   : > { %v2214_v2 = vadd.f32 %v2182_v57, %v2117_v58  ;;  %v2086_v59 = vmul.f32 %v2342_v1, %v12236_v47  ;;  %v2088_v45 = vmul.f32 %v8482_v24, %v12236_v47  ;;  %v2472_v44 = vmul.f32 %v12216_v23, %v2439_v3 }
 0x175   : > { %v2021_v55 = vadd.f32 %v1989_v11, %v1924_v22  ;;  %v1926_v21 = vadd.f32 %v1894_v34, %v1829_v4  ;;  %v2407_v40 = vadd.f32 %v2375_v49, %v2310_v12  ;;  %v2376_v14 = vmul.f32 %v7706_v31, %v8468_v8 }
 0x176   : > { %v2311_v60 = vadd.f32 %v2279_v16, %v2214_v2  ;;  %v2185_v7 = vmul.f32 %v2441_v41, %v12238_v50  ;;  %v2183_v57 = vmul.f32 %v2439_v3, %v12238_v50  ;;  %v2473_v1 = vmul.f32 %v12216_v23, %v8470_v39  ;;  %v449_v2 = vld [vmem:[%s7361_s21 + $0xf8] sm:$0xff] }
 0x177   : > { %v2023_v48 = vadd.f32 %v1991_v46, %v1926_v21  ;;  %v2118_v13 = vadd.f32 %v2086_v59, %v2021_v55  ;;  %v2504_v58 = vadd.f32 %v2472_v44, %v2407_v40  ;;  %v2280_v11 = vmul.f32 %v7704_v30, %v8472_v61  ;;  %6650 = vmatmul.msk.f32.gmra.mxu0 %vm455_vm1, %v449_v2  ;;  %v8563_v59 = vld [vmem:[%s12038_s3] ss:$0 sm:$0xff] }
 0x178   : > { %v2408_v63 = vadd.f32 %v2376_v14, %v2311_v60  ;;  %v2377_v46 = vmul.f32 %v7706_v31, %v8482_v24  ;;  %v2627_v14 = vsel %vm455_vm1, %v8458_v51, 0.0 }
 0x179   : > { %v2120_v52 = vadd.f32 %v2088_v45, %v2023_v48  ;;  %v2215_v4 = vadd.f32 %v2183_v57, %v2118_v13  ;;  %v8538_v16 = vadd.f32 %v8253_v0, %v2504_v58  ;;  %v8566_v45 = vpop.xlane.xlu2 %2592 }
 0x17a   : > { %v2505_v22 = vadd.f32 %v2473_v1, %v2408_v63  ;;  %12250 = vst [vmem:[#allocation7_spill] sm:$0xff] %v8566_v45  ;;  %v1990_v63 = vmul.f32 %v8466_v35, %v12220_v38  ;;  %v1054_v1 = vmul.f32 %v7545_v43, %v8400_v33 }
 0x17b   : > { %v8533_v12 = vadd.f32 %v2185_v7, %v2120_v52  ;;  %12247 = vst [vmem:[#allocation26_spill] sm:$0xff] %v8538_v16  ;;  %v2312_v34 = vadd.f32 %v2280_v11, %v2215_v4  ;;  %v8544_v49 = vmul.f32 %v8538_v16, %v8538_v16  ;;  %v1150_v52 = vmul.f32 %v7562_v53, %v8395_v10  ;;  %v8692_v16 = vld [vmem:[#allocation2 + $0xfa] sm:$0xff] }
 0x17c   : > { %v8547_v61 = vadd.f32 %v8253_v0, %v2505_v22  ;;  %v2022_v22 = vadd.f32 %v1990_v63, %v8497_v42 }
 0x17d   : > { %v2409_v3 = vadd.f32 %v2377_v46, %v2312_v34  ;;  %v1086_v34 = vadd.f32 %v1054_v1, %v8360_v37  ;;  %v1151_v46 = vmul.f32 %v7562_v53, %v8404_v18  ;;  %v2184_v37 = vmul.f32 %v8470_v39, %v12238_v50 }
 0x17e   : > { %12248 = vst [vmem:[#allocation6_spill] sm:$0xff] %v8547_v61  ;;  %v2573_v55 = vmul.f32 %v8547_v61, %v8547_v61 }
 0x17f   : > { %v1183_v42 = vadd.f32 %v1151_v46, %v1086_v34  ;;  %v2442_v34 = vld [vmem:[#allocation2 + $0xf2] sm:$0xff] }
 0x180   : > { %v2633_v21 = vsel %vm455_vm1, %v2573_v55, 0.0 }
 0x181   : > { %v3618_v11 = vpop.permute.xlu2 %3617 }
 0x189   : > { %3637 = vrot.lane.b32.xlu2 %v8385_v29, %s7281_s23  ;;  %v2474_v29 = vmul.f32 %v12216_v23, %v2441_v41  ;;  %v1053_v41 = vmul.f32 %v7545_v43, %v8374_v5 }
 0x18a   : > { %v651_v60 = vpop.f32.mrf.mxu0 }
 0x18b   : > { %v2506_v24 = vadd.f32 %v2474_v29, %v2409_v3  ;;  %v652_v48 = vadd.f32 %v8563_v59, %v651_v60  ;;  %v1085_v13 = vadd.f32 %v1053_v41, %v8349_v15  ;;  %v1247_v15 = vmul.f32 %v7564_v54, %v8406_v19 }
 0x18c   : > { %v3714_v3 = vsel %vm455_vm1, %v3618_v11, 0.0  ;;  %v2087_v29 = vmul.f32 %v8468_v8, %v12236_v47 }
 0x18d   : > { %v8558_v40 = vadd.f32 %v8253_v0, %v2506_v24  ;;  %696 = vst.msk [vmem:[#allocation2 + $0x151] sm:$0xff] %vm362_vm2, %v652_v48  ;;  %v1182_v51 = vadd.f32 %v1150_v52, %v1085_v13  ;;  %v1248_v48 = vmul.f32 %v7564_v54, %v8408_v56  ;;  %v2345_v52 = vld [vmem:[#allocation2 + $0xf1] sm:$0xff] }
 0x18e   : > { %v2119_v60 = vadd.f32 %v2087_v29, %v2022_v22 }
 0x18f   : > { %12249 = vst [vmem:[#allocation11_spill] sm:$0xff] %v8558_v40  ;;  %v8573_v44 = vmul.f32 %v8558_v40, %v8558_v40  ;;  %v1279_v35 = vadd.f32 %v1247_v15, %v1182_v51  ;;  %v2378_v15 = vmul.f32 %v7706_v31, %v2345_v52  ;;  %v8713_v40 = vld [vmem:[#allocation2 + $0x120] sm:$0xff] }
 0x191   : > { %3641 = vrot.lane.b32.xlu2 %v8544_v49, %s7281_s23  ;;  %v2636_v7 = vsel %vm455_vm1, %v8573_v44, 0.0 }
 0x194   : > { %v8590_v4 = vld [vmem:[#allocation2 + $0x150] sm:$0xff] }
 0x195   : > { %v654_v58 = vpop.f32.mrf.mxu0  ;;  %v1345_v2 = vmul.f32 %v7568_v62, %v8590_v4  ;;  %v8601_v24 = vld [vmem:[#allocation2 + $0x151] sm:$0xff] }
 0x196   : > { %v655_v57 = vadd.f32 %v8563_v59, %v654_v58  ;;  %v2216_v58 = vadd.f32 %v2184_v37, %v2119_v60  ;;  %v2475_v60 = vmul.f32 %v12216_v23, %v2442_v34 }
 0x197   : > { %v1377_v41 = vadd.f32 %v1345_v2, %v1279_v35 }
 0x198   : > { %2634 = vadd.xlane.f32.xlu1 %v2633_v21  ;;  %697 = vst.msk [vmem:[#allocation2 + $0x159] sm:$0xff] %vm362_vm2, %v655_v57  ;;  %v2248_v21 = vld [vmem:[#allocation2 + $0xf0] sm:$0xff]  ;;  %v1280_v57 = vadd.f32 %v1248_v48, %v1183_v42  ;;  %v8632_v42 = vld [vmem:[%s12040_s5] ss:$0 sm:$0xff] }
 0x199   : > { %v2281_v13 = vmul.f32 %v7704_v30, %v2248_v21 }
 0x19b   : > { %v2313_v51 = vadd.f32 %v2281_v13, %v2216_v58  ;;  %v2630_v13 = vsel %vm455_vm1, %v8544_v49, 0.0  ;;  %v8654_v49 = vpop.xlane.xlu1 %2595 }
 0x19c   : > { %12252 = vst [vmem:[#allocation17_spill] sm:$0xff] %v8654_v49 }
 0x19d   : > { %2628 = vadd.xlane.f32.xlu0 %v2627_v14  ;;  %v1442_v14 = vmul.f32 %v7580_v9, %v8601_v24  ;;  %v2410_v29 = vadd.f32 %v2378_v15, %v2313_v51  ;;  %v1992_v15 = vmul.f32 %v2248_v21, %v12220_v38 }
 0x19f   : > { %v8610_v8 = vld [vmem:[#allocation2 + $0x158] sm:$0xff]  ;;  %v1474_v39 = vadd.f32 %v1442_v14, %v1377_v41 }
 0x1a0   : > { %2637 = vadd.xlane.f32.xlu1 %v2636_v7  ;;  %v8612_v7 = vld [vmem:[#allocation2 + $0x159] sm:$0xff]  ;;  %v1346_v11 = vmul.f32 %v7568_v62, %v8610_v8 }
 0x1a1   : > { %v8614_v63 = vld [vmem:[#allocation2 + $0x152] sm:$0xff]  ;;  %v8616_v1 = vld [vmem:[#allocation2 + $0x15a] sm:$0xff]  ;;  %v1443_v22 = vmul.f32 %v7580_v9, %v8612_v7 }
 0x1a2   : > { %v1539_v46 = vmul.f32 %v7591_v25, %v8614_v63  ;;  %v1378_v35 = vadd.f32 %v1346_v11, %v1280_v57  ;;  %v1703_v11 = vmul.f32 %v2248_v21, %v12239_v36  ;;  %v861_v21 = vmul.f32 %v7501_v27, %v8395_v10 }
 0x1a4   : > { %v1571_v2 = vadd.f32 %v1539_v46, %v1474_v39  ;;  %v1475_v37 = vadd.f32 %v1443_v22, %v1378_v35  ;;  %v8649_v39 = vpop.permute.xlu0 %3615  ;;  %v1800_v22 = vmul.f32 %v2345_v52, %v7587_v20  ;;  %v2024_v46 = vadd.f32 %v1992_v15, %v8504_v17  ;;  %v8682_v15 = vld [vmem:[#allocation2 + $0x109] sm:$0xff] }
 0x1a5   : > { %v2089_v35 = vmul.f32 %v2345_v52, %v12236_v47 }
 0x1a6   : > { %v1607_v48 = vadd.f32 %v8632_v42, %v1571_v2  ;;  %v1832_v2 = vadd.f32 %v1800_v22, %v1703_v11 }
 0x1a8   : > { %3715 = vadd.xlane.f32.xlu1 %v3714_v3  ;;  %v1540_v3 = vmul.f32 %v7591_v25, %v8616_v1  ;;  %1639 = vst.msk [vmem:[#allocation2 + $0x139] sm:$0xff] %vm362_vm2, %v1607_v48  ;;  %v2121_v48 = vadd.f32 %v2089_v35, %v2024_v46 }
 0x1aa   : > { %v1572_v41 = vadd.f32 %v1540_v3, %v1475_v37  ;;  %v8662_v3 = vld [vmem:[#allocation2 + $0xf8] sm:$0xff]  ;;  %v764_v37 = vmul.f32 %v7499_v26, %v8374_v5 }
 0x1ab   : > { %v1993_v17 = vmul.f32 %v12220_v38, %v8662_v3 }
 0x1ac   : > { %v1608_v14 = vadd.f32 %v8632_v42, %v1572_v41  ;;  %v8651_v51 = vpop.permute.xlu0 %3619  ;;  %v8672_v41 = vpop.permute.xlu1 %3623  ;;  %v893_v10 = vadd.f32 %v861_v21, %v764_v37  ;;  %v765_v21 = vmul.f32 %v7499_v26, %v8400_v33 }
 0x1ad   : > { %v2025_v46 = vadd.f32 %v1993_v17, %v8513_v6  ;;  %v862_v6 = vmul.f32 %v7501_v27, %v8404_v18 }
 0x1ae   : > { %1640 = vst.msk [vmem:[#allocation2 + $0x141] sm:$0xff] %vm362_vm2, %v1608_v14  ;;  %v8678_v14 = vld [vmem:[#allocation2 + $0xf9] sm:$0xff] }
 0x1af   : > { %v2090_v35 = vmul.f32 %v12236_v47, %v8678_v14 }
 0x1b1   : > { %3643 = vrot.lane.b32.xlu0 %v2573_v55, %s7281_s23  ;;  %v2507_v55 = vadd.f32 %v2475_v60, %v2410_v29  ;;  %v1897_v29 = vmul.f32 %v2442_v34, %v7611_v28  ;;  %v8665_v60 = vld [vmem:[#allocation2 + $0x108] sm:$0xff] }
 0x1b2   : > { %v1994_v5 = vmul.f32 %v8665_v60, %v12220_v38 }
 0x1b3   : > { %v8641_v58 = vadd.f32 %v8253_v0, %v2507_v55  ;;  %v2283_v55 = vmul.f32 %v7704_v30, %v8665_v60 }
 0x1b4   : > { %v3622_v52 = vpop.permute.xlu0 %3621 }
 0x1b5   : > { %12251 = vst [vmem:[#allocation4_spill] sm:$0xff] %v8641_v58  ;;  %v8645_v57 = vmul.f32 %v8641_v58, %v8641_v58  ;;  %v3720_v22 = vsel %vm455_vm1, %v3622_v52, 0.0  ;;  %v1055_v52 = vmul.f32 %v7545_v43, %v8590_v4 }
 0x1ba   : > { %2631 = vadd.xlane.f32.xlu2 %v2630_v13  ;;  %v1929_v13 = vadd.f32 %v1897_v29, %v1832_v2  ;;  %v2380_v2 = vmul.f32 %v7706_v31, %v8682_v15 }
 0x1bc   : > { %v2026_v37 = vadd.f32 %v1994_v5, %v1929_v13  ;;  %v2122_v13 = vadd.f32 %v2090_v35, %v2025_v46  ;;  %v2187_v5 = vmul.f32 %v12238_v50, %v8692_v16  ;;  %v1152_v46 = vmul.f32 %v7562_v53, %v8601_v24  ;;  %v2348_v35 = vld [vmem:[#allocation2 + $0x111] sm:$0xff] }
 0x1c1   : > { %3647 = vrot.lane.b32.xlu1 %v8645_v57, %s7281_s23 }
 0x1ce   : > { %v657_v29 = vpop.f32.mrf.mxu0 }
 0x1d2   : > { %3645 = vrot.lane.b32.xlu2 %v8573_v44, %s7281_s23  ;;  %v2186_v44 = vmul.f32 %v2442_v34, %v12238_v50  ;;  %v958_v34 = vmul.f32 %v7519_v32, %v8406_v19  ;;  %v2091_v19 = vmul.f32 %v8682_v15, %v12236_v47 }
 0x1d4   : > { %v2218_v11 = vadd.f32 %v2186_v44, %v2121_v48  ;;  %v2444_v48 = vld [vmem:[#allocation2 + $0x10a] sm:$0xff]  ;;  %v658_v44 = vadd.f32 %v8563_v59, %v657_v29  ;;  %v990_v17 = vadd.f32 %v958_v34, %v893_v10  ;;  %v2123_v18 = vadd.f32 %v2091_v19, %v2026_v37 }
 0x1d5   : > { %v2188_v58 = vmul.f32 %v2444_v48, %v12238_v50  ;;  %v894_v29 = vadd.f32 %v862_v6, %v765_v21  ;;  %v959_v10 = vmul.f32 %v7519_v32, %v8408_v56  ;;  %v2285_v37 = vmul.f32 %v7704_v30, %v8713_v40 }
 0x1d6   : > { %v2315_v61 = vadd.f32 %v2283_v55, %v2218_v11  ;;  %v2251_v55 = vld [vmem:[#allocation2 + $0x110] sm:$0xff]  ;;  %v8703_v11 = vpop.permute.xlu1 %3627  ;;  %698 = vst.msk [vmem:[#allocation2 + $0x169] sm:$0xff] %vm362_vm2, %v658_v44  ;;  %v1087_v49 = vadd.f32 %v1055_v52, %v990_v17  ;;  %v2219_v44 = vadd.f32 %v2187_v5, %v2122_v13  ;;  %v1056_v56 = vmul.f32 %v7545_v43, %v8610_v8 }
 0x1d7   : > { %v2284_v34 = vmul.f32 %v7704_v30, %v2251_v55  ;;  %v2220_v45 = vadd.f32 %v2188_v58, %v2123_v18  ;;  %v991_v19 = vadd.f32 %v959_v10, %v894_v29  ;;  %v2381_v6 = vmul.f32 %v7706_v31, %v2348_v35  ;;  %v8722_v55 = vld [vmem:[#allocation2 + $0x121] sm:$0xff]  ;;  %v2445_v13 = vld [vmem:[#allocation2 + $0x112] sm:$0xff] }
 0x1d8   : > { %v2412_v33 = vadd.f32 %v2380_v2, %v2315_v61  ;;  %v660_v2 = vpop.f32.mrf.mxu0  ;;  %v1184_v17 = vadd.f32 %v1152_v46, %v1087_v49  ;;  %v1249_v52 = vmul.f32 %v7564_v54, %v8614_v63  ;;  %v2382_v49 = vmul.f32 %v7706_v31, %v8722_v55 }
 0x1d9   : > { %v2316_v21 = vadd.f32 %v2284_v34, %v2219_v44  ;;  %v661_v5 = vadd.f32 %v8563_v59, %v660_v2  ;;  %v2317_v18 = vadd.f32 %v2285_v37, %v2220_v45  ;;  %v1088_v10 = vadd.f32 %v1056_v56, %v991_v19  ;;  %v8742_v44 = vld [vmem:[#allocation2 + $0x122] sm:$0xff] }
 0x1da   : > { %v1153_v34 = vmul.f32 %v7562_v53, %v8612_v7  ;;  %v2478_v35 = vmul.f32 %v12216_v23, %v2445_v13  ;;  %v1705_v45 = vmul.f32 %v8665_v60, %v12239_v36  ;;  %v1802_v2 = vmul.f32 %v8682_v15, %v7587_v20 }
 0x1db   : > { %3721 = vadd.xlane.f32.xlu0 %v3720_v22  ;;  %v2477_v22 = vmul.f32 %v12216_v23, %v2444_v48  ;;  %699 = vst.msk [vmem:[#allocation2 + $0x171] sm:$0xff] %vm362_vm2, %v661_v5  ;;  %v2413_v46 = vadd.f32 %v2381_v6, %v2316_v21  ;;  %v2414_v19 = vadd.f32 %v2382_v49, %v2317_v18 }
 0x1dc   : > { %v2479_v56 = vmul.f32 %v12216_v23, %v8742_v44  ;;  %v1185_v21 = vadd.f32 %v1153_v34, %v1088_v10  ;;  %v1250_v6 = vmul.f32 %v7564_v54, %v8616_v1  ;;  %v1834_v13 = vadd.f32 %v1802_v2, %v1705_v45 }
 0x1dd   : > { %v2509_v61 = vadd.f32 %v2477_v22, %v2412_v33  ;;  %v8727_v58 = vld [vmem:[#allocation2 + $0x168] sm:$0xff]  ;;  %v2639_v33 = vsel %vm455_vm1, %v8645_v57, 0.0  ;;  %v1281_v57 = vadd.f32 %v1249_v52, %v1184_v17  ;;  %v2510_v52 = vadd.f32 %v2478_v35, %v2413_v46 }
 0x1de   : > { %v8737_v29 = vpop.permute.xlu1 %3629  ;;  %v8750_v37 = vld [vmem:[#allocation2 + $0x169] sm:$0xff]  ;;  %v1899_v5 = vmul.f32 %v2444_v48, %v7611_v28  ;;  %v2511_v49 = vadd.f32 %v2479_v56, %v2414_v19  ;;  %v1282_v10 = vadd.f32 %v1250_v6, %v1185_v21  ;;  %v3717_v48 = vsel %vm455_vm1, %v8651_v51, 0.0 }
 0x1df   : > { %v8732_v22 = vadd.f32 %v8253_v0, %v2509_v61  ;;  %v1347_v61 = vmul.f32 %v7568_v62, %v8727_v58  ;;  %v1444_v15 = vmul.f32 %v7580_v9, %v8750_v37  ;;  %v8772_v46 = vadd.f32 %v8253_v0, %v2510_v52 }
 0x1e0   : > { %v1931_v45 = vadd.f32 %v1899_v5, %v1834_v13  ;;  %v1996_v2 = vmul.f32 %v8713_v40, %v12220_v38  ;;  %v8789_v6 = vadd.f32 %v8253_v0, %v2511_v49 }
 0x1e1   : > { %12253 = vst [vmem:[#allocation8_spill] sm:$0xff] %v8732_v22  ;;  %v8758_v17 = vmul.f32 %v8732_v22, %v8732_v22  ;;  %v1379_v60 = vadd.f32 %v1347_v61, %v1281_v57  ;;  %v8793_v51 = vmul.f32 %v8772_v46, %v8772_v46 }
 0x1e2   : > { %v8767_v18 = vld [vmem:[#allocation2 + $0x171] sm:$0xff]  ;;  %12255 = vst [vmem:[#allocation20_spill] sm:$0xff] %v8772_v46  ;;  %v8799_v13 = vmul.f32 %v8789_v6, %v8789_v6  ;;  %v2028_v5 = vadd.f32 %v1996_v2, %v1931_v45  ;;  %v3711_v45 = vsel %vm455_vm1, %v8649_v39, 0.0 }
 0x1e3   : > { %v8774_v35 = vld [vmem:[#allocation2 + $0x16a] sm:$0xff]  ;;  %v1476_v57 = vadd.f32 %v1444_v15, %v1379_v60  ;;  %v8778_v61 = vld [vmem:[#allocation2 + $0x172] sm:$0xff]  ;;  %v1445_v56 = vmul.f32 %v7580_v9, %v8767_v18  ;;  %12256 = vst [vmem:[#allocation5_spill] sm:$0xff] %v8789_v6 }
 0x1e4   : > { %v1541_v21 = vmul.f32 %v7591_v25, %v8774_v35  ;;  %v1542_v60 = vmul.f32 %v7591_v25, %v8778_v61 }
 0x1e6   : > { %v8769_v34 = vpop.xlane.xlu1 %2613  ;;  %v1573_v15 = vadd.f32 %v1541_v21, %v1476_v57  ;;  %v2651_v57 = vsel %vm455_vm1, %v8799_v13, 0.0  ;;  %v2254_v21 = vld [vmem:[#allocation2 + $0x138] sm:$0xff] }
 0x1e7   : > { %12254 = vst [vmem:[#allocation19_spill] sm:$0xff] %v8769_v34  ;;  %v1865_v34 = vld [vmem:[#allocation2 + $0xfa] sm:$0xff] }
 0x1e8   : > { %v1609_v0 = vadd.f32 %v8632_v42, %v1573_v15  ;;  %v2351_v15 = vld [vmem:[#allocation2 + $0x139] sm:$0xff] }
 0x1ea   : > { %1641 = vst.msk [vmem:[#allocation2 + $0x151] sm:$0xff] %vm362_vm2, %v1609_v0  ;;  %v2384_v0 = vmul.f32 %v7706_v31, %v2351_v15 }
 0x1eb   : > { %2640 = vadd.xlane.f32.xlu1 %v2639_v33  ;;  %v8765_v33 = vld [vmem:[#allocation2 + $0x170] sm:$0xff] }
 0x1ec   : > { %v1348_v19 = vmul.f32 %v7568_v62, %v8765_v33 }
 0x1ee   : > { %v1380_v52 = vadd.f32 %v1348_v19, %v1282_v10  ;;  %v8806_v49 = vpop.permute.xlu1 %3631  ;;  %v2190_v19 = vmul.f32 %v8742_v44, %v12238_v50 }
 0x1ef   : > { %3651 = vrot.lane.b32.xlu0 %v8758_v17, %s7281_s23 }
 0x1f0   : > { %v1477_v22 = vadd.f32 %v1445_v56, %v1380_v52 }
 0x1f2   : > { %v1574_v10 = vadd.f32 %v1542_v60, %v1477_v22  ;;  %v2282_v22 = vmul.f32 %v7704_v30, %v8662_v3  ;;  %v2287_v60 = vmul.f32 %v7704_v30, %v2254_v21  ;;  %v766_v3 = vmul.f32 %v7499_v26, %v8590_v4 }
 0x1f3   : > { %3718 = vadd.xlane.f32.xlu1 %v3717_v48  ;;  %v2093_v48 = vmul.f32 %v8722_v55, %v12236_v47 }
 0x1f4   : > { %v1610_v56 = vadd.f32 %v8632_v42, %v1574_v10  ;;  %v2314_v39 = vadd.f32 %v2282_v22, %v8533_v12  ;;  %v864_v22 = vmul.f32 %v7501_v27, %v8612_v7 }
 0x1f5   : > { %v2125_v2 = vadd.f32 %v2093_v48, %v2028_v5  ;;  %v2379_v5 = vmul.f32 %v7706_v31, %v8678_v14  ;;  %v767_v14 = vmul.f32 %v7499_v26, %v8610_v8  ;;  %v865_v8 = vmul.f32 %v7501_v27, %v8750_v37 }
 0x1f6   : > { %1642 = vst.msk [vmem:[#allocation2 + $0x159] sm:$0xff] %vm362_vm2, %v1610_v56  ;;  %v8824_v10 = vpop.permute.xlu1 %3633  ;;  %v2476_v56 = vmul.f32 %v12216_v23, %v8692_v16  ;;  %v960_v16 = vmul.f32 %v7519_v32, %v8614_v63  ;;  %v8852_v63 = vld [vmem:[%s12042_s7] ss:$0 sm:$0xff] }
 0x1f7   : > { %3653 = vrot.lane.b32.xlu0 %v8793_v51, %s7281_s23  ;;  %v2222_v52 = vadd.f32 %v2190_v19, %v2125_v2  ;;  %v863_v2 = vmul.f32 %v7501_v27, %v8601_v24  ;;  %v768_v24 = vmul.f32 %v7499_v26, %v8727_v58  ;;  %v896_v7 = vadd.f32 %v864_v22, %v767_v14 }
 0x1f8   : > { %v962_v14 = vmul.f32 %v7519_v32, %v8774_v35 }
 0x1f9   : > { %v2319_v48 = vadd.f32 %v2287_v60, %v2222_v52  ;;  %v663_v52 = vpop.f32.mrf.mxu0 }
 0x1fa   : > { %v664_v4 = vadd.f32 %v8563_v59, %v663_v52  ;;  %v1058_v52 = vmul.f32 %v7545_v43, %v8765_v33 }
 0x1fb   : > { %2652 = vadd.xlane.f32.xlu1 %v2651_v57  ;;  %3712 = vadd.xlane.f32.xlu2 %v3711_v45  ;;  %v2448_v57 = vld [vmem:[#allocation2 + $0x13a] sm:$0xff]  ;;  %v2411_v45 = vadd.f32 %v2379_v5, %v2314_v39  ;;  %v2416_v12 = vadd.f32 %v2384_v0, %v2319_v48  ;;  %v895_v39 = vadd.f32 %v863_v2, %v766_v3 }
 0x1fc   : > { %v2481_v19 = vmul.f32 %v12216_v23, %v2448_v57  ;;  %700 = vst.msk [vmem:[#allocation2 + $0x181] sm:$0xff] %vm362_vm2, %v664_v4  ;;  %v961_v48 = vmul.f32 %v7519_v32, %v8616_v1  ;;  %v1057_v3 = vmul.f32 %v7545_v43, %v8727_v58  ;;  %v1707_v2 = vmul.f32 %v8713_v40, %v12239_v36 }
 0x1fd   : > { %v2508_v60 = vadd.f32 %v2476_v56, %v2411_v45  ;;  %v992_v45 = vadd.f32 %v960_v16, %v895_v39  ;;  %v1804_v1 = vmul.f32 %v8722_v55, %v7587_v20  ;;  %v1154_v16 = vmul.f32 %v7562_v53, %v8750_v37 }
 0x1fe   : > { %v2513_v5 = vadd.f32 %v2481_v19, %v2416_v12  ;;  %v1901_v12 = vmul.f32 %v8742_v44, %v7611_v28  ;;  %v897_v19 = vadd.f32 %v865_v8, %v768_v24  ;;  %v993_v22 = vadd.f32 %v961_v48, %v896_v7 }
 0x1ff   : > { %v8855_v0 = vadd.f32 %v8852_v63, %v2508_v60  ;;  %v1836_v60 = vadd.f32 %v1804_v1, %v1707_v2  ;;  %v1998_v44 = vmul.f32 %v2254_v21, %v12220_v38  ;;  %v1089_v39 = vadd.f32 %v1057_v3, %v992_v45 }
 0x200   : > { %v8858_v56 = vadd.f32 %v8852_v63, %v2513_v5  ;;  %v769_v7 = vmul.f32 %v7499_v26, %v8765_v33  ;;  %v866_v48 = vmul.f32 %v7501_v27, %v8767_v18  ;;  %v994_v21 = vadd.f32 %v962_v14, %v897_v19  ;;  %v8900_v33 = vld [vmem:[#allocation2 + $0x150] sm:$0xff] }
 0x201   : > { %12258 = vst [vmem:[#allocation28_spill] sm:$0xff] %v8855_v0  ;;  %v8874_v58 = vmul.f32 %v8855_v0, %v8855_v0  ;;  %v666_v40 = vpop.f32.mrf.mxu0  ;;  %v1933_v24 = vadd.f32 %v1901_v12, %v1836_v60  ;;  %v2095_v37 = vmul.f32 %v2351_v15, %v12236_v47  ;;  %v1090_v45 = vadd.f32 %v1058_v52, %v993_v22  ;;  %v8907_v52 = vld [vmem:[#allocation2 + $0x151] sm:$0xff] }
 0x202   : > { %12259 = vst [vmem:[#allocation29_spill] sm:$0xff] %v8858_v56  ;;  %v8878_v55 = vmul.f32 %v8858_v56, %v8858_v56  ;;  %v667_v8 = vadd.f32 %v8563_v59, %v666_v40  ;;  %v1155_v3 = vmul.f32 %v7562_v53, %v8767_v18  ;;  %v2192_v26 = vmul.f32 %v2448_v57, %v12238_v50 }
 0x203   : > { %12260 = vst [vmem:[#allocation30_spill] sm:$0xff] %v8874_v58  ;;  %v1026_v4 = vld [vmem:[#allocation2 + $0x180] sm:$0xff]  ;;  %v2030_v59 = vadd.f32 %v1998_v44, %v1933_v24  ;;  %v1186_v27 = vadd.f32 %v1154_v16, %v1089_v39  ;;  %v963_v12 = vmul.f32 %v7519_v32, %v8778_v61  ;;  %v1251_v15 = vmul.f32 %v7564_v54, %v8774_v35  ;;  %v8913_v44 = vpop.xlane.xlu2 %2598  ;;  %v8915_v39 = vld [vmem:[#allocation2 + $0x152] sm:$0xff] }
 0x204   : > { %12261 = vst [vmem:[#allocation31_spill] sm:$0xff] %v8878_v55  ;;  %v1059_v2 = vmul.f32 %v7545_v43, %v1026_v4  ;;  %v1123_v1 = vld [vmem:[#allocation2 + $0x181] sm:$0xff]  ;;  %v898_v19 = vadd.f32 %v866_v48, %v769_v7  ;;  %v1187_v60 = vadd.f32 %v1155_v3, %v1090_v45  ;;  %v1252_v57 = vmul.f32 %v7564_v54, %v8778_v61  ;;  %v8917_v35 = vld [vmem:[#allocation2 + $0x198] sm:$0xff] }
 0x205   : > { %701 = vst.msk [vmem:[#allocation2 + $0x189] sm:$0xff] %vm362_vm2, %v667_v8  ;;  %v1156_v18 = vmul.f32 %v7562_v53, %v1123_v1  ;;  %v2127_v22 = vadd.f32 %v2095_v37, %v2030_v59  ;;  %v2289_v40 = vmul.f32 %v7704_v30, %v8900_v33  ;;  %v1283_v16 = vadd.f32 %v1251_v15, %v1186_v27  ;;  %v8924_v48 = vld [vmem:[#allocation2 + $0x199] sm:$0xff] }
 0x206   : > { %v1091_v14 = vadd.f32 %v1059_v2, %v994_v21  ;;  %12263 = vst [vmem:[#allocation33_spill] sm:$0xff] %v8913_v44  ;;  %v1349_v24 = vmul.f32 %v7568_v62, %v1026_v4  ;;  %v2386_v7 = vmul.f32 %v7706_v31, %v8907_v52  ;;  %v995_v61 = vadd.f32 %v963_v12, %v898_v19  ;;  %v8934_v19 = vld [vmem:[#allocation2 + $0x1a0] sm:$0xff] }
 0x207   : > { %v2224_v32 = vadd.f32 %v2192_v26, %v2127_v22  ;;  %v1284_v2 = vadd.f32 %v1252_v57, %v1187_v60  ;;  %v2483_v26 = vmul.f32 %v12216_v23, %v8915_v39  ;;  %v1351_v4 = vmul.f32 %v7568_v62, %v8917_v35 }
 0x208   : > { %v1188_v21 = vadd.f32 %v1156_v18, %v1091_v14  ;;  %v1381_v14 = vadd.f32 %v1349_v24, %v1283_v16  ;;  %v1446_v18 = vmul.f32 %v7580_v9, %v1123_v1  ;;  %v1448_v57 = vmul.f32 %v7580_v9, %v8924_v48 }
 0x209   : > { %v2321_v59 = vadd.f32 %v2289_v40, %v2224_v32  ;;  %v1352_v16 = vmul.f32 %v7568_v62, %v8934_v19  ;;  %v3732_v1 = vsel %vm455_vm1, %v8737_v29, 0.0 }
 0x20b   : > { %v8840_v46 = vpop.xlane.xlu1 %2634  ;;  %v2418_v60 = vadd.f32 %v2386_v7, %v2321_v59  ;;  %v8960_v29 = vpop.permute.xlu2 %3625 }
 0x20c   : > { %12257 = vst [vmem:[#allocation27_spill] sm:$0xff] %v8840_v46  ;;  %v1027_v37 = vld [vmem:[#allocation2 + $0x188] sm:$0xff] }
 0x20d   : > { %v1124_v45 = vld [vmem:[#allocation2 + $0x189] sm:$0xff]  ;;  %v1060_v15 = vmul.f32 %v7545_v43, %v1027_v37  ;;  %v1350_v6 = vmul.f32 %v7568_v62, %v1027_v37  ;;  %v8941_v43 = vld [vmem:[#allocation2 + $0x1a1] sm:$0xff]  ;;  %v2515_v0 = vadd.f32 %v2483_v26, %v2418_v60  ;;  %v8958_v62 = vpop.xlane.xlu0 %2601 }
 0x20e   : > { %v1220_v3 = vld [vmem:[#allocation2 + $0x182] sm:$0xff]  ;;  %v1221_v27 = vld [vmem:[#allocation2 + $0x18a] sm:$0xff]  ;;  %v1157_v22 = vmul.f32 %v7562_v53, %v1124_v45  ;;  %v8943_v53 = vld [vmem:[#allocation2 + $0x19a] sm:$0xff]  ;;  %12264 = vst [vmem:[#allocation34_spill] sm:$0xff] %v8958_v62 }
 0x20f   : > { %v1253_v12 = vmul.f32 %v7564_v54, %v1220_v3  ;;  %v1092_v40 = vadd.f32 %v1060_v15, %v995_v61  ;;  %v1254_v32 = vmul.f32 %v7564_v54, %v1221_v27  ;;  %v1382_v7 = vadd.f32 %v1350_v6, %v1284_v2  ;;  %v8952_v37 = vld [vmem:[#allocation2 + $0x1a2] sm:$0xff] }
 0x210   : > { %v1447_v61 = vmul.f32 %v7580_v9, %v1124_v45  ;;  %v1478_v54 = vadd.f32 %v1446_v18, %v1381_v14  ;;  %v1545_v26 = vmul.f32 %v7591_v25, %v8943_v53  ;;  %v8963_v6 = vadd.f32 %v8852_v63, %v2515_v0  ;;  %v8975_v60 = vld [vmem:[#allocation2 + $0x128] sm:$0xff] }
 0x211   : > { %v1285_v56 = vadd.f32 %v1253_v12, %v1188_v21  ;;  %v1189_v24 = vadd.f32 %v1157_v22, %v1092_v40  ;;  %v1449_v21 = vmul.f32 %v7580_v9, %v8941_v43  ;;  %v1544_v12 = vmul.f32 %v7591_v25, %v1221_v27 }
 0x212   : > { %12265 = vst [vmem:[#allocation35_spill] sm:$0xff] %v8963_v6  ;;  %v1479_v45 = vadd.f32 %v1447_v61, %v1382_v7  ;;  %v8968_v9 = vmul.f32 %v8963_v6, %v8963_v6  ;;  %v1546_v14 = vmul.f32 %v7591_v25, %v8952_v37 }
 0x213   : > { %v8883_v5 = vpop.xlane.xlu1 %2637  ;;  %3649 = vrot.lane.b32.xlu2 %v8874_v58, %s7281_s23  ;;  %v1383_v59 = vadd.f32 %v1351_v4, %v1285_v56  ;;  %v1286_v56 = vadd.f32 %v1254_v32, %v1189_v24  ;;  %v1543_v4 = vmul.f32 %v7591_v25, %v1220_v3  ;;  %v1708_v32 = vmul.f32 %v12239_v36, %v8975_v60  ;;  %v8988_v24 = vld [vmem:[#allocation2 + $0x12a] sm:$0xff] }
 0x214   : > { %12262 = vst [vmem:[#allocation32_spill] sm:$0xff] %v8883_v5  ;;  %3659 = vrot.lane.b32.xlu1 %v8878_v55, %s7281_s23  ;;  %v3735_v25 = vsel %vm455_vm1, %v8806_v49, 0.0  ;;  %v9066_v55 = vld [vmem:[#allocation2 + $0x110] sm:$0xff] }
 0x215   : > { %v1480_v2 = vadd.f32 %v1448_v57, %v1383_v59  ;;  %12266 = vst [vmem:[#allocation36_spill] sm:$0xff] %v8968_v9  ;;  %v1384_v22 = vadd.f32 %v1352_v16, %v1286_v56  ;;  %v1575_v0 = vadd.f32 %v1543_v4, %v1478_v54  ;;  %v1576_v57 = vadd.f32 %v1544_v12, %v1479_v45  ;;  %v8981_v16 = vld [vmem:[#allocation2 + $0x129] sm:$0xff]  ;;  %v9007_v12 = vpop.xlane.xlu0 %2604 }
 0x216   : > { %v1902_v54 = vmul.f32 %v7611_v28, %v8988_v24 }
 0x217   : > { %v1481_v3 = vadd.f32 %v1449_v21, %v1384_v22  ;;  %v1577_v40 = vadd.f32 %v1545_v26, %v1480_v2  ;;  %v1611_v27 = vadd.f32 %v8632_v42, %v1575_v0  ;;  %v1612_v59 = vadd.f32 %v8632_v42, %v1576_v57  ;;  %v8994_v21 = vld [vmem:[#allocation2 + $0x140] sm:$0xff] }
 0x218   : > { %v1999_v49 = vmul.f32 %v12220_v38, %v8994_v21  ;;  %v9002_v2 = vld [vmem:[#allocation2 + $0x141] sm:$0xff] }
 0x219   : > { %v1578_v7 = vadd.f32 %v1546_v14, %v1481_v3  ;;  %v1613_v61 = vadd.f32 %v8632_v42, %v1577_v40  ;;  %1643 = vst.msk [vmem:[#allocation2 + $0x169] sm:$0xff] %vm362_vm2, %v1611_v27  ;;  %v2096_v22 = vmul.f32 %v12236_v47, %v9002_v2  ;;  %v3636_v14 = vpop.permute.xlu2 %3635  ;;  %v9010_v0 = vld [vmem:[#allocation2 + $0x142] sm:$0xff]  ;;  %v9014_v3 = vld [vmem:[#allocation2 + $0x158] sm:$0xff] }
 0x21a   : > { %1644 = vst.msk [vmem:[#allocation2 + $0x171] sm:$0xff] %vm362_vm2, %v1612_v59  ;;  %v3741_v40 = vsel %vm455_vm1, %v3636_v14, 0.0  ;;  %v2290_v27 = vmul.f32 %v7704_v30, %v9014_v3  ;;  %v1671_v14 = vld [vmem:[#allocation2 + $0xf8] sm:$0xff] }
 0x21b   : > { %v8920_v8 = vpop.xlane.xlu1 %3715  ;;  %v1614_v45 = vadd.f32 %v8632_v42, %v1578_v7  ;;  %1645 = vst.msk [vmem:[#allocation2 + $0x181] sm:$0xff] %vm362_vm2, %v1613_v61  ;;  %v2193_v42 = vmul.f32 %v12238_v50, %v9010_v0  ;;  %v1905_v7 = vmul.f32 %v8915_v39, %v7611_v28 }
 0x21c   : > { %6881 = vrsqrt.f32 %v8920_v8  ;;  %3663 = vrot.lane.b32.xlu1 %v8968_v9, %s7281_s23  ;;  %vm3826_vm4 = vcmp.eq.f32.partialorder %v8920_v8, inf  ;;  %vm3828_vm5 = vcmp.eq.f32.partialorder %v8920_v8, 0.0 }
 0x21d   : > { %1646 = vst.msk [vmem:[#allocation2 + $0x189] sm:$0xff] %vm362_vm2, %v1614_v45 }
 0x220   : > { %v9025_v59 = vld [vmem:[#allocation2 + $0x168] sm:$0xff] }
 0x221   : > { %3733 = vadd.xlane.f32.xlu0 %v3732_v1  ;;  %v1805_v1 = vmul.f32 %v7587_v20, %v8981_v16  ;;  %v2002_v45 = vmul.f32 %v12220_v38, %v9025_v59 }
 0x222   : > { %v8956_v15 = vpop.eup %6881 }
 0x223   : > { %v3820_v18 = vmul.f32 %v8956_v15, %v8920_v8  ;;  %v1837_v26 = vadd.f32 %v1805_v1, %v1708_v32  ;;  %v1808_v1 = vmul.f32 %v8907_v52, %v7587_v20 }
 0x224   : > { %v2166_v62 = vld [vmem:[#allocation2 + $0x18a] sm:$0xff] }
 0x225   : > { %v3821_v56 = vmul.f32 %v8956_v15, %v3820_v18  ;;  %v1934_v4 = vadd.f32 %v1902_v54, %v1837_v26  ;;  %v9027_v54 = vld [vmem:[#allocation2 + $0x159] sm:$0xff]  ;;  %v9029_v26 = vld [vmem:[#allocation2 + $0x169] sm:$0xff] }
 0x226   : > { %v2387_v52 = vmul.f32 %v7706_v31, %v9027_v54  ;;  %v2099_v39 = vmul.f32 %v12236_v47, %v9029_v26 }
 0x227   : > { %v2031_v18 = vadd.f32 %v1999_v49, %v1934_v4  ;;  %v3822_v57 = vmul.f32 0.5, %v3821_v56  ;;  %v9033_v4 = vld [vmem:[#allocation2 + $0x16a] sm:$0xff] }
 0x229   : > { %3736 = vadd.xlane.f32.xlu0 %v3735_v25  ;;  %v2128_v32 = vadd.f32 %v2096_v22, %v2031_v18  ;;  %v1711_v25 = vmul.f32 %v8900_v33, %v12239_v36  ;;  %v3823_v49 = vsub.f32 1.5, %v3822_v57  ;;  %v1768_v18 = vld [vmem:[#allocation2 + $0xf9] sm:$0xff]  ;;  %v9043_v57 = vpop.xlane.xlu0 %2607 }
 0x22a   : > { %12267 = vst [vmem:[#allocation37_spill] sm:$0xff] %v9043_v57 }
 0x22b   : > { %v2225_v61 = vadd.f32 %v2193_v42, %v2128_v32  ;;  %v1840_v56 = vadd.f32 %v1808_v1, %v1711_v25  ;;  %v9039_v42 = vld [vmem:[#allocation2 + $0x15a] sm:$0xff]  ;;  %v3824_v32 = vmul.f32 %v8956_v15, %v3823_v49  ;;  %v3723_v15 = vsel %vm455_vm1, %v8672_v41, 0.0  ;;  %v9058_v49 = vld [vmem:[#allocation2 + $0x182] sm:$0xff] }
 0x22c   : > { %v9048_v1 = vld [vmem:[#allocation2 + $0x181] sm:$0xff]  ;;  %v2484_v6 = vmul.f32 %v12216_v23, %v9039_v42 }
 0x22d   : > { %v2322_v33 = vadd.f32 %v2290_v27, %v2225_v61  ;;  %v1937_v22 = vadd.f32 %v1905_v7, %v1840_v56  ;;  %v2196_v27 = vmul.f32 %v12238_v50, %v9033_v4  ;;  %v1704_v7 = vmul.f32 %v12239_v36, %v1671_v14 }
 0x22e   : > { %v1801_v61 = vmul.f32 %v7587_v20, %v1768_v18  ;;  %v2487_v18 = vmul.f32 %v12216_v23, %v9058_v49 }
 0x22f   : > { %v2034_v25 = vadd.f32 %v2002_v45, %v1937_v22  ;;  %v2419_v56 = vadd.f32 %v2387_v52, %v2322_v33  ;;  %v3825_v45 = vmul.f32 %v3824_v32, %v8920_v8  ;;  %v2390_v33 = vmul.f32 %v7706_v31, %v9048_v1 }
 0x230   : > { %v1898_v52 = vmul.f32 %v7611_v28, %v1865_v34 }
 0x231   : > { %3742 = vadd.xlane.f32.xlu0 %v3741_v40  ;;  %v9041_v40 = vld [vmem:[#allocation2 + $0x180] sm:$0xff]  ;;  %v2131_v5 = vadd.f32 %v2099_v39, %v2034_v25  ;;  %v2516_v14 = vadd.f32 %v2484_v6, %v2419_v56  ;;  %v1833_v25 = vadd.f32 %v1801_v61, %v1704_v7  ;;  %v3827_v41 = vsel %vm3826_vm4, %v8920_v8, %v3825_v45  ;;  %v9079_v7 = vld [vmem:[#allocation2 + $0x111] sm:$0xff] }
 0x232   : > { %v2293_v46 = vmul.f32 %v7704_v30, %v9041_v40  ;;  %v3726_v61 = vsel %vm455_vm1, %v8960_v29, 0.0  ;;  %v9083_v56 = vld [vmem:[#allocation2 + $0x170] sm:$0xff] }
 0x233   : > { %v2228_v22 = vadd.f32 %v2196_v27, %v2131_v5  ;;  %v3829_v5 = vand.u32 2147483648, %v8920_v8  ;;  %v1995_v27 = vmul.f32 %v12220_v38, %v9066_v55  ;;  %v9077_v34 = vadd.f32 %v8852_v63, %v2516_v14  ;;  %v9085_v45 = vld [vmem:[#allocation2 + $0x171] sm:$0xff] }
 0x234   : > { %v1930_v6 = vadd.f32 %v1898_v52, %v1833_v25  ;;  %v1714_v52 = vmul.f32 %v12239_v36, %v9083_v56  ;;  %v1811_v29 = vmul.f32 %v7587_v20, %v9085_v45  ;;  %v2069_v25 = vld [vmem:[#allocation2 + $0x189] sm:$0xff] }
 0x235   : > { %v2325_v39 = vadd.f32 %v2293_v46, %v2228_v22  ;;  %12269 = vst [vmem:[#allocation39_spill] sm:$0xff] %v9077_v34  ;;  %v9087_v22 = vld [vmem:[#allocation2 + $0x172] sm:$0xff]  ;;  %v9093_v8 = vmul.f32 %v9077_v34, %v9077_v34 }
 0x236   : > { %v1908_v14 = vmul.f32 %v7611_v28, %v9087_v22 }
 0x237   : > { %v2422_v32 = vadd.f32 %v2390_v33, %v2325_v39  ;;  %v3830_v33 = vsel %vm3828_vm5, %v3829_v5, %v3827_v41  ;;  %v9089_v39 = vpop.xlane.xlu2 %2622  ;;  %12271 = vst [vmem:[#allocation41_spill] sm:$0xff] %v9093_v8  ;;  %v2092_v41 = vmul.f32 %v12236_v47, %v9079_v7 }
 0x238   : > { %12270 = vst [vmem:[#allocation40_spill] sm:$0xff] %v9089_v39  ;;  %v2027_v39 = vadd.f32 %v1995_v27, %v1930_v6 }
 0x239   : > { %v2519_v46 = vadd.f32 %v2487_v18, %v2422_v32  ;;  %v1972_v18 = vld [vmem:[#allocation2 + $0x188] sm:$0xff]  ;;  %v4192_v32 = vmax.f32 %v3830_v33, 1e-12  ;;  %v2102_v33 = vmul.f32 %v12236_v47, %v2069_v25 }
 0x23a   : > { %v2005_v34 = vmul.f32 %v12220_v38, %v1972_v18 }
 0x23b   : > { %v9106_v5 = vadd.f32 %v8852_v63, %v2519_v46  ;;  %6883 = vrcp.f32 %v4192_v32  ;;  %vm4243_vm7 = vweird.f32 %v4192_v32 }
 0x23c   : > { %3724 = vadd.xlane.f32.xlu2 %v3723_v15  ;;  %v9073_v15 = vpop.xlane.xlu0 %2610 }
 0x23d   : > { %12268 = vst [vmem:[#allocation38_spill] sm:$0xff] %v9073_v15  ;;  %v9109_v15 = vld [vmem:[#allocation2 + $0x112] sm:$0xff] }
 0x23e   : > { %12272 = vst [vmem:[#allocation42_spill] sm:$0xff] %v9106_v5  ;;  %v2189_v9 = vmul.f32 %v12238_v50, %v9109_v15 }
 0x241   : > { %v6884_v6 = vpop.eup %6883 }
 0x242   : > { %v4239_v58 = vmul.f32 %v6884_v6, %v4192_v32  ;;  %vm4244_vm6 = vweird.f32 %v6884_v6 }
 0x243   : > { %vm9147_vm8 = vmor %vm4243_vm7, %vm4244_vm6 }
 0x244   : > { %3727 = vadd.xlane.f32.xlu2 %v3726_v61  ;;  %v1843_v61 = vadd.f32 %v1811_v29, %v1714_v52  ;;  %v2199_v52 = vmul.f32 %v12238_v50, %v2166_v62  ;;  %v2124_v29 = vadd.f32 %v2092_v41, %v2027_v39  ;;  %v9119_v18 = vpop.xlane.xlu0 %2616  ;;  %v2393_v62 = vmul.f32 %v7706_v31, %v8941_v43 }
 0x245   : > { %3665 = vrot.lane.b32.xlu0 %v9093_v8, %s7281_s23  ;;  %v9116_v8 = vmul.f32 %v9106_v5, %v9106_v5  ;;  %v2490_v41 = vmul.f32 %v12216_v23, %v8952_v37  ;;  %v2480_v43 = vmul.f32 %v12216_v23, %v8988_v24  ;;  %v1904_v37 = vmul.f32 %v9010_v0, %v7611_v28 }
 0x246   : > { %v1940_v44 = vadd.f32 %v1908_v14, %v1843_v61  ;;  %v2296_v14 = vmul.f32 %v7704_v30, %v8934_v19  ;;  %v3638_v61 = vpop.permute.xlu2 %3637  ;;  %v2221_v57 = vadd.f32 %v2189_v9, %v2124_v29  ;;  %v4240_v19 = vsub.f32 1.0, %v4239_v58 }
 0x247   : > { %12273 = vst [vmem:[#allocation43_spill] sm:$0xff] %v9116_v8  ;;  %v1807_v58 = vmul.f32 %v9002_v2, %v7587_v20 }
 0x248   : > { %v2037_v46 = vadd.f32 %v2005_v34, %v1940_v44  ;;  %v2286_v44 = vmul.f32 %v7704_v30, %v8975_v60  ;;  %v3744_v34 = vsel %vm455_vm1, %v3638_v61, 0.0  ;;  %v4241_v9 = vmul.f32 %v6884_v6, %v4240_v19 }
 0x249   : > { %3745 = vadd.xlane.f32.xlu1 %v3744_v34 }
 0x24a   : > { %v2134_v27 = vadd.f32 %v2102_v33, %v2037_v46  ;;  %v2318_v33 = vadd.f32 %v2286_v44, %v2221_v57  ;;  %v2383_v46 = vmul.f32 %v7706_v31, %v8981_v16  ;;  %v4249_v44 = vand.u32 2147483648, %v4192_v32 }
 0x24c   : > { %v2231_v25 = vadd.f32 %v2199_v52, %v2134_v27  ;;  %v4242_v27 = vadd.f32 %v6884_v6, %v4241_v9  ;;  %v9136_v5 = vpop.xlane.xlu0 %2619  ;;  %v2415_v57 = vadd.f32 %v2383_v46, %v2318_v33  ;;  %v2098_v46 = vmul.f32 %v9027_v54, %v12236_v47 }
 0x24d   : > { %3671 = vrot.lane.b32.xlu0 %v9116_v8, %s7281_s23  ;;  %v1907_v9 = vmul.f32 %v9033_v4, %v7611_v28  ;;  %v1870_v8 = vld [vmem:[#allocation2 + $0x13a] sm:$0xff] }
 0x24e   : > { %v2328_v39 = vadd.f32 %v2296_v14, %v2231_v25  ;;  %v1710_v14 = vmul.f32 %v8994_v21, %v12239_v36  ;;  %v4247_v25 = vand.u32 2147483647, %v4192_v32  ;;  %v4246_v19 = vsel %vm9147_vm8, %v6884_v6, %v4242_v27 }
 0x24f   : > { %v1713_v32 = vmul.f32 %v9025_v59, %v12239_v36  ;;  %v2195_v27 = vmul.f32 %v9039_v42, %v12238_v50 }
 0x250   : > { %v2425_v52 = vadd.f32 %v2393_v62, %v2328_v39  ;;  %v1839_v34 = vadd.f32 %v1807_v58, %v1710_v14  ;;  %v2001_v39 = vmul.f32 %v9014_v3, %v12220_v38  ;;  %vm4248_vm9 = vcmp.eq.f32.partialorder %v4247_v25, 8.507059e+37 }
 0x251   : > { %v4250_v3 = vor.u32 1.1754944e-38, %v4249_v44  ;;  %v2004_v14 = vmul.f32 %v9041_v40, %v12220_v38  ;;  %v2292_v25 = vmul.f32 %v7704_v30, %v9083_v56  ;;  %v2198_v40 = vmul.f32 %v9058_v49, %v12238_v50 }
 0x252   : > { %v2522_v29 = vadd.f32 %v2490_v41, %v2425_v52  ;;  %v1936_v33 = vadd.f32 %v1904_v37, %v1839_v34  ;;  %v1810_v52 = vmul.f32 %v9029_v26, %v7587_v20  ;;  %v2392_v49 = vmul.f32 %v7706_v31, %v8924_v48 }
 0x253   : > { %v4251_v58 = vsel %vm4248_vm9, %v4250_v3, %v4246_v19 }
 0x254   : > { %v9145_v61 = vadd.f32 %v8852_v63, %v2522_v29  ;;  %v2512_v29 = vadd.f32 %v2480_v43, %v2415_v57  ;;  %v2033_v6 = vadd.f32 %v2001_v39, %v1936_v33  ;;  %v1842_v54 = vadd.f32 %v1810_v52, %v1713_v32  ;;  %v9182_v42 = vpop.xlane.xlu0 %2625  ;;  %v12279_v39 = vld [vmem:[#allocation13_spill] sm:$0xff]  ;;  %v9195_v52 = vpop.permute.xlu1 %3647 }
 0x255   : > { %v2101_v43 = vmul.f32 %v9048_v1, %v12236_v47  ;;  %v4252_v19 = vmul.f32 %v4251_v58, %v12279_v39  ;;  %v2486_v1 = vmul.f32 %v12216_v23, %v9087_v22  ;;  %v2295_v32 = vmul.f32 %v7704_v30, %v8917_v35 }
 0x256   : > { %12274 = vst [vmem:[#allocation44_spill] sm:$0xff] %v9145_v61  ;;  %v9155_v41 = vmul.f32 %v9145_v61, %v9145_v61  ;;  %v2130_v37 = vadd.f32 %v2098_v46, %v2033_v6  ;;  %v1939_v44 = vadd.f32 %v1907_v9, %v1842_v54  ;;  %v9180_v57 = vadd.f32 %v8852_v63, %v2512_v29 }
 0x257   : > { %v2489_v22 = vmul.f32 %v12216_v23, %v8943_v53 }
 0x258   : > { %12277 = vst [vmem:[#allocation45_spill] sm:$0xff] %v9155_v41  ;;  %3677 = vrot.lane.b32.xlu0 %v9155_v41, %s7281_s23  ;;  %v2227_v62 = vadd.f32 %v2195_v27, %v2130_v37  ;;  %v2036_v34 = vadd.f32 %v2004_v14, %v1939_v44  ;;  %v2580_v56 = vmul.f32 %v9180_v57, %v9180_v57 }
 0x259   : > { %12278 = vst [vmem:[#allocation46_spill] sm:$0xff] %v9180_v57 }
 0x25a   : > { %v2324_v33 = vadd.f32 %v2292_v25, %v2227_v62  ;;  %v2133_v46 = vadd.f32 %v2101_v43, %v2036_v34  ;;  %v1706_v34 = vmul.f32 %v9066_v55, %v12239_v36 }
 0x25c   : > { %3655 = vrot.lane.b32.xlu2 %v8799_v13, %s7281_s23  ;;  %v2389_v13 = vmul.f32 %v7706_v31, %v9085_v45  ;;  %v2230_v3 = vadd.f32 %v2198_v40, %v2133_v46  ;;  %v9203_v6 = vpop.permute.xlu0 %3639  ;;  %v1803_v40 = vmul.f32 %v9079_v7, %v7587_v20  ;;  %v1900_v46 = vmul.f32 %v9109_v15, %v7611_v28 }
 0x25d   : > { %v1997_v7 = vmul.f32 %v12220_v38, %v8975_v60  ;;  %v2094_v15 = vmul.f32 %v12236_v47, %v8981_v16  ;;  %v2288_v60 = vmul.f32 %v7704_v30, %v8994_v21 }
 0x25e   : > { %v2421_v45 = vadd.f32 %v2389_v13, %v2324_v33  ;;  %v2327_v29 = vadd.f32 %v2295_v32, %v2230_v3  ;;  %v9212_v58 = vpop.xlane.xlu1 %2640  ;;  %v9233_v13 = vpop.permute.xlu2 %3641 }
 0x260   : > { %4707 = vrot.lane.b32.xlu0 %v4252_v19, %s7281_s23  ;;  %v2518_v9 = vadd.f32 %v2486_v1, %v2421_v45  ;;  %v2424_v27 = vadd.f32 %v2392_v49, %v2327_v29  ;;  %v1835_v1 = vadd.f32 %v1803_v40, %v1706_v34  ;;  %v2654_v34 = vsel %vm455_vm1, %v2580_v56, 0.0 }
 0x262   : > { %v9206_v35 = vadd.f32 %v8852_v63, %v2518_v9  ;;  %v2521_v14 = vadd.f32 %v2489_v22, %v2424_v27  ;;  %v3729_v9 = vsel %vm455_vm1, %v8703_v11, 0.0  ;;  %v1932_v55 = vadd.f32 %v1900_v46, %v1835_v1 }
 0x263   : > { %v2191_v11 = vmul.f32 %v12238_v50, %v8988_v24 }
 0x264   : > { %3657 = vrot.lane.b32.xlu2 %v2580_v56, %s7281_s23  ;;  %12280 = vst [vmem:[#allocation47_spill] sm:$0xff] %v9206_v35  ;;  %v9210_v54 = vmul.f32 %v9206_v35, %v9206_v35  ;;  %v9217_v48 = vadd.f32 %v8852_v63, %v2521_v14  ;;  %v9219_v53 = vpop.xlane.xlu0 %2628  ;;  %v2029_v22 = vadd.f32 %v1997_v7, %v1932_v55 }
 0x265   : > { %v2385_v56 = vmul.f32 %v7706_v31, %v9002_v2 }
 0x266   : > { %12281 = vst [vmem:[#allocation48_spill] sm:$0xff] %v9210_v54  ;;  %3669 = vrot.lane.b32.xlu1 %v9210_v54, %s7281_s23  ;;  %v9223_v37 = vmul.f32 %v9217_v48, %v9217_v48  ;;  %v9227_v25 = vpop.xlane.xlu1 %3718  ;;  %v9241_v32 = vpop.xlane.xlu2 %2631 }
 0x267   : > { %12282 = vst [vmem:[#allocation49_spill] sm:$0xff] %v9217_v48 }
 0x268   : > { %12283 = vst [vmem:[#allocation50_spill] sm:$0xff] %v9223_v37 }
 0x26c   : > { %v9229_v44 = vpop.permute.xlu0 %3643 }
 0x26e   : > { %3675 = vrot.lane.b32.xlu1 %v9223_v37, %s7281_s23  ;;  %v9231_v43 = vpop.xlane.xlu1 %2652  ;;  %v3646_v27 = vpop.permute.xlu2 %3645 }
 0x26f   : > { %v3756_v16 = vsel %vm455_vm1, %v3646_v27, 0.0 }
 0x274   : > { %v3722_v62 = vpop.xlane.xlu0 %3721 }
 0x275   : > { %6885 = vrsqrt.f32 %v3722_v62  ;;  %vm3850_vm10 = vcmp.eq.f32.partialorder %v3722_v62, inf  ;;  %vm3852_vm11 = vcmp.eq.f32.partialorder %v3722_v62, 0.0 }
 0x27b   : > { %v6886_v33 = vpop.eup %6885 }
 0x27c   : > { %v3652_v3 = vpop.permute.xlu0 %3651  ;;  %v3844_v49 = vmul.f32 %v6886_v33, %v3722_v62 }
 0x27e   : > { %v3845_v29 = vmul.f32 %v6886_v33, %v3844_v49  ;;  %v9255_v49 = vpop.xlane.xlu2 %3712 }
 0x27f   : > { %6887 = vrsqrt.f32 %v9255_v49  ;;  %vm3814_vm12 = vcmp.eq.f32.partialorder %v9255_v49, inf  ;;  %vm3816_vm13 = vcmp.eq.f32.partialorder %v9255_v49, 0.0 }
 0x280   : > { %v3846_v14 = vmul.f32 0.5, %v3845_v29  ;;  %v2482_v29 = vmul.f32 %v12216_v23, %v9010_v0 }
 0x284   : > { %v3654_v40 = vpop.permute.xlu0 %3653 }
 0x286   : > { %v3660_v19 = vpop.permute.xlu1 %3659 }
 0x287   : > { %v3777_v45 = vsel %vm455_vm1, %v3660_v19, 0.0  ;;  %v2126_v19 = vadd.f32 %v2094_v15, %v2029_v22  ;;  %v3853_v22 = vand.u32 2147483648, %v3722_v62  ;;  %v3759_v15 = vsel %vm455_vm1, %v9195_v52, 0.0 }
 0x288   : > { %v3765_v52 = vsel %vm455_vm1, %v3652_v3, 0.0 }
 0x289   : > { %v2223_v1 = vadd.f32 %v2191_v11, %v2126_v19 }
 0x28a   : > { %3778 = vadd.xlane.f32.xlu0 %v3777_v45  ;;  %v3847_v45 = vsub.f32 1.5, %v3846_v14  ;;  %v9267_v14 = vpop.permute.xlu2 %3649 }
 0x28b   : > { %v2320_v55 = vadd.f32 %v2288_v60, %v2223_v1 }
 0x28c   : > { %v3848_v46 = vmul.f32 %v6886_v33, %v3847_v45  ;;  %v6888_v33 = vpop.eup %6887 }
 0x28d   : > { %3730 = vadd.xlane.f32.xlu2 %v3729_v9  ;;  %v2417_v7 = vadd.f32 %v2385_v56, %v2320_v55  ;;  %v3808_v19 = vmul.f32 %v6888_v33, %v9255_v49  ;;  %v3768_v56 = vsel %vm455_vm1, %v3654_v40, 0.0  ;;  %v1676_v40 = vld [vmem:[#allocation2 + $0x138] sm:$0xff] }
 0x28e   : > { %v3849_v24 = vmul.f32 %v3848_v46, %v3722_v62 }
 0x28f   : > { %v2514_v27 = vadd.f32 %v2482_v29, %v2417_v7  ;;  %v3809_v1 = vmul.f32 %v6888_v33, %v3808_v19 }
 0x290   : > { %v3851_v21 = vsel %vm3850_vm10, %v3722_v62, %v3849_v24 }
 0x291   : > { %v9273_v11 = vadd.f32 %v8852_v63, %v2514_v27  ;;  %v3810_v60 = vmul.f32 0.5, %v3809_v1 }
 0x293   : > { %12284 = vst [vmem:[#allocation51_spill] sm:$0xff] %v9273_v11  ;;  %v9277_v45 = vmul.f32 %v9273_v11, %v9273_v11  ;;  %v3811_v55 = vsub.f32 1.5, %v3810_v60  ;;  %v1773_v60 = vld [vmem:[#allocation2 + $0x139] sm:$0xff] }
 0x294   : > { %v9258_v9 = vpop.xlane.xlu0 %3733 }
 0x295   : > { %2655 = vadd.xlane.f32.xlu2 %v2654_v34  ;;  %v3854_v34 = vsel %vm3852_vm11, %v3853_v22, %v3851_v21  ;;  %v3812_v29 = vmul.f32 %v6888_v33, %v3811_v55  ;;  %v3817_v33 = vand.u32 2147483648, %v9255_v49 }
 0x296   : > { %v4194_v0 = vmax.f32 %v3854_v34, 1e-12 }
 0x297   : > { %v3813_v19 = vmul.f32 %v3812_v29, %v9255_v49 }
 0x298   : > { %3757 = vadd.xlane.f32.xlu1 %v3756_v16  ;;  %6889 = vrcp.f32 %v4194_v0  ;;  %v4279_v37 = vand.u32 2147483648, %v4194_v0  ;;  %vm4273_vm15 = vweird.f32 %v4194_v0 }
 0x299   : > { %v3815_v48 = vsel %vm3814_vm12, %v9255_v49, %v3813_v19  ;;  %v4277_v19 = vand.u32 2147483647, %v4194_v0  ;;  %v1903_v49 = vmul.f32 %v7611_v28, %v1870_v8 }
 0x29b   : > { %vm4278_vm3 = vcmp.eq.f32.partialorder %v4277_v19, 8.507059e+37 }
 0x29c   : > { %v9269_v2 = vpop.xlane.xlu0 %3736 }
 0x29e   : > { %v6890_v16 = vpop.eup %6889 }
 0x29f   : > { %v4269_v7 = vmul.f32 %v6890_v16, %v4194_v0  ;;  %vm4274_vm14 = vweird.f32 %v6890_v16 }
 0x2a0   : > { %3760 = vadd.xlane.f32.xlu1 %v3759_v15  ;;  %vm4275_vm2 = vmor %vm4273_vm15, %vm4274_vm14 }
 0x2a1   : > { %v4270_v34 = vsub.f32 1.0, %v4269_v7  ;;  %v1806_v7 = vmul.f32 %v7587_v20, %v1773_v60 }
 0x2a4   : > { %v9285_v46 = vpop.xlane.xlu0 %3742 }
 0x2a8   : > { %3766 = vadd.xlane.f32.xlu1 %v3765_v52  ;;  %v4271_v52 = vmul.f32 %v6890_v16, %v4270_v34  ;;  %v3818_v34 = vsel %vm3816_vm13, %v3817_v33, %v3815_v48 }
 0x2a9   : > { %v9300_v11 = vmax.f32 %v3818_v34, 1e-12 }
 0x2ab   : > { %vm4228_vm13 = vweird.f32 %v9300_v11 }
 0x2ad   : > { %3661 = vrot.lane.b32.xlu2 %v9277_v45, %s7281_s23 }
 0x2af   : > { %v9282_v62 = vpop.xlane.xlu2 %3724 }
 0x2b0   : > { %6891 = vrsqrt.f32 %v9282_v62  ;;  %3769 = vadd.xlane.f32.xlu1 %v3768_v56  ;;  %vm3862_vm4 = vcmp.eq.f32.partialorder %v9282_v62, inf  ;;  %vm3864_vm6 = vcmp.eq.f32.partialorder %v9282_v62, 0.0 }
 0x2b6   : > { %v6892_v24 = vpop.eup %6891 }
 0x2b7   : > { %v3856_v3 = vmul.f32 %v6892_v24, %v9282_v62  ;;  %v9289_v22 = vpop.permute.xlu0 %3665  ;;  %v3728_v15 = vpop.xlane.xlu2 %3727 }
 0x2b8   : > { %6893 = vrsqrt.f32 %v3728_v15  ;;  %vm3874_vm5 = vcmp.eq.f32.partialorder %v3728_v15, inf  ;;  %vm3876_vm7 = vcmp.eq.f32.partialorder %v3728_v15, 0.0 }
 0x2b9   : > { %v3857_v21 = vmul.f32 %v6892_v24, %v3856_v3  ;;  %v1709_v3 = vmul.f32 %v12239_v36, %v1676_v40  ;;  %6895 = vrcp.f32 %v9300_v11 }
 0x2bb   : > { %v3858_v27 = vmul.f32 0.5, %v3857_v21 }
 0x2bd   : > { %v3859_v1 = vsub.f32 1.5, %v3858_v27  ;;  %v4272_v27 = vadd.f32 %v6890_v16, %v4271_v52 }
 0x2be   : > { %v6894_v56 = vpop.eup %6893 }
 0x2bf   : > { %v3868_v55 = vmul.f32 %v6894_v56, %v3728_v15  ;;  %v3860_v29 = vmul.f32 %v6892_v24, %v3859_v1  ;;  %v9298_v61 = vpop.permute.xlu0 %3671  ;;  %v4276_v60 = vsel %vm4275_vm2, %v6890_v16, %v4272_v27  ;;  %v1838_v24 = vadd.f32 %v1806_v7, %v1709_v3  ;;  %v2064_v16 = vld [vmem:[#allocation2 + $0x151] sm:$0xff] }
 0x2c0   : > { %v4280_v1 = vor.u32 1.1754944e-38, %v4279_v37  ;;  %v12285_v37 = vld [vmem:[#allocation18_spill] sm:$0xff]  ;;  %v2097_v34 = vmul.f32 %v12236_v47, %v2064_v16 }
 0x2c1   : > { %v3869_v21 = vmul.f32 %v6894_v56, %v3868_v55  ;;  %v3861_v40 = vmul.f32 %v3860_v29, %v9282_v62  ;;  %v1967_v55 = vld [vmem:[#allocation2 + $0x150] sm:$0xff]  ;;  %v1935_v33 = vadd.f32 %v1903_v49, %v1838_v24  ;;  %v3865_v29 = vand.u32 2147483648, %v9282_v62  ;;  %v6896_v49 = vpop.eup %6895 }
 0x2c2   : > { %v4281_v48 = vsel %vm4278_vm3, %v4280_v1, %v4276_v60  ;;  %v2000_v8 = vmul.f32 %v12220_v38, %v1967_v55  ;;  %v3738_v1 = vsel %vm455_vm1, %v8824_v10, 0.0  ;;  %vm4229_vm11 = vweird.f32 %v6896_v49 }
 0x2c3   : > { %v3870_v41 = vmul.f32 0.5, %v3869_v21  ;;  %v3863_v0 = vsel %vm3862_vm4, %v9282_v62, %v3861_v40  ;;  %v2161_v40 = vld [vmem:[#allocation2 + $0x152] sm:$0xff]  ;;  %v4224_v62 = vmul.f32 %v6896_v49, %v9300_v11  ;;  %vm4230_vm14 = vmor %vm4228_vm13, %vm4229_vm11 }
 0x2c4   : > { %v3866_v21 = vsel %vm3864_vm6, %v3865_v29, %v3863_v0  ;;  %v2032_v27 = vadd.f32 %v2000_v8, %v1935_v33  ;;  %v2194_v60 = vmul.f32 %v12238_v50, %v2161_v40  ;;  %v2485_v40 = vmul.f32 %v12216_v23, %v9033_v4 }
 0x2c5   : > { %v3871_v54 = vsub.f32 1.5, %v3870_v41  ;;  %v3877_v41 = vand.u32 2147483648, %v3728_v15  ;;  %v9315_v19 = vmax.f32 %v3866_v21, 1e-12 }
 0x2c7   : > { %v3872_v35 = vmul.f32 %v6894_v56, %v3871_v54  ;;  %v4282_v56 = vmul.f32 %v4281_v48, %v12285_v37  ;;  %v4225_v48 = vsub.f32 1.0, %v4224_v62  ;;  %vm4288_vm3 = vweird.f32 %v9315_v19 }
 0x2c9   : > { %v3873_v52 = vmul.f32 %v3872_v35, %v3728_v15  ;;  %4746 = vrot.lane.b32.xlu1 %v4282_v56, %s7281_s23  ;;  %v4226_v16 = vmul.f32 %v6896_v49, %v4225_v48  ;;  %v2388_v56 = vmul.f32 %v7706_v31, %v9029_v26  ;;  %v4234_v26 = vand.u32 2147483648, %v9300_v11 }
 0x2ca   : > { %v9311_v3 = vpop.permute.xlu0 %3677 }
 0x2cb   : > { %v3875_v54 = vsel %vm3874_vm5, %v3728_v15, %v3873_v52  ;;  %v2129_v15 = vadd.f32 %v2097_v34, %v2032_v27  ;;  %v2291_v52 = vmul.f32 %v7704_v30, %v9025_v59  ;;  %v4235_v4 = vor.u32 1.1754944e-38, %v4234_v26  ;;  %v1776_v26 = vld [vmem:[#allocation2 + $0x159] sm:$0xff] }
 0x2cc   : > { %v3878_v7 = vsel %vm3876_vm7, %v3877_v41, %v3875_v54 }
 0x2cd   : > { %v4196_v35 = vmax.f32 %v3878_v7, 1e-12  ;;  %v2226_v0 = vadd.f32 %v2194_v60, %v2129_v15  ;;  %v4227_v15 = vadd.f32 %v6896_v49, %v4226_v16  ;;  %v4294_v16 = vand.u32 2147483648, %v9315_v19 }
 0x2cf   : > { %6897 = vrcp.f32 %v4196_v35  ;;  %v4309_v41 = vand.u32 2147483648, %v4196_v35  ;;  %v2323_v54 = vadd.f32 %v2291_v52, %v2226_v0  ;;  %v4307_v10 = vand.u32 2147483647, %v4196_v35 }
 0x2d0   : > { %6899 = vrcp.f32 %v9315_v19  ;;  %vm4303_vm9 = vweird.f32 %v4196_v35  ;;  %v4231_v0 = vsel %vm4230_vm14, %v6896_v49, %v4227_v15 }
 0x2d1   : > { %v4310_v34 = vor.u32 1.1754944e-38, %v4309_v41  ;;  %v2420_v59 = vadd.f32 %v2388_v56, %v2323_v54  ;;  %vm4308_vm12 = vcmp.eq.f32.partialorder %v4307_v10, 8.507059e+37  ;;  %v12288_v54 = vld [vmem:[#allocation12_spill] sm:$0xff]  ;;  %v3664_v10 = vpop.permute.xlu1 %3663  ;;  %6901 = vrsqrt.f32 %v9285_v46 }
 0x2d2   : > { %v4708_v24 = vpop.permute.xlu0 %4707 }
 0x2d3   : > { %6651 = vmatpush.xpose.msk.msra.mxu1 %vm455_vm1, %v4708_v24  ;;  %v2517_v52 = vadd.f32 %v2485_v40, %v2420_v59  ;;  %v9350_v59 = vpop.permute.xlu2 %3655 }
 0x2d5   : > { %v6898_v55 = vpop.eup %6897 }
 0x2d6   : > { %3739 = vadd.xlane.f32.xlu2 %v3738_v1  ;;  %v4299_v33 = vmul.f32 %v6898_v55, %v4196_v35  ;;  %v6900_v8 = vpop.eup %6899  ;;  %vm4304_vm8 = vweird.f32 %v6898_v55  ;;  %v12286_v1 = vld [vmem:[#allocation14_spill] sm:$0xff]  ;;  %v4232_v35 = vand.u32 2147483647, %v9300_v11  ;;  %v4292_v11 = vand.u32 2147483647, %v9315_v19 }
 0x2d7   : > { %v4284_v21 = vmul.f32 %v6900_v8, %v9315_v19  ;;  %vm4305_vm10 = vmor %vm4303_vm9, %vm4304_vm8  ;;  %vm4289_vm2 = vweird.f32 %v6900_v8  ;;  %vm3934_vm8 = vcmp.eq.f32.partialorder %v9285_v46, inf }
 0x2d8   : > { %v4300_v29 = vsub.f32 1.0, %v4299_v33  ;;  %vm4233_vm15 = vcmp.eq.f32.partialorder %v4232_v35, 8.507059e+37  ;;  %vm4290_vm4 = vmor %vm4288_vm3, %vm4289_vm2  ;;  %vm4293_vm5 = vcmp.eq.f32.partialorder %v4292_v11, 8.507059e+37 }
 0x2d9   : > { %v4285_v60 = vsub.f32 1.0, %v4284_v21  ;;  %v9353_v19 = vpop.xlane.xlu1 %3745 }
 0x2da   : > { %v4301_v7 = vmul.f32 %v6898_v55, %v4300_v29  ;;  %v9336_v29 = vadd.f32 %v8852_v63, %v2517_v52  ;;  %v4295_v63 = vor.u32 1.1754944e-38, %v4294_v16  ;;  %v12292_v16 = vld [vmem:[#allocation7_spill] sm:$0xff] }
 0x2db   : > { %v4286_v33 = vmul.f32 %v6900_v8, %v4285_v60  ;;  %v9355_v40 = vpop.permute.xlu2 %3657  ;;  %v6902_v60 = vpop.eup %6901  ;;  %vm2694_vm13 = vcmp.eq.f32.partialorder %v12292_v16, inf  ;;  %vm2696_vm2 = vcmp.eq.f32.partialorder %v12292_v16, 0.0 }
 0x2dc   : > { %v4302_v27 = vadd.f32 %v6898_v55, %v4301_v7  ;;  %12287 = vst [vmem:[#allocation52_spill] sm:$0xff] %v9336_v29  ;;  %v9345_v49 = vmul.f32 %v9336_v29, %v9336_v29  ;;  %v3928_v35 = vmul.f32 %v6902_v60, %v9285_v46 }
 0x2dd   : > { %v4287_v41 = vadd.f32 %v6900_v8, %v4286_v33 }
 0x2de   : > { %v4306_v62 = vsel %vm4305_vm10, %v6898_v55, %v4302_v27  ;;  %v4236_v55 = vsel %vm4233_vm15, %v4235_v4, %v4231_v0  ;;  %v12289_v27 = vld [vmem:[#allocation21_spill] sm:$0xff]  ;;  %v1809_v4 = vmul.f32 %v7587_v20, %v1776_v26  ;;  %vm3936_vm10 = vcmp.eq.f32.partialorder %v9285_v46, 0.0 }
 0x2df   : > { %v4311_v24 = vsel %vm4308_vm12, %v4310_v34, %v4306_v62  ;;  %v4237_v56 = vmul.f32 %v4236_v55, %v12288_v54  ;;  %v4291_v7 = vsel %vm4290_vm4, %v6900_v8, %v4287_v41  ;;  %v1873_v41 = vld [vmem:[#allocation2 + $0x15a] sm:$0xff] }
 0x2e0   : > { %v4312_v48 = vmul.f32 %v4311_v24, %v12286_v1  ;;  %v4296_v21 = vsel %vm4293_vm5, %v4295_v63, %v4291_v7  ;;  %v1679_v24 = vld [vmem:[#allocation2 + $0x158] sm:$0xff] }
 0x2e1   : > { %v4297_v34 = vmul.f32 %v4296_v21, %v12289_v27  ;;  %v9357_v62 = vpop.permute.xlu1 %3669  ;;  %v1712_v33 = vmul.f32 %v12239_v36, %v1679_v24  ;;  %v1906_v21 = vmul.f32 %v7611_v28, %v1873_v41  ;;  %v3747_v24 = vsel %vm455_vm1, %v9203_v6, 0.0  ;;  %v12293_v41 = vld [vmem:[#allocation17_spill] sm:$0xff] }
 0x2e2   : > { %4785 = vrot.lane.b32.xlu1 %v4312_v48, %s7281_s23  ;;  %vm2706_vm5 = vcmp.eq.f32.partialorder %v12293_v41, inf }
 0x2e3   : > { %v1841_v63 = vadd.f32 %v1809_v4, %v1712_v33 }
 0x2e5   : > { %v1938_v26 = vadd.f32 %v1906_v21, %v1841_v63 }
 0x2e9   : > { %v9363_v15 = vpop.permute.xlu1 %3675 }
 0x2ea   : > { %4705 = vrot.lane.b32.xlu1 %v4237_v56, %s7281_s23  ;;  %12290 = vst [vmem:[#allocation53_spill] sm:$0xff] %v9363_v15  ;;  %v3929_v56 = vmul.f32 %v6902_v60, %v3928_v35 }
 0x2ec   : > { %v3930_v29 = vmul.f32 0.5, %v3929_v56 }
 0x2ee   : > { %3667 = vrot.lane.b32.xlu2 %v9345_v49, %s7281_s23  ;;  %v3931_v4 = vsub.f32 1.5, %v3930_v29 }
 0x2f0   : > { %v3932_v63 = vmul.f32 %v6902_v60, %v3931_v4 }
 0x2f2   : > { %4783 = vrot.lane.b32.xlu1 %v4297_v34, %s7281_s23  ;;  %v1970_v34 = vld [vmem:[#allocation2 + $0x170] sm:$0xff] }
 0x2f3   : > { %v2003_v35 = vmul.f32 %v12220_v38, %v1970_v34  ;;  %v2164_v38 = vld [vmem:[#allocation2 + $0x172] sm:$0xff]  ;;  %v3783_v34 = vsel %vm455_vm1, %v3664_v10, 0.0 }
 0x300   : > { %v9360_v8 = vpop.xlane.xlu2 %3730 }
 0x301   : > { %6903 = vrsqrt.f32 %v9360_v8  ;;  %vm3886_vm6 = vcmp.eq.f32.partialorder %v9360_v8, inf  ;;  %vm3888_vm7 = vcmp.eq.f32.partialorder %v9360_v8, 0.0 }
 0x302   : > { %6905 = vrsqrt.f32 %v12292_v16 }
 0x307   : > { %v6904_v48 = vpop.eup %6903 }
 0x308   : > { %v3880_v0 = vmul.f32 %v6904_v48, %v9360_v8  ;;  %v9367_v52 = vpop.xlane.xlu2 %2655  ;;  %v9376_v36 = vpop.eup %6905 }
 0x309   : > { %12291 = vst [vmem:[#allocation54_spill] sm:$0xff] %v9367_v52 }
 0x30a   : > { %v3881_v55 = vmul.f32 %v6904_v48, %v3880_v0  ;;  %v2067_v0 = vld [vmem:[#allocation2 + $0x171] sm:$0xff] }
 0x30b   : > { %v9372_v11 = vpop.xlane.xlu1 %3757 }
 0x30c   : > { %v3882_v7 = vmul.f32 0.5, %v3881_v55  ;;  %6907 = vrsqrt.f32 %v9372_v11  ;;  %v2688_v55 = vmul.f32 %v9376_v36, %v12292_v16  ;;  %vm3994_vm9 = vcmp.eq.f32.partialorder %v9372_v11, inf }
 0x30d   : > { %6909 = vrsqrt.f32 %v12293_v41  ;;  %vm3996_vm11 = vcmp.eq.f32.partialorder %v9372_v11, 0.0 }
 0x30e   : > { %v3883_v15 = vsub.f32 1.5, %v3882_v7  ;;  %v2100_v7 = vmul.f32 %v12236_v47, %v2067_v0  ;;  %6911 = vrsqrt.f32 %v9007_v12  ;;  %v2689_v29 = vmul.f32 %v9376_v36, %v2688_v55  ;;  %v2261_v0 = vld [vmem:[#allocation2 + $0x188] sm:$0xff] }
 0x30f   : > { %v2648_v55 = vsel %vm455_vm1, %v8793_v51, 0.0  ;;  %v3937_v51 = vand.u32 2147483648, %v9285_v46 }
 0x310   : > { %v3662_v52 = vpop.permute.xlu2 %3661  ;;  %v3884_v28 = vmul.f32 %v6904_v48, %v3883_v15  ;;  %v2645_v48 = vsel %vm455_vm1, %v8758_v17, 0.0  ;;  %v2690_v4 = vmul.f32 0.5, %v2689_v29 }
 0x311   : > { %v3780_v20 = vsel %vm455_vm1, %v3662_v52, 0.0  ;;  %v2035_v52 = vadd.f32 %v2003_v35, %v1938_v26  ;;  %v3933_v35 = vmul.f32 %v3932_v63, %v9285_v46  ;;  %v2358_v63 = vld [vmem:[#allocation2 + $0x189] sm:$0xff] }
 0x312   : > { %3781 = vadd.xlane.f32.xlu0 %v3780_v20  ;;  %v6908_v33 = vpop.eup %6907  ;;  %v3885_v21 = vmul.f32 %v3884_v28, %v9360_v8  ;;  %v3750_v20 = vsel %vm455_vm1, %v9233_v13, 0.0  ;;  %v3889_v13 = vand.u32 2147483648, %v9360_v8 }
 0x313   : > { %v3988_v56 = vmul.f32 %v6908_v33, %v9372_v11  ;;  %v2132_v47 = vadd.f32 %v2100_v7, %v2035_v52  ;;  %v9396_v26 = vpop.eup %6909  ;;  %v2294_v7 = vmul.f32 %v7704_v30, %v2261_v0  ;;  %v9422_v30 = vpop.xlane.xlu1 %3760 }
 0x314   : > { %v3887_v17 = vsel %vm3886_vm6, %v9360_v8, %v3885_v21  ;;  %v9401_v10 = vpop.eup %6911  ;;  %v12294_v21 = vld [vmem:[#allocation37_spill] sm:$0xff] }
 0x315   : > { %v3989_v6 = vmul.f32 %v6908_v33, %v3988_v56  ;;  %6913 = vrsqrt.f32 %v12294_v21 }
 0x317   : > { %3748 = vadd.xlane.f32.xlu2 %v3747_v24  ;;  %v3990_v15 = vmul.f32 0.5, %v3989_v6  ;;  %v2197_v24 = vmul.f32 %v12238_v50, %v2164_v38  ;;  %v2700_v50 = vmul.f32 %v9396_v26, %v12293_v41  ;;  %v3890_v6 = vsel %vm3888_vm7, %v3889_v13, %v3887_v17 }
 0x318   : > { %v3935_v38 = vsel %vm3934_vm8, %v9285_v46, %v3933_v35  ;;  %v9416_v8 = vmax.f32 %v3890_v6, 1e-12  ;;  %v2691_v17 = vsub.f32 1.5, %v2690_v4  ;;  %vm2742_vm7 = vcmp.eq.f32.partialorder %v9007_v12, inf }
 0x319   : > { %v3991_v60 = vsub.f32 1.5, %v3990_v15  ;;  %v2229_v56 = vadd.f32 %v2197_v24, %v2132_v47  ;;  %v3997_v15 = vand.u32 2147483648, %v9372_v11  ;;  %v2391_v47 = vmul.f32 %v7706_v31, %v2358_v63 }
 0x31a   : > { %3784 = vadd.xlane.f32.xlu0 %v3783_v34  ;;  %6915 = vrcp.f32 %v9416_v8  ;;  %v3938_v34 = vsel %vm3936_vm10, %v3937_v51, %v3935_v38  ;;  %v2701_v46 = vmul.f32 %v9396_v26, %v2700_v50  ;;  %v2692_v31 = vmul.f32 %v9376_v36, %v2691_v17  ;;  %v12295_v50 = vld [vmem:[#allocation30_spill] sm:$0xff] }
 0x31b   : > { %v3992_v28 = vmul.f32 %v6908_v33, %v3991_v60  ;;  %v2736_v33 = vmul.f32 %v9401_v10, %v9007_v12  ;;  %v2455_v60 = vld [vmem:[#allocation2 + $0x18a] sm:$0xff]  ;;  %v9434_v0 = vmax.f32 %v3938_v34, 1e-12  ;;  %v4324_v17 = vand.u32 2147483648, %v9416_v8 }
 0x31c   : > { %2646 = vadd.xlane.f32.xlu1 %v2645_v48  ;;  %v3786_v48 = vsel %vm455_vm1, %v9289_v22, 0.0  ;;  %v9436_v22 = vpop.eup %6913  ;;  %v2488_v13 = vmul.f32 %v12216_v23, %v2455_v60  ;;  %v2693_v51 = vmul.f32 %v2692_v31, %v12292_v16  ;;  %vm4318_vm14 = vweird.f32 %v9416_v8 }
 0x31d   : > { %v3993_v52 = vmul.f32 %v3992_v28, %v9372_v11  ;;  %v2748_v6 = vmul.f32 %v9436_v22, %v12294_v21  ;;  %vm2744_vm10 = vcmp.eq.f32.partialorder %v9007_v12, 0.0 }
 0x31f   : > { %3751 = vadd.xlane.f32.xlu2 %v3750_v20  ;;  %v3995_v29 = vsel %vm3994_vm9, %v9372_v11, %v3993_v52  ;;  %v2326_v20 = vadd.f32 %v2294_v7, %v2229_v56  ;;  %v2737_v11 = vmul.f32 %v9401_v10, %v2736_v33  ;;  %v2702_v52 = vmul.f32 0.5, %v2701_v46  ;;  %v9447_v33 = vpop.xlane.xlu1 %3766 }
 0x320   : > { %v3998_v24 = vsel %vm3996_vm11, %v3997_v15, %v3995_v29  ;;  %v2642_v7 = vsel %vm455_vm1, %v12295_v50, 0.0  ;;  %v2749_v34 = vmul.f32 %v9436_v22, %v2748_v6  ;;  %v2697_v6 = vand.u32 2147483648, %v12292_v16 }
 0x321   : > { %v9430_v35 = vmax.f32 %v3998_v24, 1e-12  ;;  %v2423_v28 = vadd.f32 %v2391_v47, %v2326_v20  ;;  %v2738_v4 = vmul.f32 0.5, %v2737_v11  ;;  %v2703_v29 = vsub.f32 1.5, %v2702_v52  ;;  %v7271_v20 = vld [vmem:[%s12042_s7] ss:$0 sm:$0xff] }
 0x322   : > { %3787 = vadd.xlane.f32.xlu0 %v3786_v48  ;;  %v2750_v52 = vmul.f32 0.5, %v2749_v34  ;;  %vm2708_vm9 = vcmp.eq.f32.partialorder %v12293_v41, 0.0 }
 0x323   : > { %6917 = vrcp.f32 %v9430_v35  ;;  %v2520_v23 = vadd.f32 %v2488_v13, %v2423_v28  ;;  %v2739_v15 = vsub.f32 1.5, %v2738_v4  ;;  %v4322_v28 = vand.u32 2147483647, %v9416_v8 }
 0x324   : > { %2649 = vadd.xlane.f32.xlu1 %v2648_v55  ;;  %v6916_v55 = vpop.eup %6915  ;;  %6919 = vrcp.f32 %v9434_v0  ;;  %v2695_v13 = vsel %vm2694_vm13, %v12292_v16, %v2693_v51  ;;  %v2704_v31 = vmul.f32 %v9396_v26, %v2703_v29  ;;  %v12297_v16 = vld [vmem:[#allocation9_spill] sm:$0xff]  ;;  %vm4453_vm6 = vweird.f32 %v9430_v35 }
 0x325   : > { %v4314_v56 = vmul.f32 %v6916_v55, %v9416_v8  ;;  %v9458_v47 = vadd.f32 %v7271_v20, %v2520_v23  ;;  %vm4319_vm12 = vweird.f32 %v6916_v55  ;;  %v4325_v8 = vor.u32 1.1754944e-38, %v4324_v17 }
 0x326   : > { %vm4320_vm15 = vmor %vm4318_vm14, %vm4319_vm12  ;;  %vm4323_vm3 = vcmp.eq.f32.partialorder %v4322_v28, 8.507059e+37  ;;  %v2705_v26 = vmul.f32 %v2704_v31, %v12293_v41  ;;  %v4457_v34 = vand.u32 2147483647, %v9430_v35  ;;  %v2709_v17 = vand.u32 2147483648, %v12293_v41 }
 0x327   : > { %v4315_v38 = vsub.f32 1.0, %v4314_v56  ;;  %12296 = vst [vmem:[#allocation7_spill] sm:$0xff] %v9458_v47  ;;  %v9466_v11 = vmul.f32 %v9458_v47, %v9458_v47  ;;  %v2740_v56 = vmul.f32 %v9401_v10, %v2739_v15  ;;  %v9480_v23 = vpop.xlane.xlu1 %3769  ;;  %v4459_v15 = vand.u32 2147483648, %v9430_v35 }
 0x328   : > { %vm4458_vm11 = vcmp.eq.f32.partialorder %v4457_v34, 8.507059e+37  ;;  %vm4378_vm13 = vweird.f32 %v9434_v0  ;;  %vm2754_vm14 = vcmp.eq.f32.partialorder %v12294_v21, inf }
 0x329   : > { %v9449_v63 = vpop.eup %6917  ;;  %v4316_v36 = vmul.f32 %v6916_v55, %v4315_v38  ;;  %v2741_v10 = vmul.f32 %v2740_v56, %v9007_v12  ;;  %v2745_v56 = vand.u32 2147483648, %v9007_v12 }
 0x32a   : > { %2643 = vadd.xlane.f32.xlu0 %v2642_v7  ;;  %v4449_v48 = vmul.f32 %v9449_v63, %v9430_v35  ;;  %v9460_v60 = vpop.eup %6919  ;;  %vm4454_vm4 = vweird.f32 %v9449_v63 }
 0x32b   : > { %v4317_v24 = vadd.f32 %v6916_v55, %v4316_v36  ;;  %v4374_v7 = vmul.f32 %v9460_v60, %v9434_v0  ;;  %v2698_v36 = vsel %vm2696_vm2, %v2697_v6, %v2695_v13  ;;  %vm9496_vm8 = vmor %vm4453_vm6, %vm4454_vm4  ;;  %v2743_v28 = vsel %vm2742_vm7, %v9007_v12, %v2741_v10 }
 0x32c   : > { %v4450_v46 = vsub.f32 1.0, %v4449_v48  ;;  %v9491_v20 = vmax.f32 %v2698_v36, 1e-12  ;;  %vm4379_vm12 = vweird.f32 %v9460_v60  ;;  %v4382_v10 = vand.u32 2147483647, %v9434_v0 }
 0x32d   : > { %v4321_v4 = vsel %vm4320_vm15, %v6916_v55, %v4317_v24  ;;  %v2751_v55 = vsub.f32 1.5, %v2750_v52  ;;  %v4375_v29 = vsub.f32 1.0, %v4374_v7  ;;  %v2707_v24 = vsel %vm2706_vm5, %v12293_v41, %v2705_v26  ;;  %vm4380_vm15 = vmor %vm4378_vm13, %vm4379_vm12 }
 0x32e   : > { %v4451_v50 = vmul.f32 %v9449_v63, %v4450_v46  ;;  %v4326_v38 = vsel %vm4323_vm3, %v4325_v8, %v4321_v4  ;;  %v4460_v52 = vor.u32 1.1754944e-38, %v4459_v15  ;;  %6921 = vrcp.f32 %v9491_v20  ;;  %v12300_v8 = vld [vmem:[#allocation11_spill] sm:$0xff]  ;;  %v12301_v46 = vld [vmem:[#allocation22_spill] sm:$0xff] }
 0x32f   : > { %v4327_v48 = vmul.f32 %v4326_v38, %v12297_v16  ;;  %v2752_v13 = vmul.f32 %v9436_v22, %v2751_v55  ;;  %v4376_v31 = vmul.f32 %v9460_v60, %v4375_v29  ;;  %v2710_v22 = vsel %vm2708_vm9, %v2709_v17, %v2707_v24 }
 0x330   : > { %v4452_v51 = vadd.f32 %v9449_v63, %v4451_v50  ;;  %v2746_v7 = vsel %vm2744_vm10, %v2745_v56, %v2743_v28  ;;  %6923 = vrsqrt.f32 %v9227_v25  ;;  %v4384_v41 = vand.u32 2147483648, %v9434_v0 }
 0x331   : > { %v4377_v6 = vadd.f32 %v9460_v60, %v4376_v31  ;;  %v9517_v12 = vmax.f32 %v2710_v22, 1e-12  ;;  %v9522_v38 = vmax.f32 %v2746_v7, 1e-12  ;;  %v2757_v29 = vand.u32 2147483648, %v12294_v21 }
 0x332   : > { %v4456_v35 = vsel %vm9496_vm8, %v9449_v63, %v4452_v51  ;;  %v2753_v63 = vmul.f32 %v2752_v13, %v12294_v21  ;;  %v4385_v15 = vor.u32 1.1754944e-38, %v4384_v41  ;;  %vm2756_vm2 = vcmp.eq.f32.partialorder %v12294_v21, 0.0 }
 0x333   : > { %v4461_v50 = vsel %vm4458_vm11, %v4460_v52, %v4456_v35  ;;  %v4381_v51 = vsel %vm4380_vm15, %v9460_v60, %v4377_v6  ;;  %6925 = vrcp.f32 %v9517_v12  ;;  %vm4383_vm3 = vcmp.eq.f32.partialorder %v4382_v10, 8.507059e+37 }
 0x334   : > { %v4462_v26 = vmul.f32 %v4461_v50, %v12300_v8  ;;  %v6922_v36 = vpop.eup %6921  ;;  %v2755_v55 = vsel %vm2754_vm14, %v12294_v21, %v2753_v63  ;;  %6927 = vrcp.f32 %v9522_v38  ;;  %vm3108_vm5 = vweird.f32 %v9491_v20 }
 0x335   : > { %v3104_v34 = vmul.f32 %v6922_v36, %v9491_v20  ;;  %v2758_v24 = vsel %vm2756_vm2, %v2757_v29, %v2755_v55  ;;  %vm3109_vm4 = vweird.f32 %v6922_v36  ;;  %v3112_v10 = vand.u32 2147483647, %v9491_v20 }
 0x336   : > { %v6924_v0 = vpop.eup %6923  ;;  %v9535_v60 = vmax.f32 %v2758_v24, 1e-12  ;;  %vm3110_vm6 = vmor %vm3108_vm5, %vm3109_vm4  ;;  %vm3123_vm10 = vweird.f32 %v9517_v12  ;;  %vm3168_vm12 = vweird.f32 %v9522_v38  ;;  %vm3838_vm15 = vcmp.eq.f32.partialorder %v9227_v25, inf }
 0x337   : > { %3673 = vrot.lane.b32.xlu2 %v9466_v11, %s7281_s23  ;;  %v3832_v17 = vmul.f32 %v6924_v0, %v9227_v25  ;;  %v3105_v35 = vsub.f32 1.0, %v3104_v34  ;;  %vm3113_vm7 = vcmp.eq.f32.partialorder %v3112_v10, 8.507059e+37  ;;  %vm3840_vm4 = vcmp.eq.f32.partialorder %v9227_v25, 0.0 }
 0x338   : > { %6929 = vrcp.f32 %v9535_v60  ;;  %vm3183_vm5 = vweird.f32 %v9535_v60 }
 0x339   : > { %v6926_v13 = vpop.eup %6925  ;;  %v3833_v21 = vmul.f32 %v6924_v0, %v3832_v17  ;;  %v3106_v52 = vmul.f32 %v6922_v36, %v3105_v35 }
 0x33a   : > { %v6928_v31 = vpop.eup %6927  ;;  %v3119_v56 = vmul.f32 %v6926_v13, %v9517_v12  ;;  %vm3124_vm8 = vweird.f32 %v6926_v13 }
 0x33b   : > { %v4747_v4 = vpop.permute.xlu1 %4746  ;;  %v3834_v22 = vmul.f32 0.5, %v3833_v21  ;;  %v3107_v63 = vadd.f32 %v6922_v36, %v3106_v52  ;;  %v3129_v21 = vand.u32 2147483648, %v9517_v12  ;;  %vm3169_vm9 = vweird.f32 %v6928_v31  ;;  %vm3125_vm11 = vmor %vm3123_vm10, %vm3124_vm8 }
 0x33c   : > { %6655 = vmatpush.xpose.msk.msra.mxu2 %vm455_vm1, %v4747_v4  ;;  %v3164_v4 = vmul.f32 %v6928_v31, %v9522_v38  ;;  %v3120_v50 = vsub.f32 1.0, %v3119_v56  ;;  %v3127_v52 = vand.u32 2147483647, %v9517_v12  ;;  %vm3170_vm13 = vmor %vm3168_vm12, %vm3169_vm9 }
 0x33d   : > { %4822 = vrot.lane.b32.xlu1 %v4327_v48, %s7281_s23  ;;  %v4386_v48 = vsel %vm4383_vm3, %v4385_v15, %v4381_v51  ;;  %v3835_v55 = vsub.f32 1.5, %v3834_v22  ;;  %v3111_v29 = vsel %vm3110_vm6, %v6922_v36, %v3107_v63  ;;  %v3753_v36 = vsel %vm455_vm1, %v9229_v44, 0.0 }
 0x33e   : > { %v4387_v28 = vmul.f32 %v4386_v48, %v12301_v46  ;;  %v3165_v6 = vsub.f32 1.0, %v3164_v4  ;;  %v9541_v41 = vpop.eup %6929  ;;  %v3121_v51 = vmul.f32 %v6926_v13, %v3120_v50  ;;  %v3172_v22 = vand.u32 2147483647, %v9522_v38 }
 0x33f   : > { %v3179_v48 = vmul.f32 %v9541_v41, %v9535_v60  ;;  %v3836_v24 = vmul.f32 %v6924_v0, %v3835_v55  ;;  %v3174_v0 = vand.u32 2147483648, %v9522_v38  ;;  %v3130_v44 = vor.u32 1.1754944e-38, %v3129_v21 }
 0x340   : > { %v3166_v15 = vmul.f32 %v6928_v31, %v3165_v6  ;;  %vm3128_vm14 = vcmp.eq.f32.partialorder %v3127_v52, 8.507059e+37  ;;  %vm3173_vm2 = vcmp.eq.f32.partialorder %v3172_v22, 8.507059e+37  ;;  %v3841_v38 = vand.u32 2147483648, %v9227_v25 }
 0x341   : > { %v3837_v50 = vmul.f32 %v3836_v24, %v9227_v25  ;;  %v3175_v6 = vor.u32 1.1754944e-38, %v3174_v0  ;;  %vm3184_vm3 = vweird.f32 %v9541_v41  ;;  %v3187_v24 = vand.u32 2147483647, %v9535_v60 }
 0x342   : > { %v3167_v56 = vadd.f32 %v6928_v31, %v3166_v15  ;;  %vm3185_vm6 = vmor %vm3183_vm5, %vm3184_vm3  ;;  %vm4008_vm3 = vcmp.eq.f32.partialorder %v9422_v30, 0.0 }
 0x343   : > { %v3839_v10 = vsel %vm3838_vm15, %v9227_v25, %v3837_v50  ;;  %vm4006_vm15 = vcmp.eq.f32.partialorder %v9422_v30, inf }
 0x344   : > { %v3171_v63 = vsel %vm3170_vm13, %v6928_v31, %v3167_v56  ;;  %v3762_v31 = vsel %vm455_vm1, %v9267_v14, 0.0  ;;  %v3771_v56 = vsel %vm455_vm1, %v9350_v59, 0.0  ;;  %v12302_v59 = vld [vmem:[#allocation36_spill] sm:$0xff] }
 0x345   : > { %4980 = vrot.lane.b32.xlu1 %v4462_v26, %s7281_s23  ;;  %v3114_v26 = vand.u32 2147483648, %v9491_v20  ;;  %v3180_v20 = vsub.f32 1.0, %v3179_v48  ;;  %v3176_v55 = vsel %vm3173_vm2, %v3175_v6, %v3171_v63  ;;  %v3189_v48 = vand.u32 2147483648, %v9535_v60 }
 0x346   : > { %v2663_v22 = vsel %vm455_vm1, %v12302_v59, 0.0  ;;  %vm3900_vm2 = vcmp.eq.f32.partialorder %v9258_v9, 0.0 }
 0x347   : > { %v3115_v34 = vor.u32 1.1754944e-38, %v3114_v26  ;;  %v3181_v12 = vmul.f32 %v9541_v41, %v3180_v20  ;;  %v3190_v14 = vor.u32 1.1754944e-38, %v3189_v48 }
 0x349   : > { %v3116_v17 = vsel %vm3113_vm7, %v3115_v34, %v3111_v29  ;;  %v3182_v29 = vadd.f32 %v9541_v41, %v3181_v12  ;;  %v3177_v34 = vmul.f32 %v3176_v55, %v12289_v27  ;;  %vm3188_vm7 = vcmp.eq.f32.partialorder %v3187_v24, 8.507059e+37 }
 0x34a   : > { %v3117_v4 = vmul.f32 %v3116_v17, %v12288_v54  ;;  %v3842_v17 = vsel %vm3840_vm4, %v3841_v38, %v3839_v10 }
 0x34b   : > { %v3186_v25 = vsel %vm3185_vm6, %v9541_v41, %v3182_v29 }
 0x34d   : > { %4900 = vrot.lane.b32.xlu1 %v4387_v28, %s7281_s23  ;;  %v3122_v28 = vadd.f32 %v6926_v13, %v3121_v51  ;;  %v9565_v51 = vpop.xlane.xlu2 %3739 }
 0x34e   : > { %6931 = vrsqrt.f32 %v9565_v51  ;;  %vm3924_vm13 = vcmp.eq.f32.partialorder %v9565_v51, 0.0 }
 0x354   : > { %v4786_v7 = vpop.permute.xlu1 %4785  ;;  %v6932_v21 = vpop.eup %6931 }
 0x355   : > { %6659 = vmatpush.xpose.msk.msra.mxu3 %vm455_vm1, %v4786_v7  ;;  %v3126_v7 = vsel %vm3125_vm11, %v6926_v13, %v3122_v28  ;;  %v4193_v28 = vmax.f32 %v3842_v17, 1e-12  ;;  %v3916_v20 = vmul.f32 %v6932_v21, %v9565_v51  ;;  %vm3922_vm11 = vcmp.eq.f32.partialorder %v9565_v51, inf }
 0x356   : > { %v3131_v26 = vsel %vm3128_vm14, %v3130_v44, %v3126_v7  ;;  %vm3898_vm14 = vcmp.eq.f32.partialorder %v9258_v9, inf }
 0x357   : > { %v3132_v15 = vmul.f32 %v3131_v26, %v12279_v39  ;;  %6933 = vrcp.f32 %v4193_v28  ;;  %v3917_v52 = vmul.f32 %v6932_v21, %v3916_v20  ;;  %v4264_v48 = vand.u32 2147483648, %v4193_v28 }
 0x358   : > { %6935 = vrsqrt.f32 %v9258_v9  ;;  %vm4258_vm9 = vweird.f32 %v4193_v28  ;;  %v4262_v17 = vand.u32 2147483647, %v4193_v28  ;;  %v3925_v20 = vand.u32 2147483648, %v9565_v51 }
 0x359   : > { %6937 = vrsqrt.f32 %v9422_v30  ;;  %v3918_v63 = vmul.f32 0.5, %v3917_v52 }
 0x35a   : > { %vm4263_vm12 = vcmp.eq.f32.partialorder %v4262_v17, 8.507059e+37 }
 0x35b   : > { %v3919_v10 = vsub.f32 1.5, %v3918_v63 }
 0x35c   : > { %v4706_v35 = vpop.permute.xlu1 %4705 }
 0x35d   : > { %6652 = vmatpush.xpose.msk.msra.mxu1 %vm455_vm1, %v4706_v35  ;;  %v3191_v35 = vsel %vm3188_vm7, %v3190_v14, %v3186_v25  ;;  %v6934_v41 = vpop.eup %6933  ;;  %v3920_v29 = vmul.f32 %v6932_v21, %v3919_v10 }
 0x35e   : > { %v3192_v60 = vmul.f32 %v3191_v35, %v12286_v1  ;;  %v4254_v50 = vmul.f32 %v6934_v41, %v4193_v28  ;;  %vm4259_vm8 = vweird.f32 %v6934_v41  ;;  %v4265_v35 = vor.u32 1.1754944e-38, %v4264_v48 }
 0x35f   : > { %v3921_v24 = vmul.f32 %v3920_v29, %v9565_v51  ;;  %vm4260_vm10 = vmor %vm4258_vm9, %vm4259_vm8 }
 0x360   : > { %3754 = vadd.xlane.f32.xlu2 %v3753_v36  ;;  %6653 = vmatmul.msk.f32.vlgmr.msra.gmra.mxu1 %vm455_vm1, %v3117_v4  ;;  %v6936_v36 = vpop.eup %6935  ;;  %v3774_v4 = vsel %vm455_vm1, %v9355_v40, 0.0  ;;  %v4255_v12 = vsub.f32 1.0, %v4254_v50  ;;  %v9595_v40 = vpop.permute.xlu2 %3667 }
 0x361   : > { %v6938_v0 = vpop.eup %6937  ;;  %v3892_v7 = vmul.f32 %v6936_v36, %v9258_v9  ;;  %v3923_v21 = vsel %vm3922_vm11, %v9565_v51, %v3921_v24  ;;  %v3901_v51 = vand.u32 2147483648, %v9258_v9 }
 0x362   : > { %v4000_v44 = vmul.f32 %v6938_v0, %v9422_v30  ;;  %v4256_v55 = vmul.f32 %v6934_v41, %v4255_v12  ;;  %v3926_v28 = vsel %vm3924_vm13, %v3925_v20, %v3923_v21 }
 0x363   : > { %v3893_v6 = vmul.f32 %v6936_v36, %v3892_v7 }
 0x364   : > { %v4784_v13 = vpop.permute.xlu1 %4783  ;;  %v4001_v26 = vmul.f32 %v6938_v0, %v4000_v44  ;;  %v4009_v44 = vand.u32 2147483648, %v9422_v30 }
 0x365   : > { %6660 = vmatpush.xpose.msk.msra.mxu3 %vm455_vm1, %v4784_v13  ;;  %v3894_v38 = vmul.f32 0.5, %v3893_v6 }
 0x366   : > { %v4002_v13 = vmul.f32 0.5, %v4001_v26 }
 0x368   : > { %3763 = vadd.xlane.f32.xlu2 %v3762_v31  ;;  %6654 = vmatmul.msk.f32.gmra.mxu1 %vm455_vm1, %v3132_v15  ;;  %v4257_v31 = vadd.f32 %v6934_v41, %v4256_v55  ;;  %v3895_v15 = vsub.f32 1.5, %v3894_v38 }
 0x369   : > { %6661 = vmatmul.msk.f32.vlgmr.msra.gmra.mxu3 %vm455_vm1, %v3177_v34  ;;  %v4003_v34 = vsub.f32 1.5, %v4002_v13 }
 0x36a   : > { %v4261_v25 = vsel %vm4260_vm10, %v6934_v41, %v4257_v31  ;;  %v3896_v14 = vmul.f32 %v6936_v36, %v3895_v15  ;;  %v12303_v36 = vld [vmem:[#allocation15_spill] sm:$0xff] }
 0x36b   : > { %v4266_v52 = vsel %vm4263_vm12, %v4265_v35, %v4261_v25  ;;  %v12304_v25 = vld [vmem:[#allocation33_spill] sm:$0xff] }
 0x36c   : > { %v4267_v59 = vmul.f32 %v4266_v52, %v12303_v36 }
 0x370   : > { %3772 = vadd.xlane.f32.xlu2 %v3771_v56  ;;  %v4004_v56 = vmul.f32 %v6938_v0, %v4003_v34  ;;  %v9606_v0 = vmax.f32 %v3926_v28, 1e-12 }
 0x371   : > { %6662 = vmatmul.msk.f32.gmra.mxu3 %vm455_vm1, %v3192_v60 }
 0x372   : > { %v4005_v41 = vmul.f32 %v4004_v56, %v9422_v30  ;;  %vm4363_vm7 = vweird.f32 %v9606_v0 }
 0x374   : > { %v4007_v7 = vsel %vm4006_vm15, %v9422_v30, %v4005_v41 }
 0x375   : > { %v4010_v10 = vsel %vm4008_vm3, %v4009_v44, %v4007_v7 }
 0x376   : > { %v9622_v29 = vmax.f32 %v4010_v10, 1e-12 }
 0x377   : > { %2664 = vadd.xlane.f32.xlu1 %v2663_v22 }
 0x378   : > { %3775 = vadd.xlane.f32.xlu2 %v3774_v4  ;;  %v3897_v4 = vmul.f32 %v3896_v14, %v9258_v9 }
 0x37a   : > { %v3899_v22 = vsel %vm3898_vm14, %v9258_v9, %v3897_v4 }
 0x37b   : > { %v3902_v6 = vsel %vm3900_vm2, %v3901_v51, %v3899_v22 }
 0x37c   : > { %v9620_v38 = vmax.f32 %v3902_v6, 1e-12 }
 0x37e   : > { %vm4333_vm11 = vweird.f32 %v9620_v38 }
 0x38a   : > { %v3749_v60 = vpop.xlane.xlu2 %3748 }
 0x38b   : > { %6939 = vrsqrt.f32 %v3749_v60  ;;  %vm3958_vm4 = vcmp.eq.f32.partialorder %v3749_v60, inf  ;;  %v3961_v17 = vand.u32 2147483648, %v3749_v60  ;;  %vm3960_vm5 = vcmp.eq.f32.partialorder %v3749_v60, 0.0 }
 0x38c   : > { %6941 = vrsqrt.f32 %v9269_v2 }
 0x38d   : > { %6943 = vrcp.f32 %v9606_v0 }
 0x38e   : > { %6945 = vrsqrt.f32 %v9353_v19 }
 0x38f   : > { %6947 = vrcp.f32 %v9620_v38 }
 0x390   : > { %4744 = vrot.lane.b32.xlu2 %v4267_v59, %s7281_s23  ;;  %6949 = vrcp.f32 %v9622_v29 }
 0x391   : > { %v6940_v50 = vpop.eup %6939  ;;  %6951 = vrsqrt.f32 %v12304_v25 }
 0x392   : > { %v3952_v63 = vmul.f32 %v6940_v50, %v3749_v60  ;;  %v9616_v12 = vpop.xlane.xlu2 %3751  ;;  %v6942_v13 = vpop.eup %6941 }
 0x393   : > { %v6944_v9 = vpop.eup %6943  ;;  %v3904_v15 = vmul.f32 %v6942_v13, %v9269_v2 }
 0x394   : > { %v3953_v26 = vmul.f32 %v6940_v50, %v3952_v63  ;;  %v4359_v24 = vmul.f32 %v6944_v9, %v9606_v0  ;;  %v9630_v56 = vpop.eup %6945  ;;  %vm4364_vm6 = vweird.f32 %v6944_v9 }
 0x395   : > { %v3905_v14 = vmul.f32 %v6942_v13, %v3904_v15  ;;  %v9633_v52 = vpop.eup %6947  ;;  %v3940_v22 = vmul.f32 %v9630_v56, %v9353_v19  ;;  %v4369_v15 = vand.u32 2147483648, %v9606_v0  ;;  %vm4365_vm8 = vmor %vm4363_vm7, %vm4364_vm6 }
 0x396   : > { %v3954_v55 = vmul.f32 0.5, %v3953_v26  ;;  %v4360_v28 = vsub.f32 1.0, %v4359_v24  ;;  %v9635_v41 = vpop.eup %6949  ;;  %v4329_v51 = vmul.f32 %v9633_v52, %v9620_v38  ;;  %v12305_v24 = vld [vmem:[#allocation34_spill] sm:$0xff]  ;;  %vm4334_vm14 = vweird.f32 %v9633_v52 }
 0x397   : > { %v3906_v59 = vmul.f32 0.5, %v3905_v14  ;;  %v4464_v7 = vmul.f32 %v9635_v41, %v9622_v29  ;;  %v3941_v6 = vmul.f32 %v9630_v56, %v3940_v22  ;;  %v4370_v22 = vor.u32 1.1754944e-38, %v4369_v15  ;;  %v12306_v15 = vld [vmem:[#allocation23_spill] sm:$0xff]  ;;  %vm9672_vm3 = vmor %vm4333_vm11, %vm4334_vm14 }
 0x398   : > { %v3955_v31 = vsub.f32 1.5, %v3954_v55  ;;  %v4330_v55 = vsub.f32 1.0, %v4329_v51  ;;  %vm4469_vm2 = vweird.f32 %v9635_v41  ;;  %vm3948_vm11 = vcmp.eq.f32.partialorder %v9353_v19, 0.0 }
 0x399   : > { %v3907_v44 = vsub.f32 1.5, %v3906_v59  ;;  %v3942_v14 = vmul.f32 0.5, %v3941_v6  ;;  %vm2730_vm14 = vcmp.eq.f32.partialorder %v12305_v24, inf }
 0x39a   : > { %v3956_v48 = vmul.f32 %v6940_v50, %v3955_v31  ;;  %v3674_v34 = vpop.permute.xlu2 %3673  ;;  %v9639_v50 = vpop.eup %6951  ;;  %v4465_v31 = vsub.f32 1.0, %v4464_v7 }
 0x39b   : > { %v3798_v20 = vsel %vm455_vm1, %v3674_v34, 0.0  ;;  %v2712_v63 = vmul.f32 %v9639_v50, %v12304_v25  ;;  %v4367_v34 = vand.u32 2147483647, %v9606_v0 }
 0x39c   : > { %v3957_v30 = vmul.f32 %v3956_v48, %v3749_v60  ;;  %3799 = vadd.xlane.f32.xlu0 %v3798_v20  ;;  %v4466_v59 = vmul.f32 %v9635_v41, %v4465_v31 }
 0x39d   : > { %vm4368_vm10 = vcmp.eq.f32.partialorder %v4367_v34, 8.507059e+37  ;;  %v4474_v34 = vand.u32 2147483648, %v9622_v29 }
 0x39e   : > { %v3959_v35 = vsel %vm3958_vm4, %v3749_v60, %v3957_v30  ;;  %v4361_v60 = vmul.f32 %v6944_v9, %v4360_v28  ;;  %v3908_v30 = vmul.f32 %v6942_v13, %v3907_v44  ;;  %v4331_v28 = vmul.f32 %v9633_v52, %v4330_v55 }
 0x39f   : > { %v3962_v21 = vsel %vm3960_vm5, %v3961_v17, %v3959_v35  ;;  %v2713_v17 = vmul.f32 %v9639_v50, %v2712_v63  ;;  %v3943_v44 = vsub.f32 1.5, %v3942_v14  ;;  %v4467_v31 = vadd.f32 %v9635_v41, %v4466_v59  ;;  %v12307_v14 = vld [vmem:[#allocation38_spill] sm:$0xff] }
 0x3a0   : > { %v4203_v4 = vmax.f32 %v3962_v21, 1e-12  ;;  %v4362_v10 = vadd.f32 %v6944_v9, %v4361_v60  ;;  %v3909_v51 = vmul.f32 %v3908_v30, %v9269_v2  ;;  %v4332_v6 = vadd.f32 %v9633_v52, %v4331_v28 }
 0x3a1   : > { %v4337_v30 = vand.u32 2147483647, %v9620_v38  ;;  %vm4468_vm4 = vweird.f32 %v9622_v29  ;;  %vm3910_vm5 = vcmp.eq.f32.partialorder %v9269_v2, inf }
 0x3a2   : > { %6953 = vrcp.f32 %v4203_v4  ;;  %v4366_v21 = vsel %vm4365_vm8, %v6944_v9, %v4362_v10  ;;  %v4414_v20 = vand.u32 2147483648, %v4203_v4  ;;  %v4412_v13 = vand.u32 2147483647, %v4203_v4  ;;  %vm9688_vm6 = vmor %vm4468_vm4, %vm4469_vm2 }
 0x3a3   : > { %6955 = vrsqrt.f32 %v12305_v24  ;;  %v4371_v0 = vsel %vm4368_vm10, %v4370_v22, %v4366_v21  ;;  %vm4408_vm12 = vweird.f32 %v4203_v4  ;;  %v4339_v9 = vand.u32 2147483648, %v9620_v38 }
 0x3a4   : > { %6957 = vrsqrt.f32 %v9616_v12  ;;  %v4415_v63 = vor.u32 1.1754944e-38, %v4414_v20  ;;  %vm4413_vm15 = vcmp.eq.f32.partialorder %v4412_v13, 8.507059e+37  ;;  %v4472_v20 = vand.u32 2147483647, %v9622_v29 }
 0x3a5   : > { %6959 = vrsqrt.f32 %v12307_v14  ;;  %v3944_v22 = vmul.f32 %v9630_v56, %v3943_v44  ;;  %v4336_v38 = vsel %vm9672_vm3, %v9633_v52, %v4332_v6  ;;  %v2714_v29 = vmul.f32 0.5, %v2713_v17  ;;  %v12313_v52 = vld [vmem:[#allocation31_spill] sm:$0xff] }
 0x3a6   : > { %v3911_v13 = vsel %vm3910_vm5, %v9269_v2, %v3909_v51  ;;  %v4471_v56 = vsel %vm9688_vm6, %v9635_v41, %v4467_v31  ;;  %vm4338_vm7 = vcmp.eq.f32.partialorder %v4337_v30, 8.507059e+37  ;;  %v2657_v44 = vsel %vm455_vm1, %v12313_v52, 0.0 }
 0x3a7   : > { %vm3912_vm8 = vcmp.eq.f32.partialorder %v9269_v2, 0.0  ;;  %v2715_v31 = vsub.f32 1.5, %v2714_v29  ;;  %vm3946_vm10 = vcmp.eq.f32.partialorder %v9353_v19, inf  ;;  %6961 = vrsqrt.f32 %v9119_v18 }
 0x3a8   : > { %v6954_v26 = vpop.eup %6953  ;;  %vm3972_vm2 = vcmp.eq.f32.partialorder %v9616_v12, 0.0  ;;  %vm2732_vm3 = vcmp.eq.f32.partialorder %v12305_v24, 0.0  ;;  %vm2766_vm4 = vcmp.eq.f32.partialorder %v12307_v14, inf }
 0x3a9   : > { %v4404_v48 = vmul.f32 %v6954_v26, %v4203_v4  ;;  %vm4409_vm9 = vweird.f32 %v6954_v26  ;;  %v9661_v10 = vpop.eup %6955 }
 0x3aa   : > { %vm4410_vm13 = vmor %vm4408_vm12, %vm4409_vm9  ;;  %v6958_v28 = vpop.eup %6957  ;;  %v2724_v59 = vmul.f32 %v9661_v10, %v12305_v24  ;;  %vm4473_vm9 = vcmp.eq.f32.partialorder %v4472_v20, 8.507059e+37  ;;  %vm2718_vm12 = vcmp.eq.f32.partialorder %v12304_v25, inf }
 0x3ab   : > { %v4405_v35 = vsub.f32 1.0, %v4404_v48  ;;  %v4372_v48 = vmul.f32 %v4371_v0, %v12306_v15  ;;  %v4340_v0 = vor.u32 1.1754944e-38, %v4339_v9  ;;  %v3964_v17 = vmul.f32 %v6958_v28, %v9616_v12 }
 0x3ac   : > { %v3945_v9 = vmul.f32 %v3944_v22, %v9353_v19  ;;  %v2725_v41 = vmul.f32 %v9661_v10, %v2724_v59  ;;  %v3949_v59 = vand.u32 2147483648, %v9353_v19 }
 0x3ad   : > { %v4406_v60 = vmul.f32 %v6954_v26, %v4405_v35  ;;  %v12308_v35 = vld [vmem:[#allocation25_spill] sm:$0xff]  ;;  %v4341_v6 = vsel %vm4338_vm7, %v4340_v0, %v4336_v38  ;;  %vm2768_vm7 = vcmp.eq.f32.partialorder %v12307_v14, 0.0 }
 0x3ae   : > { %v3947_v22 = vsel %vm3946_vm10, %v9353_v19, %v3945_v9  ;;  %v2726_v38 = vmul.f32 0.5, %v2725_v41  ;;  %v12316_v9 = vld [vmem:[#allocation19_spill] sm:$0xff]  ;;  %v3792_v41 = vsel %vm455_vm1, %v9357_v62, 0.0 }
 0x3af   : > { %v4407_v7 = vadd.f32 %v6954_v26, %v4406_v60  ;;  %v2716_v60 = vmul.f32 %v9639_v50, %v2715_v31  ;;  %v3950_v0 = vsel %vm3948_vm11, %v3949_v59, %v3947_v22  ;;  %v2721_v31 = vand.u32 2147483648, %v12304_v25 }
 0x3b0   : > { %4863 = vrot.lane.b32.xlu0 %v4372_v48, %s7281_s23  ;;  %v6960_v48 = vpop.eup %6959  ;;  %v2727_v52 = vsub.f32 1.5, %v2726_v38  ;;  %vm2790_vm11 = vcmp.eq.f32.partialorder %v9119_v18, inf }
 0x3b1   : > { %v4411_v55 = vsel %vm4410_vm13, %v6954_v26, %v4407_v7  ;;  %v3913_v7 = vand.u32 2147483648, %v9269_v2  ;;  %v3965_v2 = vmul.f32 %v6958_v28, %v3964_v17  ;;  %v2760_v20 = vmul.f32 %v6960_v48, %v12307_v14 }
 0x3b2   : > { %v4416_v4 = vsel %vm4413_vm15, %v4415_v63, %v4411_v55  ;;  %v4475_v63 = vor.u32 1.1754944e-38, %v4474_v34  ;;  %v12315_v34 = vld [vmem:[#allocation4_spill] sm:$0xff]  ;;  %vm2720_vm13 = vcmp.eq.f32.partialorder %v12304_v25, 0.0  ;;  %vm3970_vm15 = vcmp.eq.f32.partialorder %v9616_v12, inf }
 0x3b3   : > { %v4417_v21 = vmul.f32 %v4416_v4, %v12308_v35  ;;  %v3914_v51 = vsel %vm3912_vm8, %v3913_v7, %v3911_v13  ;;  %v12314_v4 = vld [vmem:[#allocation10_spill] sm:$0xff]  ;;  %v3966_v29 = vmul.f32 0.5, %v3965_v2  ;;  %v3789_v13 = vsel %vm455_vm1, %v9595_v40, 0.0  ;;  %v6962_v7 = vpop.eup %6961 }
 0x3b4   : > { %v4476_v55 = vsel %vm4473_vm9, %v4475_v63, %v4471_v56  ;;  %v4342_v30 = vmul.f32 %v4341_v6, %v12314_v4  ;;  %v2761_v56 = vmul.f32 %v6960_v48, %v2760_v20  ;;  %v2717_v63 = vmul.f32 %v2716_v60, %v12304_v25 }
 0x3b5   : > { %4939 = vrot.lane.b32.xlu1 %v4417_v21, %s7281_s23  ;;  %v9705_v21 = vmax.f32 %v3914_v51, 1e-12  ;;  %v4477_v26 = vmul.f32 %v4476_v55, %v12315_v34  ;;  %v3967_v17 = vsub.f32 1.5, %v3966_v29  ;;  %v2784_v19 = vmul.f32 %v6962_v7, %v9119_v18 }
 0x3b6   : > { %v2762_v6 = vmul.f32 0.5, %v2761_v56  ;;  %v2728_v51 = vmul.f32 %v9661_v10, %v2727_v52  ;;  %v2719_v40 = vsel %vm2718_vm12, %v12304_v25, %v2717_v63  ;;  %v3973_v52 = vand.u32 2147483648, %v9616_v12 }
 0x3b7   : > { %6963 = vrcp.f32 %v9705_v21  ;;  %v3968_v55 = vmul.f32 %v6958_v28, %v3967_v17  ;;  %v2785_v10 = vmul.f32 %v6962_v7, %v2784_v19  ;;  %v2733_v17 = vand.u32 2147483648, %v12305_v24 }
 0x3b8   : > { %4824 = vrot.lane.b32.xlu0 %v4342_v30, %s7281_s23  ;;  %v2763_v30 = vsub.f32 1.5, %v2762_v6  ;;  %v2729_v20 = vmul.f32 %v2728_v51, %v12305_v24  ;;  %vm4348_vm6 = vweird.f32 %v9705_v21 }
 0x3b9   : > { %2658 = vadd.xlane.f32.xlu2 %v2657_v44  ;;  %v9720_v44 = vmax.f32 %v3950_v0, 1e-12  ;;  %v3969_v22 = vmul.f32 %v3968_v55, %v9616_v12  ;;  %v2786_v60 = vmul.f32 0.5, %v2785_v10  ;;  %v2769_v55 = vand.u32 2147483648, %v12307_v14 }
 0x3ba   : > { %v2764_v28 = vmul.f32 %v6960_v48, %v2763_v30  ;;  %v2731_v25 = vsel %vm2730_vm14, %v12305_v24, %v2729_v20  ;;  %v4354_v20 = vand.u32 2147483648, %v9705_v21  ;;  %vm2792_vm14 = vcmp.eq.f32.partialorder %v9119_v18, 0.0 }
 0x3bb   : > { %6965 = vrcp.f32 %v9720_v44  ;;  %v2787_v6 = vsub.f32 1.5, %v2786_v60  ;;  %vm4393_vm12 = vweird.f32 %v9720_v44 }
 0x3bc   : > { %6967 = vrsqrt.f32 %v12316_v9  ;;  %v2765_v48 = vmul.f32 %v2764_v28, %v12307_v14  ;;  %v4352_v28 = vand.u32 2147483647, %v9705_v21 }
 0x3bd   : > { %5017 = vrot.lane.b32.xlu1 %v4477_v26, %s7281_s23  ;;  %v9723_v50 = vpop.eup %6963  ;;  %v2722_v26 = vsel %vm2720_vm13, %v2721_v31, %v2719_v40  ;;  %6969 = vrsqrt.f32 %v9136_v5  ;;  %v2734_v31 = vsel %vm2732_vm3, %v2733_v17, %v2731_v25  ;;  %v2788_v24 = vmul.f32 %v6962_v7, %v2787_v6  ;;  %v12320_v7 = vld [vmem:[#allocation24_spill] sm:$0xff] }
 0x3be   : > { %v4344_v2 = vmul.f32 %v9723_v50, %v9705_v21  ;;  %v9744_v29 = vmax.f32 %v2722_v26, 1e-12  ;;  %v2767_v30 = vsel %vm2766_vm4, %v12307_v14, %v2765_v48  ;;  %vm4349_vm5 = vweird.f32 %v9723_v50 }
 0x3bf   : > { %vm9785_vm8 = vmor %vm4348_vm6, %vm4349_vm5  ;;  %v4355_v14 = vor.u32 1.1754944e-38, %v4354_v20  ;;  %vm4353_vm9 = vcmp.eq.f32.partialorder %v4352_v28, 8.507059e+37  ;;  %v2793_v20 = vand.u32 2147483648, %v9119_v18 }
 0x3c0   : > { %v4345_v62 = vsub.f32 1.0, %v4344_v2  ;;  %6971 = vrcp.f32 %v9744_v29  ;;  %vm3138_vm5 = vweird.f32 %v9744_v29 }
 0x3c1   : > { %3790 = vadd.xlane.f32.xlu2 %v3789_v13  ;;  %v9739_v59 = vpop.eup %6965  ;;  %v3971_v13 = vsel %vm3970_vm15, %v9616_v12, %v3969_v22  ;;  %v12317_v22 = vld [vmem:[#allocation40_spill] sm:$0xff] }
 0x3c2   : > { %v9742_v38 = vpop.eup %6967  ;;  %v4389_v0 = vmul.f32 %v9739_v59, %v9720_v44  ;;  %v4346_v63 = vmul.f32 %v9723_v50, %v4345_v62  ;;  %v3974_v51 = vsel %vm3972_vm2, %v3973_v52, %v3971_v13  ;;  %v9780_v62 = vmax.f32 %v2734_v31, 1e-12 }
 0x3c3   : > { %v2772_v56 = vmul.f32 %v9742_v38, %v12316_v9  ;;  %v9760_v19 = vpop.eup %6969  ;;  %v9774_v26 = vmax.f32 %v3974_v51, 1e-12  ;;  %v2770_v13 = vsel %vm2768_vm7, %v2769_v55, %v2767_v30  ;;  %vm4394_vm10 = vweird.f32 %v9739_v59 }
 0x3c4   : > { %v4347_v2 = vadd.f32 %v9723_v50, %v4346_v63  ;;  %v2796_v10 = vmul.f32 %v9760_v19, %v9136_v5  ;;  %v4399_v31 = vand.u32 2147483648, %v9720_v44  ;;  %v9810_v30 = vmax.f32 %v2770_v13, 1e-12  ;;  %vm9819_vm13 = vmor %vm4393_vm12, %vm4394_vm10 }
 0x3c5   : > { %v2773_v12 = vmul.f32 %v9742_v38, %v2772_v56  ;;  %v2789_v56 = vmul.f32 %v2788_v24, %v9119_v18 }
 0x3c6   : > { %v9782_v60 = vpop.eup %6971  ;;  %v4351_v21 = vsel %vm9785_vm8, %v9723_v50, %v4347_v2  ;;  %v2797_v52 = vmul.f32 %v9760_v19, %v2796_v10  ;;  %v4397_v2 = vand.u32 2147483647, %v9720_v44  ;;  %v4400_v39 = vor.u32 1.1754944e-38, %v4399_v31 }
 0x3c7   : > { %v3134_v6 = vmul.f32 %v9782_v60, %v9744_v29  ;;  %v4356_v50 = vsel %vm4353_vm9, %v4355_v14, %v4351_v21  ;;  %v2791_v10 = vsel %vm2790_vm11, %v9119_v18, %v2789_v56  ;;  %vm3139_vm4 = vweird.f32 %v9782_v60 }
 0x3c8   : > { %v2794_v27 = vsel %vm2792_vm14, %v2793_v20, %v2791_v10  ;;  %vm4398_vm15 = vcmp.eq.f32.partialorder %v4397_v2, 8.507059e+37  ;;  %v3795_v10 = vsel %vm455_vm1, %v9298_v61, 0.0  ;;  %v12323_v20 = vld [vmem:[#allocation16_spill] sm:$0xff]  ;;  %vm9884_vm6 = vmor %vm3138_vm5, %vm3139_vm4  ;;  %vm3153_vm8 = vweird.f32 %v9780_v62 }
 0x3c9   : > { %3793 = vadd.xlane.f32.xlu2 %v3792_v41  ;;  %v4390_v41 = vsub.f32 1.0, %v4389_v0  ;;  %v2774_v0 = vmul.f32 0.5, %v2773_v12  ;;  %v3135_v56 = vsub.f32 1.0, %v3134_v6  ;;  %vm2778_vm9 = vcmp.eq.f32.partialorder %v12316_v9, inf }
 0x3ca   : > { %vm4423_vm14 = vweird.f32 %v9774_v26 }
 0x3cb   : > { %v4391_v25 = vmul.f32 %v9739_v59, %v4390_v41  ;;  %v2775_v12 = vsub.f32 1.5, %v2774_v0  ;;  %v2798_v0 = vmul.f32 0.5, %v2797_v52 }
 0x3cd   : > { %v4392_v51 = vadd.f32 %v9739_v59, %v4391_v25  ;;  %v4357_v25 = vmul.f32 %v4356_v50, %v12320_v7  ;;  %v2776_v52 = vmul.f32 %v9742_v38, %v2775_v12 }
 0x3cf   : > { %v4396_v44 = vsel %vm9819_vm13, %v9739_v59, %v4392_v51 }
 0x3d0   : > { %v4401_v51 = vsel %vm4398_vm15, %v4400_v39, %v4396_v44  ;;  %vm2780_vm15 = vcmp.eq.f32.partialorder %v12316_v9, 0.0 }
 0x3d3   : > { %v9764_v40 = vpop.xlane.xlu2 %3754 }
 0x3d4   : > { %6973 = vrsqrt.f32 %v9764_v40  ;;  %vm3982_vm2 = vcmp.eq.f32.partialorder %v9764_v40, inf  ;;  %v3985_v2 = vand.u32 2147483648, %v9764_v40  ;;  %vm3984_vm3 = vcmp.eq.f32.partialorder %v9764_v40, 0.0 }
 0x3d5   : > { %6975 = vrsqrt.f32 %v12317_v22 }
 0x3d6   : > { %6977 = vrsqrt.f32 %v9182_v42 }
 0x3d7   : > { %6979 = vrcp.f32 %v9774_v26 }
 0x3d8   : > { %6981 = vrcp.f32 %v9780_v62 }
 0x3da   : > { %v6974_v48 = vpop.eup %6973 }
 0x3db   : > { %v3976_v63 = vmul.f32 %v6974_v48, %v9764_v40  ;;  %v9798_v17 = vpop.xlane.xlu2 %3763  ;;  %v9806_v55 = vpop.eup %6975 }
 0x3dc   : > { %6983 = vrsqrt.f32 %v9798_v17  ;;  %v9814_v24 = vpop.eup %6977  ;;  %v2808_v14 = vmul.f32 %v9806_v55, %v12317_v22  ;;  %vm4018_vm10 = vcmp.eq.f32.partialorder %v9798_v17, inf  ;;  %vm4020_vm11 = vcmp.eq.f32.partialorder %v9798_v17, 0.0 }
 0x3dd   : > { %v3977_v41 = vmul.f32 %v6974_v48, %v3976_v63  ;;  %v9823_v13 = vpop.eup %6979  ;;  %6985 = vrcp.f32 %v9810_v30  ;;  %v2820_v31 = vmul.f32 %v9814_v24, %v9182_v42 }
 0x3de   : > { %v9830_v63 = vpop.eup %6981  ;;  %v4419_v18 = vmul.f32 %v9823_v13, %v9774_v26  ;;  %vm4424_vm12 = vweird.f32 %v9823_v13 }
 0x3df   : > { %v3978_v28 = vmul.f32 0.5, %v3977_v41  ;;  %v3136_v41 = vmul.f32 %v9782_v60, %v3135_v56  ;;  %v3149_v39 = vmul.f32 %v9830_v63, %v9780_v62  ;;  %vm3154_vm13 = vweird.f32 %v9830_v63 }
 0x3e0   : > { %v4420_v56 = vsub.f32 1.0, %v4419_v18  ;;  %v9868_v18 = vmul.f32 %v2776_v52, %v12316_v9 }
 0x3e1   : > { %v3979_v50 = vsub.f32 1.5, %v3978_v28  ;;  %4861 = vrot.lane.b32.xlu2 %v4357_v25, %s7281_s23  ;;  %v2799_v28 = vsub.f32 1.5, %v2798_v0  ;;  %v2809_v25 = vmul.f32 %v9806_v55, %v2808_v14  ;;  %v4402_v0 = vmul.f32 %v4401_v51, %v12323_v20 }
 0x3e2   : > { %v6984_v54 = vpop.eup %6983  ;;  %3796 = vadd.xlane.f32.xlu0 %v3795_v10 }
 0x3e3   : > { %v3980_v21 = vmul.f32 %v6974_v48, %v3979_v50  ;;  %v4012_v59 = vmul.f32 %v6984_v54, %v9798_v17  ;;  %v9838_v6 = vpop.xlane.xlu2 %3772  ;;  %v2669_v48 = vsel %vm455_vm1, %v9345_v49, 0.0  ;;  %v9858_v49 = vpop.eup %6985 }
 0x3e5   : > { %v3981_v38 = vmul.f32 %v3980_v21, %v9764_v40  ;;  %v4013_v12 = vmul.f32 %v6984_v54, %v4012_v59  ;;  %v3142_v21 = vand.u32 2147483647, %v9744_v29  ;;  %v3144_v59 = vand.u32 2147483648, %v9744_v29 }
 0x3e7   : > { %v3983_v14 = vsel %vm3982_vm2, %v9764_v40, %v3981_v38  ;;  %v4014_v44 = vmul.f32 0.5, %v4013_v12  ;;  %2670 = vadd.xlane.f32.xlu1 %v2669_v48  ;;  %v3137_v40 = vadd.f32 %v9782_v60, %v3136_v41  ;;  %v3150_v38 = vsub.f32 1.0, %v3149_v39  ;;  %vm9924_vm2 = vmor %vm4423_vm14, %vm4424_vm12 }
 0x3e8   : > { %v3986_v50 = vsel %vm3984_vm3, %v3985_v2, %v3983_v14  ;;  %v9870_v12 = vmax.f32 %v2794_v27, 1e-12  ;;  %v9873_v48 = vmul.f32 %v9760_v19, %v2799_v28  ;;  %v2810_v2 = vmul.f32 0.5, %v2809_v25  ;;  %vm9943_vm3 = vmor %vm3153_vm8, %vm3154_vm13 }
 0x3e9   : > { %v9863_v61 = vmax.f32 %v3986_v50, 1e-12  ;;  %v4015_v51 = vsub.f32 1.5, %v4014_v44  ;;  %4902 = vrot.lane.b32.xlu2 %v4402_v0, %s7281_s23  ;;  %v4421_v44 = vmul.f32 %v9823_v13, %v4420_v56  ;;  %v2821_v41 = vmul.f32 %v9814_v24, %v2820_v31 }
 0x3ea   : > { %vm9888_vm7 = vcmp.eq.f32.partialorder %v3142_v21, 8.507059e+37  ;;  %v3141_v29 = vsel %vm9884_vm6, %v9782_v60, %v3137_v40  ;;  %v3145_v52 = vor.u32 1.1754944e-38, %v3144_v59  ;;  %v3151_v28 = vmul.f32 %v9830_v63, %v3150_v38 }
 0x3eb   : > { %6987 = vrcp.f32 %v9863_v61  ;;  %v4016_v10 = vmul.f32 %v6984_v54, %v4015_v51  ;;  %v9876_v14 = vpop.xlane.xlu2 %3775  ;;  %v2811_v31 = vsub.f32 1.5, %v2810_v2  ;;  %v4021_v25 = vand.u32 2147483648, %v9798_v17  ;;  %v9911_v51 = vpop.xlane.xlu0 %3778 }
 0x3ec   : > { %6989 = vrsqrt.f32 %v9876_v14  ;;  %v2678_v39 = vsel %vm455_vm1, %v9466_v11, 0.0  ;;  %v4422_v56 = vadd.f32 %v9823_v13, %v4421_v44  ;;  %v4429_v50 = vand.u32 2147483648, %v9774_v26 }
 0x3ed   : > { %v4017_v54 = vmul.f32 %v4016_v10, %v9798_v17  ;;  %v3146_v21 = vsel %vm9888_vm7, %v3145_v52, %v3141_v29  ;;  %v3152_v40 = vadd.f32 %v9830_v63, %v3151_v28  ;;  %v9919_v2 = vmul.f32 0.5, %v2821_v41  ;;  %v12328_v10 = vld [vmem:[#allocation27_spill] sm:$0xff] }
 0x3ee   : > { %6991 = vrsqrt.f32 %v12328_v10  ;;  %v3157_v19 = vand.u32 2147483647, %v9780_v62  ;;  %v4426_v41 = vsel %vm9924_vm2, %v9823_v13, %v4422_v56  ;;  %v3159_v29 = vand.u32 2147483648, %v9780_v62 }
 0x3ef   : > { %v4019_v0 = vsel %vm4018_vm10, %v9798_v17, %v4017_v54  ;;  %2679 = vadd.xlane.f32.xlu1 %v2678_v39  ;;  %v4427_v17 = vand.u32 2147483647, %v9774_v26  ;;  %v2812_v52 = vmul.f32 %v9806_v55, %v2811_v31  ;;  %v4430_v28 = vor.u32 1.1754944e-38, %v4429_v50 }
 0x3f0   : > { %v4022_v60 = vsel %vm4020_vm11, %v4021_v25, %v4019_v0  ;;  %v3147_v25 = vmul.f32 %v3146_v21, %v12303_v36  ;;  %v4444_v13 = vand.u32 2147483648, %v9863_v61  ;;  %v3156_v55 = vsel %vm9943_vm3, %v9830_v63, %v3152_v40 }
 0x3f1   : > { %v6988_v59 = vpop.eup %6987  ;;  %v9913_v11 = vmax.f32 %v4022_v60, 1e-12  ;;  %vm4428_vm4 = vcmp.eq.f32.partialorder %v4427_v17, 8.507059e+37  ;;  %v4442_v50 = vand.u32 2147483647, %v9863_v61  ;;  %v2779_v62 = vsel %vm2778_vm9, %v12316_v9, %v9868_v18 }
 0x3f2   : > { %v6990_v38 = vpop.eup %6989  ;;  %v4434_v27 = vmul.f32 %v6988_v59, %v9863_v61  ;;  %v4431_v31 = vsel %vm4428_vm4, %v4430_v28, %v4426_v41  ;;  %vm4439_vm5 = vweird.f32 %v6988_v59  ;;  %v2823_v21 = vsub.f32 1.5, %v9919_v2  ;;  %v12333_v28 = vld [vmem:[#allocation26_spill] sm:$0xff] }
 0x3f3   : > { %6993 = vrcp.f32 %v9913_v11  ;;  %v4060_v26 = vmul.f32 %v6990_v38, %v9876_v14  ;;  %v4745_v54 = vpop.permute.xlu2 %4744  ;;  %v3160_v17 = vor.u32 1.1754944e-38, %v3159_v29  ;;  %v2813_v63 = vmul.f32 %v2812_v52, %v12317_v22 }
 0x3f4   : > { %6656 = vmatpush.xpose.msk.msra.mxu2 %vm455_vm1, %v4745_v54  ;;  %v4435_v39 = vsub.f32 1.0, %v4434_v27  ;;  %v9958_v27 = vpop.eup %6991  ;;  %vm4438_vm6 = vweird.f32 %v9863_v61  ;;  %vm3158_vm7 = vcmp.eq.f32.partialorder %v3157_v19, 8.507059e+37  ;;  %v9962_v54 = vpop.xlane.xlu0 %3781  ;;  %v4432_v18 = vmul.f32 %v4431_v31, %v12333_v28 }
 0x3f5   : > { %v4061_v60 = vmul.f32 %v6990_v38, %v4060_v26  ;;  %vm4440_vm8 = vmor %vm4438_vm6, %vm4439_vm5  ;;  %v4445_v2 = vor.u32 1.1754944e-38, %v4444_v13  ;;  %6995 = vrsqrt.f32 %v9219_v53  ;;  %vm4443_vm9 = vcmp.eq.f32.partialorder %v4442_v50, 8.507059e+37 }
 0x3f6   : > { %v4436_v56 = vmul.f32 %v6988_v59, %v4435_v39  ;;  %v3161_v39 = vsel %vm3158_vm7, %v3160_v17, %v3156_v55  ;;  %4941 = vrot.lane.b32.xlu0 %v4432_v18, %s7281_s23  ;;  %v3194_v19 = vmul.f32 %v9858_v49, %v9810_v30  ;;  %v12334_v0 = vand.u32 2147483648, %v12316_v9  ;;  %v12335_v55 = vld [vmem:[#allocation6_spill] sm:$0xff] }
 0x3f7   : > { %v4062_v44 = vmul.f32 0.5, %v4061_v60  ;;  %6657 = vmatmul.msk.f32.vlgmr.msra.gmra.mxu2 %vm455_vm1, %v3147_v25  ;;  %v2856_v13 = vmul.f32 %v9958_v27, %v12328_v10  ;;  %v3162_v31 = vmul.f32 %v3161_v39, %v12285_v37  ;;  %6997 = vrsqrt.f32 %v9838_v6 }
 0x3f8   : > { %v4437_v40 = vadd.f32 %v6988_v59, %v4436_v56  ;;  %v2782_v60 = vsel %vm2780_vm15, %v12334_v0, %v2779_v62  ;;  %vm4066_vm10 = vcmp.eq.f32.partialorder %v9876_v14, inf  ;;  %v4489_v50 = vand.u32 2147483648, %v9913_v11 }
 0x3f9   : > { %v6994_v26 = vpop.eup %6993  ;;  %v4063_v41 = vsub.f32 1.5, %v4062_v44  ;;  %v4069_v44 = vand.u32 2147483648, %v9876_v14  ;;  %v4487_v62 = vand.u32 2147483647, %v9913_v11  ;;  %v2824_v17 = vmul.f32 %v9814_v24, %v2823_v21 }
 0x3fa   : > { %v4441_v29 = vsel %vm4440_vm8, %v6988_v59, %v4437_v40  ;;  %v4479_v52 = vmul.f32 %v6994_v26, %v9913_v11  ;;  %vm4484_vm11 = vweird.f32 %v6994_v26  ;;  %vm2814_vm12 = vcmp.eq.f32.partialorder %v12317_v22, inf }
 0x3fb   : > { %v4064_v25 = vmul.f32 %v6990_v38, %v4063_v41  ;;  %v4446_v61 = vsel %vm4443_vm9, %v4445_v2, %v4441_v29  ;;  %vm4068_vm13 = vcmp.eq.f32.partialorder %v9876_v14, 0.0  ;;  %v9991_v41 = vpop.eup %6995  ;;  %vm4483_vm14 = vweird.f32 %v9913_v11 }
 0x3fc   : > { %v4447_v59 = vmul.f32 %v4446_v61, %v12335_v55  ;;  %v4480_v56 = vsub.f32 1.0, %v4479_v52  ;;  %v3195_v39 = vsub.f32 1.0, %v3194_v19  ;;  %v2815_v29 = vsel %vm2814_vm12, %v12317_v22, %v2813_v63  ;;  %vm4485_vm15 = vmor %vm4483_vm14, %vm4484_vm11  ;;  %v10006_v63 = vpop.xlane.xlu0 %3784 }
 0x3fd   : > { %v4065_v38 = vmul.f32 %v4064_v25, %v9876_v14  ;;  %v4490_v24 = vor.u32 1.1754944e-38, %v4489_v50  ;;  %v9997_v21 = vmax.f32 %v2782_v60, 1e-12  ;;  %v2857_v25 = vmul.f32 %v9958_v27, %v2856_v13  ;;  %v10001_v0 = vpop.eup %6997  ;;  %v12337_v60 = vld [vmem:[#allocation28_spill] sm:$0xff] }
 0x3fe   : > { %4978 = vrot.lane.b32.xlu2 %v4447_v59, %s7281_s23  ;;  %v4481_v9 = vmul.f32 %v6994_v26, %v4480_v56  ;;  %vm4488_vm2 = vcmp.eq.f32.partialorder %v4487_v62, 8.507059e+37  ;;  %v2817_v59 = vand.u32 2147483648, %v12317_v22  ;;  %v2832_v11 = vmul.f32 %v9991_v41, %v9219_v53 }
 0x3ff   : > { %v4067_v40 = vsel %vm4066_vm10, %v9876_v14, %v4065_v38  ;;  %6658 = vmatmul.msk.f32.gmra.mxu2 %vm455_vm1, %v3162_v31  ;;  %v12336_v14 = vld [vmem:[#allocation32_spill] sm:$0xff]  ;;  %vm2816_vm3 = vcmp.eq.f32.partialorder %v12317_v22, 0.0  ;;  %v2801_v56 = vmul.f32 %v9873_v48, %v9136_v5  ;;  %v2858_v38 = vmul.f32 0.5, %v2857_v25 }
 0x400   : > { %v4070_v18 = vsel %vm4068_vm13, %v4069_v44, %v4067_v40  ;;  %v4482_v2 = vadd.f32 %v6994_v26, %v4481_v9  ;;  %6999 = vrsqrt.f32 %v12336_v14  ;;  %v2818_v31 = vsel %vm2816_vm3, %v2817_v59, %v2815_v29 }
 0x401   : > { %v9995_v52 = vmax.f32 %v4070_v18, 1e-12  ;;  %v4048_v50 = vmul.f32 %v10001_v0, %v9838_v6  ;;  %vm2802_vm4 = vcmp.eq.f32.partialorder %v9136_v5, inf  ;;  %v2825_v22 = vmul.f32 %v2824_v17, %v9182_v42 }
 0x402   : > { %v4486_v61 = vsel %vm4485_vm15, %v6994_v26, %v4482_v2  ;;  %v3196_v26 = vmul.f32 %v9858_v49, %v3195_v39  ;;  %v2833_v44 = vmul.f32 %v9991_v41, %v2832_v11  ;;  %vm2804_vm5 = vcmp.eq.f32.partialorder %v9136_v5, 0.0 }
 0x403   : > { %7001 = vrcp.f32 %v9995_v52  ;;  %v4491_v19 = vsel %vm4488_vm2, %v4490_v24, %v4486_v61  ;;  %v10025_v62 = vmax.f32 %v2818_v31, 1e-12  ;;  %vm3199_vm6 = vweird.f32 %v9858_v49 }
 0x404   : > { %7003 = vrcp.f32 %v9870_v12  ;;  %v4492_v13 = vmul.f32 %v4491_v19, %v12337_v60  ;;  %v3197_v48 = vadd.f32 %v9858_v49, %v3196_v26  ;;  %v3202_v40 = vand.u32 2147483647, %v9810_v30 }
 0x405   : > { %7005 = vrcp.f32 %v9997_v21  ;;  %v2805_v2 = vand.u32 2147483648, %v9136_v5  ;;  %vm2826_vm7 = vcmp.eq.f32.partialorder %v9182_v42, inf  ;;  %v2829_v17 = vand.u32 2147483648, %v9182_v42 }
 0x406   : > { %5019 = vrot.lane.b32.xlu0 %v4492_v13, %s7281_s23  ;;  %v10022_v9 = vpop.eup %6999  ;;  %v3204_v39 = vand.u32 2147483648, %v9810_v30  ;;  %v2803_v24 = vsel %vm2802_vm4, %v9136_v5, %v2801_v56  ;;  %vm2828_vm8 = vcmp.eq.f32.partialorder %v9182_v42, 0.0  ;;  %v2859_v25 = vsub.f32 1.5, %v2858_v38  ;;  %v10060_v56 = vpop.xlane.xlu0 %3787 }
 0x407   : > { %v4049_v61 = vmul.f32 %v10001_v0, %v4048_v50  ;;  %vm3198_vm9 = vweird.f32 %v9810_v30  ;;  %v2827_v59 = vsel %vm2826_vm7, %v9182_v42, %v2825_v22  ;;  %v2834_v11 = vmul.f32 0.5, %v2833_v44 }
 0x408   : > { %v2868_v19 = vmul.f32 %v10022_v9, %v12336_v14  ;;  %7007 = vrsqrt.f32 %v9480_v23  ;;  %vm10048_vm10 = vmor %vm3198_vm9, %vm3199_vm6  ;;  %vm3203_vm11 = vcmp.eq.f32.partialorder %v3202_v40, 8.507059e+37  ;;  %v10064_v38 = vsel %vm455_vm1, %v9277_v45, 0.0 }
 0x409   : > { %v10030_v18 = vpop.eup %7001  ;;  %7009 = vrcp.f32 %v10025_v62  ;;  %v3201_v31 = vsel %vm10048_vm10, %v9858_v49, %v3197_v48  ;;  %v3205_v50 = vor.u32 1.1754944e-38, %v3204_v39  ;;  %v3217_v22 = vand.u32 2147483647, %v9997_v21 }
 0x40a   : > { %v10036_v29 = vpop.eup %7003  ;;  %v4539_v30 = vmul.f32 %v10030_v18, %v9995_v52  ;;  %v2860_v1 = vmul.f32 %v9958_v27, %v2859_v25  ;;  %vm2862_vm12 = vcmp.eq.f32.partialorder %v12328_v10, inf  ;;  %v4050_v36 = vmul.f32 0.5, %v4049_v61 }
 0x40b   : > { %v10052_v26 = vpop.eup %7005  ;;  %v3224_v44 = vmul.f32 %v10036_v29, %v9870_v12  ;;  %v2835_v49 = vsub.f32 1.5, %v2834_v11  ;;  %v2869_v48 = vmul.f32 %v10022_v9, %v2868_v19  ;;  %v3206_v40 = vsel %vm3203_vm11, %v3205_v50, %v3201_v31 }
 0x40c   : > { %v4540_v13 = vsub.f32 1.0, %v4539_v30  ;;  %v3209_v45 = vmul.f32 %v10052_v26, %v9997_v21  ;;  %7011 = vrsqrt.f32 %v9241_v32  ;;  %vm4544_vm13 = vweird.f32 %v10030_v18 }
 0x40d   : > { %v4549_v37 = vand.u32 2147483648, %v9995_v52  ;;  %7013 = vrsqrt.f32 %v9447_v33  ;;  %v4547_v25 = vand.u32 2147483647, %v9995_v52  ;;  %v3225_v61 = vsub.f32 1.0, %v3224_v44 }
 0x40e   : > { %v4541_v39 = vmul.f32 %v10030_v18, %v4540_v13  ;;  %v10078_v27 = vpop.eup %7007  ;;  %v2806_v11 = vsel %vm2804_vm5, %v2805_v2, %v2803_v24  ;;  %v2861_v30 = vmul.f32 %v2860_v1, %v12328_v10  ;;  %vm2864_vm14 = vcmp.eq.f32.partialorder %v12328_v10, 0.0 }
 0x40f   : > { %v10084_v19 = vpop.eup %7009  ;;  %v4051_v31 = vsub.f32 1.5, %v4050_v36  ;;  %vm4543_vm15 = vweird.f32 %v9995_v52  ;;  %v2836_v13 = vmul.f32 %v9991_v41, %v2835_v49  ;;  %v2870_v47 = vmul.f32 0.5, %v2869_v48 }
 0x410   : > { %v4542_v50 = vadd.f32 %v10030_v18, %v4541_v39  ;;  %vm10093_vm2 = vmor %vm4543_vm15, %vm4544_vm13  ;;  %v3210_v5 = vsub.f32 1.0, %v3209_v45  ;;  %v2830_v1 = vsel %vm2828_vm8, %v2829_v17, %v2827_v59  ;;  %v4036_v36 = vmul.f32 %v10078_v27, %v9480_v23  ;;  %v10124_v39 = vpop.xlane.xlu0 %2643 }
 0x411   : > { %v4550_v2 = vor.u32 1.1754944e-38, %v4549_v37  ;;  %v10104_v41 = vmax.f32 %v2806_v11, 1e-12  ;;  %v2865_v24 = vand.u32 2147483648, %v12328_v10  ;;  %vm4548_vm3 = vcmp.eq.f32.partialorder %v4547_v25, 8.507059e+37 }
 0x412   : > { %v4546_v52 = vsel %vm10093_vm2, %v10030_v18, %v4542_v50  ;;  %v10108_v49 = vmul.f32 %v3206_v40, %v12297_v16  ;;  %vm3213_vm4 = vweird.f32 %v9997_v21  ;;  %v3219_v42 = vand.u32 2147483648, %v9997_v21  ;;  %v10112_v17 = vpop.eup %7011 }
 0x413   : > { %v2863_v59 = vsel %vm2862_vm12, %v12328_v10, %v2861_v30  ;;  %v4052_v37 = vmul.f32 %v10001_v0, %v4051_v31  ;;  %v4551_v18 = vsel %vm4548_vm3, %v4550_v2, %v4546_v52  ;;  %vm3228_vm5 = vweird.f32 %v9870_v12  ;;  %v10121_v45 = vpop.eup %7013 }
 0x414   : > { %v10119_v48 = vmax.f32 %v2830_v1, 1e-12  ;;  %v2871_v40 = vsub.f32 1.5, %v2870_v47  ;;  %7015 = vrsqrt.f32 %v9911_v51  ;;  %v4552_v25 = vmul.f32 %v4551_v18, %v9180_v57 }
 0x415   : > { %v3211_v11 = vmul.f32 %v10052_v26, %v3210_v5  ;;  %v2837_v30 = vmul.f32 %v2836_v13, %v9219_v53  ;;  %v4037_v0 = vmul.f32 %v10078_v27, %v4036_v36  ;;  %v3226_v31 = vmul.f32 %v10036_v29, %v3225_v61 }
 0x416   : > { %7017 = vrcp.f32 %v10104_v41  ;;  %vm2838_vm6 = vcmp.eq.f32.partialorder %v9219_v53, inf  ;;  %vm2840_vm7 = vcmp.eq.f32.partialorder %v9219_v53, 0.0  ;;  %v2844_v47 = vmul.f32 %v10112_v17, %v9241_v32  ;;  %5097 = vrot.lane.b32.xlu0 %v4552_v25, %s7281_s23 }
 0x417   : > { %vm10137_vm8 = vcmp.eq.f32.partialorder %v3217_v22, 8.507059e+37  ;;  %vm3229_vm9 = vweird.f32 %v10036_v29  ;;  %v2841_v13 = vand.u32 2147483648, %v9219_v53  ;;  %v4024_v61 = vmul.f32 %v10121_v45, %v9447_v33 }
 0x418   : > { %v4053_v44 = vmul.f32 %v4052_v37, %v9838_v6  ;;  %7019 = vrcp.f32 %v10119_v48  ;;  %v2866_v5 = vsel %vm2864_vm14, %v2865_v24, %v2863_v59  ;;  %v2872_v1 = vmul.f32 %v10022_v9, %v2871_v40  ;;  %vm10189_vm14 = vmor %vm3228_vm5, %vm3229_vm9 }
 0x419   : > { %v3212_v22 = vadd.f32 %v10052_v26, %v3211_v11  ;;  %vm3214_vm10 = vweird.f32 %v10052_v26  ;;  %v2839_v36 = vsel %vm2838_vm6, %v9219_v53, %v2837_v30  ;;  %vm2874_vm11 = vcmp.eq.f32.partialorder %v12336_v14, inf }
 0x41a   : > { %v4038_v2 = vmul.f32 0.5, %v4037_v0  ;;  %v3227_v37 = vadd.f32 %v10036_v29, %v3226_v31  ;;  %v10156_v18 = vpop.eup %7015  ;;  %v2845_v10 = vmul.f32 %v10112_v17, %v2844_v47  ;;  %vm4054_vm12 = vcmp.eq.f32.partialorder %v9838_v6, inf  ;;  %vm10171_vm13 = vmor %vm3213_vm4, %vm3214_vm10 }
 0x41b   : > { %v3220_v9 = vor.u32 1.1754944e-38, %v3219_v42  ;;  %v3234_v24 = vand.u32 2147483648, %v9870_v12  ;;  %v10163_v40 = vmax.f32 %v2866_v5, 1e-12  ;;  %v4025_v25 = vmul.f32 %v10121_v45, %v4024_v61  ;;  %v10180_v61 = vpop.xlane.xlu0 %3799 }
 0x41c   : > { %v10161_v59 = vpop.eup %7017  ;;  %v4055_v11 = vsel %vm4054_vm12, %v9838_v6, %v4053_v44  ;;  %v3232_v42 = vand.u32 2147483647, %v9870_v12  ;;  %v2842_v0 = vsel %vm2840_vm7, %v2841_v13, %v2839_v36  ;;  %v2873_v31 = vmul.f32 %v2872_v1, %v12336_v14 }
 0x41d   : > { %v4057_v47 = vand.u32 2147483648, %v9838_v6  ;;  %v3216_v44 = vsel %vm10171_vm13, %v10052_v26, %v3212_v22  ;;  %v4072_v13 = vmul.f32 %v10156_v18, %v9911_v51  ;;  %v4039_v5 = vsub.f32 1.5, %v4038_v2  ;;  %v10201_v22 = vpop.xlane.xlu1 %2646 }
 0x41e   : > { %v10193_v53 = vpop.eup %7019  ;;  %vm4056_vm15 = vcmp.eq.f32.partialorder %v9838_v6, 0.0  ;;  %v3231_v26 = vsel %vm10189_vm14, %v10036_v29, %v3227_v37  ;;  %v2846_v1 = vmul.f32 0.5, %v2845_v10  ;;  %12348 = vst [vmem:[#allocation17_spill] sm:$0xff] %v10201_v22  ;;  %v3235_v36 = vor.u32 1.1754944e-38, %v3234_v24 }
 0x41f   : > { %v4058_v12 = vsel %vm4056_vm15, %v4057_v47, %v4055_v11  ;;  %v3239_v30 = vmul.f32 %v10161_v59, %v10104_v41  ;;  %v10205_v52 = vmax.f32 %v2842_v0, 1e-12  ;;  %v4026_v16 = vmul.f32 0.5, %v4025_v25 }
 0x420   : > { %v3221_v2 = vsel %vm10137_vm8, %v3220_v9, %v3216_v44  ;;  %vm3233_vm2 = vcmp.eq.f32.partialorder %v3232_v42, 8.507059e+37  ;;  %7021 = vrsqrt.f32 %v10060_v56  ;;  %v3249_v29 = vand.u32 2147483648, %v10104_v41 }
 0x421   : > { %v3236_v6 = vsel %vm3233_vm2, %v3235_v36, %v3231_v26  ;;  %v3269_v37 = vmul.f32 %v10193_v53, %v10119_v48  ;;  %7023 = vrsqrt.f32 %v9212_v58  ;;  %v4073_v10 = vmul.f32 %v10156_v18, %v4072_v13 }
 0x422   : > { %v4040_v24 = vmul.f32 %v10078_v27, %v4039_v5  ;;  %v10216_v11 = vmax.f32 %v4058_v12, 1e-12  ;;  %7025 = vrcp.f32 %v10163_v40  ;;  %v10222_v50 = vsel %vm2874_vm11, %v12336_v14, %v2873_v31 }
 0x423   : > { %v2847_v9 = vsub.f32 1.5, %v2846_v1  ;;  %v3240_v25 = vsub.f32 1.0, %v3239_v30  ;;  %7027 = vrcp.f32 %v10205_v52  ;;  %v4027_v0 = vsub.f32 1.5, %v4026_v16  ;;  %v4864_v27 = vpop.permute.xlu0 %4863 }
 0x424   : > { %v10227_v47 = vmul.f32 %v3221_v2, %v12314_v4  ;;  %v10231_v44 = vmul.f32 %v3236_v6, %v12320_v7  ;;  %vm3243_vm3 = vweird.f32 %v10104_v41  ;;  %v3247_v31 = vand.u32 2147483647, %v10104_v41  ;;  %6667 = vmatpush.xpose.msk.msrb.mxu2 %vm455_vm1, %v4864_v27 }
 0x425   : > { %v3254_v21 = vmul.f32 %v10084_v19, %v10025_v62  ;;  %v3270_v13 = vsub.f32 1.0, %v3269_v37  ;;  %v4074_v5 = vmul.f32 0.5, %v4073_v10  ;;  %v4041_v16 = vmul.f32 %v4040_v24, %v9480_v23 }
 0x426   : > { %7029 = vrcp.f32 %v10216_v11  ;;  %v10240_v26 = vor.u32 1.1754944e-38, %v3249_v29  ;;  %vm2876_vm4 = vcmp.eq.f32.partialorder %v12336_v14, 0.0  ;;  %v2848_v1 = vmul.f32 %v10112_v17, %v2847_v9  ;;  %v10259_v17 = vpop.xlane.xlu1 %2649 }
 0x427   : > { %2661 = vadd.xlane.f32.xlu2 %v10064_v38  ;;  %v10242_v38 = vpop.eup %7021  ;;  %v3241_v12 = vmul.f32 %v10161_v59, %v3240_v25  ;;  %vm3273_vm5 = vweird.f32 %v10119_v48  ;;  %v3277_v36 = vand.u32 2147483647, %v10119_v48  ;;  %v4028_v2 = vmul.f32 %v10121_v45, %v4027_v0  ;;  %12349 = vst [vmem:[#allocation37_spill] sm:$0xff] %v10259_v17 }
 0x428   : > { %v10249_v30 = vpop.eup %7023  ;;  %vm3244_vm6 = vweird.f32 %v10161_v59  ;;  %v3262_v6 = vand.u32 2147483647, %v10025_v62  ;;  %v3279_v29 = vand.u32 2147483648, %v10119_v48  ;;  %vm4042_vm7 = vcmp.eq.f32.partialorder %v9480_v23, inf }
 0x429   : > { %v10255_v37 = vpop.eup %7025  ;;  %7031 = vrsqrt.f32 %v10006_v63  ;;  %v3255_v10 = vsub.f32 1.0, %v3254_v21  ;;  %v3271_v24 = vmul.f32 %v10193_v53, %v3270_v13  ;;  %vm2850_vm8 = vcmp.eq.f32.partialorder %v9241_v32, inf  ;;  %vm10301_vm14 = vmor %vm3243_vm3, %vm3244_vm6 }
 0x42a   : > { %v10262_v9 = vpop.eup %7027  ;;  %v4075_v45 = vsub.f32 1.5, %v4074_v5  ;;  %v4043_v25 = vsel %vm4042_vm7, %v9480_v23, %v4041_v16  ;;  %v4108_v0 = vmul.f32 %v10242_v38, %v10060_v56  ;;  %v3264_v42 = vand.u32 2147483648, %v10025_v62 }
 0x42b   : > { %v2849_v4 = vmul.f32 %v2848_v1, %v9241_v32  ;;  %v2880_v21 = vmul.f32 %v10249_v30, %v9212_v58  ;;  %v4045_v13 = vand.u32 2147483648, %v9480_v23  ;;  %v3242_v7 = vadd.f32 %v10161_v59, %v3241_v12 }
 0x42c   : > { %v10268_v27 = vpop.xlane.xlu2 %2658  ;;  %vm10276_vm9 = vcmp.eq.f32.partialorder %v3247_v31, 8.507059e+37  ;;  %vm3258_vm10 = vweird.f32 %v10025_v62  ;;  %v10281_v16 = vpop.eup %7029  ;;  %v4029_v57 = vmul.f32 %v4028_v2, %v9447_v33  ;;  %vm4044_vm11 = vcmp.eq.f32.partialorder %v9480_v23, 0.0 }
 0x42d   : > { %12350 = vst [vmem:[#allocation30_spill] sm:$0xff] %v10268_v27  ;;  %v3804_v1 = vsel %vm455_vm1, %v9311_v3, 0.0  ;;  %vm10287_vm12 = vcmp.eq.f32.partialorder %v3277_v36, 8.507059e+37  ;;  %v3280_v12 = vor.u32 1.1754944e-38, %v3279_v29  ;;  %v4825_v31 = vpop.permute.xlu0 %4824  ;;  %v3256_v17 = vmul.f32 %v10084_v19, %v3255_v10 }
 0x42e   : > { %v4046_v60 = vsel %vm4044_vm11, %v4045_v13, %v4043_v25  ;;  %v3272_v22 = vadd.f32 %v10193_v53, %v3271_v24  ;;  %vm3274_vm13 = vweird.f32 %v10193_v53  ;;  %v4076_v2 = vmul.f32 %v10156_v18, %v4075_v45  ;;  %6663 = vmatpush.xpose.msk.msrb.mxu1 %vm455_vm1, %v4825_v31 }
 0x42f   : > { %3805 = vadd.xlane.f32.xlu2 %v3804_v1  ;;  %v4109_v23 = vmul.f32 %v10242_v38, %v4108_v0  ;;  %vm3259_vm15 = vweird.f32 %v10084_v19  ;;  %v3265_v36 = vor.u32 1.1754944e-38, %v3264_v42  ;;  %v10306_v29 = vpop.eup %7031  ;;  %v2881_v10 = vmul.f32 %v10249_v30, %v2880_v21  ;;  %vm10326_vm6 = vmor %vm3273_vm5, %vm3274_vm13 }
 0x430   : > { %vm4030_vm2 = vcmp.eq.f32.partialorder %v9447_v33, inf  ;;  %v4524_v18 = vmul.f32 %v10281_v16, %v10216_v11  ;;  %v3246_v41 = vsel %vm10301_vm14, %v10161_v59, %v3242_v7  ;;  %vm10315_vm3 = vcmp.eq.f32.partialorder %v3262_v6, 8.507059e+37 }
 0x431   : > { %v4031_v45 = vsel %vm4030_vm2, %v9447_v33, %v4029_v57  ;;  %v10320_v42 = vmax.f32 %v4046_v60, 1e-12  ;;  %v3314_v0 = vmul.f32 %v10255_v37, %v10163_v40  ;;  %v12361_v7 = vand.u32 2147483648, %v12336_v14  ;;  %v4823_v60 = vpop.permute.xlu1 %4822 }
 0x432   : > { %v4033_v57 = vand.u32 2147483648, %v9447_v33  ;;  %v4525_v6 = vsub.f32 1.0, %v4524_v18  ;;  %v3257_v21 = vadd.f32 %v10084_v19, %v3256_v17  ;;  %v3276_v48 = vsel %vm10326_vm6, %v10193_v53, %v3272_v22  ;;  %6664 = vmatpush.xpose.msk.msrb.mxu1 %vm455_vm1, %v4823_v60  ;;  %v12362_v22 = vld [vmem:[#allocation41_spill] sm:$0xff] }
 0x433   : > { %v2878_v59 = vsel %vm2876_vm4, %v12361_v7, %v10222_v50  ;;  %v4077_v13 = vmul.f32 %v4076_v2, %v9911_v51  ;;  %vm4032_vm5 = vcmp.eq.f32.partialorder %v9447_v33, 0.0  ;;  %v4096_v1 = vmul.f32 %v10306_v29, %v10006_v63  ;;  %vm10367_vm4 = vmor %vm3258_vm10, %vm3259_vm15 }
 0x434   : > { %v4110_v31 = vmul.f32 0.5, %v4109_v23  ;;  %v10347_v14 = vpop.xlane.xlu2 %3790  ;;  %v10352_v50 = vsel %vm2850_vm8, %v9241_v32, %v2849_v4  ;;  %v2882_v17 = vmul.f32 0.5, %v2881_v10  ;;  %v4034_v3 = vsel %vm4032_vm5, %v4033_v57, %v4031_v45 }
 0x435   : > { %v10354_v53 = vmax.f32 %v2878_v59, 1e-12  ;;  %v10358_v33 = vsel %vm455_vm1, %v12362_v22, 0.0  ;;  %v3251_v2 = vsel %vm10276_vm9, %v10240_v26, %v3246_v41  ;;  %7033 = vrcp.f32 %v10320_v42  ;;  %6665 = vmatmul.msk.f32.vlgmr.msrb.gmra.mxu1 %vm455_vm1, %v10108_v49 }
 0x436   : > { %v3315_v4 = vsub.f32 1.0, %v3314_v0  ;;  %vm4078_vm7 = vcmp.eq.f32.partialorder %v9911_v51, inf  ;;  %v4526_v10 = vmul.f32 %v10281_v16, %v4525_v6  ;;  %v3261_v26 = vsel %vm10367_vm4, %v10084_v19, %v3257_v21 }
 0x437   : > { %v3281_v62 = vsel %vm10287_vm12, %v3280_v12, %v3276_v48  ;;  %v4079_v5 = vsel %vm4078_vm7, %v9911_v51, %v4077_v13  ;;  %v4097_v18 = vmul.f32 %v10306_v29, %v4096_v1  ;;  %v4111_v41 = vsub.f32 1.5, %v4110_v31 }
 0x438   : > { %v10383_v45 = vmax.f32 %v4034_v3, 1e-12  ;;  %v2883_v25 = vsub.f32 1.5, %v2882_v17  ;;  %v4081_v0 = vand.u32 2147483648, %v9911_v51  ;;  %v10387_v49 = vmul.f32 %v3251_v2, %v12306_v15 }
 0x439   : > { %7035 = vrcp.f32 %v10354_v53  ;;  %vm4080_vm8 = vcmp.eq.f32.partialorder %v9911_v51, 0.0  ;;  %v3266_v19 = vsel %vm10315_vm3, %v3265_v36, %v3261_v26  ;;  %v10394_v27 = vmul.f32 %v3281_v62, %v12323_v20 }
 0x43a   : > { %v3316_v12 = vmul.f32 %v10255_v37, %v3315_v4  ;;  %v4082_v7 = vsel %vm4080_vm8, %v4081_v0, %v4079_v5  ;;  %7037 = vrsqrt.f32 %v10124_v39  ;;  %v4527_v59 = vadd.f32 %v10281_v16, %v4526_v10 }
 0x43b   : > { %vm4529_vm9 = vweird.f32 %v10281_v16  ;;  %v10400_v57 = vpop.eup %7033  ;;  %v4098_v60 = vmul.f32 0.5, %v4097_v18  ;;  %v4112_v51 = vmul.f32 %v10242_v38, %v4111_v41  ;;  %v4534_v36 = vand.u32 2147483648, %v10216_v11 }
 0x43c   : > { %v10403_v6 = vpop.xlane.xlu2 %3793  ;;  %7039 = vrcp.f32 %v10383_v45  ;;  %v2884_v24 = vmul.f32 %v10249_v30, %v2883_v25  ;;  %vm4528_vm10 = vweird.f32 %v10216_v11  ;;  %v4532_v21 = vand.u32 2147483647, %v10216_v11 }
 0x43d   : > { %7041 = vrsqrt.f32 %v10403_v6  ;;  %vm2886_vm11 = vcmp.eq.f32.partialorder %v9212_v58, inf  ;;  %v10412_v48 = vmax.f32 %v4082_v7, 1e-12  ;;  %vm10414_vm12 = vmor %vm4528_vm10, %vm4529_vm9  ;;  %v10419_v13 = vmul.f32 %v3266_v19, %v12301_v46  ;;  %6666 = vmatmul.msk.f32.gmra.mxu1 %vm455_vm1, %v10227_v47 }
 0x43e   : > { %v3322_v1 = vand.u32 2147483647, %v10163_v40  ;;  %v2889_v31 = vand.u32 2147483648, %v9212_v58  ;;  %v4531_v11 = vsel %vm10414_vm12, %v10281_v16, %v4527_v59  ;;  %v4509_v17 = vmul.f32 %v10400_v57, %v10320_v42 }
 0x43f   : > { %v10422_v30 = vpop.eup %7035  ;;  %v3324_v3 = vand.u32 2147483648, %v10163_v40  ;;  %vm2888_vm13 = vcmp.eq.f32.partialorder %v9212_v58, 0.0  ;;  %v4099_v22 = vsub.f32 1.5, %v4098_v60  ;;  %v4113_v2 = vmul.f32 %v4112_v51, %v10060_v56  ;;  %v4981_v51 = vpop.permute.xlu1 %4980 }
 0x440   : > { %v4535_v23 = vor.u32 1.1754944e-38, %v4534_v36  ;;  %vm3318_vm14 = vweird.f32 %v10163_v40  ;;  %v10436_v4 = vpop.eup %7037  ;;  %v2885_v47 = vmul.f32 %v2884_v24, %v9212_v58  ;;  %vm4533_vm15 = vcmp.eq.f32.partialorder %v4532_v21, 8.507059e+37  ;;  %2667 = vadd.xlane.f32.xlu0 %v10358_v33  ;;  %v12371_v36 = vld [vmem:[#allocation5_spill] sm:$0xff] }
 0x441   : > { %v3317_v16 = vadd.f32 %v10255_v37, %v3316_v12  ;;  %vm3319_vm2 = vweird.f32 %v10255_v37  ;;  %7043 = vrcp.f32 %v10412_v48  ;;  %vm10444_vm3 = vcmp.eq.f32.partialorder %v3322_v1, 8.507059e+37 }
 0x442   : > { %v10441_v10 = vpop.eup %7039  ;;  %v4536_v26 = vsel %vm4533_vm15, %v4535_v23, %v4531_v11  ;;  %v3329_v5 = vmul.f32 %v10422_v30, %v10354_v53  ;;  %7045 = vrsqrt.f32 %v9962_v54  ;;  %vm4114_vm6 = vcmp.eq.f32.partialorder %v10060_v56, inf  ;;  %vm10462_vm5 = vmor %vm3318_vm14, %vm3319_vm2 }
 0x443   : > { %v7042_v18 = vpop.eup %7041  ;;  %v4510_v41 = vsub.f32 1.0, %v4509_v17  ;;  %v3325_v25 = vor.u32 1.1754944e-38, %v3324_v3  ;;  %v4100_v0 = vmul.f32 %v10306_v29, %v4099_v22  ;;  %v4115_v19 = vsel %vm4114_vm6, %v10060_v56, %v4113_v2 }
 0x444   : > { %v2892_v12 = vmul.f32 %v10436_v4, %v10124_v39  ;;  %v4132_v7 = vmul.f32 %v7042_v18, %v10403_v6  ;;  %v4862_v59 = vpop.permute.xlu2 %4861  ;;  %v2887_v29 = vsel %vm2886_vm11, %v9212_v58, %v2885_v47  ;;  %v4117_v33 = vand.u32 2147483648, %v10060_v56 }
 0x445   : > { %6668 = vmatpush.xpose.msk.msrb.mxu2 %vm455_vm1, %v4862_v59  ;;  %v4537_v24 = vmul.f32 %v4536_v26, %v12371_v36  ;;  %v3321_v21 = vsel %vm10462_vm5, %v10255_v37, %v3317_v16  ;;  %vm4116_vm4 = vcmp.eq.f32.partialorder %v10060_v56, 0.0  ;;  %v4494_v38 = vmul.f32 %v10441_v10, %v10383_v45 }
 0x446   : > { %v4133_v40 = vmul.f32 %v7042_v18, %v4132_v7  ;;  %v3330_v1 = vsub.f32 1.0, %v3329_v5  ;;  %v4118_v11 = vsel %vm4116_vm4, %v4117_v33, %v4115_v19  ;;  %v4511_v17 = vmul.f32 %v10400_v57, %v4510_v41 }
 0x447   : > { %5095 = vrot.lane.b32.xlu2 %v4537_v24, %s7281_s23  ;;  %v3337_v3 = vand.u32 2147483647, %v10354_v53  ;;  %v3339_v22 = vand.u32 2147483648, %v10354_v53  ;;  %v10483_v2 = vpop.eup %7043  ;;  %vm2852_vm7 = vcmp.eq.f32.partialorder %v9241_v32, 0.0  ;;  %7047 = vrsqrt.f32 %v9231_v43 }
 0x448   : > { %v4101_v56 = vmul.f32 %v4100_v0, %v10006_v63  ;;  %v2893_v37 = vmul.f32 %v10436_v4, %v2892_v12  ;;  %v4134_v23 = vmul.f32 0.5, %v4133_v40  ;;  %6669 = vmatmul.msk.f32.vlgmr.msrb.gmra.mxu2 %vm455_vm1, %v10231_v44  ;;  %v10491_v47 = vpop.eup %7045  ;;  %v2890_v16 = vsel %vm2888_vm13, %v2889_v31, %v2887_v29 }
 0x449   : > { %6679 = vmatpush.xpose.msk.msra.mxu2 %vm455_vm1, %v4981_v51  ;;  %v4519_v26 = vand.u32 2147483648, %v10320_v42  ;;  %v10498_v5 = vsel %vm10444_vm3, %v3325_v25, %v3321_v21  ;;  %v10502_v41 = vmul.f32 %v10262_v9, %v10205_v52  ;;  %v10504_v0 = vmax.f32 %v4118_v11, 1e-12 }
 0x44a   : > { %v4135_v19 = vsub.f32 1.5, %v4134_v23  ;;  %v4495_v12 = vsub.f32 1.0, %v4494_v38  ;;  %v3331_v44 = vmul.f32 %v10422_v30, %v3330_v1  ;;  %vm4102_vm8 = vcmp.eq.f32.partialorder %v10006_v63, inf }
 0x44b   : > { %v4512_v58 = vadd.f32 %v10400_v57, %v4511_v17  ;;  %vm4514_vm9 = vweird.f32 %v10400_v57  ;;  %v4554_v31 = vmul.f32 %v10483_v2, %v10412_v48  ;;  %v4084_v62 = vmul.f32 %v10491_v47, %v9962_v54  ;;  %v4901_v17 = vpop.permute.xlu1 %4900 }
 0x44c   : > { %v4103_v25 = vsel %vm4102_vm8, %v10006_v63, %v4101_v56  ;;  %v2894_v7 = vmul.f32 0.5, %v2893_v37  ;;  %v4136_v59 = vmul.f32 %v7042_v18, %v4135_v19  ;;  %v4903_v60 = vpop.permute.xlu2 %4902  ;;  %v4105_v29 = vand.u32 2147483648, %v10006_v63 }
 0x44d   : > { %6671 = vmatpush.xpose.msk.msrb.mxu3 %vm455_vm1, %v4903_v60  ;;  %vm4513_vm10 = vweird.f32 %v10320_v42  ;;  %v4517_v33 = vand.u32 2147483647, %v10320_v42  ;;  %v4520_v51 = vor.u32 1.1754944e-38, %v4519_v26  ;;  %vm3334_vm11 = vweird.f32 %v10422_v30  ;;  %v10520_v24 = vpop.eup %7047 }
 0x44e   : > { %vm4104_vm12 = vcmp.eq.f32.partialorder %v10006_v63, 0.0  ;;  %7049 = vrcp.f32 %v10504_v0  ;;  %v4137_v18 = vmul.f32 %v4136_v59, %v10403_v6  ;;  %vm10527_vm13 = vmor %vm4513_vm10, %vm4514_vm9  ;;  %v4496_v40 = vmul.f32 %v10441_v10, %v4495_v12 }
 0x44f   : > { %v4106_v42 = vsel %vm4104_vm12, %v4105_v29, %v4103_v25  ;;  %vm4138_vm14 = vcmp.eq.f32.partialorder %v10403_v6, inf  ;;  %v4141_v38 = vand.u32 2147483648, %v10403_v6  ;;  %v4516_v63 = vsel %vm10527_vm13, %v10400_v57, %v4512_v58 }
 0x450   : > { %vm3333_vm15 = vweird.f32 %v10354_v53  ;;  %v4085_v1 = vmul.f32 %v10491_v47, %v4084_v62  ;;  %v2895_v11 = vsub.f32 1.5, %v2894_v7  ;;  %v4139_v56 = vsel %vm4138_vm14, %v10403_v6, %v4137_v18  ;;  %6670 = vmatmul.msk.f32.gmra.mxu2 %vm455_vm1, %v10387_v49 }
 0x451   : > { %vm4140_vm2 = vcmp.eq.f32.partialorder %v10403_v6, 0.0  ;;  %v2928_v37 = vmul.f32 %v10520_v24, %v9231_v43  ;;  %6672 = vmatpush.xpose.msk.msrb.mxu3 %vm455_vm1, %v4901_v17  ;;  %vm4518_vm3 = vcmp.eq.f32.partialorder %v4517_v33, 8.507059e+37  ;;  %v12374_v57 = vand.u32 2147483648, %v9241_v32  ;;  %vm10601_vm8 = vmor %vm3333_vm15, %vm3334_vm11 }
 0x452   : > { %v4142_v23 = vsel %vm4140_vm2, %v4141_v38, %v4139_v56  ;;  %v10551_v19 = vmax.f32 %v4106_v42, 1e-12  ;;  %v4521_v6 = vsel %vm4518_vm3, %v4520_v51, %v4516_v63  ;;  %v4555_v58 = vsub.f32 1.0, %v4554_v31  ;;  %v12375_v31 = vld [vmem:[#allocation20_spill] sm:$0xff]  ;;  %v12385_v38 = vld [vmem:[#allocation29_spill] sm:$0xff] }
 0x453   : > { %v2854_v26 = vsel %vm2852_vm7, %v12374_v57, %v10352_v50  ;;  %v10553_v12 = vmax.f32 %v4142_v23, 1e-12  ;;  %v4497_v49 = vadd.f32 %v10441_v10, %v4496_v40  ;;  %vm4499_vm6 = vweird.f32 %v10441_v10 }
 0x454   : > { %v3332_v62 = vadd.f32 %v10422_v30, %v3331_v44  ;;  %v3285_v25 = vsub.f32 1.0, %v10502_v41  ;;  %v10559_v7 = vpop.eup %7049  ;;  %v4086_v59 = vmul.f32 0.5, %v4085_v1  ;;  %v2896_v32 = vmul.f32 %v10436_v4, %v2895_v11  ;;  %6673 = vmatmul.msk.f32.vlgmr.msrb.gmra.mxu3 %vm455_vm1, %v10419_v13 }
 0x455   : > { %7051 = vrcp.f32 %v10553_v12  ;;  %v4504_v50 = vand.u32 2147483648, %v10383_v45  ;;  %v4522_v60 = vmul.f32 %v4521_v6, %v12375_v31  ;;  %vm4498_vm5 = vweird.f32 %v10383_v45  ;;  %v12382_v6 = vld [vmem:[#allocation8_spill] sm:$0xff] }
 0x456   : > { %v4502_v44 = vand.u32 2147483647, %v10383_v45  ;;  %v10569_v29 = vmax.f32 %v2854_v26, 1e-12  ;;  %v10571_v41 = vmax.f32 %v2890_v16, 1e-12  ;;  %7053 = vrcp.f32 %v10551_v19  ;;  %vm10576_vm4 = vmor %vm4498_vm5, %vm4499_vm6 }
 0x457   : > { %v4556_v13 = vmul.f32 %v10483_v2, %v4555_v58  ;;  %vm10583_vm7 = vcmp.eq.f32.partialorder %v3337_v3, 8.507059e+37  ;;  %v2929_v45 = vmul.f32 %v10520_v24, %v2928_v37  ;;  %5058 = vrot.lane.b32.xlu0 %v4522_v60, %s7281_s23  ;;  %v4501_v16 = vsel %vm10576_vm4, %v10441_v10, %v4497_v49 }
 0x458   : > { %v3327_v51 = vmul.f32 %v10498_v5, %v12335_v55  ;;  %v4599_v18 = vmul.f32 %v10559_v7, %v10504_v0  ;;  %v4087_v21 = vsub.f32 1.5, %v4086_v59  ;;  %v2897_v3 = vmul.f32 %v2896_v32, %v10124_v39  ;;  %v4979_v40 = vpop.permute.xlu2 %4978 }
 0x459   : > { %v4505_v42 = vor.u32 1.1754944e-38, %v4504_v50  ;;  %v3340_v10 = vor.u32 1.1754944e-38, %v3339_v22  ;;  %6680 = vmatpush.xpose.msk.msra.mxu2 %vm455_vm1, %v4979_v40  ;;  %vm4503_vm9 = vcmp.eq.f32.partialorder %v4502_v44, 8.507059e+37  ;;  %v3336_v5 = vsel %vm10601_vm8, %v10422_v30, %v3332_v62 }
 0x45a   : > { %v3286_v63 = vmul.f32 %v10262_v9, %v3285_v25  ;;  %7055 = vrcp.f32 %v10569_v29  ;;  %v4557_v17 = vadd.f32 %v10483_v2, %v4556_v13  ;;  %vm4559_vm10 = vweird.f32 %v10483_v2 }
 0x45b   : > { %v10613_v1 = vpop.eup %7051  ;;  %v4506_v11 = vsel %vm4503_vm9, %v4505_v42, %v4501_v16  ;;  %v4564_v53 = vand.u32 2147483648, %v10412_v48  ;;  %7057 = vrcp.f32 %v10571_v41  ;;  %v10619_v22 = vmul.f32 0.5, %v2929_v45 }
 0x45c   : > { %vm2898_vm11 = vcmp.eq.f32.partialorder %v10124_v39, inf  ;;  %v4600_v30 = vsub.f32 1.0, %v4599_v18  ;;  %v10622_v56 = vpop.eup %7053  ;;  %v4088_v37 = vmul.f32 %v10491_v47, %v4087_v21  ;;  %6674 = vmatmul.msk.f32.gmra.mxu3 %vm455_vm1, %v10394_v27  ;;  %6681 = vmatmul.msk.f32.vlgmr.msra.gmra.mxu2 %vm455_vm1, %v3327_v51  ;;  %vm4558_vm12 = vweird.f32 %v10412_v48 }
 0x45d   : > { %v2899_v23 = vsel %vm2898_vm11, %v10124_v39, %v2897_v3  ;;  %v4562_v57 = vand.u32 2147483647, %v10412_v48  ;;  %v2901_v26 = vand.u32 2147483648, %v10124_v39  ;;  %v4507_v58 = vmul.f32 %v4506_v11, %v12382_v6  ;;  %vm10635_vm13 = vmor %vm4558_vm12, %vm4559_vm10  ;;  %v10677_v11 = vpop.xlane.xlu0 %3796 }
 0x45e   : > { %v3341_v47 = vsel %vm10583_vm7, %v3340_v10, %v3336_v5  ;;  %v4629_v27 = vmul.f32 %v10613_v1, %v10553_v12  ;;  %vm2900_vm14 = vcmp.eq.f32.partialorder %v10124_v39, 0.0  ;;  %v4561_v48 = vsel %vm10635_vm13, %v10483_v2, %v4557_v17 }
 0x45f   : > { %v4565_v62 = vor.u32 1.1754944e-38, %v4564_v53  ;;  %v10648_v25 = vadd.f32 %v10262_v9, %v3286_v63  ;;  %v2902_v32 = vsel %vm2900_vm14, %v2901_v26, %v2899_v23  ;;  %5056 = vrot.lane.b32.xlu0 %v4507_v58, %s7281_s23  ;;  %v4601_v60 = vmul.f32 %v10559_v7, %v4600_v30 }
 0x460   : > { %v10650_v59 = vpop.eup %7055  ;;  %v4630_v50 = vsub.f32 1.0, %v4629_v27  ;;  %v4584_v44 = vmul.f32 %v10622_v56, %v10551_v19  ;;  %v4089_v39 = vmul.f32 %v4088_v37, %v9962_v54  ;;  %vm4563_vm15 = vcmp.eq.f32.partialorder %v4562_v57, 8.507059e+37  ;;  %v12389_v57 = vld [vmem:[#allocation54_spill] sm:$0xff] }
 0x461   : > { %v3342_v2 = vmul.f32 %v3341_v47, %v12300_v8  ;;  %v4639_v4 = vand.u32 2147483648, %v10553_v12  ;;  %v10659_v13 = vpop.eup %7057  ;;  %v4566_v33 = vsel %vm4563_vm15, %v4565_v62, %v4561_v48  ;;  %vm4634_vm2 = vweird.f32 %v10613_v1  ;;  %v10701_v47 = vpop.xlane.xlu1 %2664 }
 0x462   : > { %v4631_v45 = vmul.f32 %v10613_v1, %v4630_v50  ;;  %v4637_v16 = vand.u32 2147483647, %v10553_v12  ;;  %vm4090_vm3 = vcmp.eq.f32.partialorder %v9962_v54, inf  ;;  %v10665_v51 = vmax.f32 %v2902_v32, 1e-12 }
 0x463   : > { %vm4604_vm6 = vweird.f32 %v10559_v7  ;;  %v3299_v18 = vmul.f32 %v10650_v59, %v10569_v29  ;;  %vm4633_vm5 = vweird.f32 %v10553_v12  ;;  %v4602_v3 = vadd.f32 %v10559_v7, %v4601_v60 }
 0x464   : > { %v4632_v21 = vadd.f32 %v10613_v1, %v4631_v45  ;;  %v4585_v40 = vsub.f32 1.0, %v4584_v44  ;;  %v4091_v42 = vsel %vm4090_vm3, %v9962_v54, %v4089_v39  ;;  %v4567_v10 = vmul.f32 %v4566_v33, %v12385_v38  ;;  %6682 = vmatmul.msk.f32.gmra.mxu2 %vm455_vm1, %v3342_v2  ;;  %vm4635_vm4 = vmor %vm4633_vm5, %vm4634_vm2  ;;  %v12392_v33 = vld [vmem:[#allocation39_spill] sm:$0xff] }
 0x465   : > { %v4640_v5 = vor.u32 1.1754944e-38, %v4639_v4  ;;  %v4609_v63 = vand.u32 2147483648, %v10504_v0  ;;  %vm4638_vm7 = vcmp.eq.f32.partialorder %v4637_v16, 8.507059e+37  ;;  %vm4603_vm8 = vweird.f32 %v10504_v0 }
 0x466   : > { %v4636_v17 = vsel %vm4635_vm4, %v10613_v1, %v4632_v21  ;;  %v4607_v12 = vand.u32 2147483647, %v10504_v0  ;;  %vm4092_vm9 = vcmp.eq.f32.partialorder %v9962_v54, 0.0  ;;  %v4093_v53 = vand.u32 2147483648, %v9962_v54  ;;  %vm10686_vm10 = vmor %vm4603_vm8, %vm4604_vm6  ;;  %v12388_v1 = vld [vmem:[#allocation47_spill] sm:$0xff] }
 0x467   : > { %v4641_v30 = vsel %vm4638_vm7, %v4640_v5, %v4636_v17  ;;  %vm3289_vm11 = vweird.f32 %v10262_v9  ;;  %7059 = vrcp.f32 %v10665_v51  ;;  %5134 = vrot.lane.b32.xlu0 %v4567_v10, %s7281_s23  ;;  %v4606_v0 = vsel %vm10686_vm10, %v10559_v7, %v4602_v3 }
 0x468   : > { %v4642_v23 = vmul.f32 %v4641_v30, %v12388_v1  ;;  %v4586_v54 = vmul.f32 %v10622_v56, %v4585_v40  ;;  %7061 = vrsqrt.f32 %v12389_v57  ;;  %v4094_v26 = vsel %vm4092_vm9, %v4093_v53, %v4091_v42  ;;  %v4942_v4 = vpop.permute.xlu0 %4941 }
 0x469   : > { %v4610_v58 = vor.u32 1.1754944e-38, %v4609_v63  ;;  %v3344_v49 = vmul.f32 %v10659_v13, %v10571_v41  ;;  %7063 = vrsqrt.f32 %v10180_v61  ;;  %vm4608_vm12 = vcmp.eq.f32.partialorder %v4607_v12, 8.507059e+37  ;;  %6675 = vmatpush.xpose.msk.msra.mxu1 %vm455_vm1, %v4942_v4  ;;  %v4940_v53 = vpop.permute.xlu1 %4939 }
 0x46a   : > { %5214 = vrot.lane.b32.xlu1 %v4642_v23, %s7281_s23  ;;  %v3300_v27 = vsub.f32 1.0, %v3299_v18  ;;  %vm3288_vm13 = vweird.f32 %v10205_v52  ;;  %v3292_v7 = vand.u32 2147483647, %v10205_v52  ;;  %v3294_v62 = vand.u32 2147483648, %v10205_v52 }
 0x46b   : > { %v4611_v48 = vsel %vm4608_vm12, %v4610_v58, %v4606_v0  ;;  %v2931_v32 = vsub.f32 1.5, %v10619_v22  ;;  %v10709_v50 = vmax.f32 %v4094_v26, 1e-12  ;;  %vm10713_vm14 = vmor %vm3288_vm13, %vm3289_vm11  ;;  %v4587_v44 = vadd.f32 %v10622_v56, %v4586_v54 }
 0x46c   : > { %vm4589_vm15 = vweird.f32 %v10622_v56  ;;  %v3291_v39 = vsel %vm10713_vm14, %v10262_v9, %v10648_v25  ;;  %v4594_v52 = vand.u32 2147483648, %v10551_v19  ;;  %v3345_v22 = vsub.f32 1.0, %v3344_v49 }
 0x46d   : > { %v10724_v2 = vpop.eup %7059  ;;  %v4612_v45 = vmul.f32 %v4611_v48, %v12392_v33  ;;  %vm4588_vm2 = vweird.f32 %v10551_v19  ;;  %v4592_v16 = vand.u32 2147483647, %v10551_v19  ;;  %v3301_v18 = vmul.f32 %v10650_v59, %v3300_v27  ;;  %v12395_v19 = vld [vmem:[#allocation53_spill] sm:$0xff]  ;;  %6676 = vmatpush.xpose.msk.msra.mxu1 %vm455_vm1, %v4940_v53 }
 0x46e   : > { %v10730_v21 = vpop.eup %7061  ;;  %vm3293_vm3 = vcmp.eq.f32.partialorder %v3292_v7, 8.507059e+37  ;;  %v3295_v9 = vor.u32 1.1754944e-38, %v3294_v62  ;;  %vm10733_vm6 = vmor %vm4588_vm2, %vm4589_vm15  ;;  %v2932_v40 = vmul.f32 %v10520_v24, %v2931_v32  ;;  %7065 = vrcp.f32 %v10709_v50  ;;  %v12398_v62 = vld [vmem:[#allocation35_spill] sm:$0xff] }
 0x46f   : > { %v10737_v3 = vpop.eup %7063  ;;  %5175 = vrot.lane.b32.xlu0 %v4612_v45, %s7281_s23  ;;  %v3801_v42 = vsel %vm455_vm1, %v12395_v19, 0.0  ;;  %v4591_v10 = vsel %vm10733_vm6, %v10622_v56, %v4587_v44  ;;  %v4595_v63 = vor.u32 1.1754944e-38, %v4594_v52  ;;  %v3346_v17 = vmul.f32 %v10659_v13, %v3345_v22  ;;  %v12399_v22 = vld [vmem:[#allocation48_spill] sm:$0xff] }
 0x470   : > { %3802 = vadd.xlane.f32.xlu2 %v3801_v42  ;;  %v3296_v5 = vsel %vm3293_vm3, %v3295_v9, %v3291_v39  ;;  %v3359_v12 = vmul.f32 %v10724_v2, %v10665_v51  ;;  %v2940_v24 = vmul.f32 %v10730_v21, %v12389_v57  ;;  %vm4593_vm5 = vcmp.eq.f32.partialorder %v4592_v16, 8.507059e+37 }
 0x471   : > { %v3302_v30 = vadd.f32 %v10650_v59, %v3301_v18  ;;  %vm3304_vm4 = vweird.f32 %v10650_v59  ;;  %v4156_v56 = vmul.f32 %v10737_v3, %v10180_v61  ;;  %v4596_v37 = vsel %vm4593_vm5, %v4595_v63, %v4591_v10 }
 0x472   : > { %v3309_v23 = vand.u32 2147483648, %v10569_v29  ;;  %v3297_v0 = vmul.f32 %v3296_v5, %v12308_v35  ;;  %vm3303_vm7 = vweird.f32 %v10569_v29  ;;  %v3307_v54 = vand.u32 2147483647, %v10569_v29 }
 0x473   : > { %v2933_v26 = vmul.f32 %v2932_v40, %v9231_v43  ;;  %vm10762_vm8 = vmor %vm3303_vm7, %vm3304_vm4  ;;  %v3347_v49 = vadd.f32 %v10659_v13, %v3346_v17  ;;  %vm3349_vm9 = vweird.f32 %v10659_v13  ;;  %v3360_v27 = vsub.f32 1.0, %v3359_v12  ;;  %v5018_v17 = vpop.permute.xlu1 %5017 }
 0x474   : > { %v10768_v48 = vpop.eup %7065  ;;  %v2941_v7 = vmul.f32 %v10730_v21, %v2940_v24  ;;  %6677 = vmatmul.msk.f32.vlgmr.msra.gmra.mxu1 %vm455_vm1, %v3297_v0  ;;  %v4597_v32 = vmul.f32 %v4596_v37, %v12398_v62  ;;  %v3306_v29 = vsel %vm10762_vm8, %v10650_v59, %v3302_v30  ;;  %v3354_v60 = vand.u32 2147483648, %v10571_v41 }
 0x475   : > { %v4157_v44 = vmul.f32 %v10737_v3, %v4156_v56  ;;  %v3310_v39 = vor.u32 1.1754944e-38, %v3309_v23  ;;  %vm3348_vm10 = vweird.f32 %v10571_v41  ;;  %v3352_v52 = vand.u32 2147483647, %v10571_v41 }
 0x476   : > { %vm2934_vm11 = vcmp.eq.f32.partialorder %v9231_v43, inf  ;;  %v2672_v4 = vsel %vm455_vm1, %v12399_v22, 0.0  ;;  %vm3308_vm12 = vcmp.eq.f32.partialorder %v3307_v54, 8.507059e+37  ;;  %vm10786_vm13 = vmor %vm3348_vm10, %vm3349_vm9  ;;  %v3361_v18 = vmul.f32 %v10724_v2, %v3360_v27 }
 0x477   : > { %5173 = vrot.lane.b32.xlu0 %v4597_v32, %s7281_s23  ;;  %v3311_v45 = vsel %vm3308_vm12, %v3310_v39, %v3306_v29  ;;  %v3351_v41 = vsel %vm10786_vm13, %v10659_v13, %v3347_v49  ;;  %v4569_v9 = vmul.f32 %v10768_v48, %v10709_v50  ;;  %v2935_v25 = vsel %vm2934_vm11, %v9231_v43, %v2933_v26  ;;  %v12403_v29 = vld [vmem:[#allocation28_spill] sm:$0xff] }
 0x478   : > { %2673 = vadd.xlane.f32.xlu2 %v2672_v4  ;;  %v5020_v16 = vpop.permute.xlu0 %5019  ;;  %v2942_v40 = vmul.f32 0.5, %v2941_v7  ;;  %v3355_v19 = vor.u32 1.1754944e-38, %v3354_v60  ;;  %v2937_v42 = vand.u32 2147483648, %v9231_v43  ;;  %v4158_v10 = vmul.f32 0.5, %v4157_v44  ;;  %v12402_v7 = vld [vmem:[#allocation17_spill] sm:$0xff] }
 0x479   : > { %6683 = vmatpush.xpose.msk.msra.mxu3 %vm455_vm1, %v5020_v16  ;;  %vm3353_vm14 = vcmp.eq.f32.partialorder %v3352_v52, 8.507059e+37  ;;  %vm2936_vm15 = vcmp.eq.f32.partialorder %v9231_v43, 0.0  ;;  %v3312_v5 = vmul.f32 %v3311_v45, %v12333_v28  ;;  %v3362_v12 = vadd.f32 %v10724_v2, %v3361_v18 }
 0x47a   : > { %v3356_v13 = vsel %vm3353_vm14, %v3355_v19, %v3351_v41  ;;  %v2938_v63 = vsel %vm2936_vm15, %v2937_v42, %v2935_v25  ;;  %vm3364_vm2 = vweird.f32 %v10724_v2  ;;  %v4570_v24 = vsub.f32 1.0, %v4569_v9  ;;  %v10840_v4 = vpop.f32.mrf.mxu2 }
 0x47b   : > { %v2943_v53 = vsub.f32 1.5, %v2942_v40  ;;  %v3369_v30 = vand.u32 2147483648, %v10665_v51  ;;  %v4159_v56 = vsub.f32 1.5, %v4158_v10  ;;  %v3357_v43 = vmul.f32 %v3356_v13, %v12315_v34  ;;  %v12406_v10 = vld [vmem:[#allocation37_spill] sm:$0xff] }
 0x47c   : > { %6678 = vmatmul.msk.f32.gmra.mxu1 %vm455_vm1, %v3312_v5  ;;  %vm3363_vm3 = vweird.f32 %v10665_v51  ;;  %v3367_v37 = vand.u32 2147483647, %v10665_v51  ;;  %v10809_v23 = vmax.f32 %v2938_v63, 1e-12  ;;  %v4571_v54 = vmul.f32 %v10768_v48, %v4570_v24  ;;  %v12407_v5 = vld [vmem:[#allocation51_spill] sm:$0xff] }
 0x47d   : > { %6684 = vmatpush.xpose.msk.msra.mxu3 %vm455_vm1, %v5018_v17  ;;  %vm3365_vm6 = vmor %vm3363_vm3, %vm3364_vm2  ;;  %v2944_v26 = vmul.f32 %v10730_v21, %v2943_v53  ;;  %v3370_v58 = vor.u32 1.1754944e-38, %v3369_v30  ;;  %v4160_v49 = vmul.f32 %v10737_v3, %v4159_v56  ;;  %vm4574_vm4 = vweird.f32 %v10768_v48  ;;  %v12408_v53 = vld [vmem:[#allocation45_spill] sm:$0xff] }
 0x47e   : > { %v3366_v0 = vsel %vm3365_vm6, %v10724_v2, %v3362_v12  ;;  %vm3368_vm5 = vcmp.eq.f32.partialorder %v3367_v37, 8.507059e+37  ;;  %7067 = vrcp.f32 %v10809_v23  ;;  %v4572_v51 = vadd.f32 %v10768_v48, %v4571_v54 }
 0x47f   : > { %v3371_v27 = vsel %vm3368_vm5, %v3370_v58, %v3366_v0  ;;  %7069 = vrsqrt.f32 %v12402_v7  ;;  %v2945_v32 = vmul.f32 %v2944_v26, %v12389_v57  ;;  %v4579_v2 = vand.u32 2147483648, %v10709_v50 }
 0x480   : > { %6685 = vmatmul.msk.f32.vlgmr.msra.gmra.mxu3 %vm455_vm1, %v3357_v43  ;;  %7071 = vrsqrt.f32 %v10347_v14  ;;  %v4161_v21 = vmul.f32 %v4160_v49, %v10180_v61  ;;  %v3372_v3 = vmul.f32 %v3371_v27, %v12403_v29  ;;  %vm4573_vm7 = vweird.f32 %v10709_v50 }
 0x481   : > { %v4577_v60 = vand.u32 2147483647, %v10709_v50  ;;  %vm10827_vm8 = vmor %vm4573_vm7, %vm4574_vm4  ;;  %vm2946_vm9 = vcmp.eq.f32.partialorder %v12389_v57, inf  ;;  %vm4162_vm10 = vcmp.eq.f32.partialorder %v10180_v61, inf  ;;  %v4580_v50 = vor.u32 1.1754944e-38, %v4579_v2 }
 0x482   : > { %v4576_v39 = vsel %vm10827_vm8, %v10768_v48, %v4572_v51  ;;  %v2947_v22 = vsel %vm2946_vm9, %v12389_v57, %v2945_v32  ;;  %v2949_v45 = vand.u32 2147483648, %v12389_v57  ;;  %v4163_v16 = vsel %vm4162_vm10, %v10180_v61, %v4161_v21  ;;  %v4778_v43 = vpop.f32.mrf.mxu2 }
 0x483   : > { %vm4578_vm11 = vcmp.eq.f32.partialorder %v4577_v60, 8.507059e+37  ;;  %vm2948_vm12 = vcmp.eq.f32.partialorder %v12389_v57, 0.0  ;;  %v4165_v48 = vand.u32 2147483648, %v10180_v61  ;;  %vm4164_vm13 = vcmp.eq.f32.partialorder %v10180_v61, 0.0 }
 0x484   : > { %v10836_v52 = vpop.eup %7067  ;;  %v4581_v9 = vsel %vm4578_vm11, %v4580_v50, %v4576_v39  ;;  %v2950_v25 = vsel %vm2948_vm12, %v2949_v45, %v2947_v22  ;;  %7073 = vrsqrt.f32 %v10677_v11  ;;  %v2684_v30 = vsel %vm455_vm1, %v12408_v53, 0.0 }
 0x485   : > { %v7070_v59 = vpop.eup %7069  ;;  %v4166_v40 = vsel %vm4164_vm13, %v4165_v48, %v4163_v16  ;;  %v3404_v19 = vmul.f32 %v10836_v52, %v10809_v23  ;;  %7075 = vrsqrt.f32 %v12406_v10  ;;  %v4582_v13 = vmul.f32 %v4581_v9, %v12407_v5 }
 0x486   : > { %v7072_v41 = vpop.eup %7071  ;;  %v2904_v42 = vmul.f32 %v7070_v59, %v12402_v7  ;;  %v10855_v63 = vmax.f32 %v2950_v25, 1e-12  ;;  %v10857_v61 = vmax.f32 %v4166_v40, 1e-12  ;;  %v10864_v0 = vstv %s361_s19 }
 0x487   : > { %v4120_v57 = vmul.f32 %v7072_v41, %v10347_v14  ;;  %v3405_v17 = vsub.f32 1.0, %v3404_v19  ;;  %v10869_v27 = vmul.f32 %v10864_v0, %v4778_v43  ;;  %vm5360_vm14 = vcmask 130048  }
 0x488   : > { %6686 = vmatmul.msk.f32.gmra.mxu3 %vm455_vm1, %v3372_v3  ;;  %v5098_v18 = vpop.permute.xlu0 %5097  ;;  %v2905_v12 = vmul.f32 %v7070_v59, %v2904_v42  ;;  %7077 = vrcp.f32 %v10855_v63  ;;  %vm3409_vm15 = vweird.f32 %v10836_v52  ;;  %v3414_v45 = vand.u32 2147483648, %v10809_v23 }
 0x489   : > { %6691 = vmatpush.xpose.msk.msrb.mxu2 %vm455_vm1, %v5098_v18  ;;  %v4121_v24 = vmul.f32 %v7072_v41, %v4120_v57  ;;  %7079 = vrcp.f32 %v10857_v61  ;;  %v3406_v54 = vmul.f32 %v10836_v52, %v3405_v17  ;;  %v5370_v39 = vsel %vm5360_vm14, %v10869_v27, -inf }
 0x48a   : > { %v7074_v56 = vpop.eup %7073  ;;  %v2906_v26 = vmul.f32 0.5, %v2905_v12  ;;  %vm3408_vm2 = vweird.f32 %v10809_v23  ;;  %v3412_v16 = vand.u32 2147483647, %v10809_v23  ;;  %7081 = vrsqrt.f32 %v10701_v47 }
 0x48b   : > { %v7076_v37 = vpop.eup %7075  ;;  %v4122_v58 = vmul.f32 0.5, %v4121_v24  ;;  %v4144_v49 = vmul.f32 %v7074_v56, %v10677_v11  ;;  %v3407_v2 = vadd.f32 %v10836_v52, %v3406_v54  ;;  %vm3410_vm3 = vmor %vm3408_vm2, %vm3409_vm15  ;;  %v3415_v57 = vor.u32 1.1754944e-38, %v3414_v45 }
 0x48c   : > { %v2916_v51 = vmul.f32 %v7076_v37, %v12406_v10  ;;  %v2907_v3 = vsub.f32 1.5, %v2906_v26  ;;  %vm3413_vm6 = vcmp.eq.f32.partialorder %v3412_v16, 8.507059e+37  ;;  %vm2910_vm5 = vcmp.eq.f32.partialorder %v12402_v7, inf }
 0x48d   : > { %v4123_v60 = vsub.f32 1.5, %v4122_v58  ;;  %v4145_v44 = vmul.f32 %v7074_v56, %v4144_v49  ;;  %v3411_v19 = vsel %vm3410_vm3, %v10836_v52, %v3407_v2  ;;  %v3427_v58 = vand.u32 2147483647, %v10855_v63 }
 0x48e   : > { %v10872_v32 = vpop.eup %7077  ;;  %v2917_v50 = vmul.f32 %v7076_v37, %v2916_v51  ;;  %v2908_v9 = vmul.f32 %v7070_v59, %v2907_v3  ;;  %v3416_v12 = vsel %vm3413_vm6, %v3415_v57, %v3411_v19  ;;  %vm4126_vm4 = vcmp.eq.f32.partialorder %v10347_v14, inf }
 0x48f   : > { %v10876_v21 = vpop.eup %7079  ;;  %v3419_v48 = vmul.f32 %v10872_v32, %v10855_v63  ;;  %v4124_v25 = vmul.f32 %v7072_v41, %v4123_v60  ;;  %v4146_v40 = vmul.f32 0.5, %v4145_v44  ;;  %v3417_v54 = vmul.f32 %v3416_v12, %v12371_v36 }
 0x490   : > { %5136 = vrot.lane.b32.xlu2 %v4582_v13, %s7281_s23  ;;  %v4659_v18 = vmul.f32 %v10876_v21, %v10857_v61  ;;  %v2918_v42 = vmul.f32 0.5, %v2917_v50  ;;  %v12409_v13 = vld [vmem:[#allocation50_spill] sm:$0xff]  ;;  %v2909_v53 = vmul.f32 %v2908_v9, %v12402_v7  ;;  %v10897_v41 = vpop.eup %7081  ;;  %vm3423_vm7 = vweird.f32 %v10855_v63 }
 0x491   : > { %v2681_v17 = vsel %vm455_vm1, %v12409_v13, 0.0  ;;  %v3420_v23 = vsub.f32 1.0, %v3419_v48  ;;  %v4147_v43 = vsub.f32 1.5, %v4146_v40  ;;  %v2976_v2 = vmul.f32 %v10897_v41, %v10701_v47 }
 0x492   : > { %v4660_v24 = vsub.f32 1.0, %v4659_v18  ;;  %v2919_v52 = vsub.f32 1.5, %v2918_v42  ;;  %v2911_v51 = vsel %vm2910_vm5, %v12402_v7, %v2909_v53  ;;  %v2913_v44 = vand.u32 2147483648, %v12402_v7  ;;  %v12416_v53 = vld [vmem:[#allocation30_spill] sm:$0xff] }
 0x493   : > { %v3421_v26 = vmul.f32 %v10872_v32, %v3420_v23  ;;  %v4148_v60 = vmul.f32 %v7074_v56, %v4147_v43  ;;  %v4129_v50 = vand.u32 2147483648, %v10347_v14  ;;  %v3429_v45 = vand.u32 2147483648, %v10855_v63 }
 0x494   : > { %2685 = vadd.xlane.f32.xlu1 %v2684_v30  ;;  %v4125_v30 = vmul.f32 %v4124_v25, %v10347_v14  ;;  %v4661_v49 = vmul.f32 %v10876_v21, %v4660_v24  ;;  %vm2912_vm8 = vcmp.eq.f32.partialorder %v12402_v7, 0.0  ;;  %vm4128_vm9 = vcmp.eq.f32.partialorder %v10347_v14, 0.0 }
 0x495   : > { %v3422_v16 = vadd.f32 %v10872_v32, %v3421_v26  ;;  %vm3424_vm10 = vweird.f32 %v10872_v32  ;;  %vm10918_vm11 = vcmp.eq.f32.partialorder %v3427_v58, 8.507059e+37  ;;  %v2914_v18 = vsel %vm2912_vm8, %v2913_v44, %v2911_v51 }
 0x496   : > { %v4127_v3 = vsel %vm4126_vm4, %v10347_v14, %v4125_v30  ;;  %vm4664_vm12 = vweird.f32 %v10876_v21  ;;  %v2977_v25 = vmul.f32 %v10897_v41, %v2976_v2  ;;  %v4149_v7 = vmul.f32 %v4148_v60, %v10677_v11  ;;  %vm10936_vm15 = vmor %vm3423_vm7, %vm3424_vm10 }
 0x497   : > { %v4130_v9 = vsel %vm4128_vm9, %v4129_v50, %v4127_v3  ;;  %v4669_v19 = vand.u32 2147483648, %v10857_v61  ;;  %vm4663_vm13 = vweird.f32 %v10857_v61  ;;  %v4667_v57 = vand.u32 2147483647, %v10857_v61 }
 0x498   : > { %vm2922_vm2 = vcmp.eq.f32.partialorder %v12406_v10, inf  ;;  %v10941_v23 = vmax.f32 %v4130_v9, 1e-12  ;;  %vm10945_vm3 = vmor %vm4663_vm13, %vm4664_vm12  ;;  %v3426_v63 = vsel %vm10936_vm15, %v10872_v32, %v3422_v16  ;;  %v10952_v61 = vmax.f32 %v2914_v18, 1e-12  ;;  %v12418_v9 = vld [vmem:[#allocation46_spill] sm:$0xff] }
 0x499   : > { %vm4150_vm6 = vcmp.eq.f32.partialorder %v10677_v11, inf  ;;  %v2978_v43 = vmul.f32 0.5, %v2977_v25  ;;  %v4670_v58 = vor.u32 1.1754944e-38, %v4669_v19  ;;  %v2925_v32 = vand.u32 2147483648, %v12406_v10 }
 0x49a   : > { %v10880_v22 = vpop.xlane.xlu2 %2661  ;;  %v4153_v51 = vand.u32 2147483648, %v10677_v11  ;;  %vm4668_vm5 = vcmp.eq.f32.partialorder %v4667_v57, 8.507059e+37  ;;  %vm4152_vm4 = vcmp.eq.f32.partialorder %v10677_v11, 0.0  ;;  %vm2924_vm7 = vcmp.eq.f32.partialorder %v12406_v10, 0.0 }
 0x49b   : > { %v2979_v44 = vsub.f32 1.5, %v2978_v43  ;;  %vm2982_vm10 = vcmp.eq.f32.partialorder %v10701_v47, inf  ;;  %vm3378_vm12 = vweird.f32 %v10952_v61  ;;  %vm4618_vm15 = vweird.f32 %v10941_v23 }
 0x49c   : > { %5371 = vmax.xlane.f32.xlu1 %v5370_v39  ;;  %v2920_v39 = vmul.f32 %v7076_v37, %v2919_v52  ;;  %v4662_v37 = vadd.f32 %v10876_v21, %v4661_v49  ;;  %v4151_v52 = vsel %vm4150_vm6, %v10677_v11, %v4149_v7 }
 0x49d   : > { %v4154_v3 = vsel %vm4152_vm4, %v4153_v51, %v4151_v52  ;;  %v2985_v51 = vand.u32 2147483648, %v10701_v47 }
 0x49e   : > { %v2921_v42 = vmul.f32 %v2920_v39, %v12406_v10  ;;  %v4666_v30 = vsel %vm10945_vm3, %v10876_v21, %v4662_v37  ;;  %v10973_v18 = vmax.f32 %v4154_v3, 1e-12 }
 0x49f   : > { %v4671_v21 = vsel %vm4668_vm5, %v4670_v58, %v4666_v30 }
 0x4a0   : > { %v2923_v49 = vsel %vm2922_vm2, %v12406_v10, %v2921_v42 }
 0x4a1   : > { %2682 = vadd.xlane.f32.xlu0 %v2681_v17  ;;  %v3430_v17 = vor.u32 1.1754944e-38, %v3429_v45  ;;  %v2926_v60 = vsel %vm2924_vm7, %v2925_v32, %v2923_v49  ;;  %v12417_v45 = vld [vmem:[#allocation7_spill] sm:$0xff] }
 0x4a2   : > { %v10895_v59 = vpop.xlane.xlu2 %3805  ;;  %v4672_v16 = vmul.f32 %v4671_v21, %v12417_v45  ;;  %v10977_v10 = vmax.f32 %v2926_v60, 1e-12 }
 0x4a3   : > { %7083 = vrsqrt.f32 %v10895_v59  ;;  %vm4186_vm8 = vcmp.eq.f32.partialorder %v10895_v59, inf  ;;  %vm4188_vm9 = vcmp.eq.f32.partialorder %v10895_v59, 0.0 }
 0x4a4   : > { %7085 = vrsqrt.f32 %v12416_v53 }
 0x4a5   : > { %7087 = vrcp.f32 %v10941_v23 }
 0x4a6   : > { %7089 = vrcp.f32 %v10952_v61 }
 0x4a7   : > { %7091 = vrsqrt.f32 %v10880_v22 }
 0x4a9   : > { %v7084_v56 = vpop.eup %7083 }
 0x4aa   : > { %v4180_v14 = vmul.f32 %v7084_v56, %v10895_v59  ;;  %v5096_v40 = vpop.permute.xlu2 %5095  ;;  %v10970_v50 = vpop.eup %7085 }
 0x4ab   : > { %6692 = vmatpush.xpose.msk.msrb.mxu2 %vm455_vm1, %v5096_v40  ;;  %v10981_v48 = vpop.eup %7087  ;;  %v2952_v25 = vmul.f32 %v10970_v50, %v12416_v53  ;;  %v4189_v40 = vand.u32 2147483648, %v10895_v59 }
 0x4ac   : > { %v4181_v12 = vmul.f32 %v7084_v56, %v4180_v14  ;;  %v10993_v19 = vpop.eup %7089  ;;  %v4614_v13 = vmul.f32 %v10981_v48, %v10941_v23  ;;  %vm4619_vm13 = vweird.f32 %v10981_v48 }
 0x4ad   : > { %v3374_v24 = vmul.f32 %v10993_v19, %v10952_v61  ;;  %vm3379_vm2 = vweird.f32 %v10993_v19  ;;  %vm11050_vm3 = vmor %vm4618_vm15, %vm4619_vm13  ;;  %vm2960_vm13 = vcmp.eq.f32.partialorder %v12416_v53, 0.0 }
 0x4ae   : > { %v4182_v26 = vmul.f32 0.5, %v4181_v12  ;;  %6693 = vmatmul.msk.f32.vlgmr.msrb.gmra.mxu2 %vm455_vm1, %v3417_v54  ;;  %v3431_v54 = vsel %vm10918_vm11, %v3430_v17, %v3426_v63  ;;  %v2953_v12 = vmul.f32 %v10970_v50, %v2952_v25  ;;  %v11006_v63 = vpop.eup %7091  ;;  %v4615_v43 = vsub.f32 1.0, %v4614_v13  ;;  %vm11072_vm5 = vmor %vm3378_vm12, %vm3379_vm2 }
 0x4af   : > { %v3432_v37 = vmul.f32 %v3431_v54, %v12418_v9  ;;  %vm2984_vm11 = vcmp.eq.f32.partialorder %v10701_v47, 0.0  ;;  %v2964_v21 = vmul.f32 %v11006_v63, %v10880_v22 }
 0x4b0   : > { %v4183_v2 = vsub.f32 1.5, %v4182_v26  ;;  %v2954_v58 = vmul.f32 0.5, %v2953_v12  ;;  %v4616_v60 = vmul.f32 %v10981_v48, %v4615_v43 }
 0x4b1   : > { %v2965_v25 = vmul.f32 %v11006_v63, %v2964_v21  ;;  %v11058_v21 = vpop.xlane.xlu1 %2670 }
 0x4b2   : > { %v4184_v39 = vmul.f32 %v7084_v56, %v4183_v2  ;;  %v2980_v56 = vmul.f32 %v10897_v41, %v2979_v44  ;;  %v12419_v41 = vld [vmem:[#allocation43_spill] sm:$0xff]  ;;  %v3375_v2 = vsub.f32 1.0, %v3374_v24  ;;  %v4624_v24 = vand.u32 2147483648, %v10941_v23 }
 0x4b3   : > { %v10988_v14 = vpop.xlane.xlu0 %2667  ;;  %v2675_v42 = vsel %vm455_vm1, %v12419_v41, 0.0  ;;  %v4617_v41 = vadd.f32 %v10981_v48, %v4616_v60 }
 0x4b4   : > { %v4185_v11 = vmul.f32 %v4184_v39, %v10895_v59  ;;  %7093 = vrsqrt.f32 %v10988_v14  ;;  %v2981_v17 = vmul.f32 %v2980_v56, %v10701_v47  ;;  %v2955_v39 = vsub.f32 1.5, %v2954_v58 }
 0x4b5   : > { %5253 = vrot.lane.b32.xlu0 %v4672_v16, %s7281_s23  ;;  %7095 = vrcp.f32 %v10973_v18  ;;  %vm2996_vm15 = vcmp.eq.f32.partialorder %v10988_v14, 0.0 }
 0x4b6   : > { %v4187_v7 = vsel %vm4186_vm8, %v10895_v59, %v4185_v11  ;;  %6694 = vmatmul.msk.f32.gmra.mxu2 %vm455_vm1, %v3432_v37  ;;  %7097 = vrcp.f32 %v10977_v10  ;;  %v2983_v26 = vsel %vm2982_vm10, %v10701_v47, %v2981_v17  ;;  %v4814_v37 = vpop.f32.mrf.mxu3  ;;  %v3376_v47 = vmul.f32 %v10993_v19, %v3375_v2 }
 0x4b7   : > { %v4190_v57 = vsel %vm4188_vm9, %v4189_v40, %v4187_v7  ;;  %v2986_v54 = vsel %vm2984_vm11, %v2985_v51, %v2983_v26  ;;  %v3382_v40 = vand.u32 2147483647, %v10952_v61  ;;  %v11039_v17 = vmul.f32 %v10864_v0, %v4814_v37 }
 0x4b8   : > { %v11008_v59 = vmax.f32 %v4190_v57, 1e-12  ;;  %v11029_v56 = vmax.f32 %v2986_v54, 1e-12  ;;  %v2956_v12 = vmul.f32 %v10970_v50, %v2955_v39  ;;  %v4622_v26 = vand.u32 2147483647, %v10941_v23 }
 0x4b9   : > { %2676 = vadd.xlane.f32.xlu2 %v2675_v42  ;;  %v3384_v42 = vand.u32 2147483648, %v10952_v61  ;;  %v3377_v58 = vadd.f32 %v10993_v19, %v3376_v47  ;;  %vm11054_vm6 = vcmp.eq.f32.partialorder %v3382_v40, 8.507059e+37  ;;  %v4625_v39 = vor.u32 1.1754944e-38, %v4624_v24 }
 0x4ba   : > { %v7094_v30 = vpop.eup %7093  ;;  %7099 = vrcp.f32 %v11008_v59  ;;  %vm4623_vm7 = vcmp.eq.f32.partialorder %v4622_v26, 8.507059e+37  ;;  %v3399_v61 = vand.u32 2147483648, %v10977_v10  ;;  %vm2958_vm8 = vcmp.eq.f32.partialorder %v12416_v53, inf }
 0x4bb   : > { %v11011_v52 = vpop.eup %7095  ;;  %v2988_v49 = vmul.f32 %v7094_v30, %v10988_v14  ;;  %7101 = vrcp.f32 %v11029_v56  ;;  %v3385_v54 = vor.u32 1.1754944e-38, %v3384_v42  ;;  %v3381_v47 = vsel %vm11072_vm5, %v10993_v19, %v3377_v58 }
 0x4bc   : > { %v11015_v32 = vpop.eup %7097  ;;  %v4644_v44 = vmul.f32 %v11011_v52, %v10973_v18  ;;  %vm4649_vm9 = vweird.f32 %v11011_v52  ;;  %v4654_v26 = vand.u32 2147483648, %v10973_v18  ;;  %vm2994_vm10 = vcmp.eq.f32.partialorder %v10988_v14, inf }
 0x4bd   : > { %v2989_v3 = vmul.f32 %v7094_v30, %v2988_v49  ;;  %v3389_v11 = vmul.f32 %v11015_v32, %v10977_v10  ;;  %v2966_v49 = vmul.f32 0.5, %v2965_v25  ;;  %vm3394_vm4 = vweird.f32 %v11015_v32 }
 0x4be   : > { %v4645_v57 = vsub.f32 1.0, %v4644_v44  ;;  %v2957_v44 = vmul.f32 %v2956_v12, %v12416_v53  ;;  %v3397_v25 = vand.u32 2147483647, %v10977_v10  ;;  %vm4648_vm11 = vweird.f32 %v10973_v18 }
 0x4bf   : > { %v2990_v16 = vmul.f32 0.5, %v2989_v3  ;;  %v3390_v43 = vsub.f32 1.0, %v3389_v11  ;;  %v4621_v3 = vsel %vm11050_vm3, %v10981_v48, %v4617_v41  ;;  %v11078_v11 = vpop.f32.mrf.mxu1  ;;  %v4652_v2 = vand.u32 2147483647, %v10973_v18  ;;  %vm11110_vm12 = vmor %vm4648_vm11, %vm4649_vm9 }
 0x4c0   : > { %v11036_v13 = vpop.eup %7099  ;;  %v4626_v42 = vsel %vm4623_vm7, %v4625_v39, %v4621_v3  ;;  %v2959_v19 = vsel %vm2958_vm8, %v12416_v53, %v2957_v44  ;;  %v2997_v39 = vand.u32 2147483648, %v10988_v14  ;;  %vm3393_vm3 = vweird.f32 %v10977_v10 }
 0x4c1   : > { %v2991_v7 = vsub.f32 1.5, %v2990_v16  ;;  %v4689_v60 = vmul.f32 %v11036_v13, %v11008_v59  ;;  %v3391_v48 = vmul.f32 %v11015_v32, %v3390_v43  ;;  %v11092_v24 = vpop.eup %7101  ;;  %v4655_v16 = vor.u32 1.1754944e-38, %v4654_v26 }
 0x4c2   : > { %vm4653_vm2 = vcmp.eq.f32.partialorder %v4652_v2, 8.507059e+37  ;;  %vm11136_vm5 = vcmp.eq.f32.partialorder %v3397_v25, 8.507059e+37  ;;  %v5373_v25 = vsel %vm5360_vm14, %v11039_v17, -inf  ;;  %vm2970_vm7 = vcmp.eq.f32.partialorder %v10880_v22, inf }
 0x4c3   : > { %v2992_v51 = vmul.f32 %v7094_v30, %v2991_v7  ;;  %v4646_v30 = vmul.f32 %v11011_v52, %v4645_v57  ;;  %v2967_v7 = vsub.f32 1.5, %v2966_v49  ;;  %v4690_v12 = vsub.f32 1.0, %v4689_v60  ;;  %v12426_v49 = vld [vmem:[#allocation52_spill] sm:$0xff] }
 0x4c4   : > { %v3392_v58 = vadd.f32 %v11015_v32, %v3391_v48  ;;  %v3386_v60 = vsel %vm11054_vm6, %v3385_v54, %v3381_v47  ;;  %v11125_v48 = vpop.xlane.xlu1 %2679  ;;  %vm11132_vm6 = vmor %vm3393_vm3, %vm3394_vm4  ;;  %vm4694_vm4 = vweird.f32 %v11036_v13  ;;  %vm4693_vm8 = vweird.f32 %v11008_v59 }
 0x4c5   : > { %v2993_v40 = vmul.f32 %v2992_v51, %v10988_v14  ;;  %v4647_v57 = vadd.f32 %v11011_v52, %v4646_v30  ;;  %v4627_v51 = vmul.f32 %v4626_v42, %v12426_v49  ;;  %v2968_v3 = vmul.f32 %v11006_v63, %v2967_v7  ;;  %vm11160_vm9 = vmor %vm4693_vm8, %vm4694_vm4 }
 0x4c6   : > { %v4691_v50 = vmul.f32 %v11036_v13, %v4690_v12  ;;  %v3387_v47 = vmul.f32 %v3386_v60, %v12382_v6  ;;  %v3400_v42 = vor.u32 1.1754944e-38, %v3399_v61  ;;  %v3396_v10 = vsel %vm11132_vm6, %v11015_v32, %v3392_v58 }
 0x4c7   : > { %v2995_v30 = vsel %vm2994_vm10, %v10988_v14, %v2993_v40  ;;  %v4651_v63 = vsel %vm11110_vm12, %v11011_v52, %v4647_v57  ;;  %v2969_v52 = vmul.f32 %v2968_v3, %v10880_v22  ;;  %v4739_v57 = vpop.f32.mrf.mxu1  ;;  %v4699_v61 = vand.u32 2147483648, %v11008_v59 }
 0x4c8   : > { %v4656_v7 = vsel %vm4653_vm2, %v4655_v16, %v4651_v63  ;;  %v4697_v32 = vand.u32 2147483647, %v11008_v59  ;;  %v2973_v60 = vand.u32 2147483648, %v10880_v22  ;;  %vm2972_vm10 = vcmp.eq.f32.partialorder %v10880_v22, 0.0 }
 0x4c9   : > { %v5059_v23 = vpop.permute.xlu0 %5058  ;;  %v2971_v58 = vsel %vm2970_vm7, %v10880_v22, %v2969_v52  ;;  %vm3469_vm12 = vweird.f32 %v11092_v24 }
 0x4ca   : > { %6687 = vmatpush.xpose.msk.msrb.mxu1 %vm455_vm1, %v5059_v23  ;;  %v2961_v23 = vand.u32 2147483648, %v12416_v53  ;;  %v3464_v53 = vmul.f32 %v11092_v24, %v11029_v56  ;;  %v2974_v63 = vsel %vm2972_vm10, %v2973_v60, %v2971_v58  ;;  %vm4698_vm11 = vcmp.eq.f32.partialorder %v4697_v32, 8.507059e+37 }
 0x4cb   : > { %v4892_v37 = vpop.f32.mrf.mxu2 }
 0x4cc   : > { %v11087_v41 = vmul.f32 %v10864_v0, %v4892_v37  ;;  %v2962_v54 = vsel %vm2960_vm13, %v2961_v23, %v2959_v19  ;;  %v2998_v37 = vsel %vm2996_vm15, %v2997_v39, %v2995_v30  ;;  %v4692_v19 = vadd.f32 %v11036_v13, %v4691_v50 }
 0x4cd   : > { %v11140_v12 = vmax.f32 %v2962_v54, 1e-12  ;;  %v3465_v26 = vsub.f32 1.0, %v3464_v53  ;;  %v3401_v23 = vsel %vm11136_vm5, %v3400_v42, %v3396_v10  ;;  %v11165_v30 = vmul.f32 %v10864_v0, %v4739_v57 }
 0x4ce   : > { %v5385_v43 = vsel %vm5360_vm14, %v11087_v41, -inf  ;;  %v4696_v59 = vsel %vm11160_vm9, %v11036_v13, %v4692_v19  ;;  %v11177_v39 = vmul.f32 %v10864_v0, %v10840_v4  ;;  %v3402_v54 = vmul.f32 %v3401_v23, %v12375_v31  ;;  %v4817_v23 = vpop.f32.mrf.mxu3 }
 0x4cf   : > { %5386 = vmax.xlane.f32.xlu1 %v5385_v43  ;;  %v11148_v43 = vmax.f32 %v2998_v37, 1e-12  ;;  %7103 = vrcp.f32 %v11140_v12  ;;  %v3466_v16 = vmul.f32 %v11092_v24, %v3465_v26  ;;  %v4853_v13 = vpop.f32.mrf.mxu1  ;;  %v11185_v4 = vmax.f32 %v2974_v63, 1e-12 }
 0x4d0   : > { %v5367_v22 = vsel %vm5360_vm14, %v11177_v39, -inf  ;;  %v5364_v37 = vsel %vm5360_vm14, %v11165_v30, -inf  ;;  %v3474_v57 = vand.u32 2147483648, %v11029_v56  ;;  %vm3468_vm13 = vweird.f32 %v11029_v56 }
 0x4d1   : > { %v5057_v18 = vpop.permute.xlu0 %5056  ;;  %5212 = vrot.lane.b32.xlu2 %v4627_v51, %s7281_s23  ;;  %v12433_v51 = vld [vmem:[#allocation42_spill] sm:$0xff]  ;;  %7105 = vrcp.f32 %v11148_v43  ;;  %v3467_v40 = vadd.f32 %v11092_v24, %v3466_v16  ;;  %v3472_v19 = vand.u32 2147483647, %v11029_v56  ;;  %vm3470_vm15 = vmor %vm3468_vm13, %vm3469_vm12  ;;  %v11226_v16 = vmul.f32 %v10864_v0, %v4817_v23 }
 0x4d2   : > { %6688 = vmatpush.xpose.msk.msrb.mxu1 %vm455_vm1, %v5057_v18  ;;  %v4657_v2 = vmul.f32 %v4656_v7, %v12433_v51  ;;  %v4700_v18 = vor.u32 1.1754944e-38, %v4699_v61  ;;  %v12436_v7 = vld [vmem:[#allocation44_spill] sm:$0xff]  ;;  %7107 = vrcp.f32 %v11185_v4  ;;  %v3475_v58 = vor.u32 1.1754944e-38, %v3474_v57 }
 0x4d3   : > { %v4895_v52 = vpop.f32.mrf.mxu2  ;;  %v3471_v32 = vsel %vm3470_vm15, %v11092_v24, %v3467_v40  ;;  %vm3473_vm2 = vcmp.eq.f32.partialorder %v3472_v19, 8.507059e+37  ;;  %vm3483_vm6 = vweird.f32 %v11148_v43  ;;  %v3487_v19 = vand.u32 2147483647, %v11148_v43 }
 0x4d4   : > { %v4701_v53 = vsel %vm4698_vm11, %v4700_v18, %v4696_v59  ;;  %v11207_v61 = vmul.f32 %v10864_v0, %v4895_v52  ;;  %v3476_v18 = vsel %vm3473_vm2, %v3475_v58, %v3471_v32  ;;  %v5376_v23 = vsel %vm5360_vm14, %v11226_v16, -inf }
 0x4d5   : > { %6689 = vmatmul.msk.f32.vlgmr.msrb.gmra.mxu1 %vm455_vm1, %v3387_v47  ;;  %v11191_v47 = vpop.eup %7103  ;;  %v4702_v14 = vmul.f32 %v4701_v53, %v12436_v7  ;;  %vm3488_vm7 = vcmp.eq.f32.partialorder %v3487_v19, 8.507059e+37  ;;  %vm3438_vm8 = vweird.f32 %v11140_v12  ;;  %vm3453_vm15 = vweird.f32 %v11185_v4 }
 0x4d6   : > { %v3434_v26 = vmul.f32 %v11191_v47, %v11140_v12  ;;  %v5388_v59 = vsel %vm5360_vm14, %v11207_v61, -inf  ;;  %vm3439_vm4 = vweird.f32 %v11191_v47 }
 0x4d7   : > { %5374 = vmax.xlane.f32.xlu1 %v5373_v25  ;;  %v11196_v42 = vpop.eup %7105  ;;  %v11204_v25 = vmul.f32 %v10864_v0, %v4853_v13  ;;  %v3477_v13 = vmul.f32 %v3476_v18, %v12398_v62  ;;  %vm11264_vm9 = vmor %vm3438_vm8, %vm3439_vm4  ;;  %vm3006_vm8 = vcmp.eq.f32.partialorder %v11058_v21, inf }
 0x4d8   : > { %v3479_v56 = vmul.f32 %v11196_v42, %v11148_v43  ;;  %v3435_v63 = vsub.f32 1.0, %v3434_v26  ;;  %vm3484_vm3 = vweird.f32 %v11196_v42 }
 0x4d9   : > { %v11169_v44 = vpop.permute.xlu0 %5134  ;;  %5251 = vrot.lane.b32.xlu2 %v4657_v2, %s7281_s23  ;;  %v5379_v60 = vsel %vm5360_vm14, %v11204_v25, -inf  ;;  %vm11245_vm5 = vmor %vm3483_vm6, %vm3484_vm3 }
 0x4da   : > { %v3480_v3 = vsub.f32 1.0, %v3479_v56  ;;  %v3436_v40 = vmul.f32 %v11191_v47, %v3435_v63  ;;  %v4931_v56 = vpop.f32.mrf.mxu3 }
 0x4dc   : > { %v5215_v50 = vpop.permute.xlu1 %5214  ;;  %v3481_v24 = vmul.f32 %v11196_v42, %v3480_v3  ;;  %v3437_v18 = vadd.f32 %v11191_v47, %v3436_v40 }
 0x4dd   : > { %6703 = vmatpush.xpose.msk.msra.mxu2 %vm455_vm1, %v5215_v50  ;;  %6690 = vmatmul.msk.f32.gmra.mxu1 %vm455_vm1, %v3402_v54  ;;  %v4856_v50 = vpop.f32.mrf.mxu1  ;;  %v11223_v54 = vpop.eup %7107 }
 0x4de   : > { %v11233_v52 = vmul.f32 %v10864_v0, %v4856_v50  ;;  %v3449_v26 = vmul.f32 %v11223_v54, %v11185_v4  ;;  %vm3454_vm13 = vweird.f32 %v11223_v54 }
 0x4df   : > { %5368 = vmax.xlane.f32.xlu0 %v5367_v22  ;;  %5365 = vmax.xlane.f32.xlu1 %v5364_v37  ;;  %v3482_v22 = vadd.f32 %v11196_v42, %v3481_v24  ;;  %vm3455_vm2 = vmor %vm3453_vm15, %vm3454_vm13 }
 0x4e0   : > { %v3450_v50 = vsub.f32 1.0, %v3449_v26 }
 0x4e1   : > { %v5176_v10 = vpop.permute.xlu0 %5175  ;;  %5292 = vrot.lane.b32.xlu2 %v4702_v14, %s7281_s23  ;;  %v3489_v14 = vand.u32 2147483648, %v11148_v43  ;;  %v3486_v3 = vsel %vm11245_vm5, %v11196_v42, %v3482_v22  ;;  %v3444_v43 = vand.u32 2147483648, %v11140_v12  ;;  %v3442_v42 = vand.u32 2147483647, %v11140_v12 }
 0x4e2   : > { %6699 = vmatpush.xpose.msk.msra.mxu1 %vm455_vm1, %v5176_v10 }
 0x4e3   : > { %v11212_v2 = vpop.xlane.xlu2 %3802  ;;  %v3445_v19 = vor.u32 1.1754944e-38, %v3444_v43  ;;  %vm3443_vm10 = vcmp.eq.f32.partialorder %v3442_v42, 8.507059e+37  ;;  %v3459_v42 = vand.u32 2147483648, %v11185_v4 }
 0x4e4   : > { %7109 = vrsqrt.f32 %v11212_v2  ;;  %vm4174_vm11 = vcmp.eq.f32.partialorder %v11212_v2, inf  ;;  %vm4176_vm12 = vcmp.eq.f32.partialorder %v11212_v2, 0.0 }
 0x4e5   : > { %7111 = vrsqrt.f32 %v11058_v21 }
 0x4e7   : > { %5380 = vmax.xlane.f32.xlu0 %v5379_v60  ;;  %5389 = vmax.xlane.f32.xlu1 %v5388_v59  ;;  %v5382_v60 = vsel %vm5360_vm14, %v11233_v52, -inf  ;;  %v3490_v59 = vor.u32 1.1754944e-38, %v3489_v14  ;;  %v11269_v14 = vmul.f32 %v10864_v0, %v4931_v56  ;;  %v4177_v56 = vand.u32 2147483648, %v11212_v2 }
 0x4e9   : > { %v5174_v53 = vpop.permute.xlu0 %5173 }
 0x4ea   : > { %v7110_v37 = vpop.eup %7109  ;;  %6700 = vmatpush.xpose.msk.msra.mxu1 %vm455_vm1, %v5174_v53  ;;  %v3491_v53 = vsel %vm3488_vm7, %v3490_v59, %v3486_v3  ;;  %v4934_v59 = vpop.f32.mrf.mxu3 }
 0x4eb   : > { %v4168_v57 = vmul.f32 %v7110_v37, %v11212_v2  ;;  %v11239_v10 = vpop.xlane.xlu2 %2673  ;;  %v11260_v24 = vpop.eup %7111  ;;  %v3492_v12 = vmul.f32 %v3491_v53, %v12392_v33 }
 0x4ec   : > { %v3000_v3 = vmul.f32 %v11260_v24, %v11058_v21  ;;  %7113 = vrsqrt.f32 %v11239_v10 }
 0x4ed   : > { %v4169_v58 = vmul.f32 %v7110_v37, %v4168_v57  ;;  %6701 = vmatmul.msk.f32.vlgmr.msra.gmra.mxu1 %vm455_vm1, %v3477_v13  ;;  %v3441_v57 = vsel %vm11264_vm9, %v11191_v47, %v3437_v18  ;;  %vm3008_vm9 = vcmp.eq.f32.partialorder %v11058_v21, 0.0 }
 0x4ef   : > { %v4170_v63 = vmul.f32 0.5, %v4169_v58  ;;  %5383 = vmax.xlane.f32.xlu0 %v5382_v60  ;;  %5377 = vmax.xlane.f32.xlu1 %v5376_v23  ;;  %v3451_v23 = vmul.f32 %v11223_v54, %v3450_v50  ;;  %v5391_v60 = vsel %vm5360_vm14, %v11269_v14, -inf  ;;  %v3001_v50 = vmul.f32 %v11260_v24, %v3000_v3 }
 0x4f1   : > { %v4171_v13 = vsub.f32 1.5, %v4170_v63  ;;  %v4970_v40 = vpop.f32.mrf.mxu1  ;;  %v3452_v63 = vadd.f32 %v11223_v54, %v3451_v23 }
 0x4f2   : > { %v11275_v32 = vmul.f32 %v10864_v0, %v4970_v40  ;;  %v7114_v40 = vpop.eup %7113 }
 0x4f3   : > { %v4172_v26 = vmul.f32 %v7110_v37, %v4171_v13  ;;  %v5137_v58 = vpop.permute.xlu2 %5136  ;;  %v3446_v37 = vsel %vm3443_vm10, %v3445_v19, %v3441_v57  ;;  %v11303_v57 = vmul.f32 %v10864_v0, %v4934_v59  ;;  %v3456_v19 = vsel %vm3455_vm2, %v11223_v54, %v3452_v63 }
 0x4f4   : > { %6695 = vmatpush.xpose.msk.msrb.mxu3 %vm455_vm1, %v5137_v58  ;;  %v5397_v43 = vsel %vm5360_vm14, %v11275_v32, -inf  ;;  %v3447_v22 = vmul.f32 %v3446_v37, %v12385_v38  ;;  %vm3018_vm10 = vcmp.eq.f32.partialorder %v11239_v10, inf  ;;  %vm3042_vm2 = vcmp.eq.f32.partialorder %v11125_v48, inf }
 0x4f5   : > { %v4173_v47 = vmul.f32 %v4172_v26, %v11212_v2  ;;  %6702 = vmatmul.msk.f32.gmra.mxu1 %vm455_vm1, %v3492_v12  ;;  %v3002_v26 = vmul.f32 0.5, %v3001_v50  ;;  %v3012_v12 = vmul.f32 %v7114_v40, %v11239_v10  ;;  %v5394_v58 = vsel %vm5360_vm14, %v11303_v57, -inf }
 0x4f7   : > { %v4175_v18 = vsel %vm4174_vm11, %v11212_v2, %v4173_v47  ;;  %5398 = vmax.xlane.f32.xlu0 %v5397_v43  ;;  %5392 = vmax.xlane.f32.xlu1 %v5391_v60  ;;  %v3457_v2 = vand.u32 2147483647, %v11185_v4  ;;  %v3003_v3 = vsub.f32 1.5, %v3002_v26  ;;  %v3013_v47 = vmul.f32 %v7114_v40, %v3012_v12 }
 0x4f8   : > { %v4178_v53 = vsel %vm4176_vm12, %v4177_v56, %v4175_v18  ;;  %6696 = vmatpush.xpose.msk.msrb.mxu3 %vm455_vm1, %v11169_v44  ;;  %v3460_v44 = vor.u32 1.1754944e-38, %v3459_v42  ;;  %vm3020_vm11 = vcmp.eq.f32.partialorder %v11239_v10, 0.0 }
 0x4f9   : > { %v4221_v13 = vmax.f32 %v4178_v53, 1e-12  ;;  %vm3458_vm3 = vcmp.eq.f32.partialorder %v3457_v2, 8.507059e+37  ;;  %v3004_v59 = vmul.f32 %v11260_v24, %v3003_v3  ;;  %v3014_v18 = vmul.f32 0.5, %v3013_v47  ;;  %v12441_v24 = vld [vmem:[#allocation49_spill] sm:$0xff] }
 0x4fa   : > { %v3461_v23 = vsel %vm3458_vm3, %v3460_v44, %v3456_v19  ;;  %v3009_v47 = vand.u32 2147483648, %v11058_v21 }
 0x4fb   : > { %7115 = vrcp.f32 %v4221_v13  ;;  %6697 = vmatmul.msk.f32.vlgmr.msrb.gmra.mxu3 %vm455_vm1, %v3447_v22  ;;  %v3462_v37 = vmul.f32 %v3461_v23, %v12407_v5  ;;  %v4684_v63 = vand.u32 2147483648, %v4221_v13  ;;  %v4682_v42 = vand.u32 2147483647, %v4221_v13 }
 0x4fc   : > { %vm4678_vm5 = vweird.f32 %v4221_v13  ;;  %v3005_v2 = vmul.f32 %v3004_v59, %v11058_v21  ;;  %v3015_v19 = vsub.f32 1.5, %v3014_v18  ;;  %7117 = vrsqrt.f32 %v11125_v48  ;;  %v12442_v59 = vld [vmem:[#allocation18_spill] sm:$0xff]  ;;  %v12443_v18 = vld [vmem:[#allocation15_spill] sm:$0xff] }
 0x4fd   : > { %v4685_v44 = vor.u32 1.1754944e-38, %v4684_v63  ;;  %vm4683_vm7 = vcmp.eq.f32.partialorder %v4682_v42, 8.507059e+37 }
 0x4fe   : > { %v3007_v23 = vsel %vm3006_vm8, %v11058_v21, %v3005_v2  ;;  %v3016_v3 = vmul.f32 %v7114_v40, %v3015_v19  ;;  %v6797_v21 = vpack.i.bf16 %v12443_v18, %v12442_v59 }
 0x4ff   : > { %5395 = vmax.xlane.f32.xlu1 %v5394_v58 }
 0x501   : > { %v7116_v4 = vpop.eup %7115 }
 0x502   : > { %v4674_v56 = vmul.f32 %v7116_v4, %v4221_v13  ;;  %vm4679_vm6 = vweird.f32 %v7116_v4  ;;  %v3010_v13 = vsel %vm3008_vm9, %v3009_v47, %v3007_v23 }
 0x503   : > { %v5048_v43 = vpop.f32.mrf.mxu3  ;;  %6698 = vmatmul.msk.f32.gmra.mxu3 %vm455_vm1, %v3462_v37  ;;  %vm4680_vm4 = vmor %vm4678_vm5, %vm4679_vm6  ;;  %v3097_v37 = vmax.f32 %v3010_v13, 1e-12  ;;  %vm3044_vm6 = vcmp.eq.f32.partialorder %v11125_v48, 0.0 }
 0x504   : > { %v11313_v54 = vmul.f32 %v10864_v0, %v5048_v43  ;;  %v4675_v60 = vsub.f32 1.0, %v4674_v56  ;;  %v3021_v43 = vand.u32 2147483648, %v11239_v10 }
 0x505   : > { %7119 = vrcp.f32 %v3097_v37  ;;  %v3504_v18 = vand.u32 2147483648, %v3097_v37  ;;  %vm3498_vm13 = vweird.f32 %v3097_v37 }
 0x506   : > { %v5409_v50 = vsel %vm5360_vm14, %v11313_v54, -inf  ;;  %v4676_v53 = vmul.f32 %v7116_v4, %v4675_v60  ;;  %v7118_v60 = vpop.eup %7117 }
 0x507   : > { %5410 = vmax.xlane.f32.xlu0 %v5409_v50  ;;  %v3036_v63 = vmul.f32 %v7118_v60, %v11125_v48 }
 0x508   : > { %v4677_v22 = vadd.f32 %v7116_v4, %v4676_v53 }
 0x50a   : > { %v4681_v26 = vsel %vm4680_vm4, %v7116_v4, %v4677_v22  ;;  %v3017_v4 = vmul.f32 %v3016_v3, %v11239_v10  ;;  %v3037_v22 = vmul.f32 %v7118_v60, %v3036_v63 }
 0x50b   : > { %v4686_v12 = vsel %vm4683_vm7, %v4685_v44, %v4681_v26  ;;  %v7120_v53 = vpop.eup %7119  ;;  %v11343_v26 = vpop.xlane.xlu1 %2685 }
 0x50c   : > { %v4687_v58 = vmul.f32 %v4686_v12, %v12441_v24  ;;  %v3019_v56 = vsel %vm3018_vm10, %v11239_v10, %v3017_v4  ;;  %v3494_v10 = vmul.f32 %v7120_v53, %v3097_v37  ;;  %v3038_v2 = vmul.f32 0.5, %v3037_v22 }
 0x50d   : > { %v3022_v40 = vsel %vm3020_vm11, %v3021_v43, %v3019_v56  ;;  %vm3499_vm12 = vweird.f32 %v7120_v53  ;;  %v3502_v22 = vand.u32 2147483647, %v3097_v37  ;;  %v3045_v37 = vand.u32 2147483648, %v11125_v48 }
 0x50e   : > { %5290 = vrot.lane.b32.xlu2 %v4687_v58, %s7281_s23  ;;  %v11334_v50 = vmax.f32 %v3022_v40, 1e-12  ;;  %v3495_v19 = vsub.f32 1.0, %v3494_v10  ;;  %v3039_v58 = vsub.f32 1.5, %v3038_v2  ;;  %v11358_v10 = vmul.f32 %v10864_v0, %v11078_v11  ;;  %vm3500_vm15 = vmor %vm3498_vm13, %vm3499_vm12 }
 0x50f   : > { %vm3503_vm3 = vcmp.eq.f32.partialorder %v3502_v22, 8.507059e+37  ;;  %vm3066_vm13 = vcmp.eq.f32.partialorder %v11343_v26, inf }
 0x510   : > { %7121 = vrcp.f32 %v11334_v50  ;;  %v3496_v3 = vmul.f32 %v7120_v53, %v3495_v19  ;;  %v3040_v4 = vmul.f32 %v7118_v60, %v3039_v58  ;;  %v5361_v11 = vsel %vm5360_vm14, %v11358_v10, -inf }
 0x511   : > { %v3519_v22 = vand.u32 2147483648, %v11334_v50  ;;  %vm3513_vm4 = vweird.f32 %v11334_v50 }
 0x512   : > { %v3497_v43 = vadd.f32 %v7120_v53, %v3496_v3  ;;  %v3041_v63 = vmul.f32 %v3040_v4, %v11125_v48 }
 0x514   : > { %v11337_v42 = vpop.xlane.xlu0 %2682  ;;  %v3501_v60 = vsel %vm3500_vm15, %v7120_v53, %v3497_v43  ;;  %v3043_v3 = vsel %vm3042_vm2, %v11125_v48, %v3041_v63  ;;  %v3517_v48 = vand.u32 2147483647, %v11334_v50  ;;  %vm3068_vm15 = vcmp.eq.f32.partialorder %v11343_v26, 0.0 }
 0x515   : > { %7123 = vrsqrt.f32 %v11337_v42  ;;  %vm3054_vm10 = vcmp.eq.f32.partialorder %v11337_v42, inf  ;;  %vm3056_vm12 = vcmp.eq.f32.partialorder %v11337_v42, 0.0 }
 0x516   : > { %v11341_v44 = vpop.eup %7121  ;;  %7125 = vrsqrt.f32 %v11343_v26  ;;  %vm3518_vm8 = vcmp.eq.f32.partialorder %v3517_v48, 8.507059e+37  ;;  %v3057_v48 = vand.u32 2147483648, %v11337_v42 }
 0x517   : > { %v3509_v47 = vmul.f32 %v11341_v44, %v11334_v50  ;;  %vm3514_vm5 = vweird.f32 %v11341_v44 }
 0x518   : > { %vm3515_vm7 = vmor %vm3513_vm4, %vm3514_vm5 }
 0x519   : > { %v3510_v40 = vsub.f32 1.0, %v3509_v47 }
 0x51b   : > { %6798 = vrot.lane.b32.xlu0 %v6797_v21, %s7282_s20  ;;  %v7124_v12 = vpop.eup %7123  ;;  %v3511_v2 = vmul.f32 %v11341_v44, %v3510_v40  ;;  %v3046_v40 = vsel %vm3044_vm6, %v3045_v37, %v3043_v3  ;;  %v3520_v37 = vor.u32 1.1754944e-38, %v3519_v22 }
 0x51c   : > { %v3048_v13 = vmul.f32 %v7124_v12, %v11337_v42  ;;  %v11353_v21 = vpop.eup %7125 }
 0x51d   : > { %v3060_v19 = vmul.f32 %v11353_v21, %v11343_v26  ;;  %v3512_v43 = vadd.f32 %v11341_v44, %v3511_v2 }
 0x51e   : > { %v3049_v59 = vmul.f32 %v7124_v12, %v3048_v13 }
 0x520   : > { %v3050_v58 = vmul.f32 0.5, %v3049_v59  ;;  %v5009_v59 = vpop.f32.mrf.mxu2 }
 0x522   : > { %v3051_v63 = vsub.f32 1.5, %v3050_v58 }
 0x524   : > { %v3052_v3 = vmul.f32 %v7124_v12, %v3051_v63 }
 0x527   : > { %v5254_v23 = vpop.permute.xlu0 %5253 }
 0x528   : > { %6707 = vmatpush.xpose.msk.msra.mxu3 %vm455_vm1, %v5254_v23  ;;  %v3505_v23 = vor.u32 1.1754944e-38, %v3504_v18  ;;  %v3061_v18 = vmul.f32 %v11353_v21, %v3060_v19  ;;  %v11380_v19 = vmax.f32 %v3046_v40, 1e-12 }
 0x52a   : > { %v3506_v13 = vsel %vm3503_vm3, %v3505_v23, %v3501_v60  ;;  %v3516_v23 = vsel %vm3515_vm7, %v11341_v44, %v3512_v43  ;;  %v3062_v58 = vmul.f32 0.5, %v3061_v18  ;;  %v3053_v44 = vmul.f32 %v3052_v3, %v11337_v42 }
 0x52b   : > { %v3507_v60 = vmul.f32 %v3506_v13, %v12426_v49  ;;  %v11385_v13 = vpop.xlane.xlu1 %5371  ;;  %v3521_v50 = vsel %vm3518_vm8, %v3520_v37, %v3516_v23  ;;  %vm3543_vm7 = vweird.f32 %v11380_v19 }
 0x52c   : > { %v11350_v56 = vpop.xlane.xlu2 %2676  ;;  %v3522_v40 = vmul.f32 %v3521_v50, %v12388_v1  ;;  %v3055_v63 = vsel %vm3054_vm10, %v11337_v42, %v3053_v44 }
 0x52d   : > { %7127 = vrsqrt.f32 %v11350_v56  ;;  %vm3030_vm9 = vcmp.eq.f32.partialorder %v11350_v56, inf  ;;  %vm3032_vm11 = vcmp.eq.f32.partialorder %v11350_v56, 0.0  ;;  %v3058_v3 = vsel %vm3056_vm12, %v3057_v48, %v3055_v63 }
 0x52e   : > { %7129 = vrcp.f32 %v11380_v19  ;;  %v11416_v44 = vmax.f32 %v3058_v3, 1e-12 }
 0x533   : > { %v7128_v47 = vpop.eup %7127 }
 0x534   : > { %v3024_v53 = vmul.f32 %v7128_v47, %v11350_v56  ;;  %v5213_v4 = vpop.permute.xlu2 %5212 }
 0x535   : > { %6704 = vmatpush.xpose.msk.msra.mxu2 %vm455_vm1, %v5213_v4 }
 0x536   : > { %v3025_v62 = vmul.f32 %v7128_v47, %v3024_v53  ;;  %v11383_v53 = vmul.f32 %v10864_v0, %v5009_v59  ;;  %v5012_v59 = vpop.f32.mrf.mxu2 }
 0x537   : > { %5362 = vmax.xlane.f32.xlu2 %v5361_v11 }
 0x538   : > { %v3026_v2 = vmul.f32 0.5, %v3025_v62  ;;  %6705 = vmatmul.msk.f32.vlgmr.msra.gmra.mxu2 %vm455_vm1, %v3507_v60  ;;  %v3063_v62 = vsub.f32 1.5, %v3062_v58  ;;  %v5403_v43 = vsel %vm5360_vm14, %v11383_v53, -inf  ;;  %v11403_v60 = vmul.f32 %v10864_v0, %v5012_v59  ;;  %v11406_v58 = vpop.eup %7129 }
 0x539   : > { %vm3544_vm5 = vweird.f32 %v11406_v58 }
 0x53a   : > { %v3027_v4 = vsub.f32 1.5, %v3026_v2  ;;  %v5406_v50 = vsel %vm5360_vm14, %v11403_v60, -inf  ;;  %vm3545_vm8 = vmor %vm3543_vm7, %vm3544_vm5 }
 0x53c   : > { %v3028_v11 = vmul.f32 %v7128_v47, %v3027_v4  ;;  %v5252_v33 = vpop.permute.xlu2 %5251  ;;  %v3033_v47 = vand.u32 2147483648, %v11350_v56 }
 0x53d   : > { %6708 = vmatpush.xpose.msk.msra.mxu3 %vm455_vm1, %v5252_v33  ;;  %v3064_v33 = vmul.f32 %v11353_v21, %v3063_v62  ;;  %v4973_v62 = vpop.f32.mrf.mxu1 }
 0x53e   : > { %v3029_v12 = vmul.f32 %v3028_v11, %v11350_v56  ;;  %v3539_v11 = vmul.f32 %v11406_v58, %v11380_v19 }
 0x53f   : > { %5404 = vmax.xlane.f32.xlu2 %v5403_v43  ;;  %v3065_v21 = vmul.f32 %v3064_v33, %v11343_v26  ;;  %v3069_v43 = vand.u32 2147483648, %v11343_v26  ;;  %v5460_v33 = vsub.f32 %v10869_v27, %v11385_v13 }
 0x540   : > { %v3031_v18 = vsel %vm3030_vm9, %v11350_v56, %v3029_v12  ;;  %6706 = vmatmul.msk.f32.gmra.mxu2 %vm455_vm1, %v3522_v40  ;;  %v11421_v12 = vmul.f32 %v10864_v0, %v4973_v62  ;;  %v3540_v40 = vsub.f32 1.0, %v3539_v11 }
 0x541   : > { %v3034_v22 = vsel %vm3032_vm11, %v3033_v47, %v3031_v18  ;;  %vm3558_vm11 = vweird.f32 %v11416_v44 }
 0x542   : > { %v3099_v2 = vmax.f32 %v3034_v22, 1e-12  ;;  %v5387_v23 = vpop.xlane.xlu1 %5386  ;;  %v5400_v22 = vsel %vm5360_vm14, %v11421_v12, -inf }
 0x543   : > { %v5465_v56 = vsub.f32 %v11087_v41, %v5387_v23  ;;  %v3067_v41 = vsel %vm3066_vm13, %v11343_v26, %v3065_v21 }
 0x544   : > { %7131 = vrcp.f32 %v3099_v2  ;;  %v5293_v37 = vpop.permute.xlu2 %5292  ;;  %v3070_v47 = vsel %vm3068_vm15, %v3069_v43, %v3067_v41  ;;  %v3534_v23 = vand.u32 2147483648, %v3099_v2  ;;  %vm3528_vm3 = vweird.f32 %v3099_v2 }
 0x545   : > { %v5505_v4 = vmul.f32 1.442695, %v5465_v56  ;;  %6711 = vmatpush.xpose.msk.msrb.mxu1 %vm455_vm1, %v5293_v37  ;;  %v3541_v56 = vmul.f32 %v11406_v58, %v3540_v40  ;;  %v11435_v26 = vmax.f32 %v3070_v47, 1e-12  ;;  %v3532_v37 = vand.u32 2147483647, %v3099_v2 }
 0x546   : > { %v3549_v40 = vand.u32 2147483648, %v11380_v19  ;;  %v3547_v47 = vand.u32 2147483647, %v11380_v19 }
 0x547   : > { %7133 = vpow2.f32 %v5505_v4  ;;  %5407 = vmax.xlane.f32.xlu2 %v5406_v50  ;;  %v5495_v4 = vmul.f32 1.442695, %v5460_v33  ;;  %v3535_v50 = vor.u32 1.1754944e-38, %v3534_v23  ;;  %v3542_v11 = vadd.f32 %v11406_v58, %v3541_v56 }
 0x548   : > { %7135 = vrcp.f32 %v11416_v44  ;;  %vm3533_vm4 = vcmp.eq.f32.partialorder %v3532_v37, 8.507059e+37  ;;  %vm3548_vm9 = vcmp.eq.f32.partialorder %v3547_v47, 8.507059e+37  ;;  %v3562_v47 = vand.u32 2147483647, %v11416_v44 }
 0x549   : > { %7137 = vrcp.f32 %v11435_v26 }
 0x54a   : > { %v7132_v42 = vpop.eup %7131  ;;  %7139 = vpow2.f32 %v5495_v4  ;;  %vm3563_vm13 = vcmp.eq.f32.partialorder %v3562_v47, 8.507059e+37 }
 0x54b   : > { %v3524_v59 = vmul.f32 %v7132_v42, %v3099_v2  ;;  %vm3529_vm2 = vweird.f32 %v7132_v42 }
 0x54c   : > { %vm3530_vm6 = vmor %vm3528_vm3, %vm3529_vm2  ;;  %vm3573_vm2 = vweird.f32 %v11435_v26 }
 0x54d   : > { %v11426_v18 = vpop.eup %7133  ;;  %v3525_v63 = vsub.f32 1.0, %v3524_v59 }
 0x54e   : > { %v5577_v48 = vsel %vm5360_vm14, %v11426_v18, 0.0  ;;  %v7136_v21 = vpop.eup %7135 }
 0x54f   : > { %5401 = vmax.xlane.f32.xlu2 %v5400_v22  ;;  %5578 = vadd.xlane.f32.xlu0 %v5577_v48  ;;  %v3526_v3 = vmul.f32 %v7132_v42, %v3525_v63  ;;  %v3554_v59 = vmul.f32 %v7136_v21, %v11416_v44  ;;  %v5375_v63 = vpop.xlane.xlu1 %5374  ;;  %v3550_v22 = vor.u32 1.1754944e-38, %v3549_v40  ;;  %v7138_v23 = vpop.eup %7137  ;;  %vm3559_vm10 = vweird.f32 %v7136_v21 }
 0x550   : > { %v3569_v19 = vmul.f32 %v7138_v23, %v11435_v26  ;;  %v5461_v4 = vsub.f32 %v11039_v17, %v5375_v63  ;;  %v3564_v40 = vand.u32 2147483648, %v11416_v44  ;;  %vm3560_vm12 = vmor %vm3558_vm11, %vm3559_vm10  ;;  %vm3574_vm15 = vweird.f32 %v7138_v23 }
 0x551   : > { %v3527_v27 = vadd.f32 %v7132_v42, %v3526_v3  ;;  %v3555_v48 = vsub.f32 1.0, %v3554_v59  ;;  %v11452_v3 = vpop.eup %7139  ;;  %v3579_v44 = vand.u32 2147483648, %v11435_v26  ;;  %vm3575_vm3 = vmor %vm3573_vm2, %vm3574_vm15 }
 0x552   : > { %v5087_v13 = vpop.f32.mrf.mxu1 }
 0x553   : > { %v11441_v62 = vmul.f32 %v10864_v0, %v5087_v13  ;;  %v3531_v41 = vsel %vm3530_vm6, %v7132_v42, %v3527_v27  ;;  %v3546_v42 = vsel %vm3545_vm8, %v11406_v58, %v3542_v11  ;;  %v3556_v37 = vmul.f32 %v7136_v21, %v3555_v48  ;;  %v11459_v58 = vpop.xlane.xlu0 %5368 }
 0x554   : > { %v3536_v43 = vsel %vm3533_vm4, %v3535_v50, %v3531_v41  ;;  %v3551_v56 = vsel %vm3548_vm9, %v3550_v22, %v3546_v42  ;;  %v5562_v13 = vsel %vm5360_vm14, %v11452_v3, 0.0  ;;  %v5126_v50 = vpop.f32.mrf.mxu2  ;;  %v3570_v41 = vsub.f32 1.0, %v3569_v19 }
 0x555   : > { %v3537_v2 = vmul.f32 %v3536_v43, %v12433_v51  ;;  %v5415_v33 = vsel %vm5360_vm14, %v11441_v62, -inf  ;;  %v3552_v27 = vmul.f32 %v3551_v56, %v12417_v45  ;;  %v3557_v11 = vadd.f32 %v7136_v21, %v3556_v37 }
 0x556   : > { %v5497_v43 = vmul.f32 1.442695, %v5461_v4  ;;  %v11464_v59 = vmul.f32 %v10864_v0, %v5126_v50  ;;  %v3571_v42 = vmul.f32 %v7138_v23, %v3570_v41  ;;  %v3565_v22 = vor.u32 1.1754944e-38, %v3564_v40 }
 0x557   : > { %5416 = vmax.xlane.f32.xlu2 %v5415_v33  ;;  %6709 = vmatmul.msk.f32.vlgmr.msra.gmra.mxu3 %vm455_vm1, %v3537_v2  ;;  %v5366_v17 = vpop.xlane.xlu1 %5365  ;;  %v3561_v33 = vsel %vm3560_vm12, %v7136_v21, %v3557_v11  ;;  %v3580_v40 = vor.u32 1.1754944e-38, %v3579_v44  ;;  %v12444_v44 = vld [vmem:[#allocation14_spill] sm:$0xff] }
 0x558   : > { %7141 = vpow2.f32 %v5497_v43  ;;  %v5458_v63 = vsub.f32 %v11165_v30, %v5366_v17  ;;  %v5421_v48 = vsel %vm5360_vm14, %v11464_v59, -inf  ;;  %v3566_v56 = vsel %vm3563_vm13, %v3565_v22, %v3561_v33 }
 0x559   : > { %v3572_v19 = vadd.f32 %v7138_v23, %v3571_v42  ;;  %v3577_v30 = vand.u32 2147483647, %v11435_v26 }
 0x55a   : > { %v11466_v2 = vpop.f32.mrf.mxu1  ;;  %v5491_v4 = vmul.f32 1.442695, %v5458_v63  ;;  %v5051_v63 = vpop.f32.mrf.mxu3 }
 0x55b   : > { %v3576_v41 = vsel %vm3575_vm3, %v7138_v23, %v3572_v19  ;;  %vm3578_vm6 = vcmp.eq.f32.partialorder %v3577_v30, 8.507059e+37 }
 0x55c   : > { %7143 = vpow2.f32 %v5491_v4  ;;  %v3581_v26 = vsel %vm3578_vm6, %v3580_v40, %v3576_v41 }
 0x55d   : > { %v3582_v47 = vmul.f32 %v3581_v26, %v12436_v7 }
 0x55e   : > { %v11478_v50 = vpop.eup %7141 }
 0x55f   : > { %5563 = vadd.xlane.f32.xlu2 %v5562_v13  ;;  %6710 = vmatmul.msk.f32.gmra.mxu3 %vm455_vm1, %v3552_v27  ;;  %v5381_v27 = vpop.xlane.xlu0 %5380  ;;  %v3567_v13 = vmul.f32 %v3566_v56, %v12441_v24  ;;  %v5565_v17 = vsel %vm5360_vm14, %v11478_v50, 0.0  ;;  %v5390_v23 = vpop.xlane.xlu1 %5389 }
 0x562   : > { %v11489_v33 = vpop.eup %7143 }
 0x563   : > { %v5556_v22 = vsel %vm5360_vm14, %v11489_v33, 0.0 }
 0x567   : > { %5422 = vmax.xlane.f32.xlu2 %v5421_v48  ;;  %v11491_v42 = vpop.xlane.xlu0 %5383  ;;  %v5466_v48 = vsub.f32 %v11207_v61, %v5390_v23 }
 0x568   : > { %v5291_v37 = vpop.permute.xlu2 %5290 }
 0x569   : > { %6712 = vmatpush.xpose.msk.msrb.mxu1 %vm455_vm1, %v5291_v37  ;;  %v5507_v56 = vmul.f32 1.442695, %v5466_v48  ;;  %v12447_v48 = vld [vmem:[#allocation24_spill] sm:$0xff] }
 0x56a   : > { %v5204_v21 = vpop.f32.mrf.mxu1 }
 0x56b   : > { %v11481_v11 = vmul.f32 %v10864_v0, %v5204_v21  ;;  %7145 = vpow2.f32 %v5507_v56  ;;  %v12445_v21 = vld [vmem:[#allocation21_spill] sm:$0xff] }
 0x56c   : > { %6713 = vmatmul.msk.f32.vlgmr.msrb.gmra.mxu1 %vm455_vm1, %v3567_v13  ;;  %v6812_v13 = vpack.i.bf16 %v12445_v21, %v12444_v44 }
 0x56d   : > { %v5433_v43 = vsel %vm5360_vm14, %v11481_v11, -inf }
 0x56e   : > { %5434 = vmax.xlane.f32.xlu0 %v5433_v43 }
 0x56f   : > { %5566 = vadd.xlane.f32.xlu2 %v5565_v17  ;;  %v11497_v37 = vpop.xlane.xlu0 %5398 }
 0x571   : > { %v11509_v61 = vpop.eup %7145 }
 0x572   : > { %v5580_v43 = vsel %vm5360_vm14, %v11509_v61, 0.0 }
 0x574   : > { %6714 = vmatmul.msk.f32.gmra.mxu1 %vm455_vm1, %v3582_v47  ;;  %v5463_v47 = vsub.f32 %v11204_v25, %v5381_v27  ;;  %v5459_v27 = vsub.f32 %v11177_v39, %v11459_v58 }
 0x576   : > { %v5501_v23 = vmul.f32 1.442695, %v5463_v47 }
 0x577   : > { %5557 = vadd.xlane.f32.xlu2 %v5556_v22  ;;  %v12446_v22 = vld [vmem:[#allocation12_spill] sm:$0xff] }
 0x578   : > { %v6807_v56 = vpack.i.bf16 %v12447_v48, %v12446_v22  ;;  %7147 = vpow2.f32 %v5501_v23  ;;  %v12448_v48 = vld [vmem:[#allocation9_spill] sm:$0xff] }
 0x57a   : > { %v11507_v41 = vpop.xlane.xlu0 %5410 }
 0x57e   : > { %v5165_v19 = vpop.f32.mrf.mxu3 }
 0x57f   : > { %v11500_v4 = vmul.f32 %v10864_v0, %v5165_v19  ;;  %v11517_v19 = vpop.eup %7147 }
 0x580   : > { %v5571_v21 = vsel %vm5360_vm14, %v11517_v19, 0.0 }
 0x581   : > { %v5427_v30 = vsel %vm5360_vm14, %v11500_v4, -inf }
 0x582   : > { %6813 = vrot.lane.b32.xlu0 %v6812_v13, %s7282_s20  ;;  %5428 = vmax.xlane.f32.xlu2 %v5427_v30 }
 0x58a   : > { %5581 = vadd.xlane.f32.xlu2 %v5580_v43 }
 0x58d   : > { %v6799_v40 = vpop.permute.xlu0 %6798 }
 0x58e   : > { %v6800_v17 = vunpack.i.l.bf16 %v6799_v40  ;;  %v6801_v26 = vunpack.i.h.bf16 %v6799_v40  ;;  %v5378_v40 = vpop.xlane.xlu1 %5377 }
 0x58f   : > { %v5462_v47 = vsub.f32 %v11226_v16, %v5378_v40 }
 0x590   : > { %5778 = vmatpush.msrb.mxu3 %v6800_v17 }
 0x591   : > { %v5499_v22 = vmul.f32 1.442695, %v5462_v47 }
 0x592   : > { %5779 = vmatpush.msrb.mxu3 %v6801_v26  ;;  %v5493_v26 = vmul.f32 1.442695, %v5459_v27  ;;  %v5129_v27 = vpop.f32.mrf.mxu2 }
 0x593   : > { %v11558_v40 = vmul.f32 %v10864_v0, %v5129_v27 }
 0x5a2   : > { %6808 = vrot.lane.b32.xlu2 %v6807_v56, %s7282_s20  ;;  %v6822_v56 = vpack.i.bf16 %v12335_v55, %v12448_v48  ;;  %v12449_v48 = vld [vmem:[#allocation10_spill] sm:$0xff] }
 0x5aa   : > { %v5363_v44 = vpop.xlane.xlu2 %5362 }
 0x5ab   : > { %v5457_v13 = vsub.f32 %v11358_v10, %v5363_v44  ;;  %v11532_v10 = vmul.f32 %v10864_v0, %v5051_v63 }
 0x5ac   : > { %5572 = vadd.xlane.f32.xlu0 %v5571_v21  ;;  %v11549_v21 = vmul.f32 %v10864_v0, %v11466_v2  ;;  %v5424_v2 = vsel %vm5360_vm14, %v11558_v40, -inf }
 0x5ad   : > { %v5489_v30 = vmul.f32 1.442695, %v5457_v13  ;;  %v5412_v39 = vsel %vm5360_vm14, %v11532_v10, -inf }
 0x5af   : > { %7149 = vpow2.f32 %v5489_v30  ;;  %v5418_v30 = vsel %vm5360_vm14, %v11549_v21, -inf }
 0x5b0   : > { %7151 = vpow2.f32 %v5493_v26 }
 0x5b1   : > { %7153 = vpow2.f32 %v5499_v22 }
 0x5b2   : > { %v11522_v43 = vpop.xlane.xlu2 %5404 }
 0x5b5   : > { %v11524_v25 = vpop.eup %7149 }
 0x5b6   : > { %v5553_v17 = vsel %vm5360_vm14, %v11524_v25, 0.0  ;;  %v11541_v44 = vpop.eup %7151 }
 0x5b7   : > { %5554 = vadd.xlane.f32.xlu1 %v5553_v17  ;;  %v5559_v16 = vsel %vm5360_vm14, %v11541_v44, 0.0  ;;  %v11545_v63 = vpop.eup %7153 }
 0x5b8   : > { %v5568_v13 = vsel %vm5360_vm14, %v11545_v63, 0.0 }
 0x5ba   : > { %v11534_v23 = vpop.xlane.xlu2 %5407 }
 0x5bf   : > { %5413 = vmax.xlane.f32.xlu1 %v5412_v39 }
 0x5c0   : > { %6823 = vrot.lane.b32.xlu0 %v6822_v56, %s7282_s20  ;;  %v6817_v56 = vpack.i.bf16 %v12300_v8, %v12449_v48 }
 0x5c2   : > { %v5402_v58 = vpop.xlane.xlu2 %5401  ;;  %v11568_v39 = vpop.xlane.xlu0 %5578 }
 0x5c7   : > { %5560 = vadd.xlane.f32.xlu1 %v5559_v16 }
 0x5ca   : > { %v11551_v55 = vpop.xlane.xlu2 %5416 }
 0x5cb   : > { %5569 = vadd.xlane.f32.xlu2 %v5568_v13 }
 0x5cf   : > { %5419 = vmax.xlane.f32.xlu1 %v5418_v30  ;;  %v6827_v30 = vpack.i.bf16 %v12301_v46, %v12323_v20  ;;  %v5469_v46 = vsub.f32 %v11275_v32, %v11497_v37  ;;  %v5471_v32 = vsub.f32 %v11383_v53, %v11522_v43  ;;  %v5207_v37 = vpop.f32.mrf.mxu1 }
 0x5d1   : > { %v5513_v20 = vmul.f32 1.442695, %v5469_v46 }
 0x5d2   : > { %v11560_v17 = vpop.xlane.xlu2 %5563 }
 0x5d7   : > { %5425 = vmax.xlane.f32.xlu1 %v5424_v2  ;;  %v12450_v2 = vld [vmem:[#allocation13_spill] sm:$0xff] }
 0x5d8   : > { %v6802_v8 = vpack.i.bf16 %v12306_v15, %v12450_v2  ;;  %v5470_v15 = vsub.f32 %v11421_v12, %v5402_v58 }
 0x5da   : > { %v5423_v26 = vpop.xlane.xlu2 %5422 }
 0x5db   : > { %v5477_v47 = vsub.f32 %v11464_v59, %v5423_v26 }
 0x5dd   : > { %v5529_v22 = vmul.f32 1.442695, %v5477_v47 }
 0x5df   : > { %7155 = vpow2.f32 %v5529_v22 }
 0x5e1   : > { %v11577_v59 = vpop.xlane.xlu0 %5434 }
 0x5e2   : > { %v5567_v27 = vpop.xlane.xlu2 %5566 }
 0x5e3   : > { %6818 = vrot.lane.b32.xlu2 %v6817_v56, %s7282_s20  ;;  %7157 = vrcp.f32 %v5567_v27  ;;  %v5168_v27 = vpop.f32.mrf.mxu3 }
 0x5e4   : > { %7159 = vpow2.f32 %v5513_v20 }
 0x5e5   : > { %v11570_v16 = vpop.eup %7155 }
 0x5e6   : > { %v5613_v13 = vsel %vm5360_vm14, %v11570_v16, 0.0 }
 0x5e9   : > { %v7158_v47 = vpop.eup %7157 }
 0x5ea   : > { %5614 = vadd.xlane.f32.xlu0 %v5613_v13  ;;  %v5685_v56 = vmul.f32 %v7158_v47, %v11478_v50  ;;  %v5515_v13 = vmul.f32 1.442695, %v5470_v15  ;;  %v11592_v50 = vmul.f32 %v10864_v0, %v5168_v27  ;;  %v11600_v58 = vpop.xlane.xlu2 %5557 }
 0x5eb   : > { %6828 = vrot.lane.b32.xlu2 %v6827_v30, %s7282_s20  ;;  %v11587_v30 = vpop.eup %7159 }
 0x5ec   : > { %7161 = vpow2.f32 %v5515_v13  ;;  %v5589_v2 = vsel %vm5360_vm14, %v11587_v30, 0.0  ;;  %v5430_v12 = vsel %vm5360_vm14, %v11592_v50, -inf  ;;  %v5464_v13 = vsub.f32 %v11233_v52, %v11491_v42 }
 0x5ed   : > { %v6842_v42 = vpack.i.bf16 %v12315_v34, %v12403_v29 }
 0x5f0   : > { %6803 = vrot.lane.b32.xlu1 %v6802_v8, %s7282_s20 }
 0x5f2   : > { %v11594_v8 = vpop.eup %7161 }
 0x5f3   : > { %v5592_v47 = vsel %vm5360_vm14, %v11594_v8, 0.0 }
 0x5f4   : > { %v6814_v26 = vpop.permute.xlu0 %6813 }
 0x5f5   : > { %v6815_v22 = vunpack.i.l.bf16 %v6814_v26  ;;  %v6816_v48 = vunpack.i.h.bf16 %v6814_v26  ;;  %v5393_v26 = vpop.xlane.xlu1 %5392  ;;  %v11610_v46 = vpop.xlane.xlu2 %5428 }
 0x5f7   : > { %5815 = vmatpush.msra.mxu1 %v6815_v22  ;;  %v5517_v22 = vmul.f32 1.442695, %v5471_v32 }
 0x5f9   : > { %5816 = vmatpush.msra.mxu1 %v6816_v48  ;;  %v11605_v48 = vmul.f32 %v10864_v0, %v5207_v37  ;;  %7163 = vpow2.f32 %v5517_v22 }
 0x5fa   : > { %6719 = vmatmul.msk.f32.vlgmr.msra.gmra.mxu1 %vm5360_vm14, %v5685_v56  ;;  %v5467_v56 = vsub.f32 %v11269_v14, %v5393_v26  ;;  %v5503_v14 = vmul.f32 1.442695, %v5464_v13 }
 0x5fb   : > { %v5436_v53 = vsel %vm5360_vm14, %v11605_v48, -inf }
 0x5fc   : > { %v5509_v20 = vmul.f32 1.442695, %v5467_v56 }
 0x5fd   : > { %v5396_v43 = vpop.xlane.xlu1 %5395  ;;  %v11620_v26 = vpop.xlane.xlu2 %5581 }
 0x5fe   : > { %7165 = vpow2.f32 %v5509_v20  ;;  %v5468_v20 = vsub.f32 %v11303_v57, %v5396_v43 }
 0x5ff   : > { %v11612_v15 = vpop.eup %7163  ;;  %7167 = vpow2.f32 %v5503_v14  ;;  %v5243_v14 = vpop.f32.mrf.mxu2 }
 0x600   : > { %v5595_v27 = vsel %vm5360_vm14, %v11612_v15, 0.0 }
 0x604   : > { %v11622_v32 = vpop.eup %7165 }
 0x605   : > { %v5583_v37 = vsel %vm5360_vm14, %v11622_v32, 0.0  ;;  %v11631_v22 = vpop.eup %7167  ;;  %v11633_v56 = vpop.permute.xlu2 %6808 }
 0x614   : > { %5590 = vadd.xlane.f32.xlu2 %v5589_v2 }
 0x61a   : > { %5431 = vmax.xlane.f32.xlu1 %v5430_v12  ;;  %v5472_v12 = vsub.f32 %v11403_v60, %v11534_v23  ;;  %v6847_v23 = vpack.i.bf16 %v12382_v6, %v12375_v31  ;;  %v5511_v31 = vmul.f32 1.442695, %v5468_v20 }
 0x61c   : > { %5593 = vadd.xlane.f32.xlu2 %v5592_v47  ;;  %v5519_v47 = vmul.f32 1.442695, %v5472_v12 }
 0x61e   : > { %7169 = vpow2.f32 %v5519_v47 }
 0x622   : > { %5437 = vmax.xlane.f32.xlu1 %v5436_v53  ;;  %v5574_v53 = vsel %vm5360_vm14, %v11631_v22, 0.0 }
 0x624   : > { %v11640_v34 = vpop.eup %7169 }
 0x62a   : > { %v11618_v2 = vpop.xlane.xlu1 %5554  ;;  %5596 = vadd.xlane.f32.xlu1 %v5595_v27  ;;  %v5598_v27 = vsel %vm5360_vm14, %v11640_v34, 0.0 }
 0x632   : > { %v5414_v52 = vpop.xlane.xlu1 %5413  ;;  %5584 = vadd.xlane.f32.xlu1 %v5583_v37 }
 0x634   : > { %6843 = vrot.lane.b32.xlu2 %v6842_v42, %s7282_s20  ;;  %v11651_v42 = vmul.f32 %v10864_v0, %v5243_v14 }
 0x63a   : > { %v5561_v60 = vpop.xlane.xlu1 %5560  ;;  %5575 = vadd.xlane.f32.xlu1 %v5574_v53 }
 0x63b   : > { %7171 = vrcp.f32 %v5561_v60 }
 0x63c   : > { %6848 = vrot.lane.b32.xlu2 %v6847_v23, %s7282_s20  ;;  %v5474_v23 = vsub.f32 %v11532_v10, %v5414_v52 }
 0x63e   : > { %v5570_v29 = vpop.xlane.xlu2 %5569  ;;  %v5523_v14 = vmul.f32 1.442695, %v5474_v23 }
 0x63f   : > { %7173 = vrcp.f32 %v5570_v29 }
 0x640   : > { %7175 = vrcp.f32 %v11560_v17 }
 0x641   : > { %v7172_v13 = vpop.eup %7171  ;;  %7177 = vpow2.f32 %v5511_v31  ;;  %v5282_v31 = vpop.f32.mrf.mxu3 }
 0x642   : > { %v5683_v12 = vmul.f32 %v7172_v13, %v11541_v44  ;;  %v11647_v37 = vpop.xlane.xlu1 %5419  ;;  %5599 = vadd.xlane.f32.xlu1 %v5598_v27  ;;  %v5439_v44 = vsel %vm5360_vm14, %v11651_v42, -inf  ;;  %v5473_v27 = vsub.f32 %v11313_v54, %v11507_v41 }
 0x644   : > { %6717 = vmatmul.msk.f32.vlgmr.msrb.gmra.mxu3 %vm5360_vm14, %v5683_v12  ;;  %v5521_v10 = vmul.f32 1.442695, %v5473_v27 }
 0x645   : > { %v7174_v6 = vpop.eup %7173 }
 0x646   : > { %v11653_v57 = vpop.permute.xlu2 %6818  ;;  %v5686_v17 = vmul.f32 %v7174_v6, %v11545_v63  ;;  %v7176_v43 = vpop.eup %7175 }
 0x647   : > { %v5684_v53 = vmul.f32 %v7176_v43, %v11452_v3  ;;  %v11663_v20 = vpop.eup %7177 }
 0x648   : > { %6720 = vmatmul.msk.f32.gmra.mxu1 %vm5360_vm14, %v5686_v17  ;;  %v5586_v3 = vsel %vm5360_vm14, %v11663_v20, 0.0 }
 0x649   : > { %v5285_v43 = vpop.f32.mrf.mxu3 }
 0x64a   : > { %v5426_v47 = vpop.xlane.xlu1 %5425  ;;  %5440 = vmax.xlane.f32.xlu1 %v5439_v44  ;;  %v5479_v44 = vsub.f32 %v11500_v4, %v11610_v46  ;;  %v11689_v23 = vmul.f32 %v10864_v0, %v5285_v43  ;;  %v11694_v4 = vmul.f32 %v10864_v0, %v5282_v31 }
 0x64b   : > { %v5478_v60 = vsub.f32 %v11558_v40, %v5426_v47  ;;  %v5246_v40 = vpop.f32.mrf.mxu2 }
 0x64c   : > { %6718 = vmatmul.msk.f32.gmra.mxu3 %vm5360_vm14, %v5684_v53  ;;  %v11672_v6 = vmul.f32 %v10864_v0, %v5246_v40  ;;  %v5573_v53 = vpop.xlane.xlu0 %5572  ;;  %v6811_v40 = vunpack.i.h.bf16 %v11633_v56 }
 0x64d   : > { %v5531_v29 = vmul.f32 1.442695, %v5478_v60 }
 0x64e   : > { %v6829_v63 = vpop.permute.xlu2 %6828  ;;  %v5442_v41 = vsel %vm5360_vm14, %v11672_v6, -inf }
 0x64f   : > { %7179 = vpow2.f32 %v5531_v29  ;;  %v6830_v13 = vunpack.i.l.bf16 %v6829_v63  ;;  %v6831_v12 = vunpack.i.h.bf16 %v6829_v63  ;;  %v5533_v29 = vmul.f32 1.442695, %v5479_v44 }
 0x650   : > { %7181 = vpow2.f32 %v5523_v14  ;;  %v5448_v14 = vsel %vm5360_vm14, %v11689_v23, -inf }
 0x651   : > { %5926 = vmatpush.msrb.mxu1 %v6830_v13  ;;  %7183 = vpow2.f32 %v5521_v10 }
 0x652   : > { %5587 = vadd.xlane.f32.xlu1 %v5586_v3  ;;  %7185 = vrcp.f32 %v11618_v2  ;;  %v5476_v3 = vsub.f32 %v11549_v21, %v11647_v37  ;;  %v6821_v21 = vunpack.i.h.bf16 %v11653_v57 }
 0x653   : > { %5927 = vmatpush.msrb.mxu1 %v6831_v12  ;;  %7187 = vrcp.f32 %v11568_v39  ;;  %v6810_v12 = vunpack.i.l.bf16 %v11633_v56 }
 0x654   : > { %7189 = vrcp.f32 %v11600_v58  ;;  %v6824_v10 = vpop.permute.xlu0 %6823  ;;  %v5445_v58 = vsel %vm5360_vm14, %v11694_v4, -inf  ;;  %v5527_v56 = vmul.f32 1.442695, %v5476_v3  ;;  %v12451_v3 = vld [vmem:[#allocation39_spill] sm:$0xff] }
 0x655   : > { %v11669_v52 = vpop.eup %7179  ;;  %7191 = vpow2.f32 %v5533_v29  ;;  %v6826_v37 = vunpack.i.h.bf16 %v6824_v10 }
 0x656   : > { %v5616_v54 = vsel %vm5360_vm14, %v11669_v52, 0.0  ;;  %v11678_v17 = vpop.eup %7181  ;;  %7193 = vrcp.f32 %v11620_v26  ;;  %v6825_v26 = vunpack.i.l.bf16 %v6824_v10 }
 0x657   : > { %5617 = vadd.xlane.f32.xlu0 %v5616_v54  ;;  %v11683_v47 = vpop.eup %7183  ;;  %v5604_v60 = vsel %vm5360_vm14, %v11678_v17, 0.0  ;;  %7195 = vrcp.f32 %v5573_v53 }
 0x658   : > { %v5601_v63 = vsel %vm5360_vm14, %v11683_v47, 0.0  ;;  %v7186_v2 = vpop.eup %7185  ;;  %7197 = vpow2.f32 %v5527_v56 }
 0x659   : > { %v7188_v27 = vpop.eup %7187  ;;  %v5681_v31 = vmul.f32 %v7186_v2, %v11524_v25  ;;  %v5321_v2 = vpop.f32.mrf.mxu1 }
 0x65a   : > { %5443 = vmax.xlane.f32.xlu1 %v5442_v41  ;;  %v5689_v54 = vmul.f32 %v7188_v27, %v11426_v18  ;;  %v6820_v41 = vunpack.i.l.bf16 %v11653_v57  ;;  %v7190_v25 = vpop.eup %7189 }
 0x65b   : > { %v11712_v43 = vpop.eup %7191  ;;  %v5682_v44 = vmul.f32 %v7190_v25, %v11489_v33  ;;  %v6832_v33 = vpack.i.bf16 %v12418_v9, %v12333_v28 }
 0x65c   : > { %v7194_v18 = vpop.eup %7193  ;;  %v5619_v57 = vsel %vm5360_vm14, %v11712_v43, 0.0 }
 0x65d   : > { %v7196_v29 = vpop.eup %7195 }
 0x65f   : > { %5605 = vadd.xlane.f32.xlu0 %v5604_v60  ;;  %v5690_v60 = vmul.f32 %v7194_v18, %v11509_v61  ;;  %v11729_v61 = vmul.f32 %v10864_v0, %v5321_v2 }
 0x662   : > { %v6804_v46 = vpop.permute.xlu1 %6803  ;;  %5602 = vadd.xlane.f32.xlu1 %v5601_v63  ;;  %v11720_v63 = vpop.eup %7197 }
 0x663   : > { %v6806_v13 = vunpack.i.h.bf16 %v6804_v46  ;;  %v6805_v39 = vunpack.i.l.bf16 %v6804_v46  ;;  %v5687_v46 = vmul.f32 %v7196_v29, %v11517_v19  ;;  %v5610_v53 = vsel %vm5360_vm14, %v11720_v63, 0.0 }
 0x664   : > { %v5451_v19 = vsel %vm5360_vm14, %v11729_v61, -inf }
 0x665   : > { %5741 = vmatpush.msrb.mxu2 %v6805_v39  ;;  %5449 = vmax.xlane.f32.xlu2 %v5448_v14  ;;  %v6837_v39 = vpack.i.bf16 %v12371_v36, %v12308_v35  ;;  %v6852_v14 = vpack.i.bf16 %v12385_v38, %v12407_v5  ;;  %v5475_v35 = vsub.f32 %v11441_v62, %v11551_v55 }
 0x666   : > { %5889 = vmatpush.msra.mxu3 %v6806_v13  ;;  %v6862_v13 = vpack.i.bf16 %v12426_v49, %v12388_v1  ;;  %v5481_v62 = vsub.f32 %v11481_v11, %v11577_v59 }
 0x667   : > { %5742 = vmatpush.msrb.mxu2 %v6810_v12  ;;  %5446 = vmax.xlane.f32.xlu0 %v5445_v58  ;;  %v5525_v58 = vmul.f32 1.442695, %v5475_v35 }
 0x668   : > { %5890 = vmatpush.msra.mxu3 %v6811_v40  ;;  %6715 = vmatmul.msk.f32.vlgmr.msrb.gmra.mxu2 %vm5360_vm14, %v5681_v31  ;;  %v12452_v40 = vld [vmem:[#allocation35_spill] sm:$0xff] }
 0x669   : > { %5852 = vmatpush.msra.mxu2 %v6820_v41  ;;  %6723 = vmatmul.msk.f32.vlgmr.msra.gmra.mxu3 %vm5360_vm14, %v5689_v54  ;;  %v6857_v31 = vpack.i.bf16 %v12452_v40, %v12451_v3 }
 0x66a   : > { %6000 = vmatpush.msrb.mxu3 %v6821_v21 }
 0x66b   : > { %5853 = vmatpush.msra.mxu2 %v6825_v26 }
 0x66c   : > { %6001 = vmatpush.msrb.mxu3 %v6826_v37 }
 0x66f   : > { %5620 = vadd.xlane.f32.xlu0 %v5619_v57 }
 0x670   : > { %6716 = vmatmul.msk.f32.gmra.mxu2 %vm5360_vm14, %v5682_v44 }
 0x671   : > { %6724 = vmatmul.msk.f32.gmra.mxu3 %vm5360_vm14, %v5690_v60 }
 0x677   : > { %5611 = vadd.xlane.f32.xlu0 %v5610_v53 }
 0x678   : > { %6721 = vmatmul.msk.f32.vlgmr.msra.gmra.mxu2 %vm5360_vm14, %v5687_v46  ;;  %v5324_v46 = vpop.f32.mrf.mxu1 }
 0x67b   : > { %6833 = vrot.lane.b32.xlu1 %v6832_v33, %s7282_s20 }
 0x67d   : > { %6863 = vrot.lane.b32.xlu2 %v6862_v13, %s7282_s20 }
 0x67f   : > { %5452 = vmax.xlane.f32.xlu0 %v5451_v19 }
 0x683   : > { %6838 = vrot.lane.b32.xlu1 %v6837_v39, %s7282_s20  ;;  %v5615_v39 = vpop.xlane.xlu0 %5614 }
 0x687   : > { %v11740_v28 = vpop.xlane.xlu2 %5590 }
 0x68d   : > { %v5432_v9 = vpop.xlane.xlu1 %5431 }
 0x68e   : > { %v5480_v38 = vsub.f32 %v11592_v50, %v5432_v9 }
 0x68f   : > { %v11742_v27 = vpop.xlane.xlu2 %5593 }
 0x690   : > { %v5535_v21 = vmul.f32 1.442695, %v5480_v38 }
 0x693   : > { %6853 = vrot.lane.b32.xlu0 %v6852_v14, %s7282_s20 }
 0x695   : > { %v5438_v1 = vpop.xlane.xlu1 %5437 }
 0x696   : > { %v5482_v44 = vsub.f32 %v11605_v48, %v5438_v1 }
 0x697   : > { %v6844_v49 = vpop.permute.xlu2 %6843 }
 0x698   : > { %v6845_v12 = vunpack.i.l.bf16 %v6844_v49  ;;  %v6846_v10 = vunpack.i.h.bf16 %v6844_v49  ;;  %v5539_v13 = vmul.f32 1.442695, %v5482_v44 }
 0x69a   : > { %6037 = vmatpush.msra.mxu1 %v6845_v12 }
 0x69b   : > { %6858 = vrot.lane.b32.xlu0 %v6857_v31, %s7282_s20 }
 0x69c   : > { %6038 = vmatpush.msra.mxu1 %v6846_v10 }
 0x69d   : > { %v5597_v36 = vpop.xlane.xlu1 %5596 }
 0x69e   : > { %7199 = vrcp.f32 %v5597_v36 }
 0x69f   : > { %7201 = vpow2.f32 %v5525_v58  ;;  %v11793_v31 = vpop.permute.xlu2 %6848 }
 0x6a4   : > { %v7200_v5 = vpop.eup %7199 }
 0x6a5   : > { %v5695_v54 = vmul.f32 %v7200_v5, %v11612_v15  ;;  %v5585_v41 = vpop.xlane.xlu1 %5584  ;;  %v11755_v26 = vpop.eup %7201  ;;  %v5537_v15 = vmul.f32 1.442695, %v5481_v62 }
 0x6a6   : > { %7203 = vrcp.f32 %v5585_v41  ;;  %v5607_v56 = vsel %vm5360_vm14, %v11755_v26, 0.0 }
 0x6a7   : > { %6729 = vmatmul.msk.f32.vlgmr.msrb.gmra.mxu3 %vm5360_vm14, %v5695_v54  ;;  %7205 = vpow2.f32 %v5535_v21 }
 0x6ac   : > { %v7204_v55 = vpop.eup %7203 }
 0x6ad   : > { %v5691_v50 = vmul.f32 %v7204_v55, %v11622_v32  ;;  %v5576_v25 = vpop.xlane.xlu1 %5575  ;;  %5608 = vadd.xlane.f32.xlu1 %v5607_v56  ;;  %v11763_v37 = vpop.eup %7205 }
 0x6ae   : > { %7207 = vrcp.f32 %v5576_v25  ;;  %v5622_v11 = vsel %vm5360_vm14, %v11763_v37, 0.0 }
 0x6af   : > { %6725 = vmatmul.msk.f32.vlgmr.msrb.gmra.mxu1 %vm5360_vm14, %v5691_v50  ;;  %7209 = vpow2.f32 %v5537_v15 }
 0x6b4   : > { %v7208_v18 = vpop.eup %7207 }
 0x6b5   : > { %v5600_v59 = vpop.xlane.xlu1 %5599  ;;  %5623 = vadd.xlane.f32.xlu1 %v5622_v11  ;;  %v5688_v57 = vmul.f32 %v7208_v18, %v11631_v22  ;;  %v11769_v32 = vpop.eup %7209  ;;  %v11778_v22 = vmul.f32 %v10864_v0, %v5324_v46 }
 0x6b6   : > { %7211 = vrcp.f32 %v5600_v59  ;;  %v5625_v29 = vsel %vm5360_vm14, %v11769_v32, 0.0 }
 0x6b7   : > { %6722 = vmatmul.msk.f32.gmra.mxu2 %vm5360_vm14, %v5688_v57  ;;  %v5454_v48 = vsel %vm5360_vm14, %v11778_v22, -inf }
 0x6bc   : > { %v7212_v60 = vpop.eup %7211 }
 0x6bd   : > { %v5441_v53 = vpop.xlane.xlu1 %5440  ;;  %5626 = vadd.xlane.f32.xlu1 %v5625_v29  ;;  %v5696_v2 = vmul.f32 %v7212_v60, %v11640_v34 }
 0x6be   : > { %v5483_v33 = vsub.f32 %v11651_v42, %v5441_v53 }
 0x6bf   : > { %6730 = vmatmul.msk.f32.gmra.mxu3 %vm5360_vm14, %v5696_v2 }
 0x6c0   : > { %v5541_v19 = vmul.f32 1.442695, %v5483_v33 }
 0x6c2   : > { %7213 = vpow2.f32 %v5541_v19 }
 0x6c3   : > { %7215 = vpow2.f32 %v5539_v13 }
 0x6c5   : > { %v5588_v9 = vpop.xlane.xlu1 %5587  ;;  %5455 = vmax.xlane.f32.xlu1 %v5454_v48 }
 0x6c6   : > { %7217 = vrcp.f32 %v5588_v9 }
 0x6c8   : > { %v11782_v14 = vpop.eup %7213 }
 0x6c9   : > { %v11784_v34 = vpop.eup %7215  ;;  %v5631_v42 = vsel %vm5360_vm14, %v11782_v14, 0.0 }
 0x6ca   : > { %5632 = vadd.xlane.f32.xlu0 %v5631_v42  ;;  %v5618_v0 = vpop.xlane.xlu0 %5617  ;;  %v5628_v49 = vsel %vm5360_vm14, %v11784_v34, 0.0 }
 0x6cc   : > { %v7218_v1 = vpop.eup %7217 }
 0x6cd   : > { %v5444_v12 = vpop.xlane.xlu1 %5443  ;;  %5629 = vadd.xlane.f32.xlu1 %v5628_v49  ;;  %v5692_v3 = vmul.f32 %v7218_v1, %v11663_v20 }
 0x6ce   : > { %v5484_v40 = vsub.f32 %v11672_v6, %v5444_v12 }
 0x6cf   : > { %6726 = vmatmul.msk.f32.gmra.mxu1 %vm5360_vm14, %v5692_v3 }
 0x6d0   : > { %v5543_v10 = vmul.f32 1.442695, %v5484_v40 }
 0x6d2   : > { %7219 = vpow2.f32 %v5543_v10  ;;  %v5606_v35 = vpop.xlane.xlu0 %5605 }
 0x6d5   : > { %v5603_v36 = vpop.xlane.xlu1 %5602 }
 0x6d6   : > { %7221 = vrcp.f32 %v5603_v36 }
 0x6d7   : > { %7223 = vrcp.f32 %v5606_v35 }
 0x6d8   : > { %v11795_v58 = vpop.eup %7219  ;;  %v5450_v38 = vpop.xlane.xlu2 %5449 }
 0x6d9   : > { %v5486_v5 = vsub.f32 %v11689_v23, %v5450_v38  ;;  %v5634_v54 = vsel %vm5360_vm14, %v11795_v58, 0.0 }
 0x6da   : > { %5635 = vadd.xlane.f32.xlu1 %v5634_v54  ;;  %v5447_v20 = vpop.xlane.xlu0 %5446 }
 0x6db   : > { %v5547_v6 = vmul.f32 1.442695, %v5486_v5  ;;  %v5485_v41 = vsub.f32 %v11694_v4, %v5447_v20 }
 0x6dc   : > { %v7222_v21 = vpop.eup %7221 }
 0x6dd   : > { %v5697_v62 = vmul.f32 %v7222_v21, %v11683_v47  ;;  %7225 = vpow2.f32 %v5547_v6  ;;  %v5545_v55 = vmul.f32 1.442695, %v5485_v41  ;;  %v7224_v56 = vpop.eup %7223 }
 0x6de   : > { %v5698_v4 = vmul.f32 %v7224_v56, %v11678_v17 }
 0x6df   : > { %7227 = vpow2.f32 %v5545_v55  ;;  %6731 = vmatmul.msk.f32.vlgmr.msra.gmra.mxu1 %vm5360_vm14, %v5697_v62 }
 0x6e0   : > { %7229 = vrcp.f32 %v5615_v39  ;;  %v6864_v46 = vpop.permute.xlu2 %6863  ;;  %v6850_v39 = vunpack.i.l.bf16 %v11793_v31 }
 0x6e1   : > { %7231 = vrcp.f32 %v11740_v28  ;;  %v6865_v48 = vunpack.i.l.bf16 %v6864_v46 }
 0x6e2   : > { %v5621_v50 = vpop.xlane.xlu0 %5620  ;;  %7233 = vrcp.f32 %v11742_v27  ;;  %v6866_v27 = vunpack.i.h.bf16 %v6864_v46 }
 0x6e3   : > { %v11803_v23 = vpop.eup %7225  ;;  %7235 = vrcp.f32 %v5618_v0  ;;  %v6867_v0 = vpack.i.bf16 %v12433_v51, %v12417_v45 }
 0x6e4   : > { %v5640_v25 = vsel %vm5360_vm14, %v11803_v23, 0.0 }
 0x6e5   : > { %v11807_v15 = vpop.eup %7227  ;;  %5641 = vadd.xlane.f32.xlu2 %v5640_v25 }
 0x6e6   : > { %v5637_v47 = vsel %vm5360_vm14, %v11807_v15, 0.0  ;;  %v7230_v60 = vpop.eup %7229 }
 0x6e7   : > { %5638 = vadd.xlane.f32.xlu1 %v5637_v47  ;;  %6732 = vmatmul.msk.f32.gmra.mxu1 %vm5360_vm14, %v5698_v4  ;;  %v7232_v29 = vpop.eup %7231  ;;  %v5701_v19 = vmul.f32 %v7230_v60, %v11570_v16 }
 0x6e8   : > { %v5693_v28 = vmul.f32 %v7232_v29, %v11587_v30  ;;  %v7234_v9 = vpop.eup %7233 }
 0x6e9   : > { %v7236_v42 = vpop.eup %7235  ;;  %v5694_v1 = vmul.f32 %v7234_v9, %v11594_v8 }
 0x6ea   : > { %v11813_v18 = vpop.xlane.xlu0 %5611  ;;  %v5702_v49 = vmul.f32 %v7236_v42, %v11669_v52 }
 0x6ed   : > { %v6834_v11 = vpop.permute.xlu1 %6833 }
 0x6ee   : > { %v6836_v59 = vunpack.i.h.bf16 %v6834_v11  ;;  %v6835_v57 = vunpack.i.l.bf16 %v6834_v11 }
 0x6f0   : > { %5963 = vmatpush.msrb.mxu2 %v6835_v57  ;;  %6111 = vmatpush.msra.mxu3 %v6836_v59  ;;  %v5818_v57 = vpop.f32.mrf.mxu1 }
 0x6f2   : > { %v5453_v44 = vpop.xlane.xlu0 %5452 }
 0x6f3   : > { %v5487_v17 = vsub.f32 %v11729_v61, %v5453_v44  ;;  %v6851_v61 = vunpack.i.h.bf16 %v11793_v31  ;;  %v6872_v31 = vpack.i.bf16 %v12441_v24, %v12436_v7 }
 0x6f5   : > { %v5549_v53 = vmul.f32 1.442695, %v5487_v17  ;;  %v6839_v2 = vpop.permute.xlu1 %6838 }
 0x6f6   : > { %v6841_v33 = vunpack.i.h.bf16 %v6839_v2  ;;  %v6840_v13 = vunpack.i.l.bf16 %v6839_v2 }
 0x6f7   : > { %7237 = vpow2.f32 %v5549_v53 }
 0x6f8   : > { %5964 = vmatpush.msrb.mxu2 %v6840_v13  ;;  %6112 = vmatpush.msra.mxu3 %v6841_v33  ;;  %7239 = vrcp.f32 %v5621_v50 }
 0x6f9   : > { %6727 = vmatmul.msk.f32.vlgmr.msrb.gmra.mxu2 %vm5360_vm14, %v5693_v28  ;;  %6735 = vmatmul.msk.f32.vlgmr.msra.gmra.mxu3 %vm5360_vm14, %v5701_v19 }
 0x6fa   : > { %6074 = vmatpush.msra.mxu2 %v6850_v39  ;;  %6222 = vmatpush.msrb.mxu3 %v6865_v48 }
 0x6fc   : > { %6075 = vmatpush.msra.mxu2 %v6851_v61  ;;  %6223 = vmatpush.msrb.mxu3 %v6866_v27  ;;  %v5744_v61 = vpop.f32.mrf.mxu2 }
 0x6fd   : > { %v11824_v16 = vpop.eup %7237 }
 0x6fe   : > { %v5643_v30 = vsel %vm5360_vm14, %v11824_v16, 0.0  ;;  %v7240_v3 = vpop.eup %7239 }
 0x6ff   : > { %5644 = vadd.xlane.f32.xlu0 %v5643_v30  ;;  %v5703_v45 = vmul.f32 %v7240_v3, %v11712_v43 }
 0x700   : > { %6868 = vrot.lane.b32.xlu1 %v6867_v0, %s7282_s20 }
 0x701   : > { %6728 = vmatmul.msk.f32.gmra.mxu2 %vm5360_vm14, %v5694_v1  ;;  %6736 = vmatmul.msk.f32.gmra.mxu3 %vm5360_vm14, %v5702_v49 }
 0x704   : > { %v5747_v3 = vpop.f32.mrf.mxu2 }
 0x705   : > { %v6854_v12 = vpop.permute.xlu0 %6853 }
 0x706   : > { %v6855_v40 = vunpack.i.l.bf16 %v6854_v12  ;;  %v6856_v10 = vunpack.i.h.bf16 %v6854_v12 }
 0x708   : > { %6873 = vrot.lane.b32.xlu1 %v6872_v31, %s7282_s20  ;;  %6148 = vmatpush.msrb.mxu1 %v6855_v40 }
 0x70a   : > { %6149 = vmatpush.msrb.mxu1 %v6856_v10 }
 0x70b   : > { %6737 = vmatmul.msk.f32.vlgmr.msrb.gmra.mxu1 %vm5360_vm14, %v5703_v45 }
 0x70c   : > { %v5855_v10 = vpop.f32.mrf.mxu2 }
 0x70d   : > { %v6859_v51 = vpop.permute.xlu0 %6858 }
 0x70e   : > { %v6860_v8 = vunpack.i.l.bf16 %v6859_v51  ;;  %v6861_v52 = vunpack.i.h.bf16 %v6859_v51 }
 0x710   : > { %6185 = vmatpush.msrb.mxu2 %v6860_v8 }
 0x712   : > { %6186 = vmatpush.msrb.mxu2 %v6861_v52 }
 0x720   : > { %v5609_v35 = vpop.xlane.xlu1 %5608 }
 0x721   : > { %7241 = vrcp.f32 %v5609_v35 }
 0x722   : > { %7243 = vrcp.f32 %v11813_v18 }
 0x727   : > { %v7242_v36 = vpop.eup %7241 }
 0x728   : > { %v5699_v7 = vmul.f32 %v7242_v36, %v11755_v26  ;;  %v5624_v24 = vpop.xlane.xlu1 %5623  ;;  %v7244_v43 = vpop.eup %7243 }
 0x729   : > { %7245 = vrcp.f32 %v5624_v24  ;;  %v5700_v54 = vmul.f32 %v7244_v43, %v11720_v63 }
 0x72a   : > { %6733 = vmatmul.msk.f32.vlgmr.msra.gmra.mxu2 %vm5360_vm14, %v5699_v7 }
 0x72f   : > { %v7246_v38 = vpop.eup %7245 }
 0x730   : > { %v5627_v5 = vpop.xlane.xlu1 %5626  ;;  %v5704_v20 = vmul.f32 %v7246_v38, %v11763_v37 }
 0x731   : > { %7247 = vrcp.f32 %v5627_v5 }
 0x732   : > { %6734 = vmatmul.msk.f32.gmra.mxu2 %vm5360_vm14, %v5700_v54  ;;  %6738 = vmatmul.msk.f32.gmra.mxu1 %vm5360_vm14, %v5704_v20 }
 0x737   : > { %v7248_v6 = vpop.eup %7247 }
 0x738   : > { %v5705_v41 = vmul.f32 %v7248_v6, %v11769_v32  ;;  %v5456_v26 = vpop.xlane.xlu1 %5455 }
 0x739   : > { %v5488_v21 = vsub.f32 %v11778_v22, %v5456_v26  ;;  %v5781_v22 = vpop.f32.mrf.mxu3 }
 0x73a   : > { %6739 = vmatmul.msk.f32.vlgmr.msrb.gmra.mxu2 %vm5360_vm14, %v5705_v41  ;;  %v11921_v41 = vld [vmem:[%s12044_s9] ss:$0 sm:$0xff] }
 0x73b   : > { %v5551_v62 = vmul.f32 1.442695, %v5488_v21 }
 0x73d   : > { %7249 = vpow2.f32 %v5551_v62  ;;  %v5633_v55 = vpop.xlane.xlu0 %5632 }
 0x73e   : > { %7251 = vrcp.f32 %v5633_v55 }
 0x740   : > { %v5630_v63 = vpop.xlane.xlu1 %5629 }
 0x741   : > { %7253 = vrcp.f32 %v5630_v63  ;;  %v5784_v18 = vpop.f32.mrf.mxu3 }
 0x743   : > { %v11850_v37 = vpop.eup %7249 }
 0x744   : > { %v7252_v56 = vpop.eup %7251  ;;  %v5646_v50 = vsel %vm5360_vm14, %v11850_v37, 0.0 }
 0x745   : > { %v5707_v25 = vmul.f32 %v7252_v56, %v11782_v14  ;;  %5647 = vadd.xlane.f32.xlu0 %v5646_v50  ;;  %v6305_v14 = vld [vmem:[%s12043_s8] sm:$0xf] }
 0x746   : > { %6785 = vmatpush.msk.msra.mxu3 %vm552_vm0, %v6305_v14 }
 0x747   : > { %v7254_v32 = vpop.eup %7253  ;;  %6741 = vmatmul.msk.f32.vlgmr.msrb.gmra.mxu3 %vm5360_vm14, %v5707_v25 }
 0x748   : > { %v5706_v4 = vmul.f32 %v7254_v32, %v11784_v34  ;;  %v5821_v34 = vpop.f32.mrf.mxu1 }
 0x749   : > { %v11860_v44 = vpop.f32.mrf.mxu3 }
 0x74a   : > { %6740 = vmatmul.msk.f32.gmra.mxu2 %vm5360_vm14, %v5706_v4 }
 0x74d   : > { %v5636_v47 = vpop.xlane.xlu1 %5635 }
 0x74e   : > { %7255 = vrcp.f32 %v5636_v47 }
 0x750   : > { %v11868_v17 = vpop.f32.mrf.mxu1 }
 0x751   : > { %v11866_v60 = vpop.f32.mrf.mxu3 }
 0x754   : > { %v7256_v11 = vpop.eup %7255 }
 0x755   : > { %v5708_v59 = vmul.f32 %v7256_v11, %v11795_v58 }
 0x757   : > { %6742 = vmatmul.msk.f32.gmra.mxu3 %vm5360_vm14, %v5708_v59 }
 0x758   : > { %v11872_v58 = vpop.f32.mrf.mxu1  ;;  %v5642_v53 = vpop.xlane.xlu2 %5641 }
 0x759   : > { %v11870_v46 = vpop.f32.mrf.mxu3 }
 0x75a   : > { %v5639_v29 = vpop.xlane.xlu1 %5638 }
 0x75b   : > { %7257 = vrcp.f32 %v5639_v29 }
 0x75c   : > { %7259 = vrcp.f32 %v5642_v53 }
 0x760   : > { %v6040_v9 = vpop.f32.mrf.mxu1 }
 0x761   : > { %v7258_v13 = vpop.eup %7257  ;;  %v11874_v28 = vpop.f32.mrf.mxu3 }
 0x762   : > { %v5709_v48 = vmul.f32 %v7258_v13, %v11807_v15  ;;  %v7260_v27 = vpop.eup %7259 }
 0x763   : > { %v5710_v15 = vmul.f32 %v7260_v27, %v11803_v23  ;;  %v5858_v23 = vpop.f32.mrf.mxu2 }
 0x768   : > { %v6043_v40 = vpop.f32.mrf.mxu1 }
 0x772   : > { %v6869_v2 = vpop.permute.xlu1 %6868  ;;  %v5645_v33 = vpop.xlane.xlu0 %5644 }
 0x773   : > { %v6870_v19 = vunpack.i.l.bf16 %v6869_v2  ;;  %v6871_v39 = vunpack.i.h.bf16 %v6869_v2  ;;  %7261 = vrcp.f32 %v5645_v33 }
 0x775   : > { %6259 = vmatpush.msra.mxu1 %v6870_v19 }
 0x777   : > { %6260 = vmatpush.msra.mxu1 %v6871_v39 }
 0x778   : > { %6743 = vmatmul.msk.f32.vlgmr.msra.gmra.mxu1 %vm5360_vm14, %v5709_v48 }
 0x779   : > { %6747 = vmatpush.msk.msrb.mxu1 %vm552_vm0, %v6305_v14  ;;  %v7262_v30 = vpop.eup %7261 }
 0x77a   : > { %v6874_v42 = vpop.permute.xlu1 %6873  ;;  %v5711_v12 = vmul.f32 %v7262_v30, %v11824_v16 }
 0x77b   : > { %v6875_v0 = vunpack.i.l.bf16 %v6874_v42  ;;  %v6876_v49 = vunpack.i.h.bf16 %v6874_v42 }
 0x77c   : > { %v6114_v1 = vpop.f32.mrf.mxu3  ;;  %v5966_v16 = vpop.f32.mrf.mxu2 }
 0x77d   : > { %6296 = vmatpush.msra.mxu2 %v6875_v0  ;;  %6768 = vmatmul.msk.f32.vlgmr.msra.gmra.mxu3 %vm455_vm1, %v6114_v1 }
 0x77f   : > { %6297 = vmatpush.msra.mxu2 %v6876_v49 }
 0x780   : > { %6744 = vmatmul.msk.f32.gmra.mxu1 %vm5360_vm14, %v5710_v15  ;;  %6745 = vmatmul.msk.f32.vlgmr.msra.gmra.mxu2 %vm5360_vm14, %v5711_v12 }
 0x781   : > { %6784 = vmatpush.msk.msrb.mxu2 %vm552_vm0, %v6305_v14 }
 0x784   : > { %v6117_v31 = vpop.f32.mrf.mxu3  ;;  %v5969_v51 = vpop.f32.mrf.mxu2 }
 0x785   : > { %6769 = vmatmul.msk.f32.gmra.mxu3 %vm455_vm1, %v6117_v31 }
 0x788   : > { %6748 = vmatmul.msk.f32.vlgmr.msrb.gmra.mxu1 %vm455_vm1, %v5744_v61  ;;  %v6151_v45 = vpop.f32.mrf.mxu1 }
 0x78d   : > { %6770 = vmatmul.msk.f32.gmra.mxu3 %vm455_vm1, %v6151_v45 }
 0x790   : > { %6749 = vmatmul.msk.f32.gmra.mxu1 %vm455_vm1, %v5747_v3 }
 0x798   : > { %6750 = vmatmul.msk.f32.gmra.mxu1 %vm455_vm1, %v5781_v22 }
 0x7a0   : > { %6751 = vmatmul.msk.f32.gmra.mxu1 %vm455_vm1, %v5784_v18 }
 0x7a8   : > { %6752 = vmatmul.msk.f32.gmra.mxu1 %vm455_vm1, %v5818_v57 }
 0x7ad   : > { %v6077_v8 = vpop.f32.mrf.mxu2 }
 0x7af   : > { %v6154_v52 = vpop.f32.mrf.mxu1 }
 0x7b0   : > { %6753 = vmatmul.msk.f32.gmra.mxu1 %vm455_vm1, %v5821_v34  ;;  %6771 = vmatmul.msk.f32.gmra.mxu3 %vm455_vm1, %v6154_v52 }
 0x7b5   : > { %v6080_v35 = vpop.f32.mrf.mxu2 }
 0x7b8   : > { %v5648_v36 = vpop.xlane.xlu0 %5647  ;;  %6754 = vmatmul.msk.f32.gmra.mxu1 %vm455_vm1, %v5855_v10 }
 0x7b9   : > { %7263 = vrcp.f32 %v5648_v36 }
 0x7bd   : > { %v6188_v7 = vpop.f32.mrf.mxu2 }
 0x7be   : > { %6772 = vmatmul.msk.f32.gmra.mxu3 %vm455_vm1, %v6188_v7 }
 0x7bf   : > { %v7264_v24 = vpop.eup %7263 }
 0x7c0   : > { %6755 = vmatmul.msk.f32.gmra.mxu1 %vm455_vm1, %v5858_v23  ;;  %v5712_v43 = vmul.f32 %v7264_v24, %v11850_v37 }
 0x7c2   : > { %6746 = vmatmul.msk.f32.gmra.mxu2 %vm5360_vm14, %v5712_v43 }
 0x7c8   : > { %6756 = vmatmul.msk.f32.gmra.mxu1 %vm455_vm1, %v11860_v44 }
 0x7ca   : > { %6758 = vmatmul.msk.f32.vlgmr.msrb.gmra.mxu2 %vm455_vm1, %v11868_v17  ;;  %v6225_v5 = vpop.f32.mrf.mxu3 }
 0x7cd   : > { %v6191_v38 = vpop.f32.mrf.mxu2 }
 0x7ce   : > { %6773 = vmatmul.msk.f32.gmra.mxu3 %vm455_vm1, %v6191_v38 }
 0x7d0   : > { %6757 = vmatmul.msk.f32.gmra.mxu1 %vm455_vm1, %v11866_v60 }
 0x7d2   : > { %6759 = vmatmul.msk.f32.gmra.mxu2 %vm455_vm1, %v11872_v58 }
 0x7d6   : > { %6774 = vmatmul.msk.f32.gmra.mxu3 %vm455_vm1, %v6225_v5 }
 0x7da   : > { %6760 = vmatmul.msk.f32.gmra.mxu2 %vm455_vm1, %v5966_v16  ;;  %v6228_v54 = vpop.f32.mrf.mxu3 }
 0x7de   : > { %6775 = vmatmul.msk.f32.gmra.mxu3 %vm455_vm1, %v6228_v54 }
 0x7e2   : > { %6761 = vmatmul.msk.f32.gmra.mxu2 %vm455_vm1, %v5969_v51 }
 0x7ea   : > { %6762 = vmatmul.msk.f32.gmra.mxu2 %vm455_vm1, %v11870_v46 }
 0x7f2   : > { %6763 = vmatmul.msk.f32.gmra.mxu2 %vm455_vm1, %v11874_v28 }
 0x7f5   : > { %v6262_v20 = vpop.f32.mrf.mxu1 }
 0x7f6   : > { %6776 = vmatmul.msk.f32.gmra.mxu3 %vm455_vm1, %v6262_v20 }
 0x7fa   : > { %6764 = vmatmul.msk.f32.gmra.mxu2 %vm455_vm1, %v6040_v9 }
 0x7fd   : > { %v6265_v6 = vpop.f32.mrf.mxu1 }
 0x7fe   : > { %6777 = vmatmul.msk.f32.gmra.mxu3 %vm455_vm1, %v6265_v6 }
 0x800   : > { %v6486_v26 = vpop.f32.mrf.mxu3 }
 0x801   : > { %v6487_v21 = vadd.f32 %v11921_v41, %v6486_v26 }
 0x802   : > { %6765 = vmatmul.msk.f32.gmra.mxu2 %vm455_vm1, %v6043_v40 }
 0x803   : > { %6542 = vst.msk [vmem:[%s11929_s28 + $0xa0] sm:$0xff] %vm455_vm1, %v6487_v21  ;;  %v6299_v62 = vpop.f32.mrf.mxu2 }
 0x805   : > { %v6426_v55 = vpop.f32.mrf.mxu1 }
 0x806   : > { %v6427_v63 = vadd.f32 %v11921_v41, %v6426_v55  ;;  %6778 = vmatmul.msk.f32.gmra.mxu3 %vm455_vm1, %v6299_v62 }
 0x808   : > { %6522 = vst.msk [vmem:[%s11929_s28] sm:$0xff] %vm455_vm1, %v6427_v63  ;;  %v6489_v37 = vpop.f32.mrf.mxu3 }
 0x809   : > { %v6490_v56 = vadd.f32 %v11921_v41, %v6489_v37 }
 0x80a   : > { %6766 = vmatmul.msk.f32.gmra.mxu2 %vm455_vm1, %v6077_v8 }
 0x80b   : > { %6543 = vst.msk [vmem:[%s11929_s28 + $0xa8] sm:$0xff] %vm455_vm1, %v6490_v56 }
 0x80d   : > { %v6429_v50 = vpop.f32.mrf.mxu1 }
 0x80e   : > { %v6430_v25 = vadd.f32 %v11921_v41, %v6429_v50 }
 0x810   : > { %6523 = vst.msk [vmem:[%s11929_s28 + $0x8] sm:$0xff] %vm455_vm1, %v6430_v25  ;;  %v6492_v32 = vpop.f32.mrf.mxu3 }
 0x811   : > { %v6493_v22 = vadd.f32 %v11921_v41, %v6492_v32 }
 0x812   : > { %6767 = vmatmul.msk.f32.gmra.mxu2 %vm455_vm1, %v6080_v35 }
 0x813   : > { %6544 = vst.msk [vmem:[%s11929_s28 + $0xb0] sm:$0xff] %vm455_vm1, %v6493_v22 }
 0x815   : > { %v6432_v4 = vpop.f32.mrf.mxu1 }
 0x816   : > { %v6433_v47 = vadd.f32 %v11921_v41, %v6432_v4 }
 0x818   : > { %6524 = vst.msk [vmem:[%s11929_s28 + $0x10] sm:$0xff] %vm455_vm1, %v6433_v47 }
 0x81d   : > { %v6435_v18 = vpop.f32.mrf.mxu1 }
 0x81e   : > { %v6436_v11 = vadd.f32 %v11921_v41, %v6435_v18 }
 0x820   : > { %6525 = vst.msk [vmem:[%s11929_s28 + $0x18] sm:$0xff] %vm455_vm1, %v6436_v11 }
 0x825   : > { %v6438_v59 = vpop.f32.mrf.mxu1 }
 0x826   : > { %v6439_v57 = vadd.f32 %v11921_v41, %v6438_v59 }
 0x828   : > { %6526 = vst.msk [vmem:[%s11929_s28 + $0x20] sm:$0xff] %vm455_vm1, %v6439_v57 }
 0x82d   : > { %v6441_v44 = vpop.f32.mrf.mxu1 }
 0x82e   : > { %v6442_v14 = vadd.f32 %v11921_v41, %v6441_v44 }
 0x830   : > { %6527 = vst.msk [vmem:[%s11929_s28 + $0x28] sm:$0xff] %vm455_vm1, %v6442_v14 }
 0x833   : > { %v6495_v34 = vpop.f32.mrf.mxu3 }
 0x834   : > { %v6496_v60 = vadd.f32 %v11921_v41, %v6495_v34 }
 0x835   : > { %v6444_v17 = vpop.f32.mrf.mxu1 }
 0x836   : > { %6545 = vst.msk [vmem:[%s11929_s28 + $0xb8] sm:$0xff] %vm455_vm1, %v6496_v60  ;;  %v6445_v29 = vadd.f32 %v11921_v41, %v6444_v17 }
 0x838   : > { %6528 = vst.msk [vmem:[%s11929_s28 + $0x30] sm:$0xff] %vm455_vm1, %v6445_v29 }
 0x83d   : > { %v6447_v46 = vpop.f32.mrf.mxu1 }
 0x83e   : > { %v6448_v58 = vadd.f32 %v11921_v41, %v6447_v46 }
 0x840   : > { %6529 = vst.msk [vmem:[%s11929_s28 + $0x38] sm:$0xff] %vm455_vm1, %v6448_v58 }
 0x841   : > { %v6498_v53 = vpop.f32.mrf.mxu3 }
 0x842   : > { %v6499_v2 = vadd.f32 %v11921_v41, %v6498_v53 }
 0x844   : > { %6546 = vst.msk [vmem:[%s11929_s28 + $0xc0] sm:$0xff] %vm455_vm1, %v6499_v2 }
 0x845   : > { %v6302_v33 = vpop.f32.mrf.mxu2  ;;  %v6450_v13 = vpop.f32.mrf.mxu1 }
 0x846   : > { %v6451_v19 = vadd.f32 %v11921_v41, %v6450_v13  ;;  %6779 = vmatmul.msk.f32.gmra.mxu3 %vm455_vm1, %v6302_v33 }
 0x848   : > { %6530 = vst.msk [vmem:[%s11929_s28 + $0x40] sm:$0xff] %vm455_vm1, %v6451_v19 }
 0x84d   : > { %v6453_v28 = vpop.f32.mrf.mxu1  ;;  %v6456_v39 = vpop.f32.mrf.mxu2 }
 0x84e   : > { %v6454_v48 = vadd.f32 %v11921_v41, %v6453_v28  ;;  %v6457_v61 = vadd.f32 %v11921_v41, %v6456_v39 }
 0x850   : > { %6531 = vst.msk [vmem:[%s11929_s28 + $0x48] sm:$0xff] %vm455_vm1, %v6454_v48 }
 0x851   : > { %6532 = vst.msk [vmem:[%s11929_s28 + $0x50] sm:$0xff] %vm455_vm1, %v6457_v61  ;;  %v6501_v27 = vpop.f32.mrf.mxu3 }
 0x852   : > { %v6502_v9 = vadd.f32 %v11921_v41, %v6501_v27 }
 0x854   : > { %6547 = vst.msk [vmem:[%s11929_s28 + $0xc8] sm:$0xff] %vm455_vm1, %v6502_v9 }
 0x855   : > { %v6459_v42 = vpop.f32.mrf.mxu2 }
 0x856   : > { %v6460_v30 = vadd.f32 %v11921_v41, %v6459_v42 }
 0x858   : > { %6533 = vst.msk [vmem:[%s11929_s28 + $0x58] sm:$0xff] %vm455_vm1, %v6460_v30 }
 0x859   : > { %v6504_v0 = vpop.f32.mrf.mxu3 }
 0x85a   : > { %v6505_v1 = vadd.f32 %v11921_v41, %v6504_v0 }
 0x85c   : > { %6548 = vst.msk [vmem:[%s11929_s28 + $0xd0] sm:$0xff] %vm455_vm1, %v6505_v1 }
 0x85d   : > { %v6462_v49 = vpop.f32.mrf.mxu2 }
 0x85e   : > { %v6463_v12 = vadd.f32 %v11921_v41, %v6462_v49 }
 0x860   : > { %6534 = vst.msk [vmem:[%s11929_s28 + $0x60] sm:$0xff] %vm455_vm1, %v6463_v12 }
 0x861   : > { %v6507_v15 = vpop.f32.mrf.mxu3 }
 0x862   : > { %v6508_v3 = vadd.f32 %v11921_v41, %v6507_v15 }
 0x864   : > { %6549 = vst.msk [vmem:[%s11929_s28 + $0xd8] sm:$0xff] %vm455_vm1, %v6508_v3 }
 0x865   : > { %v6465_v40 = vpop.f32.mrf.mxu2 }
 0x866   : > { %v6466_v31 = vadd.f32 %v11921_v41, %v6465_v40 }
 0x868   : > { %6535 = vst.msk [vmem:[%s11929_s28 + $0x68] sm:$0xff] %vm455_vm1, %v6466_v31 }
 0x86d   : > { %v6468_v10 = vpop.f32.mrf.mxu2 }
 0x86e   : > { %v6469_v45 = vadd.f32 %v11921_v41, %v6468_v10 }
 0x870   : > { %6536 = vst.msk [vmem:[%s11929_s28 + $0x70] sm:$0xff] %vm455_vm1, %v6469_v45 }
 0x875   : > { %v6471_v23 = vpop.f32.mrf.mxu2 }
 0x876   : > { %v6472_v16 = vadd.f32 %v11921_v41, %v6471_v23 }
 0x878   : > { %6537 = vst.msk [vmem:[%s11929_s28 + $0x78] sm:$0xff] %vm455_vm1, %v6472_v16 }
 0x879   : > { %v6510_v51 = vpop.f32.mrf.mxu3 }
 0x87a   : > { %v6511_v8 = vadd.f32 %v11921_v41, %v6510_v51 }
 0x87c   : > { %6550 = vst.msk [vmem:[%s11929_s28 + $0xe0] sm:$0xff] %vm455_vm1, %v6511_v8 }
 0x87d   : > { %v6474_v52 = vpop.f32.mrf.mxu2 }
 0x87e   : > { %v6475_v35 = vadd.f32 %v11921_v41, %v6474_v52 }
 0x880   : > { %6538 = vst.msk [vmem:[%s11929_s28 + $0x80] sm:$0xff] %vm455_vm1, %v6475_v35 }
 0x881   : > { %v6513_v36 = vpop.f32.mrf.mxu3 }
 0x882   : > { %v6514_v7 = vadd.f32 %v11921_v41, %v6513_v36 }
 0x884   : > { %6551 = vst.msk [vmem:[%s11929_s28 + $0xe8] sm:$0xff] %vm455_vm1, %v6514_v7 }
 0x885   : > { %v6477_v24 = vpop.f32.mrf.mxu2 }
 0x886   : > { %v6478_v43 = vadd.f32 %v11921_v41, %v6477_v24 }
 0x888   : > { %6539 = vst.msk [vmem:[%s11929_s28 + $0x88] sm:$0xff] %vm455_vm1, %v6478_v43 }
 0x889   : > { %v6516_v38 = vpop.f32.mrf.mxu3 }
 0x88a   : > { %v6517_v5 = vadd.f32 %v11921_v41, %v6516_v38 }
 0x88c   : > { %6552 = vst.msk [vmem:[%s11929_s28 + $0xf0] sm:$0xff] %vm455_vm1, %v6517_v5 }
 0x88d   : > { %v6480_v54 = vpop.f32.mrf.mxu2 }
 0x88e   : > { %v6481_v20 = vadd.f32 %v11921_v41, %v6480_v54 }
 0x890   : > { %6540 = vst.msk [vmem:[%s11929_s28 + $0x90] sm:$0xff] %vm455_vm1, %v6481_v20 }
 0x895   : > { %v6483_v6 = vpop.f32.mrf.mxu2 }
 0x896   : > { %v6484_v26 = vadd.f32 %v11921_v41, %v6483_v6 }
 0x898   : > { %6541 = vst.msk [vmem:[%s11929_s28 + $0x98] sm:$0xff] %vm455_vm1, %v6484_v26 }
 0x8c9   : > { %v6519_v21 = vpop.f32.mrf.mxu3 }
 0x8ca   : > { %v6520_v62 = vadd.f32 %v11921_v41, %v6519_v21 }
 0x8cc   : > { %6553 = vst.msk [vmem:[%s11929_s28 + $0xf8] sm:$0xff] %vm455_vm1, %v6520_v62 }
 0x8cd PF: > { %s21_s15 = sadd.s32 1, %s7278_s15  }
 0x8ce   : > { %p18_p4 = scmp.ge.s32.totalorder %s21_s15, 4  }
 0x8d0   :  { %20 = sbr.rel (!%p18_p4) target bundleno = 2 (0x2), region = 92 }

</bundles_post_ra>
